<compile_context>
chip_gen: v7x
topology: tpu7x:2x2x1
jax: 0.10.0
libtpu: 0.0.40
codegen_flags: <defaults>
</compile_context>

<pallas_src>
import functools

import jax
import jax.numpy as jnp
from jax.experimental import pallas as pl
from jax.experimental.pallas import tpu as pltpu


def _col_attn_kernel(x_ref, wqkv_ref, bqkv_ref, wo_ref, bo_ref, out_ref,
                     *probs_refs, num_heads):
    probs_ref = probs_refs[0] if probs_refs else None
    bn, R, E = x_ref.shape
    H = num_heads
    dk = E // H

    x2 = x_ref[...].reshape(bn * R, E)

    # Fused Q/K/V projection: one [bn*R, E] x [E, 3E] MXU pass.
    qkv = jnp.dot(x2, wqkv_ref[...],
                  preferred_element_type=jnp.float32) + bqkv_ref[...]

    def heads(t):
        # [bn*R, E] -> [bn*H, R, dk]: merge (batch, head) into one batch dim so
        # the attention matmuls are plain single-batch-dim einsums.
        return t.reshape(bn, R, H, dk).transpose(0, 2, 1, 3).reshape(bn * H, R, dk)

    q = heads(qkv[:, :E])            # scaling already folded into W_q / b_q
    k = heads(qkv[:, E:2 * E])
    v = heads(qkv[:, 2 * E:])

    scores = jnp.einsum('brd,bsd->brs', q, k,
                        preferred_element_type=jnp.float32)       # [bn*H, R, R]
    scores = scores - jnp.max(scores, axis=-1, keepdims=True)
    e = jnp.exp(scores)
    # Exact reciprocal + multiply: moves the divide to the EUP slot.
    p = e * pl.reciprocal(jnp.sum(e, axis=-1, keepdims=True))

    if probs_ref is not None:
        probs_ref[...] = p.reshape(bn, H, R, R).astype(probs_ref.dtype)

    ctx = jnp.einsum('brs,bsd->brd', p, v,
                     preferred_element_type=jnp.float32)          # [bn*H, R, dk]
    ctx = ctx.reshape(bn, H, R, dk).transpose(0, 2, 1, 3).reshape(bn * R, E)

    out = jnp.dot(ctx, wo_ref[...],
                  preferred_element_type=jnp.float32) + bo_ref[...]
    out_ref[...] = out.reshape(bn, R, E).astype(out_ref.dtype)


def _vmem_capacity_bytes():
    try:
        return int(pltpu.get_tpu_info().vmem_capacity_bytes)
    except Exception:
        return 64 * 1024 * 1024   # conservative default (v7x per-core VMEM)


def _pick_batch_tile(N, R, E, H, *, vmem_budget, need_weights):
    """Largest divisor of N that fits the VMEM budget, keeps >=4 grid steps
    (pipelining + v7x megacore balance) and a reasonable MXU row count."""
    f32 = 4
    target_rows = 512          # flattened rows per tile fed to the MXU
    min_steps = min(4, N)      # keep the pipeline and both v7x cores busy

    def fits(bn):
        io = 2 * 2 * bn * R * E * f32                         # x & out, 2 bufs each
        probs = 2 * bn * H * R * R * f32 if need_weights else 0
        w = 2 * (3 * E * E + 3 * E + E * E + E) * f32         # fused W_qkv + W_out (+bias)
        interm = (5 * bn * R * E + 3 * bn * H * R * R) * f32  # qkv/q/k/v/ctx + scores/e/p
        return io + probs + w + interm <= vmem_budget

    best = 1
    for d in range(1, N + 1):
        if N % d:
            continue
        if d * R > target_rows:
            continue
        if N // d < min_steps:
            continue
        if not fits(d):
            continue
        best = d
    return best


@functools.partial(jax.jit, static_argnames=("num_heads", "need_weights"))
def column_self_attention(x, wq, bq, wk, bk, wv, bv, wo, bo, *,
                          num_heads, need_weights=True):
    R, C, B, E = x.shape
    H = num_heads
    assert E % H == 0, "embedding_dim must be divisible by num_att_heads"
    dk = E // H
    scaling = float(dk) ** -0.5
    N = C * B

    vmem_cap = _vmem_capacity_bytes()           # 128 MiB v5e/v6e, 64 MiB v7x
    vmem_limit = int(vmem_cap * 3 // 4)         # headroom for Mosaic internals
    bn = _pick_batch_tile(N, R, E, H,
                          vmem_budget=vmem_limit * 4 // 5,
                          need_weights=need_weights)

    # [R, C, B, E] -> batch-major [N, R, E]  (attention runs along R).
    xp = jnp.transpose(x, (1, 2, 0, 3)).reshape(N, R, E)
    # TODO(synk): if R is not a multiple of 8, pad R (with key masking) so the
    # in-kernel (bn,R,E)<->(bn*R,E) reshapes stay layout-preserving.

    # Pre-transpose weights to [in, out] (no per-step RHS transpose), fuse
    # Q/K/V into a single [E, 3E] weight, fold scaling into the Q columns.
    wqkv = jnp.concatenate([wq.T * scaling, wk.T, wv.T], axis=1)   # [E, 3E]
    bqkv = jnp.concatenate([bq * scaling, bk, bv]).reshape(1, 3 * E)
    wo_t = wo.T                                                    # [E, E]
    bo2 = bo.reshape(1, E)

    out_shapes = [jax.ShapeDtypeStruct((N, R, E), jnp.float32)]
    out_specs = [pl.BlockSpec((bn, R, E), lambda i: (i, 0, 0))]
    probs_bytes = 0
    if need_weights:
        out_shapes.append(jax.ShapeDtypeStruct((N, H, R, R), jnp.float32))
        out_specs.append(pl.BlockSpec((bn, H, R, R), lambda i: (i, 0, 0, 0)))
        probs_bytes = 4 * N * H * R * R

    flops = 8 * N * R * E * E + 4 * N * R * R * E
    cost = pl.CostEstimate(
        flops=flops,
        transcendentals=N * H * R * R,
        bytes_accessed=4 * (2 * N * R * E + 4 * E * E + 4 * E) + probs_bytes,
    )

    results = pl.pallas_call(
        functools.partial(_col_attn_kernel, num_heads=H),
        out_shape=tuple(out_shapes),
        grid_spec=pltpu.PrefetchScalarGridSpec(
            num_scalar_prefetch=0,
            grid=(N // bn,),
            in_specs=[
                pl.BlockSpec((bn, R, E), lambda i: (i, 0, 0)),     # x tile
                pl.BlockSpec((E, 3 * E), lambda i: (0, 0)),        # fused W_qkv
                pl.BlockSpec((1, 3 * E), lambda i: (0, 0)),        # fused b_qkv
                pl.BlockSpec((E, E), lambda i: (0, 0)),            # W_out
                pl.BlockSpec((1, E), lambda i: (0, 0)),            # b_out
            ],
            out_specs=tuple(out_specs),
        ),
        compiler_params=pltpu.CompilerParams(
            dimension_semantics=("parallel",),
            vmem_limit_bytes=vmem_limit),
        cost_estimate=cost,
    )(xp, wqkv, bqkv, wo_t, bo2)

    # Back to the module's layouts: output [R, C, B, E], probs 'hcnij'.
    output = results[0].reshape(C, B, R, E).transpose(2, 0, 1, 3)
    probs = None
    if need_weights:
        probs = results[1].reshape(C, B, H, R, R).transpose(2, 0, 1, 3, 4)
    return output, probs


def _reference(x, wq, bq, wk, bk, wv, bv, wo, bo, num_heads):
    R, C, B, E = x.shape
    dk = E // num_heads
    scaling = dk ** -0.5

    def lin(t, w, b):
        return jnp.einsum('rcbe,fe->rcbf', t, w) + b

    q = lin(x, wq, bq).reshape(R, C, B, num_heads, dk) * scaling
    k = lin(x, wk, bk).reshape(R, C, B, num_heads, dk)
    v = lin(x, wv, bv).reshape(R, C, B, num_heads, dk)
    aw = jnp.einsum('icnhd,jcnhd->hcnij', q, k)
    p = jax.nn.softmax(aw, axis=-1)
    c = jnp.einsum('hcnij,jcnhd->icnhd', p, v).reshape(R, C, B, E)
    out = jnp.einsum('rcbe,fe->rcbf', c, wo) + bo
    return out, p


if __name__ == "__main__":
    # n_rows, n_cols, batch, embedding_dim, heads
    R, C, B, E, H = 16, 8, 4, 64, 4
    key = jax.random.PRNGKey(0)
    ks = jax.random.split(key, 9)

    x = jax.random.normal(ks[0], (R, C, B, E), dtype=jnp.float32)
    init = 1.0 / (E ** 0.5)
    wq = jax.random.normal(ks[1], (E, E), dtype=jnp.float32) * init
    wk = jax.random.normal(ks[2], (E, E), dtype=jnp.float32) * init
    wv = jax.random.normal(ks[3], (E, E), dtype=jnp.float32) * init
    wo = jax.random.normal(ks[4], (E, E), dtype=jnp.float32) * init
    bq = jax.random.normal(ks[5], (E,), dtype=jnp.float32) * 0.02
    bk = jax.random.normal(ks[6], (E,), dtype=jnp.float32) * 0.02
    bv = jax.random.normal(ks[7], (E,), dtype=jnp.float32) * 0.02
    bo = jax.random.normal(ks[8], (E,), dtype=jnp.float32) * 0.02

    out, probs = column_self_attention(
        x, wq, bq, wk, bk, wv, bv, wo, bo, num_heads=H)
    out, probs = jax.block_until_ready((out, probs))

    ref_out, ref_p = _reference(x, wq, bq, wk, bk, wv, bv, wo, bo, H)
    assert out.shape == (R, C, B, E)
    assert probs.shape == (H, C, B, R, R)
    assert jnp.allclose(out, ref_out, atol=1e-4, rtol=1e-4), float(
        jnp.max(jnp.abs(out - ref_out)))
    assert jnp.allclose(probs, ref_p, atol=1e-4, rtol=1e-4), float(
        jnp.max(jnp.abs(probs - ref_p)))

    print("KERNEL_OK")
</pallas_src>

<mosaic_0001>
module attributes {stable_mosaic.version = 11 : i64} {
  func.func @_col_attn_kernel(%arg0: i32, %arg1: memref<8x16x64xf32, #tpu.memory_space<vmem>>, %arg2: memref<64x192xf32, #tpu.memory_space<vmem>>, %arg3: memref<1x192xf32, #tpu.memory_space<vmem>>, %arg4: memref<64x64xf32, #tpu.memory_space<vmem>>, %arg5: memref<1x64xf32, #tpu.memory_space<vmem>>, %arg6: memref<8x16x64xf32, #tpu.memory_space<vmem>>, %arg7: memref<8x4x16x16xf32, #tpu.memory_space<vmem>>) attributes {dimension_semantics = [#tpu.dimension_semantics<parallel>], iteration_bounds = array<i64: 4>, scalar_prefetch = 0 : i64, scratch_operands = 0 : i64, tpu.core_type = #tpu.core_type<tc>, window_params = [{transform_indices = @transform_0, window_bounds = array<i64: 8, 16, 64>}, {pipeline_mode = #tpu.pipeline_mode<synchronous>, transform_indices = @transform_1, window_bounds = array<i64: 64, 192>}, {pipeline_mode = #tpu.pipeline_mode<synchronous>, transform_indices = @transform_2, window_bounds = array<i64: 1, 192>}, {pipeline_mode = #tpu.pipeline_mode<synchronous>, transform_indices = @transform_3, window_bounds = array<i64: 64, 64>}, {pipeline_mode = #tpu.pipeline_mode<synchronous>, transform_indices = @transform_4, window_bounds = array<i64: 1, 64>}, {transform_indices = @transform_5, window_bounds = array<i64: 8, 16, 64>}, {transform_indices = @transform_6, window_bounds = array<i64: 8, 4, 16, 16>}]} {
    %c0 = arith.constant 0 : index
    %c0_0 = arith.constant 0 : index
    %c0_1 = arith.constant 0 : index
    %0 = vector.load %arg1[%c0, %c0_0, %c0_1] : memref<8x16x64xf32, #tpu.memory_space<vmem>>, vector<8x16x64xf32>
    %1 = vector.shape_cast %0 : vector<8x16x64xf32> to vector<128x64xf32>
    %c0_2 = arith.constant 0 : index
    %c0_3 = arith.constant 0 : index
    %2 = vector.load %arg2[%c0_2, %c0_3] : memref<64x192xf32, #tpu.memory_space<vmem>>, vector<64x192xf32>
    %cst = arith.constant dense<0.000000e+00> : vector<128x192xf32>
    %3 = tpu.matmul %1, %2, %cst {dimension_numbers = #tpu.dot_dimension_numbers<[1], [0], [0], [1], [0, 0, 1, 1], [], []>} : vector<128x64xf32>, vector<64x192xf32>, vector<128x192xf32> -> vector<128x192xf32>
    %c0_4 = arith.constant 0 : index
    %c0_5 = arith.constant 0 : index
    %4 = vector.load %arg3[%c0_4, %c0_5] : memref<1x192xf32, #tpu.memory_space<vmem>>, vector<1x192xf32>
    %5 = vector.broadcast %4 : vector<1x192xf32> to vector<128x192xf32>
    %6 = arith.addf %3, %5 : vector<128x192xf32>
    %7 = vector.extract_strided_slice %6 {offsets = [0, 0], sizes = [128, 64], strides = [1, 1]} : vector<128x192xf32> to vector<128x64xf32>
    %8 = vector.shape_cast %7 : vector<128x64xf32> to vector<8x16x4x16xf32>
    %9 = tpu.transpose %8, [0, 2, 1, 3] : vector<8x16x4x16xf32> -> vector<8x4x16x16xf32>
    %10 = vector.shape_cast %9 : vector<8x4x16x16xf32> to vector<32x16x16xf32>
    %11 = vector.extract_strided_slice %6 {offsets = [0, 64], sizes = [128, 64], strides = [1, 1]} : vector<128x192xf32> to vector<128x64xf32>
    %12 = vector.shape_cast %11 : vector<128x64xf32> to vector<8x16x4x16xf32>
    %13 = tpu.transpose %12, [0, 2, 1, 3] : vector<8x16x4x16xf32> -> vector<8x4x16x16xf32>
    %14 = vector.shape_cast %13 : vector<8x4x16x16xf32> to vector<32x16x16xf32>
    %15 = vector.extract_strided_slice %6 {offsets = [0, 128], sizes = [128, 64], strides = [1, 1]} : vector<128x192xf32> to vector<128x64xf32>
    %16 = vector.shape_cast %15 : vector<128x64xf32> to vector<8x16x4x16xf32>
    %17 = tpu.transpose %16, [0, 2, 1, 3] : vector<8x16x4x16xf32> -> vector<8x4x16x16xf32>
    %18 = vector.shape_cast %17 : vector<8x4x16x16xf32> to vector<32x16x16xf32>
    "tpu.trace_start"() <{level = 10 : i32, message = "brd,bsd->brs"}> : () -> ()
    %cst_6 = arith.constant dense<0.000000e+00> : vector<32x16x16xf32>
    %19 = tpu.matmul %10, %14, %cst_6 {dimension_numbers = #tpu.dot_dimension_numbers<[2], [2], [1], [1], [0, 0, 0, 1, 1, 1], [0], [0]>} : vector<32x16x16xf32>, vector<32x16x16xf32>, vector<32x16x16xf32> -> vector<32x16x16xf32>
    "tpu.trace_stop"() : () -> ()
    %cst_7 = arith.constant dense<0xFF800000> : vector<32x16xf32>
    %20 = vector.multi_reduction <maximumf>, %19, %cst_7 [2] : vector<32x16x16xf32> to vector<32x16xf32>
    %21 = vector.shape_cast %20 : vector<32x16xf32> to vector<32x16x1xf32>
    %22 = vector.broadcast %21 : vector<32x16x1xf32> to vector<32x16x16xf32>
    %23 = arith.subf %19, %22 : vector<32x16x16xf32>
    %24 = math.exp %23 : vector<32x16x16xf32>
    %cst_8 = arith.constant dense<0.000000e+00> : vector<32x16xf32>
    %25 = vector.multi_reduction <add>, %24, %cst_8 [2] : vector<32x16x16xf32> to vector<32x16xf32>
    %26 = vector.shape_cast %25 : vector<32x16xf32> to vector<32x16x1xf32>
    %27 = tpu.reciprocal %26 : vector<32x16x1xf32> -> vector<32x16x1xf32>
    %28 = vector.broadcast %27 : vector<32x16x1xf32> to vector<32x16x16xf32>
    %29 = arith.mulf %24, %28 : vector<32x16x16xf32>
    %30 = vector.shape_cast %29 : vector<32x16x16xf32> to vector<8x4x16x16xf32>
    %c0_9 = arith.constant 0 : index
    %c0_10 = arith.constant 0 : index
    %c0_11 = arith.constant 0 : index
    %c0_12 = arith.constant 0 : index
    %31 = vector.load %arg7[%c0_9, %c0_10, %c0_11, %c0_12] : memref<8x4x16x16xf32, #tpu.memory_space<vmem>>, vector<8x4x16x16xf32>
    tpu.vector_store %arg7[%c0_9, %c0_10, %c0_11, %c0_12], %30 {strides = array<i32>} : memref<8x4x16x16xf32, #tpu.memory_space<vmem>>, vector<8x4x16x16xf32>,
    "tpu.trace_start"() <{level = 10 : i32, message = "brs,bsd->brd"}> : () -> ()
    %cst_13 = arith.constant dense<0.000000e+00> : vector<32x16x16xf32>
    %32 = tpu.matmul %29, %18, %cst_13 {dimension_numbers = #tpu.dot_dimension_numbers<[2], [1], [1], [2], [0, 0, 0, 1, 1, 2], [0], [0]>} : vector<32x16x16xf32>, vector<32x16x16xf32>, vector<32x16x16xf32> -> vector<32x16x16xf32>
    "tpu.trace_stop"() : () -> ()
    %33 = vector.shape_cast %32 : vector<32x16x16xf32> to vector<8x4x16x16xf32>
    %34 = tpu.transpose %33, [0, 2, 1, 3] : vector<8x4x16x16xf32> -> vector<8x16x4x16xf32>
    %35 = vector.shape_cast %34 : vector<8x16x4x16xf32> to vector<128x64xf32>
    %c0_14 = arith.constant 0 : index
    %c0_15 = arith.constant 0 : index
    %36 = vector.load %arg4[%c0_14, %c0_15] : memref<64x64xf32, #tpu.memory_space<vmem>>, vector<64x64xf32>
    %cst_16 = arith.constant dense<0.000000e+00> : vector<128x64xf32>
    %37 = tpu.matmul %35, %36, %cst_16 {dimension_numbers = #tpu.dot_dimension_numbers<[1], [0], [0], [1], [0, 0, 1, 1], [], []>} : vector<128x64xf32>, vector<64x64xf32>, vector<128x64xf32> -> vector<128x64xf32>
    %c0_17 = arith.constant 0 : index
    %c0_18 = arith.constant 0 : index
    %38 = vector.load %arg5[%c0_17, %c0_18] : memref<1x64xf32, #tpu.memory_space<vmem>>, vector<1x64xf32>
    %39 = vector.broadcast %38 : vector<1x64xf32> to vector<128x64xf32>
    %40 = arith.addf %37, %39 : vector<128x64xf32>
    %41 = vector.shape_cast %40 : vector<128x64xf32> to vector<8x16x64xf32>
    %c0_19 = arith.constant 0 : index
    %c0_20 = arith.constant 0 : index
    %c0_21 = arith.constant 0 : index
    %42 = vector.load %arg6[%c0_19, %c0_20, %c0_21] : memref<8x16x64xf32, #tpu.memory_space<vmem>>, vector<8x16x64xf32>
    tpu.vector_store %arg6[%c0_19, %c0_20, %c0_21], %41 {strides = array<i32>} : memref<8x16x64xf32, #tpu.memory_space<vmem>>, vector<8x16x64xf32>,
    return
  }
  func.func @transform_0(%arg0: i32) -> (i32, i32, i32) {
    %c0_i32 = arith.constant 0 : i32
    %c0_i32_0 = arith.constant 0 : i32
    %c0_i32_1 = arith.constant 0 : i32
    return %arg0, %c0_i32, %c0_i32_0 : i32, i32, i32
  }
  func.func @transform_1(%arg0: i32) -> (i32, i32) {
    %c0_i32 = arith.constant 0 : i32
    %c0_i32_0 = arith.constant 0 : i32
    %c0_i32_1 = arith.constant 0 : i32
    return %c0_i32, %c0_i32_0 : i32, i32
  }
  func.func @transform_2(%arg0: i32) -> (i32, i32) {
    %c0_i32 = arith.constant 0 : i32
    %c0_i32_0 = arith.constant 0 : i32
    %c0_i32_1 = arith.constant 0 : i32
    return %c0_i32, %c0_i32_0 : i32, i32
  }
  func.func @transform_3(%arg0: i32) -> (i32, i32) {
    %c0_i32 = arith.constant 0 : i32
    %c0_i32_0 = arith.constant 0 : i32
    %c0_i32_1 = arith.constant 0 : i32
    return %c0_i32, %c0_i32_0 : i32, i32
  }
  func.func @transform_4(%arg0: i32) -> (i32, i32) {
    %c0_i32 = arith.constant 0 : i32
    %c0_i32_0 = arith.constant 0 : i32
    %c0_i32_1 = arith.constant 0 : i32
    return %c0_i32, %c0_i32_0 : i32, i32
  }
  func.func @transform_5(%arg0: i32) -> (i32, i32, i32) {
    %c0_i32 = arith.constant 0 : i32
    %c0_i32_0 = arith.constant 0 : i32
    %c0_i32_1 = arith.constant 0 : i32
    return %arg0, %c0_i32, %c0_i32_0 : i32, i32, i32
  }
  func.func @transform_6(%arg0: i32) -> (i32, i32, i32, i32) {
    %c0_i32 = arith.constant 0 : i32
    %c0_i32_0 = arith.constant 0 : i32
    %c0_i32_1 = arith.constant 0 : i32
    %c0_i32_2 = arith.constant 0 : i32
    return %arg0, %c0_i32, %c0_i32_0, %c0_i32_1 : i32, i32, i32, i32
  }
}

</mosaic_0001>

<bundles_post_ra>
// kernel: column_self_attention.1
= control target key start
LH: loop header
LB: loop body
LE: loop exit
PB: predicated region body
PF: predicated region fallthrough
CT: control target
= control target key end

     0   :  { %s18278_s21 = smov 0   ;;  %s23953_s0 = inlined_call_operand.vmem [shape: f32[32,16,64], index: 0, kind: input, shape index: {}]   ;;  %s23954_s1 = inlined_call_operand.vmem [shape: f32[64,192], index: 1, kind: input, shape index: {}]   ;;  %s23955_s2 = inlined_call_operand.vmem [shape: f32[1,192], index: 2, kind: input, shape index: {}]   ;;  %s23956_s3 = inlined_call_operand.vmem [shape: f32[64,64], index: 3, kind: input, shape index: {}]   ;;  %s23957_s4 = inlined_call_operand.vmem [shape: f32[1,64], index: 4, kind: input, shape index: {}]   ;;  %s23958_s5 = inlined_call_operand.vmem [shape: f32[32,16,64], index: 5, kind: output, shape index: {0}]   ;;  %s23959_s6 = inlined_call_operand.vmem [shape: f32[32,4,16,16], index: 6, kind: output, shape index: {1}]  }
   0x1 LB: > { %s16451_s22 = sadd.s32 4294967295, %s18231_s21   ;;  %p16455_p0 = scmp.ge.s32.totalorder %s18231_s21, 1  ;;  %s18231_s21 = sphi %s18278_s21, %s17_s21  }
   0x2   : > { %p217_p1 = scmp.lt.s32.totalorder %s18231_s21, 5 }
   0x4   : > { %p218_p2 = pnand %p16455_p0, %p217_p1 }
   0x6   : > { %221 = sbr.rel (%p218_p2) target bundleno = 1903 (0x76f), region = 40 }
   0xd   : > { %v293_v0 = vld [vmem:[%s23954_s1 + $0x8] sm:$0xff]  ;;  %v295_v1 = vld [vmem:[%s23954_s1 + $0x18] sm:$0xff]  ;;  %v292_v2 = vld [vmem:[%s23954_s1] sm:$0xff]  ;;  %s16456_s29 = sshll.u32 %s16451_s22, 3  ;;  %v18233_v7 = vmov 0.0   ;;  %vm320_vm0 = vcmask 523264   ;;  %v310_v41 = vlaneseq }
   0xe   : > { %v17591_v3 = vpack.c.bf16 %v295_v1, %v293_v0  ;;  %v294_v4 = vld [vmem:[%s23954_s1 + $0x10] sm:$0xff]  ;;  %v297_v5 = vld [vmem:[%s23954_s1 + $0x28] sm:$0xff]  ;;  %v299_v6 = vld [vmem:[%s23954_s1 + $0x38] sm:$0xff]  ;;  %433 = vmatprep.mubr.f32.mxu0 %v18233_v7  ;;  %505 = vmatprep.mubr.f32.mxu1 %v18233_v7  ;;  %p256_p3 = scmp.lt.s32.totalorder %s16456_s29, 31  ;;  %s18234_s16 = smov 96   ;;  %vm7570_vm1 = vcmask 130048  }
   0xf   : > { %v17593_v8 = vpack.c.bf16 %v294_v4, %v292_v2  ;;  %v17595_v9 = vpack.c.bf16 %v299_v6, %v297_v5  ;;  %v296_v10 = vld [vmem:[%s23954_s1 + $0x20] sm:$0xff]  ;;  %v298_v11 = vld [vmem:[%s23954_s1 + $0x30] sm:$0xff]  ;;  %v301_v12 = vld [vmem:[%s23954_s1 + $0x48] sm:$0xff]  ;;  %v18393_v42 = vshrl.u32 %v310_v41, 7  ;;  %s18235_s17 = smov 112   ;;  %s18236_s18 = smov 80  }
  0x10   : > { %17592 = vmatprep.subr.bf16.mxu0 %v17591_v3  ;;  %v303_v13 = vld [vmem:[%s23954_s1 + $0x58] sm:$0xff]  ;;  %17943 = vmatprep.subr.bf16.mxu1 %v17591_v3  ;;  %v17597_v14 = vpack.c.bf16 %v298_v11, %v296_v10  ;;  %v300_v16 = vld [vmem:[%s23954_s1 + $0x40] sm:$0xff]  ;;  %v302_v17 = vld [vmem:[%s23954_s1 + $0x50] sm:$0xff]  ;;  %s24652_s29 = smov (!%p256_p3, %s16456_s29), 31  ;;  %s18237_s19 = smov 64   ;;  %vm16099_vm3 = vcmask 261120  }
  0x11   : > { %17594 = vmatpush1.bf16.msra.mxu0 %v17593_v8  ;;  %17947 = vmatpush1.bf16.msra.mxu1 %v17593_v8  ;;  %v17599_v15 = vpack.c.bf16 %v303_v13, %v301_v12  ;;  %v305_v18 = vld [vmem:[%s23954_s1 + $0x68] sm:$0xff]  ;;  %v307_v19 = vld [vmem:[%s23954_s1 + $0x78] sm:$0xff]  ;;  %v17601_v20 = vpack.c.bf16 %v302_v17, %v300_v16  ;;  %v304_v22 = vld [vmem:[%s23954_s1 + $0x60] sm:$0xff]  ;;  %s16820_s10 = sshll.u32 %s24652_s29, 4  ;;  %v312_v43 = vsub.s32 0, %v18393_v42  ;;  %s16822_s20 = sshll.u32 %s24652_s29, 6 }
  0x12   : > { %17596 = vmatprep.subr.bf16.mxu0 %v17595_v9  ;;  %17944 = vmatprep.subr.bf16.mxu1 %v17595_v9  ;;  %v17603_v21 = vpack.c.bf16 %v307_v19, %v305_v18  ;;  %v306_v23 = vld [vmem:[%s23954_s1 + $0x70] sm:$0xff]  ;;  %s18345_s13 = scalar_lea.vmem %s23953_s0, %s16820_s10  ;;  %v18399_v44 = vld [vmem:[%s23955_s2] sm:$0x3]  ;;  %vm19423_vm2 = vmpackc.low %vm7570_vm1, %vm7570_vm1  ;;  %s21693_s24 = scalar_lea.vmem %s23959_s6, %s16822_s20  ;;  %vm16116_vm4 = vcmask 392192  }
  0x13   : > { %v17605_v24 = vpack.c.bf16 %v306_v23, %v304_v22  ;;  %v276_v25 = vld [vmem:[%s18345_s13] sm:$0xff]  ;;  %v277_v27 = vld [vmem:[%s18345_s13 + $0x8] sm:$0xff]  ;;  %v278_v29 = vld [vmem:[%s18345_s13 + $0x10] sm:$0xff]  ;;  %v18402_v45 = vrot.slane %v18399_v44, %v312_v43  ;;  %s18240_s30 = smov 32   ;;  %s18241_s7 = smov 16  }
  0x14   : > { %v288_v26 = vld [vmem:[%s18345_s13 + $0x60] sm:$0xff]  ;;  %v289_v28 = vld [vmem:[%s18345_s13 + $0x68] sm:$0xff]  ;;  %v290_v30 = vld [vmem:[%s18345_s13 + $0x70] sm:$0xff]  ;;  %s23916_s27 = scalar_lea.vmem %s23958_s5, %s16820_s10 }
  0x15   : > { %17598 = vmatpush1.bf16.msra.mxu0 %v17597_v14  ;;  %17948 = vmatpush1.bf16.msra.mxu1 %v17597_v14  ;;  %v279_v31 = vld [vmem:[%s18345_s13 + $0x18] sm:$0xff]  ;;  %v280_v33 = vld [vmem:[%s18345_s13 + $0x20] sm:$0xff]  ;;  %v281_v34 = vld [vmem:[%s18345_s13 + $0x28] sm:$0xff] }
  0x16   : > { %17600 = vmatprep.subr.bf16.mxu0 %v17599_v15  ;;  %17945 = vmatprep.subr.bf16.mxu1 %v17599_v15  ;;  %v291_v32 = vld [vmem:[%s18345_s13 + $0x78] sm:$0xff]  ;;  %v282_v35 = vld [vmem:[%s18345_s13 + $0x30] sm:$0xff]  ;;  %v284_v37 = vld [vmem:[%s18345_s13 + $0x40] sm:$0xff] }
  0x17   : > { %v283_v36 = vld [vmem:[%s18345_s13 + $0x38] sm:$0xff]  ;;  %v285_v38 = vld [vmem:[%s18345_s13 + $0x48] sm:$0xff]  ;;  %v286_v39 = vld [vmem:[%s18345_s13 + $0x50] sm:$0xff] }
  0x18   : > { %v287_v40 = vld [vmem:[%s18345_s13 + $0x58] sm:$0xff]  ;;  %s18242_s13 = smov 48  }
  0x19   : > { %17602 = vmatpush1.bf16.msra.mxu0 %v17601_v20  ;;  %17949 = vmatpush1.bf16.msra.mxu1 %v17601_v20 }
  0x1a   : > { %17604 = vmatprep.subr.bf16.mxu0 %v17603_v21  ;;  %17946 = vmatprep.subr.bf16.mxu1 %v17603_v21 }
  0x1d   : > { %17606 = vmatpush1.bf16.msra.mxu0 %v17605_v24  ;;  %17950 = vmatpush1.bf16.msra.mxu1 %v17605_v24  ;;  %v18238_v24 = vmov 1983009808  }
  0x20   : > { %16465 = vmatmul.mubr.msk.f32.vlgmr.msra.gmra.mrb[0].mxu0 %vm320_vm0, %v276_v25  ;;  %16477 = vmatmul.mubr.msk.f32.vlgmr.msra.gmra.mrb[0].mxu1 %vm320_vm0, %v288_v26  ;;  %v693_v25 = vunpack.c.l.s4 %v18238_v24  ;;  %v18239_v26 = vmov 1934713408  }
  0x21   : > { %439 = vmatprep.mubr.f32.mxu0 %v18233_v7  ;;  %511 = vmatprep.mubr.f32.mxu1 %v18233_v7 }
  0x24   : > { %16466 = vmatmul.mubr.msk.f32.gmra.mrb[2].mxu0 %vm320_vm0, %v277_v27  ;;  %16478 = vmatmul.mubr.msk.f32.gmra.mrb[2].mxu1 %vm320_vm0, %v289_v28  ;;  %v725_v27 = vunpack.c.l.s4 %v18239_v26  ;;  %v694_v28 = vunpack.c.0.s8 %v693_v25 }
  0x25   : > { %445 = vmatprep.mubr.f32.mxu0 %v18233_v7  ;;  %517 = vmatprep.mubr.f32.mxu1 %v18233_v7 }
  0x28   : > { %16467 = vmatmul.mubr.msk.f32.gmra.mrb[4].mxu0 %vm320_vm0, %v278_v29  ;;  %16479 = vmatmul.mubr.msk.f32.gmra.mrb[4].mxu1 %vm320_vm0, %v290_v30 }
  0x29   : > { %451 = vmatprep.mubr.f32.mxu0 %v18233_v7  ;;  %523 = vmatprep.mubr.f32.mxu1 %v18233_v7 }
  0x2c   : > { %16468 = vmatmul.mubr.msk.f32.gmra.mrb[6].mxu0 %vm320_vm0, %v279_v31  ;;  %16480 = vmatmul.mubr.msk.f32.gmra.mrb[6].mxu1 %vm320_vm0, %v291_v32  ;;  %v726_v31 = vunpack.c.0.s8 %v725_v27  ;;  %v18546_v32 = vsub.s32 %v694_v28, %v18393_v42 }
  0x2d   : > { %457 = vmatprep.mubr.f32.mxu0 %v18233_v7 }
  0x2e   : > { %24180 = vst [vmem:[#allocation2_spill] sm:$0xff] %v18546_v32 }
  0x30   : > { %16469 = vmatmul.mubr.msk.f32.gmra.mrb[8].mxu0 %vm320_vm0, %v280_v33 }
  0x31   : > { %463 = vmatprep.mubr.f32.mxu0 %v18233_v7 }
  0x34   : > { %16470 = vmatmul.mubr.msk.f32.gmra.mrb[10].mxu0 %vm320_vm0, %v281_v34 }
  0x35   : > { %469 = vmatprep.mubr.f32.mxu0 %v18233_v7 }
  0x38   : > { %16471 = vmatmul.mubr.msk.f32.gmra.mrb[12].mxu0 %vm320_vm0, %v282_v35 }
  0x39   : > { %475 = vmatprep.mubr.f32.mxu0 %v18233_v7 }
  0x3c   : > { %16472 = vmatmul.mubr.msk.f32.gmra.mrb[14].mxu0 %vm320_vm0, %v283_v36 }
  0x3d   : > { %481 = vmatprep.mubr.f32.mxu0 %v18233_v7 }
  0x40   : > { %16473 = vmatmul.mubr.msk.f32.gmra.mrb[16].mxu0 %vm320_vm0, %v284_v37 }
  0x41   : > { %487 = vmatprep.mubr.f32.mxu0 %v18233_v7 }
  0x44   : > { %16474 = vmatmul.mubr.msk.f32.gmra.mrb[18].mxu0 %vm320_vm0, %v285_v38 }
  0x45   : > { %493 = vmatprep.mubr.f32.mxu0 %v18233_v7 }
  0x48   : > { %16475 = vmatmul.mubr.msk.f32.gmra.mrb[20].mxu0 %vm320_vm0, %v286_v39  ;;  %v18554_v39 = vsub.s32 %v726_v31, %v18393_v42 }
  0x49   : > { %499 = vmatprep.mubr.f32.mxu0 %v18233_v7 }
  0x4a   : > { %24181 = vst [vmem:[#allocation3_spill] sm:$0xff] %v18554_v39 }
  0x4c   : > { %16476 = vmatmul.mubr.msk.f32.gmra.mrb[22].mxu0 %vm320_vm0, %v287_v40 }
  0xf3   : > { %v435_v46 = vpop.f32.mrb[0].mxu0  ;;  %v18446_v60 = vpop.f32.mrb[0].mxu1 }
  0xf4   : > { %v18405_v47 = vadd.f32 %v435_v46, %v18402_v45  ;;  %v18407_v48 = vpop.f32.mrb[1].mxu0  ;;  %v18454_v0 = vpop.f32.mrb[1].mxu1 }
  0xf6   : > { %594 = vrot.lane.b32.xlu1 %v18405_v47, %s18234_s16  ;;  %546 = vrot.lane.b32.xlu0 %v18405_v47, %s18235_s17 }
  0xf7   : > { %v441_v49 = vpop.f32.mrb[2].mxu0  ;;  %v18462_v3 = vpop.f32.mrb[2].mxu1 }
  0xf8   : > { %v18414_v50 = vadd.f32 %v441_v49, %v18402_v45  ;;  %v18416_v51 = vpop.f32.mrb[3].mxu0  ;;  %v18466_v5 = vpop.f32.mrb[3].mxu1 }
  0xfa   : > { %596 = vrot.lane.b32.xlu1 %v18414_v50, %s18234_s16  ;;  %642 = vrot.lane.b32.xlu0 %v18405_v47, %s18236_s18 }
  0xfb   : > { %v447_v52 = vpop.f32.mrb[4].mxu0  ;;  %v18510_v18 = vpop.f32.mrb[4].mxu1 }
  0xfc   : > { %v18422_v53 = vpop.f32.mrb[5].mxu0  ;;  %v18431_v56 = vadd.f32 %v447_v52, %v18402_v45  ;;  %v18530_v21 = vpop.f32.mrb[5].mxu1 }
  0xfe   : > { %644 = vrot.lane.b32.xlu1 %v18414_v50, %s18236_s18  ;;  %2866 = vrot.lane.b32.xlu0 %v18405_v47, %s18237_s19 }
  0xff   : > { %v453_v54 = vpop.f32.mrb[6].mxu0  ;;  %v18536_v22 = vpop.f32.mrb[6].mxu1 }
 0x100   : > { %v18428_v55 = vpop.f32.mrb[7].mxu0  ;;  %v18438_v57 = vadd.f32 %v453_v54, %v18402_v45  ;;  %v18538_v23 = vpop.f32.mrb[7].mxu1 }
 0x102   : > { %2868 = vrot.lane.b32.xlu1 %v18414_v50, %s18237_s19  ;;  %548 = vrot.lane.b32.xlu0 %v18414_v50, %s18235_s17 }
 0x103   : > { %v459_v58 = vpop.f32.mrb[8].mxu0 }
 0x104   : > { %v18440_v59 = vpop.f32.mrb[9].mxu0  ;;  %v18469_v6 = vadd.f32 %v459_v58, %v18402_v45 }
 0x106   : > { %552 = vrot.lane.b32.xlu1 %v18438_v57, %s18235_s17  ;;  %550 = vrot.lane.b32.xlu0 %v18431_v56, %s18235_s17 }
 0x107   : > { %v465_v61 = vpop.f32.mrb[10].mxu0 }
 0x108   : > { %v18448_v62 = vpop.f32.mrb[11].mxu0  ;;  %v18476_v7 = vadd.f32 %v465_v61, %v18402_v45 }
 0x10a   : > { %600 = vrot.lane.b32.xlu1 %v18438_v57, %s18234_s16  ;;  %598 = vrot.lane.b32.xlu0 %v18431_v56, %s18234_s16 }
 0x10b   : > { %v471_v63 = vpop.f32.mrb[12].mxu0 }
 0x10c   : > { %v18456_v1 = vpop.f32.mrb[13].mxu0  ;;  %v18493_v14 = vadd.f32 %v471_v63, %v18402_v45 }
 0x10e   : > { %648 = vrot.lane.b32.xlu1 %v18438_v57, %s18236_s18  ;;  %646 = vrot.lane.b32.xlu0 %v18431_v56, %s18236_s18 }
 0x10f   : > { %v477_v2 = vpop.f32.mrb[14].mxu0 }
 0x110   : > { %v18464_v4 = vpop.f32.mrb[15].mxu0  ;;  %v18500_v15 = vadd.f32 %v477_v2, %v18402_v45 }
 0x112   : > { %2872 = vrot.lane.b32.xlu1 %v18438_v57, %s18237_s19  ;;  %2870 = vrot.lane.b32.xlu0 %v18431_v56, %s18237_s19 }
 0x113   : > { %v483_v8 = vpop.f32.mrb[16].mxu0 }
 0x114   : > { %v18478_v9 = vpop.f32.mrb[17].mxu0  ;;  %v18517_v19 = vadd.f32 %v483_v8, %v18402_v45 }
 0x116   : > { %556 = vrot.lane.b32.xlu1 %v18476_v7, %s18235_s17  ;;  %554 = vrot.lane.b32.xlu0 %v18469_v6, %s18235_s17 }
 0x117   : > { %v489_v10 = vpop.f32.mrb[18].mxu0 }
 0x118   : > { %v18484_v11 = vpop.f32.mrb[19].mxu0  ;;  %v18524_v20 = vadd.f32 %v489_v10, %v18402_v45 }
 0x11a   : > { %604 = vrot.lane.b32.xlu1 %v18476_v7, %s18234_s16  ;;  %602 = vrot.lane.b32.xlu0 %v18469_v6, %s18234_s16 }
 0x11b   : > { %v495_v12 = vpop.f32.mrb[20].mxu0 }
 0x11c   : > { %v18490_v13 = vpop.f32.mrb[21].mxu0  ;;  %v18565_v52 = vadd.f32 %v495_v12, %v18402_v45 }
 0x11e   : > { %652 = vrot.lane.b32.xlu1 %v18476_v7, %s18236_s18  ;;  %650 = vrot.lane.b32.xlu0 %v18469_v6, %s18236_s18 }
 0x11f   : > { %v18502_v16 = vpop.f32.mrb[22].mxu0 }
 0x120   : > { %v18504_v17 = vpop.f32.mrb[23].mxu0 }
 0x122   : > { %560 = vrot.lane.b32.xlu1 %v18500_v15, %s18235_s17  ;;  %558 = vrot.lane.b32.xlu0 %v18493_v14, %s18235_s17 }
 0x126   : > { %608 = vrot.lane.b32.xlu1 %v18500_v15, %s18234_s16  ;;  %606 = vrot.lane.b32.xlu0 %v18493_v14, %s18234_s16 }
 0x12a   : > { %656 = vrot.lane.b32.xlu1 %v18500_v15, %s18236_s18  ;;  %654 = vrot.lane.b32.xlu0 %v18493_v14, %s18236_s18 }
 0x12e   : > { %564 = vrot.lane.b32.xlu1 %v18524_v20, %s18235_s17  ;;  %562 = vrot.lane.b32.xlu0 %v18517_v19, %s18235_s17 }
 0x132   : > { %612 = vrot.lane.b32.xlu1 %v18524_v20, %s18234_s16  ;;  %610 = vrot.lane.b32.xlu0 %v18517_v19, %s18234_s16 }
 0x136   : > { %660 = vrot.lane.b32.xlu1 %v18524_v20, %s18236_s18  ;;  %658 = vrot.lane.b32.xlu0 %v18517_v19, %s18236_s18 }
 0x168   : > { %v595_v29 = vpop.permute.xlu1 %594  ;;  %v547_v30 = vpop.permute.xlu0 %546 }
 0x169   : > { %2898 = vrot.lane.b32.xlu0 %v547_v30, %s18237_s19  ;;  %v690_v33 = vcombine.low %v18405_v47, %v595_v29  ;;  %v691_v34 = vcombine.high %v18405_v47, %v595_v29 }
 0x16b   : > { %v698_v40 = vrot.slane %v690_v33, %v18546_v32  ;;  %v705_v41 = vrot.slane %v691_v34, %v18546_v32 }
 0x16c   : > { %v18550_v35 = vpop.permute.xlu1 %596  ;;  %v643_v36 = vpop.permute.xlu0 %642 }
 0x16d   : > { %v706_v37 = vcombine.low %v547_v30, %v643_v36  ;;  %v707_v38 = vcombine.high %v547_v30, %v643_v36  ;;  %2930 = vrot.lane.b32.xlu0 %v595_v29, %s18237_s19 }
 0x16f   : > { %v714_v43 = vrot.slane %v706_v37, %v18546_v32  ;;  %v721_v46 = vrot.slane %v707_v38, %v18546_v32 }
 0x170   : > { %v18560_v49 = vpop.permute.xlu1 %644  ;;  %v18562_v47 = vpop.permute.xlu0 %2866 }
 0x171   : > { %v722_v54 = vcombine.low %v698_v40, %v714_v43  ;;  %v723_v58 = vcombine.high %v698_v40, %v714_v43  ;;  %v738_v61 = vcombine.low %v705_v41, %v721_v46  ;;  %v739_v63 = vcombine.high %v705_v41, %v721_v46  ;;  %2962 = vrot.lane.b32.xlu0 %v643_v36, %s18237_s19 }
 0x173   : > { %v730_v2 = vrot.slane %v722_v54, %v18554_v39  ;;  %v737_v8 = vrot.slane %v723_v58, %v18554_v39  ;;  %v746_v10 = vrot.slane %v738_v61, %v18554_v39  ;;  %v753_v24 = vrot.slane %v739_v63, %v18554_v39 }
 0x174   : > { %v18572_v25 = vpop.permute.xlu1 %2868  ;;  %v18574_v26 = vpop.permute.xlu0 %548  ;;  %v18606_v63 = vadd.f32 %v18502_v16, %v18402_v45  ;;  %v18624_v16 = vadd.f32 %v18446_v60, %v18402_v45 }
 0x175   : > { %24182 = vst [vmem:[#allocation4_spill] sm:$0xff] %v18572_v25  ;;  %v1778_v12 = vcombine.low %v730_v2, %v737_v8  ;;  %v16481_v27 = vcombine.high %v730_v2, %v737_v8  ;;  %v1794_v28 = vcombine.low %v746_v10, %v753_v24  ;;  %v16482_v29 = vcombine.high %v746_v10, %v753_v24 }
 0x176   : > { %566 = vrot.lane.b32.xlu0 %v18565_v52, %s18235_s17  ;;  %2900 = vrot.lane.b32.xlu1 %v18574_v26, %s18237_s19  ;;  %v775_v25 = vcombine.high %v18574_v26, %v18560_v49 }
 0x177   : > { %v1785_v30 = vrot.slane %v1778_v12, %v18546_v32  ;;  %v1793_v31 = vrot.slane %v16481_v27, %v18546_v32  ;;  %v1801_v33 = vrot.slane %v1794_v28, %v18546_v32  ;;  %v1809_v34 = vrot.slane %v16482_v29, %v18546_v32 }
 0x178   : > { %v18584_v36 = vpop.permute.xlu1 %552  ;;  %v18586_v37 = vpop.permute.xlu0 %550  ;;  %v316_v12 = vsub.s32 1, %v18393_v42 }
 0x179   : > { %v1810_v38 = vcombine.low %v1785_v30, %v1793_v31  ;;  %v1826_v40 = vcombine.low %v1801_v33, %v1809_v34  ;;  %v1811_v41 = vcombine.high %v1785_v30, %v1793_v31  ;;  %v1827_v43 = vcombine.high %v1801_v33, %v1809_v34 }
 0x17a   : > { %614 = vrot.lane.b32.xlu0 %v18565_v52, %s18234_s16  ;;  %2932 = vrot.lane.b32.xlu1 %v18550_v35, %s18237_s19  ;;  %v18655_v33 = vadd.f32 %v18462_v3, %v18402_v45 }
 0x17b   : > { %v18597_v54 = vrot.slane %v1810_v38, %v18554_v39  ;;  %v18600_v58 = vrot.slane %v1826_v40, %v18554_v39  ;;  %v18611_v2 = vrot.slane %v1811_v41, %v18554_v39  ;;  %v18614_v8 = vrot.slane %v1827_v43, %v18554_v39 }
 0x17c   : > { %v18592_v46 = vpop.permute.xlu0 %598  ;;  %v18602_v61 = vpop.permute.xlu1 %600 }
 0x17d   : > { %24183 = vst [vmem:[#allocation5_spill] sm:$0xff] %v18597_v54  ;;  %24184 = vst [vmem:[#allocation6_spill] sm:$0xff] %v18600_v58  ;;  %v1842_v24 = vcombine.low %v18597_v54, %v18600_v58 }
 0x17e   : > { %662 = vrot.lane.b32.xlu0 %v18565_v52, %s18236_s18  ;;  %2964 = vrot.lane.b32.xlu1 %v18560_v49, %s18237_s19  ;;  %24185 = vst [vmem:[#allocation7_spill] sm:$0xff] %v18611_v2  ;;  %24186 = vst [vmem:[#allocation8_spill] sm:$0xff] %v18614_v8  ;;  %v774_v8 = vcombine.low %v18574_v26, %v18560_v49 }
 0x17f   : > { %17107 = vmatprep.mubr.msk.f32.mxu1 %vm7570_vm1, %v1842_v24 }
 0x180   : > { %v18616_v10 = vpop.permute.xlu0 %646  ;;  %v18633_v28 = vpop.permute.xlu1 %648 }
 0x182   : > { %2874 = vrot.lane.b32.xlu0 %v18469_v6, %s18237_s19  ;;  %568 = vrot.lane.b32.xlu1 %v18606_v63, %s18235_s17 }
 0x184   : > { %v18635_v29 = vpop.permute.xlu0 %2870  ;;  %v18645_v30 = vpop.permute.xlu1 %2872 }
 0x185   : > { %24187 = vst [vmem:[#allocation9_spill] sm:$0xff] %v18635_v29  ;;  %24188 = vst [vmem:[#allocation10_spill] sm:$0xff] %v18645_v30  ;;  %v18693_v29 = vrot.slane %v18399_v44, %v316_v12 }
 0x186   : > { %570 = vrot.lane.b32.xlu0 %v18624_v16, %s18235_s17  ;;  %616 = vrot.lane.b32.xlu1 %v18606_v63, %s18234_s16 }
 0x188   : > { %v18641_v60 = vpop.permute.xlu0 %554  ;;  %v18661_v38 = vpop.permute.xlu1 %556 }
 0x18a   : > { %2902 = vrot.lane.b32.xlu0 %v18586_v37, %s18237_s19  ;;  %664 = vrot.lane.b32.xlu1 %v18606_v63, %s18236_s18 }
 0x18c   : > { %v18649_v31 = vpop.permute.xlu0 %602  ;;  %v18684_v2 = vpop.permute.xlu1 %604 }
 0x18d   : > { %v962_v3 = vcombine.low %v18469_v6, %v18649_v31  ;;  %v963_v24 = vcombine.high %v18469_v6, %v18649_v31 }
 0x18e   : > { %2934 = vrot.lane.b32.xlu0 %v18592_v46, %s18237_s19  ;;  %2876 = vrot.lane.b32.xlu1 %v18476_v7, %s18237_s19 }
 0x18f   : > { %v970_v58 = vrot.slane %v962_v3, %v18546_v32  ;;  %v977_v6 = vrot.slane %v963_v24, %v18546_v32  ;;  %v782_v3 = vrot.slane %v774_v8, %v18546_v32  ;;  %v759_v24 = vcombine.high %v18414_v50, %v18550_v35 }
 0x190   : > { %v18663_v40 = vpop.permute.xlu0 %650  ;;  %v18713_v8 = vadd.f32 %v18407_v48, %v18693_v29 }
 0x191   : > { %v978_v41 = vcombine.low %v18641_v60, %v18663_v40  ;;  %v979_v43 = vcombine.high %v18641_v60, %v18663_v40 }
 0x192   : > { %2966 = vrot.lane.b32.xlu0 %v18616_v10, %s18237_s19  ;;  %572 = vrot.lane.b32.xlu1 %v18655_v33, %s18235_s17  ;;  %24189 = vst [vmem:[#allocation11_spill] sm:$0xff] %v18713_v8 }
 0x193   : > { %v986_v34 = vrot.slane %v978_v41, %v18546_v32  ;;  %v993_v27 = vrot.slane %v979_v43, %v18546_v32  ;;  %v758_v41 = vcombine.low %v18414_v50, %v18550_v35  ;;  %v18720_v50 = vadd.f32 %v18510_v18, %v18402_v45 }
 0x194   : > { %v18724_v35 = vadd.f32 %v18416_v51, %v18693_v29  ;;  %v18738_v18 = vadd.f32 %v18440_v59, %v18693_v29  ;;  %v18742_v51 = vadd.f32 %v18448_v62, %v18693_v29  ;;  %v18753_v59 = vadd.f32 %v18454_v0, %v18693_v29 }
 0x195   : > { %v994_v43 = vcombine.low %v970_v58, %v986_v34  ;;  %v995_v42 = vcombine.high %v970_v58, %v986_v34  ;;  %v1010_v54 = vcombine.low %v977_v6, %v993_v27  ;;  %v1011_v30 = vcombine.high %v977_v6, %v993_v27  ;;  %v18705_v27 = vpop.permute.xlu1 %652 }
 0x196   : > { %618 = vrot.lane.b32.xlu0 %v18624_v16, %s18234_s16  ;;  %2904 = vrot.lane.b32.xlu1 %v18584_v36, %s18237_s19  ;;  %v766_v58 = vrot.slane %v758_v41, %v18546_v32  ;;  %v789_v34 = vrot.slane %v775_v25, %v18546_v32  ;;  %24190 = vst [vmem:[#allocation12_spill] sm:$0xff] %v18724_v35  ;;  %24193 = vst [vmem:[#allocation15_spill] sm:$0xff] %v18738_v18 }
 0x197   : > { %v1002_v44 = vrot.slane %v994_v43, %v18554_v39  ;;  %v1009_v12 = vrot.slane %v995_v42, %v18554_v39  ;;  %v1018_v49 = vrot.slane %v1010_v54, %v18554_v39  ;;  %v1025_v26 = vrot.slane %v1011_v30, %v18554_v39  ;;  %24194 = vst [vmem:[#allocation16_spill] sm:$0xff] %v18742_v51 }
 0x198   : > { %v18728_v54 = vadd.f32 %v18422_v53, %v18693_v29  ;;  %v790_v30 = vcombine.low %v766_v58, %v782_v3  ;;  %v791_v48 = vcombine.high %v766_v58, %v782_v3  ;;  %v18734_v25 = vadd.f32 %v18428_v55, %v18693_v29  ;;  %24196 = vst [vmem:[#allocation18_spill] sm:$0xff] %v18753_v59 }
 0x199   : > { %v773_v53 = vrot.slane %v759_v24, %v18546_v32  ;;  %v2050_v6 = vcombine.low %v1002_v44, %v1009_v12  ;;  %v16489_v41 = vcombine.high %v1002_v44, %v1009_v12  ;;  %v2066_v43 = vcombine.low %v1018_v49, %v1025_v26  ;;  %v18761_v12 = vpop.permute.xlu1 %560 }
 0x19a   : > { %666 = vrot.lane.b32.xlu0 %v18624_v16, %s18236_s18  ;;  %2936 = vrot.lane.b32.xlu1 %v18602_v61, %s18237_s19  ;;  %24191 = vst [vmem:[#allocation13_spill] sm:$0xff] %v18728_v54  ;;  %24192 = vst [vmem:[#allocation14_spill] sm:$0xff] %v18734_v25  ;;  %v16490_v42 = vcombine.high %v1018_v49, %v1025_v26  ;;  %v18747_v3 = vadd.f32 %v18456_v1, %v18693_v29 }
 0x19b   : > { %v806_v55 = vcombine.low %v773_v53, %v789_v34  ;;  %v910_v58 = vcombine.low %v18584_v36, %v18633_v28  ;;  %v798_v62 = vrot.slane %v790_v30, %v18554_v39  ;;  %v805_v24 = vrot.slane %v791_v48, %v18554_v39 }
 0x19c   : > { %24195 = vst [vmem:[#allocation17_spill] sm:$0xff] %v18747_v3  ;;  %v807_v44 = vcombine.high %v773_v53, %v789_v34  ;;  %v842_v1 = vcombine.low %v18586_v37, %v18616_v10  ;;  %v894_v0 = vcombine.low %v18438_v57, %v18602_v61  ;;  %v826_v49 = vcombine.low %v18431_v56, %v18592_v46 }
 0x19d   : > { %v911_v26 = vcombine.high %v18584_v36, %v18633_v28  ;;  %v843_v34 = vcombine.high %v18586_v37, %v18616_v10  ;;  %v18774_v30 = vrot.slane %v2050_v6, %v18546_v32  ;;  %v18777_v48 = vrot.slane %v16489_v41, %v18546_v32 }
 0x19e   : > { %2878 = vrot.lane.b32.xlu0 %v18493_v14, %s18237_s19  ;;  %2968 = vrot.lane.b32.xlu1 %v18633_v28, %s18237_s19  ;;  %v18780_v53 = vrot.slane %v2066_v43, %v18546_v32  ;;  %v18783_v59 = vrot.slane %v16490_v42, %v18546_v32  ;;  %v18787_v3 = vadd.f32 %v18464_v4, %v18693_v29 }
 0x19f   : > { %v895_v36 = vcombine.high %v18438_v57, %v18602_v61  ;;  %v827_v37 = vcombine.high %v18431_v56, %v18592_v46  ;;  %v918_v10 = vrot.slane %v910_v58, %v18546_v32  ;;  %v814_v28 = vrot.slane %v806_v55, %v18554_v39  ;;  %v18809_v55 = vpop.permute.xlu1 %608 }
 0x1a0   : > { %24197 = vst [vmem:[#allocation19_spill] sm:$0xff] %v18787_v3  ;;  %v821_v6 = vrot.slane %v807_v44, %v18554_v39  ;;  %v850_v41 = vrot.slane %v842_v1, %v18546_v32  ;;  %v18803_v57 = vadd.f32 %v18536_v22, %v18402_v45  ;;  %v1846_v4 = vcombine.low %v798_v62, %v805_v24  ;;  %v18817_v1 = vpop.permute.xlu0 %558 }
 0x1a1   : > { %v16483_v56 = vcombine.high %v798_v62, %v805_v24  ;;  %v902_v46 = vrot.slane %v894_v0, %v18546_v32  ;;  %v857_v61 = vrot.slane %v843_v34, %v18546_v32  ;;  %v834_v43 = vrot.slane %v826_v49, %v18546_v32 }
 0x1a2   : > { %574 = vrot.lane.b32.xlu0 %v18720_v50, %s18235_s17  ;;  %620 = vrot.lane.b32.xlu1 %v18655_v33, %s18234_s16  ;;  %v925_v42 = vrot.slane %v911_v26, %v18546_v32  ;;  %v2082_v58 = vcombine.low %v18774_v30, %v18777_v48  ;;  %v2098_v44 = vcombine.low %v18780_v53, %v18783_v59 }
 0x1a3   : > { %v909_v45 = vrot.slane %v895_v36, %v18546_v32  ;;  %v841_v22 = vrot.slane %v827_v37, %v18546_v32  ;;  %v926_v62 = vcombine.low %v902_v46, %v918_v10  ;;  %v927_v24 = vcombine.high %v902_v46, %v918_v10 }
 0x1a4   : > { %v858_v0 = vcombine.low %v834_v43, %v850_v41  ;;  %v859_v49 = vcombine.high %v834_v43, %v850_v41  ;;  %v18822_v26 = vrot.slane %v2082_v58, %v18554_v39  ;;  %v18825_v34 = vrot.slane %v2098_v44, %v18554_v39  ;;  %v18851_v44 = vpop.permute.xlu1 %656 }
 0x1a5   : > { %v1862_v36 = vcombine.low %v814_v28, %v821_v6  ;;  %v16484_v37 = vcombine.high %v814_v28, %v821_v6  ;;  %v874_v3 = vcombine.low %v841_v22, %v857_v61  ;;  %v875_v10 = vcombine.high %v841_v22, %v857_v61 }
 0x1a6   : > { %622 = vrot.lane.b32.xlu0 %v18720_v50, %s18234_s16  ;;  %668 = vrot.lane.b32.xlu1 %v18655_v33, %s18236_s18  ;;  %24198 = vst [vmem:[#allocation20_spill] sm:$0xff] %v18822_v26  ;;  %24199 = vst [vmem:[#allocation21_spill] sm:$0xff] %v18825_v34  ;;  %v942_v46 = vcombine.low %v909_v45, %v925_v42  ;;  %v943_v18 = vcombine.high %v909_v45, %v925_v42  ;;  %v18860_v45 = vpop.permute.xlu0 %606 }
 0x1a7   : > { %v2115_v41 = vcombine.high %v18822_v26, %v18825_v34  ;;  %v18837_v43 = vadd.f32 %v18478_v9, %v18693_v29  ;;  %v18840_v58 = vrot.slane %v1846_v4, %v18546_v32  ;;  %v934_v28 = vrot.slane %v926_v62, %v18554_v39 }
 0x1a8   : > { %v941_v6 = vrot.slane %v927_v24, %v18554_v39  ;;  %v866_v61 = vrot.slane %v858_v0, %v18554_v39  ;;  %v873_v42 = vrot.slane %v859_v49, %v18554_v39  ;;  %v1869_v9 = vrot.slane %v1862_v36, %v18546_v32 }
 0x1a9   : > { %24201 = vst [vmem:[#allocation23_spill] sm:$0xff] %v18837_v43  ;;  %17170 = vmatprep.mubr.msk.f32.mxu0 %vm7570_vm1, %v2115_v41  ;;  %v1877_v4 = vrot.slane %v16484_v37, %v18546_v32  ;;  %v18864_v22 = vadd.f32 %v18484_v11, %v18693_v29  ;;  %v950_v62 = vrot.slane %v942_v46, %v18554_v39  ;;  %v18887_v43 = vpop.permute.xlu1 %564 }
 0x1aa   : > { %2906 = vrot.lane.b32.xlu0 %v18641_v60, %s18237_s19  ;;  %2880 = vrot.lane.b32.xlu1 %v18500_v15, %s18237_s19  ;;  %v18831_v60 = vadd.f32 %v18466_v5, %v18693_v29  ;;  %v18847_v5 = vrot.slane %v16483_v56, %v18546_v32  ;;  %v889_v56 = vrot.slane %v875_v10, %v18554_v39 }
 0x1ab   : > { %24202 = vst [vmem:[#allocation24_spill] sm:$0xff] %v18864_v22  ;;  %v957_v24 = vrot.slane %v943_v18, %v18554_v39  ;;  %v1046_v0 = vcombine.low %v18661_v38, %v18705_v27  ;;  %v18872_v49 = vadd.f32 %v18490_v13, %v18693_v29  ;;  %v16487_v36 = vcombine.high %v934_v28, %v941_v6 }
 0x1ac   : > { %24200 = vst [vmem:[#allocation22_spill] sm:$0xff] %v18831_v60  ;;  %v1047_v37 = vcombine.high %v18661_v38, %v18705_v27  ;;  %v1878_v11 = vcombine.low %v18840_v58, %v18847_v5  ;;  %v1914_v10 = vcombine.low %v866_v61, %v873_v42  ;;  %v16485_v18 = vcombine.high %v866_v61, %v873_v42 }
 0x1ad   : > { %24203 = vst [vmem:[#allocation25_spill] sm:$0xff] %v18872_v49  ;;  %v1030_v46 = vcombine.low %v18476_v7, %v18684_v2  ;;  %v1894_v13 = vcombine.low %v1869_v9, %v1877_v4  ;;  %v1998_v60 = vcombine.low %v950_v62, %v957_v24  ;;  %v16488_v49 = vcombine.high %v950_v62, %v957_v24 }
 0x1ae   : > { %2938 = vrot.lane.b32.xlu0 %v18649_v31, %s18237_s19  ;;  %576 = vrot.lane.b32.xlu1 %v18803_v57, %s18235_s17  ;;  %v882_v31 = vrot.slane %v874_v3, %v18554_v39  ;;  %v1982_v3 = vcombine.low %v934_v28, %v941_v6  ;;  %v1031_v6 = vcombine.high %v18476_v7, %v18684_v2 }
 0x1af   : > { %v1879_v61 = vcombine.high %v18840_v58, %v18847_v5  ;;  %v18895_v22 = vrot.slane %v16487_v36, %v18546_v32  ;;  %v1895_v7 = vcombine.high %v1869_v9, %v1877_v4  ;;  %v1038_v62 = vrot.slane %v1030_v46, %v18546_v32 }
 0x1b0   : > { %v1930_v41 = vcombine.low %v882_v31, %v889_v56  ;;  %v16486_v28 = vcombine.high %v882_v31, %v889_v56  ;;  %v18892_v42 = vrot.slane %v1982_v3, %v18546_v32  ;;  %v1061_v31 = vrot.slane %v1047_v37, %v18546_v32  ;;  %v18898_v56 = vpop.permute.xlu0 %654 }
 0x1b1   : > { %v18906_v58 = vrot.slane %v1914_v10, %v18546_v32  ;;  %v18909_v5 = vrot.slane %v16485_v18, %v18546_v32  ;;  %v18923_v4 = vrot.slane %v1998_v60, %v18546_v32  ;;  %v2099_v10 = vcombine.high %v18780_v53, %v18783_v59 }
 0x1b2   : > { %2970 = vrot.lane.b32.xlu0 %v18663_v40, %s18237_s19  ;;  %624 = vrot.lane.b32.xlu1 %v18803_v57, %s18234_s16  ;;  %v1054_v40 = vrot.slane %v1046_v0, %v18546_v32  ;;  %v1045_v0 = vrot.slane %v1031_v6, %v18546_v32  ;;  %v18915_v3 = vrot.slane %v1930_v41, %v18546_v32 }
 0x1b3   : > { %v18918_v9 = vrot.slane %v16486_v28, %v18546_v32  ;;  %v18928_v18 = vrot.slane %v16488_v49, %v18546_v32  ;;  %v18944_v59 = vrot.slane %v1878_v11, %v18554_v39  ;;  %v18947_v53 = vrot.slane %v1894_v13, %v18554_v39 }
 0x1b4   : > { %v1062_v36 = vcombine.low %v1038_v62, %v1054_v40  ;;  %v1063_v37 = vcombine.high %v1038_v62, %v1054_v40  ;;  %v1078_v46 = vcombine.low %v1045_v0, %v1061_v31  ;;  %v1079_v41 = vcombine.high %v1045_v0, %v1061_v31  ;;  %v18952_v49 = vpop.permute.xlu0 %562 }
 0x1b5   : > { %v18950_v60 = vrot.slane %v2099_v10, %v18554_v39  ;;  %v18955_v6 = vrot.slane %v1879_v61, %v18554_v39  ;;  %v1962_v11 = vcombine.low %v18915_v3, %v18918_v9  ;;  %v2014_v0 = vcombine.low %v18892_v42, %v18895_v22 }
 0x1b6   : > { %670 = vrot.lane.b32.xlu0 %v18720_v50, %s18236_s18  ;;  %2908 = vrot.lane.b32.xlu1 %v18661_v38, %s18237_s19  ;;  %v2083_v38 = vcombine.high %v18774_v30, %v18777_v48  ;;  %v18937_v30 = vadd.f32 %v18504_v17, %v18693_v29  ;;  %v18939_v48 = vpop.permute.xlu1 %612  ;;  %v18958_v17 = vrot.slane %v1895_v7, %v18554_v39 }
 0x1b7   : > { %24206 = vst [vmem:[#allocation28_spill] sm:$0xff] %v18950_v60  ;;  %v1070_v13 = vrot.slane %v1062_v36, %v18554_v39  ;;  %v1077_v40 = vrot.slane %v1063_v37, %v18554_v39  ;;  %v1086_v62 = vrot.slane %v1078_v46, %v18554_v39  ;;  %v1093_v7 = vrot.slane %v1079_v41, %v18554_v39 }
 0x1b8   : > { %v18933_v28 = vrot.slane %v2083_v38, %v18554_v39  ;;  %24205 = vst [vmem:[#allocation27_spill] sm:$0xff] %v18937_v30  ;;  %v2030_v38 = vcombine.low %v18923_v4, %v18928_v18  ;;  %v18980_v36 = vadd.f32 %v18530_v21, %v18693_v29  ;;  %v18984_v37 = vadd.f32 %v18538_v23, %v18693_v29  ;;  %v19010_v10 = vpop.permute.xlu0 %610 }
 0x1b9   : > { %v19000_v23 = vrot.slane %v1962_v11, %v18554_v39  ;;  %v2118_v29 = vcombine.low %v1070_v13, %v1077_v40  ;;  %v1182_v31 = vcombine.low %v18761_v12, %v18851_v44  ;;  %v1183_v24 = vcombine.high %v18761_v12, %v18851_v44 }
 0x1ba   : > { %2910 = vrot.lane.b32.xlu0 %v18817_v1, %s18237_s19  ;;  %24204 = vst [vmem:[#allocation26_spill] sm:$0xff] %v18933_v28  ;;  %2940 = vrot.lane.b32.xlu1 %v18684_v2, %s18237_s19  ;;  %v1946_v2 = vcombine.low %v18906_v58, %v18909_v5  ;;  %24207 = vst [vmem:[#allocation29_spill] sm:$0xff] %v18980_v36  ;;  %v19006_v46 = vpop.permute.xlu1 %660  ;;  %v2134_v41 = vcombine.low %v1086_v62, %v1093_v7 }
 0x1bb   : > { %24208 = vst [vmem:[#allocation30_spill] sm:$0xff] %v18984_v37  ;;  %v1114_v21 = vcombine.low %v18817_v1, %v18898_v56  ;;  %v19018_v11 = vrot.slane %v2030_v38, %v18554_v39  ;;  %v1167_v36 = vcombine.high %v18500_v15, %v18809_v55  ;;  %v1115_v37 = vcombine.high %v18817_v1, %v18898_v56 }
 0x1bc   : > { %v18997_v61 = vrot.slane %v1946_v2, %v18554_v39  ;;  %v19015_v2 = vrot.slane %v2014_v0, %v18554_v39  ;;  %v1098_v0 = vcombine.low %v18493_v14, %v18860_v45  ;;  %v1099_v38 = vcombine.high %v18493_v14, %v18860_v45  ;;  %v659_v51 = vpop.permute.xlu0 %658 }
 0x1bd   : > { %v1197_v60 = vrot.slane %v1183_v24, %v18546_v32  ;;  %v19045_v28 = vrot.slane %v2134_v41, %v18546_v32  ;;  %v1122_v14 = vrot.slane %v1114_v21, %v18546_v32  ;;  %v1303_v30 = vcombine.high %v18524_v20, %v18939_v48 }
 0x1be   : > { %2942 = vrot.lane.b32.xlu0 %v18860_v45, %s18237_s19  ;;  %2972 = vrot.lane.b32.xlu1 %v18705_v27, %s18237_s19  ;;  %v16491_v27 = vcombine.high %v1070_v13, %v1077_v40  ;;  %v16492_v13 = vcombine.high %v1086_v62, %v1093_v7  ;;  %v1166_v40 = vcombine.low %v18500_v15, %v18809_v55 }
 0x1bf   : > { %v1318_v62 = vcombine.low %v18887_v43, %v19006_v46  ;;  %v1319_v7 = vcombine.high %v18887_v43, %v19006_v46  ;;  %v19037_v15 = vrot.slane %v2118_v29, %v18546_v32  ;;  %v1302_v45 = vcombine.low %v18524_v20, %v18939_v48 }
 0x1c0   : > { %v19040_v1 = vrot.slane %v16491_v27, %v18546_v32  ;;  %v19055_v29 = vrot.slane %v16492_v13, %v18546_v32  ;;  %v1181_v24 = vrot.slane %v1167_v36, %v18546_v32  ;;  %v1129_v41 = vrot.slane %v1115_v37, %v18546_v32 }
 0x1c1   : > { %v1106_v21 = vrot.slane %v1098_v0, %v18546_v32  ;;  %v1113_v27 = vrot.slane %v1099_v38, %v18546_v32  ;;  %v1326_v34 = vrot.slane %v1318_v62, %v18546_v32  ;;  %v1333_v26 = vrot.slane %v1319_v7, %v18546_v32 }
 0x1c2   : > { %2974 = vrot.lane.b32.xlu0 %v18898_v56, %s18237_s19  ;;  %672 = vrot.lane.b32.xlu1 %v18803_v57, %s18236_s18  ;;  %v1190_v56 = vrot.slane %v1182_v31, %v18546_v32  ;;  %v1174_v31 = vrot.slane %v1166_v40, %v18546_v32  ;;  %v1214_v25 = vcombine.low %v1181_v24, %v1197_v60 }
 0x1c3   : > { %v1215_v40 = vcombine.high %v1181_v24, %v1197_v60  ;;  %v1130_v8 = vcombine.low %v1106_v21, %v1122_v14  ;;  %v1131_v36 = vcombine.high %v1106_v21, %v1122_v14  ;;  %v1310_v37 = vrot.slane %v1302_v45, %v18546_v32 }
 0x1c4   : > { %v1198_v13 = vcombine.low %v1174_v31, %v1190_v56  ;;  %v1199_v54 = vcombine.high %v1174_v31, %v1190_v56  ;;  %v1317_v35 = vrot.slane %v1303_v30, %v18546_v32  ;;  %v1147_v0 = vcombine.high %v1113_v27, %v1129_v41 }
 0x1c5   : > { %v1250_v38 = vcombine.low %v18952_v49, %v659_v51  ;;  %v1251_v62 = vcombine.high %v18952_v49, %v659_v51  ;;  %v1334_v7 = vcombine.low %v1310_v37, %v1326_v34  ;;  %v1335_v60 = vcombine.high %v1310_v37, %v1326_v34 }
 0x1c6   : > { %2882 = vrot.lane.b32.xlu0 %v18517_v19, %s18237_s19  ;;  %2912 = vrot.lane.b32.xlu1 %v18761_v12, %s18237_s19  ;;  %v1146_v12 = vcombine.low %v1113_v27, %v1129_v41  ;;  %v1350_v56 = vcombine.low %v1317_v35, %v1333_v26  ;;  %v1351_v14 = vcombine.high %v1317_v35, %v1333_v26 }
 0x1c7   : > { %v1206_v45 = vrot.slane %v1198_v13, %v18554_v39  ;;  %v1213_v30 = vrot.slane %v1199_v54, %v18554_v39  ;;  %v1234_v31 = vcombine.low %v18517_v19, %v19010_v10  ;;  %v1235_v24 = vcombine.high %v18517_v19, %v19010_v10 }
 0x1c8   : > { %v1222_v41 = vrot.slane %v1214_v25, %v18554_v39  ;;  %v1145_v34 = vrot.slane %v1131_v36, %v18554_v39  ;;  %v19087_v35 = vrot.slane %v1146_v12, %v18554_v39  ;;  %v1161_v54 = vrot.slane %v1147_v0, %v18554_v39 }
 0x1c9   : > { %v1258_v26 = vrot.slane %v1250_v38, %v18546_v32  ;;  %v1265_v19 = vrot.slane %v1251_v62, %v18546_v32  ;;  %v1342_v25 = vrot.slane %v1334_v7, %v18554_v39  ;;  %v1358_v21 = vrot.slane %v1350_v56, %v18554_v39 }
 0x1ca   : > { %2914 = vrot.lane.b32.xlu0 %v18952_v49, %s18237_s19  ;;  %2944 = vrot.lane.b32.xlu1 %v18809_v55, %s18237_s19  ;;  %v1229_v49 = vrot.slane %v1215_v40, %v18554_v39  ;;  %v1138_v55 = vrot.slane %v1130_v8, %v18554_v39  ;;  %v1349_v8 = vrot.slane %v1335_v60, %v18554_v39 }
 0x1cb   : > { %v2254_v27 = vcombine.low %v1206_v45, %v1213_v30  ;;  %v16495_v13 = vcombine.high %v1206_v45, %v1213_v30  ;;  %v1242_v40 = vrot.slane %v1234_v31, %v18546_v32  ;;  %v1249_v36 = vrot.slane %v1235_v24, %v18546_v32 }
 0x1cc   : > { %v2270_v37 = vcombine.low %v1222_v41, %v1229_v49  ;;  %v16496_v12 = vcombine.high %v1222_v41, %v1229_v49  ;;  %v2186_v0 = vcombine.low %v1138_v55, %v1145_v34  ;;  %v16493_v38 = vcombine.high %v1138_v55, %v1145_v34 }
 0x1cd   : > { %v1267_v62 = vcombine.high %v1242_v40, %v1258_v26  ;;  %v1282_v7 = vcombine.low %v1249_v36, %v1265_v19  ;;  %v1283_v60 = vcombine.high %v1249_v36, %v1265_v19  ;;  %v2390_v56 = vcombine.low %v1342_v25, %v1349_v8 }
 0x1ce   : > { %2946 = vrot.lane.b32.xlu0 %v19010_v10, %s18237_s19  ;;  %2976 = vrot.lane.b32.xlu1 %v18851_v44, %s18237_s19  ;;  %v1365_v10 = vrot.slane %v1351_v14, %v18554_v39  ;;  %v1266_v44 = vcombine.low %v1242_v40, %v1258_v26  ;;  %v16499_v14 = vcombine.high %v1342_v25, %v1349_v8 }
 0x1cf   : > { %v19104_v31 = vrot.slane %v2254_v27, %v18546_v32  ;;  %v19107_v24 = vrot.slane %v16495_v13, %v18546_v32  ;;  %v2202_v41 = vcombine.low %v19087_v35, %v1161_v54  ;;  %v19112_v49 = vrot.slane %v2270_v37, %v18546_v32 }
 0x1d0   : > { %v2406_v45 = vcombine.low %v1358_v21, %v1365_v10  ;;  %v16500_v30 = vcombine.high %v1358_v21, %v1365_v10  ;;  %v19115_v55 = vrot.slane %v16496_v12, %v18546_v32  ;;  %v19124_v26 = vrot.slane %v1266_v44, %v18554_v39 }
 0x1d1   : > { %v19133_v19 = vrot.slane %v1283_v60, %v18554_v39  ;;  %v19138_v25 = vrot.slane %v2390_v56, %v18546_v32  ;;  %v19141_v8 = vrot.slane %v16499_v14, %v18546_v32  ;;  %v1947_v27 = vcombine.high %v18906_v58, %v18909_v5 }
 0x1d2   : > { %2978 = vrot.lane.b32.xlu0 %v659_v51, %s18237_s19  ;;  %2884 = vrot.lane.b32.xlu1 %v18524_v20, %s18237_s19  ;;  %v16494_v51 = vcombine.high %v19087_v35, %v1161_v54  ;;  %v19127_v35 = vrot.slane %v1267_v62, %v18554_v39  ;;  %v19130_v54 = vrot.slane %v1282_v7, %v18554_v39 }
 0x1d3   : > { %v19144_v21 = vrot.slane %v2406_v45, %v18546_v32  ;;  %v19147_v10 = vrot.slane %v16500_v30, %v18546_v32  ;;  %v1963_v13 = vcombine.high %v18915_v3, %v18918_v9  ;;  %v2031_v40 = vcombine.high %v18923_v4, %v18928_v18 }
 0x1d4   : > { %v2150_v36 = vcombine.low %v19037_v15, %v19040_v1  ;;  %v2166_v37 = vcombine.low %v19045_v28, %v19055_v29  ;;  %v2151_v12 = vcombine.high %v19037_v15, %v19040_v1  ;;  %v2167_v58 = vcombine.high %v19045_v28, %v19055_v29 }
 0x1d5   : > { %v2322_v5 = vcombine.low %v19124_v26, %v19127_v35  ;;  %v2201_v3 = vrot.slane %v16493_v38, %v18546_v32  ;;  %v2338_v9 = vcombine.low %v19130_v54, %v19133_v19  ;;  %v16498_v4 = vcombine.high %v19130_v54, %v19133_v19 }
 0x1d6   : > { %2886 = vrot.lane.b32.xlu0 %v18565_v52, %s18237_s19  ;;  %2916 = vrot.lane.b32.xlu1 %v18887_v43, %s18237_s19  ;;  %v2015_v43 = vcombine.high %v18892_v42, %v18895_v22  ;;  %v16497_v22 = vcombine.high %v19124_v26, %v19127_v35  ;;  %v2193_v42 = vrot.slane %v2186_v0, %v18546_v32 }
 0x1d7   : > { %v2209_v28 = vrot.slane %v2202_v41, %v18546_v32  ;;  %v2217_v15 = vrot.slane %v16494_v51, %v18546_v32  ;;  %v19180_v1 = vrot.slane %v1947_v27, %v18554_v39  ;;  %v19189_v0 = vrot.slane %v2031_v40, %v18554_v39 }
 0x1d8   : > { %v19186_v29 = vrot.slane %v2015_v43, %v18554_v39  ;;  %v19192_v38 = vrot.slane %v2150_v36, %v18554_v39  ;;  %v19195_v44 = vrot.slane %v2166_v37, %v18554_v39  ;;  %v19198_v62 = vrot.slane %v2151_v12, %v18554_v39 }
 0x1d9   : > { %v19201_v7 = vrot.slane %v2167_v58, %v18554_v39  ;;  %v2218_v56 = vcombine.low %v2193_v42, %v2201_v3  ;;  %v2286_v14 = vcombine.low %v19104_v31, %v19107_v24  ;;  %v2302_v45 = vcombine.low %v19112_v49, %v19115_v55 }
 0x1da   : > { %2948 = vrot.lane.b32.xlu1 %v18939_v48, %s18237_s19  ;;  %v19183_v48 = vrot.slane %v1963_v13, %v18554_v39  ;;  %v2234_v51 = vcombine.low %v2209_v28, %v2217_v15  ;;  %v2219_v26 = vcombine.high %v2193_v42, %v2201_v3  ;;  %v2287_v35 = vcombine.high %v19104_v31, %v19107_v24 }
 0x1db   : > { %v2899_v18 = vpop.permute.xlu0 %2898  ;;  %v19235_v36 = vrot.slane %v2218_v56, %v18554_v39  ;;  %v19238_v37 = vrot.slane %v2286_v14, %v18554_v39  ;;  %v19241_v12 = vrot.slane %v2302_v45, %v18554_v39  ;;  %v2235_v24 = vcombine.high %v2209_v28, %v2217_v15 }
 0x1dc   : > { %v19244_v42 = vrot.slane %v2234_v51, %v18554_v39  ;;  %v19247_v3 = vrot.slane %v2219_v26, %v18554_v39  ;;  %v19250_v31 = vrot.slane %v2287_v35, %v18554_v39  ;;  %v2303_v14 = vcombine.high %v19112_v49, %v19115_v55 }
 0x1dd   : > { %24209 = vst [vmem:[#allocation31_spill] sm:$0xff] %v19235_v36  ;;  %24210 = vst [vmem:[#allocation32_spill] sm:$0xff] %v19238_v37  ;;  %v2329_v45 = vrot.slane %v2322_v5, %v18546_v32  ;;  %v2337_v27 = vrot.slane %v16497_v22, %v18546_v32  ;;  %v2345_v51 = vrot.slane %v2338_v9, %v18546_v32 }
 0x1de   : > { %2980 = vrot.lane.b32.xlu1 %v19006_v46, %s18237_s19  ;;  %24211 = vst [vmem:[#allocation33_spill] sm:$0xff] %v19241_v12  ;;  %24212 = vst [vmem:[#allocation34_spill] sm:$0xff] %v19244_v42  ;;  %v2353_v26 = vrot.slane %v16498_v4, %v18546_v32  ;;  %v19269_v55 = vrot.slane %v2235_v24, %v18554_v39  ;;  %v2422_v5 = vcombine.low %v19138_v25, %v19141_v8 }
 0x1df   : > { %v2931_v30 = vpop.permute.xlu0 %2930  ;;  %24213 = vst [vmem:[#allocation35_spill] sm:$0xff] %v19247_v3  ;;  %24214 = vst [vmem:[#allocation36_spill] sm:$0xff] %v19250_v31  ;;  %v2438_v22 = vcombine.low %v19144_v21, %v19147_v10 }
 0x1e0   : > { %v3058_v40 = vcombine.low %v18562_v47, %v2931_v30  ;;  %v3059_v56 = vcombine.high %v18562_v47, %v2931_v30  ;;  %24215 = vst [vmem:[#allocation37_spill] sm:$0xff] %v19269_v55  ;;  %v2370_v49 = vcombine.low %v2345_v51, %v2353_v26  ;;  %v2371_v54 = vcombine.high %v2345_v51, %v2353_v26 }
 0x1e1   : > { %v19292_v46 = vrot.slane %v2422_v5, %v18554_v39  ;;  %v2439_v51 = vcombine.high %v19144_v21, %v19147_v10  ;;  %v24223_v21 = vld [vmem:[#allocation4_spill] sm:$0xff] }
 0x1e2   : > { %2888 = vrot.lane.b32.xlu1 %v18606_v63, %s18237_s19  ;;  %v3066_v28 = vrot.slane %v3058_v40, %v18546_v32  ;;  %v3073_v9 = vrot.slane %v3059_v56, %v18546_v32  ;;  %v19283_v40 = vrot.slane %v2303_v14, %v18554_v39  ;;  %v2355_v56 = vcombine.high %v2329_v45, %v2337_v27 }
 0x1e3   : > { %v2963_v58 = vpop.permute.xlu0 %2962  ;;  %24217 = vst [vmem:[#allocation39_spill] sm:$0xff] %v19292_v46  ;;  %v19295_v14 = vrot.slane %v2438_v22, %v18554_v39 }
 0x1e4   : > { %v3074_v43 = vcombine.low %v2899_v18, %v2963_v58  ;;  %v3075_v13 = vcombine.high %v2899_v18, %v2963_v58  ;;  %24216 = vst [vmem:[#allocation38_spill] sm:$0xff] %v19283_v40  ;;  %v2354_v58 = vcombine.low %v2329_v45, %v2337_v27  ;;  %v2423_v45 = vcombine.high %v19138_v25, %v19141_v8 }
 0x1e5   : > { %24218 = vst [vmem:[#allocation40_spill] sm:$0xff] %v19295_v14  ;;  %v19318_v25 = vrot.slane %v2355_v56, %v18554_v39  ;;  %v19321_v8 = vrot.slane %v2371_v54, %v18554_v39  ;;  %v19337_v56 = vrot.slane %v2439_v51, %v18554_v39 }
 0x1e6   : > { %v3082_v15 = vrot.slane %v3074_v43, %v18546_v32  ;;  %v3089_v35 = vrot.slane %v3075_v13, %v18546_v32  ;;  %v19310_v22 = vrot.slane %v2354_v58, %v18554_v39  ;;  %v19334_v54 = vrot.slane %v2423_v45, %v18554_v39 }
 0x1e7   : > { %24221 = vst [vmem:[#allocation43_spill] sm:$0xff] %v19318_v25  ;;  %24222 = vst [vmem:[#allocation44_spill] sm:$0xff] %v19321_v8 }
 0x1e8   : > { %v19264_v18 = vpop.permute.xlu0 %566  ;;  %v3090_v4 = vcombine.low %v3066_v28, %v3082_v15  ;;  %v3091_v30 = vcombine.high %v3066_v28, %v3082_v15  ;;  %v2901_v13 = vpop.permute.xlu1 %2900  ;;  %v3106_v47 = vcombine.low %v3073_v9, %v3089_v35  ;;  %v3107_v19 = vcombine.high %v3073_v9, %v3089_v35  ;;  %24219 = vst [vmem:[#allocation41_spill] sm:$0xff] %v19310_v22 }
 0x1e9   : > { %2918 = vrot.lane.b32.xlu0 %v19264_v18, %s18237_s19  ;;  %v19313_v9 = vrot.slane %v2370_v49, %v18554_v39  ;;  %24224 = vst [vmem:[#allocation4_spill] sm:$0xff] %v19334_v54  ;;  %24225 = vst [vmem:[#allocation45_spill] sm:$0xff] %v19337_v56 }
 0x1ea   : > { %v3098_v24 = vrot.slane %v3090_v4, %v18554_v39  ;;  %v3105_v35 = vrot.slane %v3091_v30, %v18554_v39  ;;  %v3114_v4 = vrot.slane %v3106_v47, %v18554_v39  ;;  %v3121_v30 = vrot.slane %v3107_v19, %v18554_v39 }
 0x1eb   : > { %24220 = vst [vmem:[#allocation42_spill] sm:$0xff] %v19313_v9 }
 0x1ec   : > { %v19285_v28 = vpop.permute.xlu0 %614  ;;  %v2933_v27 = vpop.permute.xlu1 %2932  ;;  %v4146_v58 = vcombine.low %v3098_v24, %v3105_v35  ;;  %v16513_v19 = vcombine.high %v3098_v24, %v3105_v35  ;;  %v4162_v15 = vcombine.low %v3114_v4, %v3121_v30  ;;  %v16514_v24 = vcombine.high %v3114_v4, %v3121_v30 }
 0x1ed   : > { %2950 = vrot.lane.b32.xlu0 %v19285_v28, %s18237_s19  ;;  %v3126_v10 = vcombine.low %v24223_v21, %v2933_v27  ;;  %v3127_v5 = vcombine.high %v24223_v21, %v2933_v27  ;;  %v1370_v35 = vcombine.low %v18565_v52, %v19285_v28  ;;  %v1371_v30 = vcombine.high %v18565_v52, %v19285_v28 }
 0x1ee   : > { %v4153_v47 = vrot.slane %v4146_v58, %v18546_v32  ;;  %v4161_v4 = vrot.slane %v16513_v19, %v18546_v32  ;;  %v19363_v58 = vrot.slane %v4162_v15, %v18546_v32  ;;  %v19366_v19 = vrot.slane %v16514_v24, %v18546_v32 }
 0x1ef   : > { %v3134_v41 = vrot.slane %v3126_v10, %v18546_v32  ;;  %v3141_v51 = vrot.slane %v3127_v5, %v18546_v32  ;;  %v1378_v52 = vrot.slane %v1370_v35, %v18546_v32  ;;  %v19378_v15 = vrot.slane %v1371_v30, %v18546_v32 }
 0x1f0   : > { %v19325_v26 = vpop.permute.xlu0 %662  ;;  %v2965_v43 = vpop.permute.xlu1 %2964  ;;  %v4194_v30 = vcombine.low %v19363_v58, %v19366_v19  ;;  %v4179_v25 = vcombine.high %v4153_v47, %v4161_v4 }
 0x1f1   : > { %2982 = vrot.lane.b32.xlu0 %v19325_v26, %s18237_s19  ;;  %v3142_v27 = vcombine.low %v2901_v13, %v2965_v43  ;;  %v3143_v21 = vcombine.high %v2901_v13, %v2965_v43  ;;  %v1386_v45 = vcombine.low %v19264_v18, %v19325_v26  ;;  %v1387_v24 = vcombine.high %v19264_v18, %v19325_v26 }
 0x1f2   : > { %v19402_v40 = vrot.slane %v4179_v25, %v18554_v39 }
 0x1f3   : > { %v3150_v13 = vrot.slane %v3142_v27, %v18546_v32  ;;  %v3157_v43 = vrot.slane %v3143_v21, %v18546_v32  ;;  %v1394_v35 = vrot.slane %v1386_v45, %v18546_v32 }
 0x1f4   : > { %v19351_v49 = vpop.permute.xlu0 %2874  ;;  %v569_v60 = vpop.permute.xlu1 %568 }
 0x1f5   : > { %2890 = vrot.lane.b32.xlu0 %v18624_v16, %s18237_s19  ;;  %v3158_v5 = vcombine.low %v3134_v41, %v3150_v13  ;;  %v3159_v10 = vcombine.high %v3134_v41, %v3150_v13  ;;  %v3174_v27 = vcombine.low %v3141_v51, %v3157_v43  ;;  %v3175_v21 = vcombine.high %v3141_v51, %v3157_v43 }
 0x1f6   : > { %2920 = vrot.lane.b32.xlu1 %v569_v60, %s18237_s19 }
 0x1f7   : > { %v3166_v34 = vrot.slane %v3158_v5, %v18554_v39  ;;  %v3173_v20 = vrot.slane %v3159_v10, %v18554_v39  ;;  %v3182_v41 = vrot.slane %v3174_v27, %v18554_v39  ;;  %v3189_v51 = vrot.slane %v3175_v21, %v18554_v39 }
 0x1f8   : > { %v19375_v13 = vpop.permute.xlu0 %570  ;;  %v617_v43 = vpop.permute.xlu1 %616  ;;  %v4178_v5 = vcombine.low %v4153_v47, %v4161_v4 }
 0x1f9   : > { %2922 = vrot.lane.b32.xlu0 %v19375_v13, %s18237_s19  ;;  %v4214_v10 = vcombine.low %v3166_v34, %v3173_v20  ;;  %v16515_v28 = vcombine.high %v3166_v34, %v3173_v20  ;;  %v4230_v27 = vcombine.low %v3182_v41, %v3189_v51  ;;  %v16516_v8 = vcombine.high %v3182_v41, %v3189_v51 }
 0x1fa   : > { %2952 = vrot.lane.b32.xlu1 %v617_v43, %s18237_s19  ;;  %v1438_v21 = vcombine.low %v18606_v63, %v617_v43  ;;  %v1401_v41 = vrot.slane %v1387_v24, %v18546_v32  ;;  %v1402_v51 = vcombine.low %v1378_v52, %v1394_v35  ;;  %v1439_v46 = vcombine.high %v18606_v63, %v617_v43 }
 0x1fb   : > { %v4221_v26 = vrot.slane %v4214_v10, %v18546_v32  ;;  %v4229_v45 = vrot.slane %v16515_v28, %v18546_v32  ;;  %v4237_v14 = vrot.slane %v4230_v27, %v18546_v32  ;;  %v4245_v20 = vrot.slane %v16516_v8, %v18546_v32 }
 0x1fc   : > { %v2903_v34 = vpop.permute.xlu0 %2902  ;;  %v665_v9 = vpop.permute.xlu1 %664  ;;  %v4186_v47 = vrot.slane %v4178_v5, %v18554_v39  ;;  %v1403_v28 = vcombine.high %v1378_v52, %v1394_v35  ;;  %v1446_v27 = vrot.slane %v1438_v21, %v18546_v32  ;;  %v4202_v8 = vrot.slane %v4194_v30, %v18554_v39 }
 0x1fd   : > { %v1454_v4 = vcombine.low %v569_v60, %v665_v9  ;;  %v1455_v22 = vcombine.high %v569_v60, %v665_v9  ;;  %v4246_v10 = vcombine.low %v4221_v26, %v4229_v45  ;;  %v4262_v18 = vcombine.low %v4237_v14, %v4245_v20 }
 0x1fe   : > { %2984 = vrot.lane.b32.xlu1 %v665_v9, %s18237_s19  ;;  %v19409_v9 = vrot.slane %v1402_v51, %v18554_v39  ;;  %v1418_v52 = vcombine.low %v19378_v15, %v1401_v41  ;;  %v1419_v35 = vcombine.high %v19378_v15, %v1401_v41  ;;  %v1453_v21 = vrot.slane %v1439_v46, %v18546_v32 }
 0x1ff   : > { %v1462_v24 = vrot.slane %v1454_v4, %v18546_v32  ;;  %v1469_v63 = vrot.slane %v1455_v22, %v18546_v32  ;;  %v4254_v5 = vrot.slane %v4246_v10, %v18554_v39  ;;  %v4270_v60 = vrot.slane %v4262_v18, %v18554_v39  ;;  %v24226_v4 = vld [vmem:[#allocation9_spill] sm:$0xff] }
 0x200   : > { %v2935_v43 = vpop.permute.xlu0 %2934  ;;  %v19414_v25 = vpop.permute.xlu1 %2876  ;;  %v4247_v22 = vcombine.high %v4221_v26, %v4229_v45  ;;  %v4263_v10 = vcombine.high %v4237_v14, %v4245_v20  ;;  %v4210_v55 = vcombine.low %v4186_v47, %v4202_v8  ;;  %v1417_v12 = vrot.slane %v1403_v28, %v18554_v39 }
 0x201   : > { %v1470_v30 = vcombine.low %v1446_v27, %v1462_v24  ;;  %v3194_v31 = vcombine.low %v24226_v4, %v2935_v43  ;;  %v1471_v18 = vcombine.high %v1446_v27, %v1462_v24  ;;  %v4278_v51 = vcombine.low %v4254_v5, %v4270_v60 }
 0x202   : > { %2892 = vrot.lane.b32.xlu1 %v18655_v33, %s18237_s19  ;;  %v4279_v3 = vcombine.high %v4254_v5, %v4270_v60  ;;  %v1486_v37 = vcombine.low %v1453_v21, %v1469_v63  ;;  %v3195_v15 = vcombine.high %v24226_v4, %v2935_v43  ;;  %v4211_v42 = vcombine.high %v4186_v47, %v4202_v8 }
 0x203   : > { %v1487_v36 = vcombine.high %v1453_v21, %v1469_v63  ;;  %v17607_v20 = vpack.c.bf16 %v4278_v51, %v4210_v55  ;;  %v1478_v27 = vrot.slane %v1470_v30, %v18554_v39  ;;  %v3202_v28 = vrot.slane %v3194_v31, %v18546_v32 }
 0x204   : > { %v2967_v46 = vpop.permute.xlu0 %2966  ;;  %v19427_v26 = vpop.permute.xlu1 %572  ;;  %v19434_v24 = vrot.slane %v4247_v22, %v18554_v39  ;;  %v19437_v43 = vrot.slane %v4263_v10, %v18554_v39  ;;  %v1485_v47 = vrot.slane %v1471_v18, %v18554_v39  ;;  %v17613_v55 = vpack.c.bf16 %v4279_v3, %v4211_v42 }
 0x205   : > { %v3210_v14 = vcombine.low %v2903_v34, %v2967_v46  ;;  %v3211_v45 = vcombine.high %v2903_v34, %v2967_v46  ;;  %17609 = vmatprep.subr.msk.bf16.mxu1 %vm19423_vm2, %v17607_v20  ;;  %v19445_v31 = vrot.slane %v1418_v52, %v18554_v39  ;;  %v19448_v63 = vrot.slane %v1419_v35, %v18554_v39 }
 0x206   : > { %2924 = vrot.lane.b32.xlu1 %v19427_v26, %s18237_s19  ;;  %v3209_v5 = vrot.slane %v3195_v15, %v18546_v32  ;;  %17612 = vmatpush3.bf16.xpose.msk.msra.mxu1 %vm19423_vm2, %v17607_v20  ;;  %v24229_v21 = vcombine.high %v19363_v58, %v19366_v19  ;;  %v1494_v42 = vrot.slane %v1486_v37, %v18554_v39 }
 0x207   : > { %v3218_v8 = vrot.slane %v3210_v14, %v18546_v32  ;;  %v3225_v34 = vrot.slane %v3211_v45, %v18546_v32  ;;  %v1501_v3 = vrot.slane %v1487_v36, %v18554_v39  ;;  %17615 = vmatprep.subr.msk.bf16.mxu1 %vm19423_vm2, %v17613_v55  ;;  %v2458_v22 = vcombine.low %v19409_v9, %v1417_v12 }
 0x208   : > { %v19453_v60 = vpop.permute.xlu0 %618  ;;  %v4209_v30 = vrot.slane %v24229_v21, %v18554_v39  ;;  %v2905_v35 = vpop.permute.xlu1 %2904  ;;  %v16501_v10 = vcombine.high %v19409_v9, %v1417_v12  ;;  %v2526_v58 = vcombine.low %v1478_v27, %v1485_v47  ;;  %v4280_v37 = vcombine.low %v19434_v24, %v19437_v43 }
 0x209   : > { %v3226_v52 = vcombine.low %v3202_v28, %v3218_v8  ;;  %v3227_v4 = vcombine.high %v3202_v28, %v3218_v8  ;;  %v3242_v18 = vcombine.low %v3209_v5, %v3225_v34  ;;  %v3243_v51 = vcombine.high %v3209_v5, %v3225_v34  ;;  %2954 = vrot.lane.b32.xlu0 %v19453_v60, %s18237_s19 }
 0x20a   : > { %v2474_v15 = vcombine.low %v19445_v31, %v19448_v63  ;;  %v16503_v46 = vcombine.high %v1478_v27, %v1485_v47  ;;  %v2542_v20 = vcombine.low %v1494_v42, %v1501_v3  ;;  %v4212_v8 = vcombine.low %v19402_v40, %v4209_v30 }
 0x20b   : > { %v3234_v12 = vrot.slane %v3226_v52, %v18554_v39  ;;  %v3241_v9 = vrot.slane %v3227_v4, %v18554_v39  ;;  %v4213_v34 = vcombine.high %v19402_v40, %v4209_v30  ;;  %v3250_v5 = vrot.slane %v3242_v18, %v18554_v39 }
 0x20c   : > { %v667_v14 = vpop.permute.xlu0 %666  ;;  %v2937_v28 = vpop.permute.xlu1 %2936  ;;  %v3257_v21 = vrot.slane %v3243_v51, %v18554_v39  ;;  %v19485_v27 = vrot.slane %v2458_v22, %v18546_v32  ;;  %v19488_v47 = vrot.slane %v16501_v10, %v18546_v32  ;;  %v19491_v52 = vrot.slane %v2526_v58, %v18546_v32  ;;  %v24234_v58 = vld [vmem:[#allocation10_spill] sm:$0xff] }
 0x20d   : > { %2986 = vrot.lane.b32.xlu0 %v667_v14, %s18237_s19  ;;  %v16504_v4 = vcombine.high %v1494_v42, %v1501_v3  ;;  %v24231_v19 = vcombine.low %v18944_v59, %v18947_v53  ;;  %v17619_v40 = vpack.c.bf16 %v4280_v37, %v4212_v8  ;;  %v4281_v30 = vcombine.high %v19434_v24, %v19437_v43  ;;  %v24235_v43 = vld [vmem:[#allocation5_spill] sm:$0xff] }
 0x20e   : > { %24230 = vst [vmem:[#allocation9_spill] sm:$0xff] %v19491_v52  ;;  %v19500_v18 = vrot.slane %v16503_v46, %v18546_v32  ;;  %v4282_v22 = vcombine.low %v3234_v12, %v3241_v9  ;;  %v16517_v51 = vcombine.high %v3234_v12, %v3241_v9  ;;  %v1506_v10 = vcombine.low %v18624_v16, %v19453_v60 }
 0x20f   : > { %17108 = vmatmul.mubr.msk.f32.vlgmr.msra.gmra.mrb[8].mxu1 %vm7570_vm1, %v24231_v19  ;;  %v19509_v3 = vrot.slane %v2542_v20, %v18546_v32  ;;  %v3262_v37 = vcombine.low %v24234_v58, %v2937_v28  ;;  %v3263_v24 = vcombine.high %v24234_v58, %v2937_v28  ;;  %v24236_v19 = vld [vmem:[#allocation6_spill] sm:$0xff]  ;;  %v4298_v9 = vcombine.low %v3250_v5, %v3257_v21 }
 0x210   : > { %24232 = vst [vmem:[#allocation46_spill] sm:$0xff] %v19500_v18  ;;  %17618 = vmatpush3.bf16.xpose.msk.msra.mxu1 %vm19423_vm2, %v17613_v55  ;;  %v19506_v42 = vpop.permute.xlu0 %2878  ;;  %v24237_v46 = vcombine.high %v24235_v43, %v24236_v19  ;;  %v2969_v12 = vpop.permute.xlu1 %2968  ;;  %v16518_v55 = vcombine.high %v3250_v5, %v3257_v21  ;;  %v1507_v8 = vcombine.high %v18624_v16, %v19453_v60 }
 0x211   : > { %24233 = vst [vmem:[#allocation47_spill] sm:$0xff] %v19509_v3  ;;  %17621 = vmatprep.subr.msk.bf16.mxu1 %vm19423_vm2, %v17619_v40  ;;  %v1522_v20 = vcombine.low %v19375_v13, %v667_v14  ;;  %2894 = vrot.lane.b32.xlu0 %v18720_v50, %s18237_s19  ;;  %v19525_v28 = vrot.slane %v16504_v4, %v18546_v32 }
 0x212   : > { %17114 = vmatprep.mubr.msk.f32.mxu1 %vm7570_vm1, %v24237_v46  ;;  %v3278_v58 = vcombine.low %v2905_v35, %v2969_v12  ;;  %v3279_v43 = vcombine.high %v2905_v35, %v2969_v12  ;;  %v19527_v19 = vpack.c.bf16 %v4281_v30, %v4213_v34  ;;  %v19530_v46 = vrot.slane %v4282_v22, %v18546_v32 }
 0x213   : > { %24238 = vst [vmem:[#allocation10_spill] sm:$0xff] %v19525_v28  ;;  %v19533_v5 = vrot.slane %v16517_v51, %v18546_v32  ;;  %v1514_v16 = vrot.slane %v1506_v10, %v18546_v32  ;;  %v1523_v60 = vcombine.high %v19375_v13, %v667_v14  ;;  %v3270_v36 = vrot.slane %v3262_v37, %v18546_v32 }
 0x214   : > { %v19537_v21 = vpop.permute.xlu0 %574  ;;  %v3277_v4 = vrot.slane %v3263_v24, %v18546_v32  ;;  %v3286_v35 = vrot.slane %v3278_v58, %v18546_v32  ;;  %v3293_v34 = vrot.slane %v3279_v43, %v18546_v32  ;;  %v19543_v30 = vpop.permute.xlu1 %620  ;;  %v19546_v22 = vrot.slane %v4298_v9, %v18546_v32 }
 0x215   : > { %v19549_v51 = vrot.slane %v16518_v55, %v18546_v32  ;;  %v1521_v13 = vrot.slane %v1507_v8, %v18546_v32  ;;  %v1530_v14 = vrot.slane %v1522_v20, %v18546_v32  ;;  %2956 = vrot.lane.b32.xlu1 %v19543_v30, %s18237_s19  ;;  %v24239_v58 = vcombine.high %v18944_v59, %v18947_v53 }
 0x216   : > { %v3294_v10 = vcombine.low %v3270_v36, %v3286_v35  ;;  %v3295_v37 = vcombine.high %v3270_v36, %v3286_v35  ;;  %v3310_v24 = vcombine.low %v3277_v4, %v3293_v34  ;;  %v3311_v12 = vcombine.high %v3277_v4, %v3293_v34  ;;  %2926 = vrot.lane.b32.xlu0 %v19537_v21, %s18237_s19 }
 0x217   : > { %17115 = vmatmul.mubr.msk.f32.vlgmr.msra.gmra.mrb[10].mxu1 %vm7570_vm1, %v24239_v58  ;;  %v1537_v9 = vrot.slane %v1523_v60, %v18546_v32  ;;  %v4314_v36 = vcombine.low %v19530_v46, %v19533_v5  ;;  %v19572_v59 = vrot.slane %v2474_v15, %v18546_v32  ;;  %v24242_v60 = vld [vmem:[#allocation8_spill] sm:$0xff]  ;;  %v1538_v34 = vcombine.low %v1514_v16, %v1530_v14 }
 0x218   : > { %17624 = vmatpush3.bf16.xpose.msk.msra.mxu1 %vm19423_vm2, %v17619_v40  ;;  %v19564_v55 = vpop.permute.xlu0 %622  ;;  %v3302_v53 = vrot.slane %v3294_v10, %v18554_v39  ;;  %v3309_v8 = vrot.slane %v3295_v37, %v18554_v39  ;;  %v3318_v20 = vrot.slane %v3310_v24, %v18554_v39  ;;  %v3325_v43 = vrot.slane %v3311_v12, %v18554_v39  ;;  %v24241_v40 = vld [vmem:[#allocation7_spill] sm:$0xff]  ;;  %v669_v35 = vpop.permute.xlu1 %668 }
 0x219   : > { %24240 = vst [vmem:[#allocation5_spill] sm:$0xff] %v19572_v59  ;;  %v24243_v4 = vcombine.low %v24241_v40, %v24242_v60  ;;  %v1539_v58 = vcombine.high %v1514_v16, %v1530_v14  ;;  %17627 = vmatprep.subr.msk.bf16.mxu1 %vm19423_vm2, %v19527_v19  ;;  %v1590_v15 = vcombine.low %v19427_v26, %v669_v35 }
 0x21a   : > { %v4330_v10 = vcombine.low %v19546_v22, %v19549_v51  ;;  %v4350_v37 = vcombine.low %v3302_v53, %v3309_v8  ;;  %v16519_v24 = vcombine.high %v3302_v53, %v3309_v8  ;;  %v4366_v12 = vcombine.low %v3318_v20, %v3325_v43  ;;  %2988 = vrot.lane.b32.xlu1 %v669_v35, %s18237_s19 }
 0x21b   : > { %17121 = vmatprep.mubr.msk.f32.mxu1 %vm7570_vm1, %v24243_v4  ;;  %v16520_v45 = vcombine.high %v3318_v20, %v3325_v43  ;;  %v1554_v3 = vcombine.low %v1521_v13, %v1537_v9  ;;  %v1555_v4 = vcombine.high %v1521_v13, %v1537_v9  ;;  %v1574_v16 = vcombine.low %v18655_v33, %v19543_v30 }
 0x21c   : > { %v1591_v14 = vcombine.high %v19427_v26, %v669_v35  ;;  %2958 = vrot.lane.b32.xlu0 %v19564_v55, %s18237_s19  ;;  %v2907_v28 = vpop.permute.xlu0 %2906  ;;  %v19595_v52 = vrot.slane %v4350_v37, %v18546_v32  ;;  %v19598_v53 = vrot.slane %v16519_v24, %v18546_v32  ;;  %v19601_v8 = vrot.slane %v4366_v12, %v18546_v32  ;;  %v19606_v9 = vpop.permute.xlu1 %2880 }
 0x21d   : > { %v19604_v13 = vrot.slane %v16520_v45, %v18546_v32  ;;  %v1575_v26 = vcombine.high %v18655_v33, %v19543_v30  ;;  %v1598_v20 = vrot.slane %v1590_v15, %v18546_v32  ;;  %v4322_v43 = vrot.slane %v4314_v36, %v18554_v39 }
 0x21e   : > { %v4338_v35 = vrot.slane %v4330_v10, %v18554_v39  ;;  %v19614_v37 = vrot.slane %v1538_v34, %v18554_v39  ;;  %v19617_v24 = vrot.slane %v1539_v58, %v18554_v39  ;;  %2896 = vrot.lane.b32.xlu1 %v18803_v57, %s18237_s19  ;;  %v24245_v45 = vcombine.low %v18955_v6, %v18958_v17 }
 0x21f   : > { %v4382_v33 = vcombine.low %v19595_v52, %v19598_v53  ;;  %v1582_v30 = vrot.slane %v1574_v16, %v18546_v32  ;;  %v1605_v36 = vrot.slane %v1591_v14, %v18546_v32  ;;  %v4315_v58 = vcombine.high %v19530_v46, %v19533_v5 }
 0x220   : > { %24244 = vst [vmem:[#allocation6_spill] sm:$0xff] %v19617_v24  ;;  %17122 = vmatmul.mubr.msk.f32.vlgmr.msra.gmra.mrb[12].mxu1 %vm7570_vm1, %v24245_v45  ;;  %v2939_v34 = vpop.permute.xlu0 %2938  ;;  %v24246_v15 = vcombine.high %v19445_v31, %v19448_v63  ;;  %v19641_v12 = vrot.slane %v1554_v3, %v18554_v39  ;;  %v19644_v16 = vrot.slane %v1555_v4, %v18554_v39 }
 0x221   : > { %17630 = vmatpush3.bf16.xpose.msk.msra.mxu1 %vm19423_vm2, %v19527_v19  ;;  %v24247_v14 = vcombine.high %v24241_v40, %v24242_v60  ;;  %v19650_v19 = vpop.permute.xlu1 %576  ;;  %v4390_v46 = vrot.slane %v4382_v33, %v18554_v39  ;;  %v4398_v31 = vcombine.low %v19601_v8, %v19604_v13  ;;  %v1589_v63 = vrot.slane %v1575_v26, %v18546_v32 }
 0x222   : > { %v19638_v10 = vrot.slane %v24246_v15, %v18546_v32  ;;  %v1606_v5 = vcombine.low %v1582_v30, %v1598_v20  ;;  %v1607_v3 = vcombine.high %v1582_v30, %v1598_v20  ;;  %v4346_v45 = vcombine.low %v4322_v43, %v4338_v35  ;;  %2928 = vrot.lane.b32.xlu1 %v19650_v19, %s18237_s19 }
 0x223   : > { %17128 = vmatprep.mubr.msk.f32.mxu1 %vm7570_vm1, %v24247_v14  ;;  %v4406_v60 = vrot.slane %v4398_v31, %v18554_v39  ;;  %v4347_v33 = vcombine.high %v4322_v43, %v4338_v35  ;;  %v1622_v15 = vcombine.low %v1589_v63, %v1605_v36  ;;  %v1623_v14 = vcombine.high %v1589_v63, %v1605_v36 }
 0x224   : > { %v1642_v26 = vcombine.low %v18720_v50, %v19564_v55  ;;  %v3330_v20 = vcombine.low %v19351_v49, %v2939_v34  ;;  %v2971_v30 = vpop.permute.xlu0 %2970  ;;  %v1614_v24 = vrot.slane %v1606_v5, %v18554_v39  ;;  %v1621_v43 = vrot.slane %v1607_v3, %v18554_v39 }
 0x225   : > { %v625_v18 = vpop.permute.xlu1 %624  ;;  %v3346_v56 = vcombine.low %v2907_v28, %v2971_v30  ;;  %v3347_v4 = vcombine.high %v2907_v28, %v2971_v30  ;;  %v4414_v54 = vcombine.low %v4390_v46, %v4406_v60  ;;  %v4415_v59 = vcombine.high %v4390_v46, %v4406_v60 }
 0x226   : > { %v3331_v35 = vcombine.high %v19351_v49, %v2939_v34  ;;  %2960 = vrot.lane.b32.xlu1 %v625_v18, %s18237_s19  ;;  %v24248_v28 = vcombine.high %v18955_v6, %v18958_v17  ;;  %v1630_v63 = vrot.slane %v1622_v15, %v18554_v39  ;;  %v1637_v5 = vrot.slane %v1623_v14, %v18554_v39 }
 0x227   : > { %v3354_v31 = vrot.slane %v3346_v56, %v18546_v32  ;;  %v17631_v46 = vpack.c.bf16 %v4414_v54, %v4346_v45  ;;  %v3361_v3 = vrot.slane %v3347_v4, %v18546_v32  ;;  %v24249_v49 = vcombine.low %v18997_v61, %v19000_v23 }
 0x228   : > { %17129 = vmatmul.mubr.msk.f32.vlgmr.msra.gmra.mrb[14].mxu1 %vm7570_vm1, %v24248_v28  ;;  %v671_v56 = vpop.permute.xlu0 %670  ;;  %v19687_v34 = vrot.slane %v4315_v58, %v18554_v39  ;;  %v1643_v6 = vcombine.high %v18720_v50, %v19564_v55  ;;  %v19692_v17 = vrot.slane %v1642_v26, %v18546_v32  ;;  %v3338_v54 = vrot.slane %v3330_v20, %v18546_v32 }
 0x229   : > { %17135 = vmatprep.mubr.msk.f32.mxu1 %vm7570_vm1, %v24249_v49  ;;  %17633 = vmatprep.subr.msk.bf16.mxu1 %vm19423_vm2, %v17631_v46  ;;  %v17637_v45 = vpack.c.bf16 %v4415_v59, %v4347_v33  ;;  %v19697_v4 = vpop.permute.xlu1 %2908  ;;  %v2662_v60 = vcombine.low %v1614_v24, %v1621_v43  ;;  %v3345_v15 = vrot.slane %v3331_v35, %v18546_v32 }
 0x22a   : > { %17636 = vmatpush3.bf16.xpose.msk.msra.mxu1 %vm19423_vm2, %v17631_v46  ;;  %2990 = vrot.lane.b32.xlu0 %v671_v56, %s18237_s19  ;;  %v4331_v50 = vcombine.high %v19546_v22, %v19549_v51  ;;  %v16507_v55 = vcombine.high %v1614_v24, %v1621_v43  ;;  %v3362_v58 = vcombine.low %v3338_v54, %v3354_v31  ;;  %v24250_v46 = vld [vmem:[#allocation12_spill] sm:$0xff] }
 0x22b   : > { %v3363_v14 = vcombine.high %v3338_v54, %v3354_v31  ;;  %17639 = vmatprep.subr.msk.bf16.mxu1 %vm19423_vm2, %v17637_v45  ;;  %v4383_v59 = vcombine.high %v19595_v52, %v19598_v53  ;;  %v2678_v33 = vcombine.low %v1630_v63, %v1637_v5  ;;  %v16508_v26 = vcombine.high %v1630_v63, %v1637_v5 }
 0x22c   : > { %v3378_v20 = vcombine.low %v3345_v15, %v3361_v3  ;;  %v3379_v30 = vcombine.high %v3345_v15, %v3361_v3  ;;  %v19709_v35 = vpop.permute.xlu0 %2910  ;;  %v19712_v28 = vrot.slane %v1643_v6, %v18546_v32  ;;  %v1710_v22 = vcombine.low %v18803_v57, %v625_v18 }
 0x22d   : > { %v1711_v51 = vcombine.high %v18803_v57, %v625_v18  ;;  %v2941_v24 = vpop.permute.xlu1 %2940  ;;  %v4399_v43 = vcombine.high %v19601_v8, %v19604_v13  ;;  %v19719_v31 = vrot.slane %v2662_v60, %v18546_v32  ;;  %v1658_v52 = vcombine.low %v19537_v21, %v671_v56 }
 0x22e   : > { %v1659_v53 = vcombine.high %v19537_v21, %v671_v56  ;;  %5252 = vrot.lane.b32.xlu0 %v24250_v46, %s18235_s17  ;;  %v19726_v63 = vrot.slane %v4331_v50, %v18554_v39  ;;  %v19729_v5 = vrot.slane %v16507_v55, %v18546_v32  ;;  %v19732_v57 = vrot.slane %v3362_v58, %v18554_v39 }
 0x22f   : > { %v19735_v18 = vrot.slane %v3363_v14, %v18554_v39  ;;  %v19738_v8 = vrot.slane %v4383_v59, %v18554_v39  ;;  %v19741_v21 = vrot.slane %v2678_v33, %v18546_v32  ;;  %v19744_v13 = vrot.slane %v16508_v26, %v18546_v32 }
 0x230   : > { %v19747_v3 = vrot.slane %v3378_v20, %v18554_v39  ;;  %v19750_v49 = vrot.slane %v3379_v30, %v18554_v39  ;;  %v19752_v56 = vpop.permute.xlu0 %2942  ;;  %v19755_v6 = vrot.slane %v1710_v22, %v18546_v32  ;;  %v19758_v54 = vrot.slane %v1711_v51, %v18546_v32 }
 0x231   : > { %24251 = vst [vmem:[#allocation7_spill] sm:$0xff] %v19741_v21  ;;  %24252 = vst [vmem:[#allocation8_spill] sm:$0xff] %v19744_v13  ;;  %v3398_v60 = vcombine.low %v19414_v25, %v2941_v24  ;;  %v24253_v15 = vcombine.low %v19015_v2, %v19018_v11  ;;  %v19766_v50 = vrot.slane %v4399_v43, %v18554_v39  ;;  %v2973_v55 = vpop.permute.xlu1 %2972 }
 0x232   : > { %v1666_v58 = vrot.slane %v1658_v52, %v18546_v32  ;;  %v1673_v14 = vrot.slane %v1659_v53, %v18546_v32  ;;  %v3399_v59 = vcombine.high %v19414_v25, %v2941_v24  ;;  %v4348_v33 = vcombine.low %v19687_v34, %v19726_v63 }
 0x233   : > { %17136 = vmatmul.mubr.msk.f32.vlgmr.msra.gmra.mrb[16].mxu1 %vm7570_vm1, %v24253_v15  ;;  %v4418_v26 = vcombine.low %v19732_v57, %v19735_v18  ;;  %v24254_v20 = vcombine.high %v18997_v61, %v19000_v23  ;;  %v4416_v30 = vcombine.low %v19738_v8, %v19766_v50  ;;  %v3414_v22 = vcombine.low %v19697_v4, %v2973_v55  ;;  %v24255_v23 = vld [vmem:[#allocation11_spill] sm:$0xff] }
 0x234   : > { %17642 = vmatpush3.bf16.xpose.msk.msra.mxu1 %vm19423_vm2, %v17637_v45  ;;  %v16521_v45 = vcombine.high %v19732_v57, %v19735_v18  ;;  %v4434_v51 = vcombine.low %v19747_v3, %v19750_v49  ;;  %v3415_v24 = vcombine.high %v19697_v4, %v2973_v55  ;;  %v3466_v61 = vcombine.low %v19506_v42, %v19752_v56  ;;  %v2975_v43 = vpop.permute.xlu0 %2974 }
 0x235   : > { %17142 = vmatprep.mubr.msk.f32.mxu1 %vm7570_vm1, %v24254_v20  ;;  %5346 = vrot.lane.b32.xlu0 %v24255_v23, %s18236_s18  ;;  %v3406_v52 = vrot.slane %v3398_v60, %v18546_v32  ;;  %v17643_v53 = vpack.c.bf16 %v4416_v30, %v4348_v33  ;;  %v3422_v15 = vrot.slane %v3414_v22, %v18546_v32  ;;  %v19797_v20 = vpop.permute.xlu1 %672 }
 0x236   : > { %v3482_v57 = vcombine.low %v19709_v35, %v2975_v43  ;;  %v1674_v18 = vcombine.low %v19692_v17, %v1666_v58  ;;  %v1675_v4 = vcombine.high %v19692_v17, %v1666_v58  ;;  %v3413_v55 = vrot.slane %v3399_v59, %v18546_v32  ;;  %2992 = vrot.lane.b32.xlu1 %v19797_v20, %s18237_s19  ;;  %v24256_v59 = vld [vmem:[#allocation14_spill] sm:$0xff] }
 0x237   : > { %v3429_v36 = vrot.slane %v3415_v24, %v18546_v32  ;;  %v1690_v60 = vcombine.low %v19712_v28, %v1673_v14  ;;  %17645 = vmatprep.subr.msk.bf16.mxu1 %vm19423_vm2, %v17643_v53  ;;  %v3430_v33 = vcombine.low %v3406_v52, %v3422_v15  ;;  %v3431_v30 = vcombine.high %v3406_v52, %v3422_v15 }
 0x238   : > { %v3490_v22 = vrot.slane %v3482_v57, %v18546_v32  ;;  %v1691_v40 = vcombine.high %v19712_v28, %v1673_v14  ;;  %v3483_v58 = vcombine.high %v19709_v35, %v2975_v43  ;;  %v19814_v24 = vpop.permute.xlu0 %2882  ;;  %v16522_v21 = vcombine.high %v19747_v3, %v19750_v49 }
 0x239   : > { %v3446_v25 = vcombine.low %v3413_v55, %v3429_v36  ;;  %v3447_v17 = vcombine.high %v3413_v55, %v3429_v36  ;;  %5256 = vrot.lane.b32.xlu0 %v24256_v59, %s18235_s17  ;;  %v3438_v13 = vrot.slane %v3430_v33, %v18554_v39  ;;  %v3445_v52 = vrot.slane %v3431_v30, %v18554_v39  ;;  %v19825_v36 = vpop.permute.xlu1 %2912 }
 0x23a   : > { %v3474_v15 = vrot.slane %v3466_v61, %v18546_v32  ;;  %v24257_v28 = vcombine.high %v19015_v2, %v19018_v11  ;;  %v19828_v35 = vrot.slane %v4418_v26, %v18546_v32  ;;  %v19831_v14 = vrot.slane %v1674_v18, %v18554_v39  ;;  %5250 = vrot.lane.b32.xlu1 %v24255_v23, %s18235_s17 }
 0x23b   : > { %v19834_v3 = vrot.slane %v1675_v4, %v18554_v39  ;;  %v3467_v49 = vcombine.high %v19506_v42, %v19752_v56  ;;  %v3454_v2 = vrot.slane %v3446_v25, %v18554_v39  ;;  %v3461_v11 = vrot.slane %v3447_v17, %v18554_v39 }
 0x23c   : > { %17143 = vmatmul.mubr.msk.f32.vlgmr.msra.gmra.mrb[18].mxu1 %vm7570_vm1, %v24257_v28  ;;  %v3498_v61 = vcombine.low %v3474_v15, %v3490_v22  ;;  %v3499_v43 = vcombine.high %v3474_v15, %v3490_v22  ;;  %v24259_v26 = vcombine.low %v19180_v1, %v19183_v48  ;;  %v19847_v57 = vrot.slane %v16521_v45, %v18546_v32  ;;  %v19858_v25 = vpop.permute.xlu0 %2914 }
 0x23d   : > { %24258 = vst [vmem:[#allocation14_spill] sm:$0xff] %v19834_v3  ;;  %17648 = vmatpush3.bf16.xpose.msk.msra.mxu1 %vm19423_vm2, %v17643_v53  ;;  %v19850_v18 = vrot.slane %v1690_v60, %v18554_v39  ;;  %v19853_v42 = vrot.slane %v1691_v40, %v18554_v39  ;;  %v3497_v56 = vrot.slane %v3483_v58, %v18546_v32  ;;  %v24262_v60 = vld [vmem:[#allocation13_spill] sm:$0xff]  ;;  %v2945_v40 = vpop.permute.xlu1 %2944 }
 0x23e   : > { %17149 = vmatprep.mubr.msk.f32.mxu1 %vm7570_vm1, %v24259_v26  ;;  %v19861_v53 = vrot.slane %v4434_v51, %v18546_v32  ;;  %v19864_v4 = vrot.slane %v16522_v21, %v18546_v32  ;;  %v4486_v45 = vcombine.low %v3438_v13, %v3445_v52  ;;  %v16523_v55 = vcombine.high %v3438_v13, %v3445_v52 }
 0x23f   : > { %24260 = vst [vmem:[#allocation48_spill] sm:$0xff] %v19850_v18  ;;  %24261 = vst [vmem:[#allocation49_spill] sm:$0xff] %v19853_v42  ;;  %5350 = vrot.lane.b32.xlu0 %v24262_v60, %s18236_s18  ;;  %v3481_v22 = vrot.slane %v3467_v49, %v18546_v32  ;;  %v4417_v51 = vcombine.high %v19738_v8, %v19766_v50  ;;  %v4502_v17 = vcombine.low %v3454_v2, %v3461_v11 }
 0x240   : > { %v16524_v21 = vcombine.high %v3454_v2, %v3461_v11  ;;  %v3506_v58 = vrot.slane %v3498_v61, %v18554_v39  ;;  %v3513_v13 = vrot.slane %v3499_v43, %v18554_v39  ;;  %5298 = vrot.lane.b32.xlu1 %v24255_v23, %s18234_s16  ;;  %v2947_v49 = vpop.permute.xlu0 %2946  ;;  %v19884_v8 = vrot.slane %v4486_v45, %v18546_v32 }
 0x241   : > { %v3514_v28 = vcombine.low %v3481_v22, %v3497_v56  ;;  %v3515_v26 = vcombine.high %v3481_v22, %v3497_v56  ;;  %v19887_v50 = vrot.slane %v16523_v55, %v18546_v32  ;;  %v24263_v61 = vcombine.low %v19186_v29, %v19189_v0  ;;  %v2977_v43 = vpop.permute.xlu1 %2976  ;;  %v24265_v55 = vld [vmem:[#allocation16_spill] sm:$0xff] }
 0x242   : > { %v4554_v2 = vcombine.low %v3506_v58, %v3513_v13  ;;  %v16525_v11 = vcombine.high %v3506_v58, %v3513_v13  ;;  %v24264_v15 = vcombine.high %v19687_v34, %v19726_v63  ;;  %v3534_v52 = vcombine.low %v19606_v9, %v2945_v40 }
 0x243   : > { %v3522_v56 = vrot.slane %v3514_v28, %v18554_v39  ;;  %v3529_v22 = vrot.slane %v3515_v26, %v18554_v39  ;;  %5260 = vrot.lane.b32.xlu0 %v24265_v55, %s18235_s17  ;;  %v19902_v58 = vrot.slane %v4502_v17, %v18546_v32  ;;  %v19905_v13 = vrot.slane %v16524_v21, %v18546_v32 }
 0x244   : > { %17150 = vmatmul.mubr.msk.f32.vlgmr.msra.gmra.mrb[20].mxu1 %vm7570_vm1, %v24263_v61  ;;  %v17649_v45 = vpack.c.bf16 %v4417_v51, %v24264_v15  ;;  %v3535_v61 = vcombine.high %v19606_v9, %v2945_v40  ;;  %v24266_v28 = vcombine.high %v19180_v1, %v19183_v48  ;;  %v3550_v34 = vcombine.low %v19825_v36, %v2977_v43  ;;  %v2979_v26 = vpop.permute.xlu0 %2978 }
 0x245   : > { %v19914_v63 = vrot.slane %v4554_v2, %v18546_v32  ;;  %v19917_v51 = vrot.slane %v16525_v11, %v18546_v32  ;;  %v4570_v17 = vcombine.low %v3522_v56, %v3529_v22  ;;  %v3551_v21 = vcombine.high %v19825_v36, %v2977_v43  ;;  %v19927_v15 = vpop.permute.xlu1 %2884  ;;  %5300 = vrot.lane.b32.xlu1 %v24250_v46, %s18234_s16  ;;  %v24267_v36 = vld [vmem:[#allocation15_spill] sm:$0xff] }
 0x246   : > { %17156 = vmatprep.mubr.msk.f32.mxu1 %vm7570_vm1, %v24266_v28  ;;  %17651 = vmatprep.subr.msk.bf16.mxu1 %vm19423_vm2, %v17649_v45  ;;  %v16526_v9 = vcombine.high %v3522_v56, %v3529_v22  ;;  %v3542_v40 = vrot.slane %v3534_v52, %v18546_v32  ;;  %v3558_v1 = vrot.slane %v3550_v34, %v18546_v32 }
 0x247   : > { %17654 = vmatpush3.bf16.xpose.msk.msra.mxu1 %vm19423_vm2, %v17649_v45  ;;  %v3602_v48 = vcombine.low %v19814_v24, %v2947_v49  ;;  %v3549_v2 = vrot.slane %v3535_v61, %v18546_v32  ;;  %v3565_v11 = vrot.slane %v3551_v21, %v18546_v32  ;;  %v3603_v28 = vcombine.high %v19814_v24, %v2947_v49 }
 0x248   : > { %5354 = vrot.lane.b32.xlu0 %v24267_v36, %s18236_s18  ;;  %v19937_v52 = vrot.slane %v4570_v17, %v18546_v32  ;;  %v3566_v43 = vcombine.low %v3542_v40, %v3558_v1  ;;  %v3567_v56 = vcombine.high %v3542_v40, %v3558_v1  ;;  %v3618_v61 = vcombine.low %v19858_v25, %v2979_v26 }
 0x249   : > { %v3610_v22 = vrot.slane %v3602_v48, %v18546_v32  ;;  %v3582_v45 = vcombine.low %v3549_v2, %v3565_v11  ;;  %v3583_v34 = vcombine.high %v3549_v2, %v3565_v11  ;;  %v3619_v21 = vcombine.high %v19858_v25, %v2979_v26  ;;  %v19948_v33 = vpop.permute.xlu1 %2916  ;;  %5348 = vrot.lane.b32.xlu1 %v24250_v46, %s18236_s18 }
 0x24a   : > { %v3574_v24 = vrot.slane %v3566_v43, %v18554_v39  ;;  %v3581_v49 = vrot.slane %v3567_v56, %v18554_v39  ;;  %v4450_v30 = vcombine.low %v19828_v35, %v19847_v57  ;;  %v4466_v17 = vcombine.low %v19861_v53, %v19864_v4  ;;  %v24268_v56 = vld [vmem:[#allocation19_spill] sm:$0xff] }
 0x24b   : > { %v3590_v40 = vrot.slane %v3582_v45, %v18554_v39  ;;  %v3597_v1 = vrot.slane %v3583_v34, %v18554_v39  ;;  %v3626_v48 = vrot.slane %v3618_v61, %v18546_v32  ;;  %v3633_v25 = vrot.slane %v3619_v21, %v18546_v32 }
 0x24c   : > { %v19957_v26 = vrot.slane %v16526_v9, %v18546_v32  ;;  %v4622_v2 = vcombine.low %v3574_v24, %v3581_v49  ;;  %v16527_v11 = vcombine.high %v3574_v24, %v3581_v49  ;;  %v3617_v43 = vrot.slane %v3603_v28, %v18546_v32  ;;  %5264 = vrot.lane.b32.xlu0 %v24268_v56, %s18235_s17  ;;  %v24270_v49 = vld [vmem:[#allocation20_spill] sm:$0xff]  ;;  %v24271_v28 = vld [vmem:[#allocation21_spill] sm:$0xff] }
 0x24d   : > { %v4638_v45 = vcombine.low %v3590_v40, %v3597_v1  ;;  %v16528_v23 = vcombine.high %v3590_v40, %v3597_v1  ;;  %v3634_v34 = vcombine.low %v3610_v22, %v3626_v48  ;;  %v3635_v42 = vcombine.high %v3610_v22, %v3626_v48  ;;  %v2949_v3 = vpop.permute.xlu1 %2948  ;;  %5254 = vrot.lane.b32.xlu1 %v24262_v60, %s18235_s17  ;;  %v24273_v48 = vld [vmem:[#allocation17_spill] sm:$0xff] }
 0x24e   : > { %v24269_v61 = vcombine.high %v19186_v29, %v19189_v0  ;;  %v3650_v21 = vcombine.low %v3617_v43, %v3633_v25  ;;  %v3651_v46 = vcombine.high %v3617_v43, %v3633_v25  ;;  %v4458_v9 = vrot.slane %v4450_v30, %v18554_v39 }
 0x24f   : > { %v4474_v24 = vrot.slane %v4466_v17, %v18554_v39  ;;  %v24272_v18 = vcombine.low %v24270_v49, %v24271_v28  ;;  %v19973_v40 = vrot.slane %v4622_v2, %v18546_v32  ;;  %v19976_v22 = vrot.slane %v16527_v11, %v18546_v32 }
 0x250   : > { %17157 = vmatmul.mubr.msk.f32.vlgmr.msra.gmra.mrb[22].mxu1 %vm7570_vm1, %v24269_v61  ;;  %v3642_v29 = vrot.slane %v3634_v34, %v18554_v39  ;;  %v3649_v0 = vrot.slane %v3635_v42, %v18554_v39  ;;  %v19983_v30 = vrot.slane %v4638_v45, %v18546_v32  ;;  %v19986_v17 = vrot.slane %v3650_v21, %v18554_v39 }
 0x251   : > { %17163 = vmatprep.mubr.msk.f32.mxu1 %vm7570_vm1, %v24272_v18  ;;  %v19989_v18 = vrot.slane %v3651_v46, %v18554_v39  ;;  %v4518_v1 = vcombine.low %v19884_v8, %v19887_v50  ;;  %5358 = vrot.lane.b32.xlu0 %v24273_v48, %s18236_s18  ;;  %v19996_v42 = vrot.slane %v16528_v23, %v18546_v32  ;;  %v2981_v28 = vpop.permute.xlu1 %2980 }
 0x252   : > { %v4690_v25 = vcombine.low %v3642_v29, %v3649_v0  ;;  %v16529_v2 = vcombine.high %v3642_v29, %v3649_v0  ;;  %v4534_v11 = vcombine.low %v19902_v58, %v19905_v13  ;;  %v4482_v43 = vcombine.low %v4458_v9, %v4474_v24  ;;  %5302 = vrot.lane.b32.xlu1 %v24262_v60, %s18234_s16  ;;  %v24274_v29 = vld [vmem:[#allocation24_spill] sm:$0xff] }
 0x253   : > { %v4526_v45 = vrot.slane %v4518_v1, %v18554_v39  ;;  %v4483_v34 = vcombine.high %v4458_v9, %v4474_v24  ;;  %v4451_v46 = vcombine.high %v19828_v35, %v19847_v57  ;;  %v4706_v61 = vcombine.low %v19986_v17, %v19989_v18 }
 0x254   : > { %v16530_v21 = vcombine.high %v19986_v17, %v19989_v18  ;;  %v4542_v23 = vrot.slane %v4534_v11, %v18554_v39  ;;  %v4467_v49 = vcombine.high %v19861_v53, %v19864_v4  ;;  %v20013_v9 = vrot.slane %v4690_v25, %v18546_v32 }
 0x255   : > { %v20016_v35 = vrot.slane %v16529_v2, %v18546_v32  ;;  %v4465_v57 = vrot.slane %v4451_v46, %v18554_v39  ;;  %v4519_v24 = vcombine.high %v19884_v8, %v19887_v50  ;;  %5268 = vrot.lane.b32.xlu0 %v24274_v29, %s18235_s17  ;;  %v4535_v17 = vcombine.high %v19902_v58, %v19905_v13 }
 0x256   : > { %v4550_v0 = vcombine.low %v4526_v45, %v4542_v23  ;;  %v4551_v53 = vcombine.high %v4526_v45, %v4542_v23  ;;  %v4481_v4 = vrot.slane %v4467_v49, %v18554_v39  ;;  %v3670_v1 = vcombine.low %v19927_v15, %v2949_v3  ;;  %5304 = vrot.lane.b32.xlu1 %v24256_v59, %s18234_s16  ;;  %v20033_v23 = vpop.permute.xlu0 %2886 }
 0x257   : > { %v4533_v18 = vrot.slane %v4519_v24, %v18554_v39  ;;  %v3671_v25 = vcombine.high %v19927_v15, %v2949_v3  ;;  %v3686_v2 = vcombine.low %v19948_v33, %v2981_v28  ;;  %v4549_v46 = vrot.slane %v4535_v17, %v18554_v39  ;;  %v24275_v3 = vld [vmem:[#allocation23_spill] sm:$0xff] }
 0x258   : > { %v17655_v11 = vpack.c.bf16 %v4550_v0, %v4482_v43  ;;  %v17661_v8 = vpack.c.bf16 %v4551_v53, %v4483_v34  ;;  %v4484_v50 = vcombine.low %v4465_v57, %v4481_v4  ;;  %v4485_v45 = vcombine.high %v4465_v57, %v4481_v4 }
 0x259   : > { %v3678_v58 = vrot.slane %v3670_v1, %v18546_v32  ;;  %v3685_v13 = vrot.slane %v3671_v25, %v18546_v32  ;;  %v3687_v49 = vcombine.high %v19948_v33, %v2981_v28  ;;  %5362 = vrot.lane.b32.xlu0 %v24275_v3, %s18236_s18  ;;  %v4552_v15 = vcombine.low %v4533_v18, %v4549_v46  ;;  %v24276_v1 = vld [vmem:[#allocation27_spill] sm:$0xff] }
 0x25a   : > { %17657 = vmatprep.subr.msk.bf16.mxu1 %vm19423_vm2, %v17655_v11  ;;  %17663 = vmatprep.subr.msk.bf16.mxu0 %vm19423_vm2, %v17661_v8  ;;  %v4553_v43 = vcombine.high %v4533_v18, %v4549_v46  ;;  %v3694_v34 = vrot.slane %v3686_v2, %v18546_v32  ;;  %v4586_v28 = vcombine.low %v19914_v63, %v19917_v51 }
 0x25b   : > { %17660 = vmatpush3.bf16.xpose.msk.msra.mxu1 %vm19423_vm2, %v17655_v11  ;;  %17666 = vmatpush3.bf16.xpose.msk.msra.mxu0 %vm19423_vm2, %v17661_v8  ;;  %v3701_v33 = vrot.slane %v3687_v49, %v18546_v32  ;;  %v4602_v57 = vcombine.low %v19937_v52, %v19957_v26  ;;  %v17667_v24 = vpack.c.bf16 %v4552_v15, %v4484_v50  ;;  %v20060_v11 = vpop.permute.xlu0 %2918 }
 0x25c   : > { %v17673_v0 = vpack.c.bf16 %v4553_v43, %v4485_v45  ;;  %v3702_v53 = vcombine.low %v3678_v58, %v3694_v34  ;;  %v3703_v4 = vcombine.high %v3678_v58, %v3694_v34  ;;  %5352 = vrot.lane.b32.xlu1 %v24256_v59, %s18236_s18  ;;  %v4594_v25 = vrot.slane %v4586_v28, %v18554_v39 }
 0x25d   : > { %v3718_v17 = vcombine.low %v3685_v13, %v3701_v33  ;;  %v3719_v18 = vcombine.high %v3685_v13, %v3701_v33  ;;  %5272 = vrot.lane.b32.xlu0 %v24276_v1, %s18235_s17  ;;  %v4610_v2 = vrot.slane %v4602_v57, %v18554_v39  ;;  %17669 = vmatprep.subr.msk.bf16.mxu1 %vm19423_vm2, %v17667_v24 }
 0x25e   : > { %17675 = vmatprep.subr.msk.bf16.mxu0 %vm19423_vm2, %v17673_v0  ;;  %v3710_v8 = vrot.slane %v3702_v53, %v18554_v39  ;;  %v3717_v50 = vrot.slane %v3703_v4, %v18554_v39  ;;  %v4654_v46 = vcombine.low %v19973_v40, %v19976_v22  ;;  %v20071_v45 = vrot.slane %v4706_v61, %v18546_v32  ;;  %v24277_v4 = vld [vmem:[#allocation25_spill] sm:$0xff] }
 0x25f   : > { %v3726_v58 = vrot.slane %v3718_v17, %v18554_v39  ;;  %v3733_v13 = vrot.slane %v3719_v18, %v18554_v39  ;;  %v4670_v49 = vcombine.low %v19983_v30, %v19996_v42  ;;  %v20078_v15 = vrot.slane %v16530_v21, %v18546_v32  ;;  %v2951_v17 = vpop.permute.xlu0 %2950 }
 0x260   : > { %v4758_v43 = vcombine.low %v3710_v8, %v3717_v50  ;;  %v16531_v34 = vcombine.high %v3710_v8, %v3717_v50  ;;  %v4662_v33 = vrot.slane %v4654_v46, %v18554_v39  ;;  %5258 = vrot.lane.b32.xlu1 %v24267_v36, %s18235_s17  ;;  %v4618_v28 = vcombine.low %v4594_v25, %v4610_v2 }
 0x261   : > { %v4678_v61 = vrot.slane %v4670_v49, %v18554_v39  ;;  %v4619_v57 = vcombine.high %v4594_v25, %v4610_v2  ;;  %v4587_v53 = vcombine.high %v19914_v63, %v19917_v51  ;;  %5366 = vrot.lane.b32.xlu0 %v24277_v4, %s18236_s18  ;;  %v24278_v21 = vcombine.low %v19192_v38, %v19195_v44  ;;  %v24280_v63 = vld [vmem:[#allocation26_spill] sm:$0xff]  ;;  %v24281_v51 = vld [vmem:[#allocation28_spill] sm:$0xff] }
 0x262   : > { %v24279_v18 = vcombine.high %v19192_v38, %v19195_v44  ;;  %v4774_v8 = vcombine.low %v3726_v58, %v3733_v13  ;;  %v16532_v50 = vcombine.high %v3726_v58, %v3733_v13  ;;  %v4603_v25 = vcombine.high %v19937_v52, %v19957_v26 }
 0x263   : > { %17164 = vmatmul.mubr.msk.f32.vlgmr.msra.gmra.mrb[24].mxu1 %vm7570_vm1, %v24278_v21  ;;  %v24282_v2 = vcombine.low %v24280_v63, %v24281_v51  ;;  %v20105_v46 = vrot.slane %v4758_v43, %v18546_v32  ;;  %v20108_v38 = vrot.slane %v16531_v34, %v18546_v32  ;;  %v4686_v44 = vcombine.low %v4662_v33, %v4678_v61  ;;  %v2983_v34 = vpop.permute.xlu0 %2982 }
 0x264   : > { %17171 = vmatmul.mubr.msk.f32.vlgmr.msra.gmra.mrb[24].mxu0 %vm7570_vm1, %v24279_v18  ;;  %17672 = vmatpush3.bf16.xpose.msk.msra.mxu1 %vm19423_vm2, %v17667_v24  ;;  %v24283_v52 = vcombine.high %v24280_v63, %v24281_v51  ;;  %v4687_v26 = vcombine.high %v4662_v33, %v4678_v61  ;;  %v4601_v24 = vrot.slane %v4587_v53, %v18554_v39  ;;  %v24285_v51 = vld [vmem:[#allocation18_spill] sm:$0xff] }
 0x265   : > { %17177 = vmatprep.mubr.msk.f32.mxu1 %vm7570_vm1, %v24282_v2  ;;  %17678 = vmatpush3.bf16.xpose.msk.msra.mxu0 %vm19423_vm2, %v17673_v0  ;;  %v4617_v58 = vrot.slane %v4603_v25, %v18554_v39  ;;  %v17679_v13 = vpack.c.bf16 %v4686_v44, %v4618_v28  ;;  %v4655_v49 = vcombine.high %v19973_v40, %v19976_v22  ;;  %v24284_v0 = vld [vmem:[#allocation22_spill] sm:$0xff]  ;;  %v20132_v28 = vpop.permute.xlu1 %2888 }
 0x266   : > { %17184 = vmatprep.mubr.msk.f32.mxu0 %vm7570_vm1, %v24283_v52  ;;  %v4671_v43 = vcombine.high %v19983_v30, %v19996_v42  ;;  %5306 = vrot.lane.b32.xlu1 %v24267_v36, %s18234_s16  ;;  %v20127_v33 = vrot.slane %v4774_v8, %v18546_v32  ;;  %v20130_v61 = vrot.slane %v16532_v50, %v18546_v32 }
 0x267   : > { %5276 = vrot.lane.b32.xlu0 %v24284_v0, %s18235_s17  ;;  %v17685_v53 = vpack.c.bf16 %v4687_v26, %v4619_v57  ;;  %v3738_v40 = vcombine.low %v20033_v23, %v2951_v17  ;;  %17681 = vmatprep.subr.msk.bf16.mxu1 %vm19423_vm2, %v17679_v13  ;;  %v4669_v22 = vrot.slane %v4655_v49, %v18554_v39 }
 0x268   : > { %v4685_v30 = vrot.slane %v4671_v43, %v18554_v39  ;;  %v3739_v42 = vcombine.high %v20033_v23, %v2951_v17  ;;  %v3754_v21 = vcombine.low %v20060_v11, %v2983_v34  ;;  %v4620_v18 = vcombine.low %v4601_v24, %v4617_v58 }
 0x269   : > { %17687 = vmatprep.subr.msk.bf16.mxu0 %vm19423_vm2, %v17685_v53  ;;  %v4621_v8 = vcombine.high %v4601_v24, %v4617_v58  ;;  %v3755_v57 = vcombine.high %v20060_v11, %v2983_v34  ;;  %v4722_v50 = vcombine.low %v20013_v9, %v20016_v35  ;;  %v4738_v23 = vcombine.low %v20071_v45, %v20078_v15  ;;  %v20160_v26 = vpop.permute.xlu1 %2920  ;;  %v24288_v34 = vld [vmem:[#allocation31_spill] sm:$0xff] }
 0x26a   : > { %v4688_v25 = vcombine.low %v4669_v22, %v4685_v30  ;;  %v4689_v63 = vcombine.high %v4669_v22, %v4685_v30  ;;  %5308 = vrot.lane.b32.xlu1 %v24265_v55, %s18234_s16  ;;  %v24286_v17 = vcombine.low %v19198_v62, %v19201_v7  ;;  %v3746_v11 = vrot.slane %v3738_v40, %v18546_v32  ;;  %v24289_v40 = vld [vmem:[#allocation34_spill] sm:$0xff] }
 0x26b   : > { %5370 = vrot.lane.b32.xlu0 %v24285_v51, %s18236_s18  ;;  %v3753_v2 = vrot.slane %v3739_v42, %v18546_v32  ;;  %v3762_v44 = vrot.slane %v3754_v21, %v18546_v32  ;;  %v3769_v52 = vrot.slane %v3755_v57, %v18546_v32  ;;  %v24287_v24 = vcombine.high %v19198_v62, %v19201_v7 }
 0x26c   : > { %17178 = vmatmul.mubr.msk.f32.vlgmr.msra.gmra.mrb[26].mxu1 %vm7570_vm1, %v24286_v17  ;;  %v17691_v58 = vpack.c.bf16 %v4688_v25, %v4620_v18  ;;  %v17697_v49 = vpack.c.bf16 %v4689_v63, %v4621_v8  ;;  %v4790_v43 = vcombine.low %v20105_v46, %v20108_v38  ;;  %v24290_v22 = vcombine.low %v24288_v34, %v24289_v40  ;;  %v24292_v17 = vld [vmem:[#allocation30_spill] sm:$0xff] }
 0x26d   : > { %17185 = vmatmul.mubr.msk.f32.vlgmr.msra.gmra.mrb[26].mxu0 %vm7570_vm1, %v24287_v24  ;;  %17684 = vmatpush3.bf16.xpose.msk.msra.mxu1 %vm19423_vm2, %v17679_v13  ;;  %v3770_v30 = vcombine.low %v3746_v11, %v3762_v44  ;;  %v3771_v62 = vcombine.high %v3746_v11, %v3762_v44  ;;  %v3786_v7 = vcombine.low %v3753_v2, %v3769_v52  ;;  %v2953_v25 = vpop.permute.xlu1 %2952 }
 0x26e   : > { %17191 = vmatprep.mubr.msk.f32.mxu1 %vm7570_vm1, %v24290_v22  ;;  %17690 = vmatpush3.bf16.xpose.msk.msra.mxu0 %vm19423_vm2, %v17685_v53  ;;  %v24291_v42 = vcombine.high %v24288_v34, %v24289_v40  ;;  %v3787_v13 = vcombine.high %v3753_v2, %v3769_v52  ;;  %v4730_v21 = vrot.slane %v4722_v50, %v18554_v39 }
 0x26f   : > { %17693 = vmatprep.subr.msk.bf16.mxu1 %vm19423_vm2, %v17691_v58  ;;  %v4746_v18 = vrot.slane %v4738_v23, %v18554_v39  ;;  %17699 = vmatprep.subr.msk.bf16.mxu0 %vm19423_vm2, %v17697_v49  ;;  %v3778_v53 = vrot.slane %v3770_v30, %v18554_v39  ;;  %v3785_v8 = vrot.slane %v3771_v62, %v18554_v39  ;;  %v24293_v30 = vld [vmem:[#allocation32_spill] sm:$0xff]  ;;  %v24294_v62 = vld [vmem:[#allocation33_spill] sm:$0xff] }
 0x270   : > { %17198 = vmatprep.mubr.msk.f32.mxu0 %vm7570_vm1, %v24291_v42  ;;  %v3794_v57 = vrot.slane %v3786_v7, %v18554_v39  ;;  %5356 = vrot.lane.b32.xlu1 %v24265_v55, %s18236_s18  ;;  %v3801_v63 = vrot.slane %v3787_v13, %v18554_v39  ;;  %v4798_v50 = vrot.slane %v4790_v43, %v18554_v39 }
 0x271   : > { %5280 = vrot.lane.b32.xlu0 %v24292_v17, %s18235_s17  ;;  %v4806_v23 = vcombine.low %v20127_v33, %v20130_v61  ;;  %v4723_v11 = vcombine.high %v20013_v9, %v20016_v35  ;;  %v4826_v2 = vcombine.low %v3778_v53, %v3785_v8  ;;  %v16533_v44 = vcombine.high %v3778_v53, %v3785_v8  ;;  %v2985_v53 = vpop.permute.xlu1 %2984  ;;  %v24297_v8 = vld [vmem:[#allocation35_spill] sm:$0xff] }
 0x272   : > { %v4739_v52 = vcombine.high %v20071_v45, %v20078_v15  ;;  %v4791_v24 = vcombine.high %v20105_v46, %v20108_v38  ;;  %v1726_v34 = vcombine.low %v19650_v19, %v19797_v20  ;;  %v4842_v40 = vcombine.low %v3794_v57, %v3801_v63 }
 0x273   : > { %v4754_v22 = vcombine.low %v4730_v21, %v4746_v18  ;;  %v4814_v43 = vrot.slane %v4806_v23, %v18554_v39  ;;  %v24295_v7 = vcombine.low %v24293_v30, %v24294_v62  ;;  %v20211_v9 = vrot.slane %v4826_v2, %v18546_v32 }
 0x274   : > { %v16534_v35 = vcombine.high %v3794_v57, %v3801_v63  ;;  %v4755_v45 = vcombine.high %v4730_v21, %v4746_v18  ;;  %v4737_v15 = vrot.slane %v4723_v11, %v18554_v39  ;;  %v24296_v46 = vcombine.high %v24293_v30, %v24294_v62  ;;  %v24298_v57 = vld [vmem:[#allocation37_spill] sm:$0xff]  ;;  %5262 = vrot.lane.b32.xlu1 %v24273_v48, %s18235_s17 }
 0x275   : > { %17192 = vmatmul.mubr.msk.f32.vlgmr.msra.gmra.mrb[28].mxu1 %vm7570_vm1, %v24295_v7  ;;  %v20221_v38 = vrot.slane %v16533_v44, %v18546_v32  ;;  %v4822_v42 = vcombine.low %v4798_v50, %v4814_v43  ;;  %v4753_v13 = vrot.slane %v4739_v52, %v18554_v39  ;;  %v24299_v21 = vcombine.low %v24297_v8, %v24298_v57  ;;  %v20244_v52 = vpop.permute.xlu0 %2890  ;;  %v24302_v30 = vld [vmem:[#allocation5_spill] sm:$0xff] }
 0x276   : > { %17199 = vmatmul.mubr.msk.f32.vlgmr.msra.gmra.mrb[28].mxu0 %vm7570_vm1, %v24296_v46  ;;  %17696 = vmatpush3.bf16.xpose.msk.msra.mxu1 %vm19423_vm2, %v17691_v58  ;;  %v4823_v18 = vcombine.high %v4798_v50, %v4814_v43  ;;  %v4805_v63 = vrot.slane %v4791_v24, %v18554_v39  ;;  %v4807_v58 = vcombine.high %v20127_v33, %v20130_v61  ;;  %v24301_v33 = vld [vmem:[#allocation29_spill] sm:$0xff] }
 0x277   : > { %17205 = vmatprep.mubr.msk.f32.mxu1 %vm7570_vm1, %v24299_v21  ;;  %17702 = vmatpush3.bf16.xpose.msk.msra.mxu0 %vm19423_vm2, %v17697_v49  ;;  %v24300_v23 = vcombine.high %v24297_v8, %v24298_v57  ;;  %v20238_v11 = vrot.slane %v4842_v40, %v18546_v32  ;;  %v17703_v2 = vpack.c.bf16 %v4822_v42, %v4754_v22  ;;  %v24304_v8 = vld [vmem:[#allocation38_spill] sm:$0xff] }
 0x278   : > { %v3806_v49 = vcombine.low %v20132_v28, %v2953_v25  ;;  %v17709_v50 = vpack.c.bf16 %v4823_v18, %v4755_v45  ;;  %v4821_v44 = vrot.slane %v4807_v58, %v18554_v39  ;;  %5374 = vrot.lane.b32.xlu0 %v24301_v33, %s18236_s18  ;;  %v3807_v61 = vcombine.high %v20132_v28, %v2953_v25 }
 0x279   : > { %17212 = vmatprep.mubr.msk.f32.mxu0 %vm7570_vm1, %v24300_v23  ;;  %v3822_v24 = vcombine.low %v20160_v26, %v2985_v53  ;;  %v20251_v40 = vrot.slane %v16534_v35, %v18546_v32  ;;  %17705 = vmatprep.subr.msk.bf16.mxu1 %vm19423_vm2, %v17703_v2  ;;  %v3823_v22 = vcombine.high %v20160_v26, %v2985_v53  ;;  %v24303_v53 = vld [vmem:[#allocation36_spill] sm:$0xff] }
 0x27a   : > { %v2490_v43 = vcombine.low %v19485_v27, %v19488_v47  ;;  %v2506_v62 = vcombine.low %v24302_v30, %v19638_v10  ;;  %17711 = vmatprep.subr.msk.bf16.mxu0 %vm19423_vm2, %v17709_v50  ;;  %v4824_v28 = vcombine.low %v4805_v63, %v4821_v44  ;;  %v4825_v25 = vcombine.high %v4805_v63, %v4821_v44  ;;  %v2923_v63 = vpop.permute.xlu0 %2922 }
 0x27b   : > { %v3814_v7 = vrot.slane %v3806_v49, %v18546_v32  ;;  %v3830_v35 = vrot.slane %v3822_v24, %v18546_v32  ;;  %v4756_v45 = vcombine.low %v4737_v15, %v4753_v13  ;;  %v4757_v46 = vcombine.high %v4737_v15, %v4753_v13  ;;  %5310 = vrot.lane.b32.xlu1 %v24273_v48, %s18234_s16  ;;  %v24308_v24 = vld [vmem:[#allocation42_spill] sm:$0xff] }
 0x27c   : > { %v3821_v42 = vrot.slane %v3807_v61, %v18546_v32  ;;  %v3837_v26 = vrot.slane %v3823_v22, %v18546_v32  ;;  %v24305_v57 = vcombine.low %v24303_v53, %v24304_v8  ;;  %v20273_v58 = vrot.slane %v2490_v43, %v18554_v39  ;;  %v24307_v61 = vld [vmem:[#allocation41_spill] sm:$0xff] }
 0x27d   : > { %v3838_v21 = vcombine.low %v3814_v7, %v3830_v35  ;;  %v3839_v18 = vcombine.high %v3814_v7, %v3830_v35  ;;  %v20276_v15 = vrot.slane %v2506_v62, %v18554_v39  ;;  %v24306_v13 = vcombine.high %v24303_v53, %v24304_v8 }
 0x27e   : > { %17206 = vmatmul.mubr.msk.f32.vlgmr.msra.gmra.mrb[30].mxu1 %vm7570_vm1, %v24305_v57  ;;  %v17715_v23 = vpack.c.bf16 %v4824_v28, %v4756_v45  ;;  %v3854_v49 = vcombine.low %v3821_v42, %v3837_v26  ;;  %v3855_v44 = vcombine.high %v3821_v42, %v3837_v26  ;;  %v24309_v22 = vcombine.low %v24307_v61, %v24308_v24 }
 0x27f   : > { %17213 = vmatmul.mubr.msk.f32.vlgmr.msra.gmra.mrb[30].mxu0 %vm7570_vm1, %v24306_v13  ;;  %17708 = vmatpush3.bf16.xpose.msk.msra.mxu1 %vm19423_vm2, %v17703_v2  ;;  %v17721_v43 = vpack.c.bf16 %v4825_v25, %v4757_v46  ;;  %v3846_v62 = vrot.slane %v3838_v21, %v18554_v39  ;;  %v3853_v7 = vrot.slane %v3839_v18, %v18554_v39  ;;  %v2955_v46 = vpop.permute.xlu0 %2954  ;;  %v20313_v13 = vpop.permute.xlu1 %2892 }
 0x280   : > { %17219 = vmatprep.mubr.msk.f32.mxu1 %vm7570_vm1, %v24309_v22  ;;  %17714 = vmatpush3.bf16.xpose.msk.msra.mxu0 %vm19423_vm2, %v17709_v50  ;;  %v24310_v35 = vcombine.high %v24307_v61, %v24308_v24  ;;  %v3862_v2 = vrot.slane %v3854_v49, %v18554_v39  ;;  %v3869_v28 = vrot.slane %v3855_v44, %v18554_v39 }
 0x281   : > { %17717 = vmatprep.subr.msk.bf16.mxu1 %vm19423_vm2, %v17715_v23  ;;  %v4858_v50 = vcombine.low %v20211_v9, %v20221_v38  ;;  %17723 = vmatprep.subr.msk.bf16.mxu0 %vm19423_vm2, %v17721_v43  ;;  %v4894_v25 = vcombine.low %v3846_v62, %v3853_v7  ;;  %v16535_v45 = vcombine.high %v3846_v62, %v3853_v7  ;;  %v24311_v7 = vld [vmem:[#allocation39_spill] sm:$0xff] }
 0x282   : > { %17226 = vmatprep.mubr.msk.f32.mxu0 %vm7570_vm1, %v24310_v35  ;;  %5312 = vrot.lane.b32.xlu1 %v24268_v56, %s18234_s16  ;;  %v4874_v42 = vcombine.low %v20238_v11, %v20251_v40  ;;  %v4910_v26 = vcombine.low %v3862_v2, %v3869_v28  ;;  %v16536_v53 = vcombine.high %v3862_v2, %v3869_v28  ;;  %v24312_v35 = vld [vmem:[#allocation40_spill] sm:$0xff] }
 0x283   : > { %v2522_v8 = vcombine.low %v20273_v58, %v20276_v15  ;;  %v3874_v57 = vcombine.low %v20244_v52, %v2955_v46  ;;  %v4901_v21 = vrot.slane %v4894_v25, %v18546_v32  ;;  %v4909_v18 = vrot.slane %v16535_v45, %v18546_v32 }
 0x284   : > { %v2523_v49 = vcombine.high %v20273_v58, %v20276_v15  ;;  %v3875_v44 = vcombine.high %v20244_v52, %v2955_v46  ;;  %v4917_v61 = vrot.slane %v4910_v26, %v18546_v32  ;;  %v4925_v24 = vrot.slane %v16536_v53, %v18546_v32  ;;  %v2987_v15 = vpop.permute.xlu0 %2986  ;;  %v24316_v26 = vld [vmem:[#allocation44_spill] sm:$0xff] }
 0x285   : > { %v4866_v22 = vrot.slane %v4858_v50, %v18554_v39  ;;  %v4882_v62 = vrot.slane %v4874_v42, %v18554_v39  ;;  %v24313_v2 = vcombine.low %v24311_v7, %v24312_v35  ;;  %v3882_v58 = vrot.slane %v3874_v57, %v18546_v32  ;;  %v24315_v42 = vld [vmem:[#allocation43_spill] sm:$0xff] }
 0x286   : > { %5360 = vrot.lane.b32.xlu1 %v24268_v56, %s18236_s18  ;;  %v4926_v52 = vcombine.low %v4901_v21, %v4909_v18  ;;  %v4859_v28 = vcombine.high %v20211_v9, %v20221_v38  ;;  %v24314_v50 = vcombine.high %v24311_v7, %v24312_v35  ;;  %v3890_v25 = vcombine.low %v2923_v63, %v2987_v15 }
 0x287   : > { %17220 = vmatmul.mubr.msk.f32.vlgmr.msra.gmra.mrb[32].mxu1 %vm7570_vm1, %v24313_v2  ;;  %v3891_v45 = vcombine.high %v2923_v63, %v2987_v15  ;;  %v4942_v46 = vcombine.low %v4917_v61, %v4925_v24  ;;  %v24317_v53 = vcombine.low %v24315_v42, %v24316_v26  ;;  %v3889_v9 = vrot.slane %v3875_v44, %v18546_v32 }
 0x288   : > { %17227 = vmatmul.mubr.msk.f32.vlgmr.msra.gmra.mrb[32].mxu0 %vm7570_vm1, %v24314_v50  ;;  %17720 = vmatpush3.bf16.xpose.msk.msra.mxu1 %vm19423_vm2, %v17715_v23  ;;  %v4934_v38 = vrot.slane %v4926_v52, %v18554_v39  ;;  %v4875_v57 = vcombine.high %v20238_v11, %v20251_v40  ;;  %v24318_v23 = vcombine.high %v24315_v42, %v24316_v26 }
 0x289   : > { %17233 = vmatprep.mubr.msk.f32.mxu1 %vm7570_vm1, %v24317_v53  ;;  %17726 = vmatpush3.bf16.xpose.msk.msra.mxu0 %vm19423_vm2, %v17721_v43  ;;  %v3898_v63 = vrot.slane %v3890_v25, %v18546_v32  ;;  %v3905_v7 = vrot.slane %v3891_v45, %v18546_v32  ;;  %v4950_v35 = vrot.slane %v4942_v46, %v18554_v39  ;;  %v20354_v43 = vpop.permute.xlu1 %2924 }
 0x28a   : > { %17240 = vmatprep.mubr.msk.f32.mxu0 %vm7570_vm1, %v24318_v23  ;;  %v4927_v2 = vcombine.high %v4901_v21, %v4909_v18  ;;  %5266 = vrot.lane.b32.xlu1 %v24275_v3, %s18235_s17  ;;  %v4890_v44 = vcombine.low %v4866_v22, %v4882_v62  ;;  %v4891_v15 = vcombine.high %v4866_v22, %v4882_v62 }
 0x28b   : > { %v4873_v11 = vrot.slane %v4859_v28, %v18554_v39  ;;  %v4943_v40 = vcombine.high %v4917_v61, %v4925_v24  ;;  %v3906_v52 = vcombine.low %v3882_v58, %v3898_v63  ;;  %v3907_v50 = vcombine.high %v3882_v58, %v3898_v63  ;;  %v24319_v61 = vld [vmem:[#allocation4_spill] sm:$0xff]  ;;  %v24320_v24 = vld [vmem:[#allocation45_spill] sm:$0xff] }
 0x28c   : > { %v3922_v42 = vcombine.low %v3889_v9, %v3905_v7  ;;  %v3923_v26 = vcombine.high %v3889_v9, %v3905_v7  ;;  %v4958_v25 = vcombine.low %v4934_v38, %v4950_v35  ;;  %v4959_v53 = vcombine.high %v4934_v38, %v4950_v35  ;;  %v24323_v7 = vld [vmem:[#allocation46_spill] sm:$0xff]  ;;  %v24324_v35 = vld [vmem:[#allocation9_spill] sm:$0xff] }
 0x28d   : > { %v4889_v45 = vrot.slane %v4875_v57, %v18554_v39  ;;  %v4941_v21 = vrot.slane %v4927_v2, %v18554_v39  ;;  %v3914_v18 = vrot.slane %v3906_v52, %v18554_v39  ;;  %v3921_v46 = vrot.slane %v3907_v50, %v18554_v39  ;;  %v2957_v38 = vpop.permute.xlu1 %2956  ;;  %v24325_v52 = vld [vmem:[#allocation10_spill] sm:$0xff]  ;;  %v24326_v50 = vld [vmem:[#allocation47_spill] sm:$0xff] }
 0x28e   : > { %v20364_v23 = vrot.slane %v3922_v42, %v18554_v39  ;;  %v20367_v22 = vrot.slane %v3923_v26, %v18554_v39  ;;  %v24321_v62 = vcombine.low %v24319_v61, %v24320_v24  ;;  %5314 = vrot.lane.b32.xlu1 %v24275_v3, %s18234_s16  ;;  %v17727_v58 = vpack.c.bf16 %v4958_v25, %v4890_v44 }
 0x28f   : > { %v17733_v28 = vpack.c.bf16 %v4959_v53, %v4891_v15  ;;  %v4957_v9 = vrot.slane %v4943_v40, %v18554_v39  ;;  %v24322_v63 = vcombine.high %v24319_v61, %v24320_v24  ;;  %v2558_v2 = vcombine.low %v24324_v35, %v24323_v7 }
 0x290   : > { %17234 = vmatmul.mubr.msk.f32.vlgmr.msra.gmra.mrb[34].mxu1 %vm7570_vm1, %v24321_v62  ;;  %v2574_v44 = vcombine.low %v24326_v50, %v24325_v52  ;;  %v20391_v15 = vrot.slane %v1726_v34, %v18546_v32  ;;  %17729 = vmatprep.subr.msk.bf16.mxu1 %vm19423_vm2, %v17727_v58  ;;  %v4892_v40 = vcombine.low %v4873_v11, %v4889_v45  ;;  %v20404_v34 = vpop.permute.xlu0 %2894 }
 0x291   : > { %17241 = vmatmul.mubr.msk.f32.vlgmr.msra.gmra.mrb[34].mxu0 %vm7570_vm1, %v24322_v63  ;;  %17247 = vmatprep.mubr.msk.f32.mxu1 %vm7570_vm1, %v2522_v8  ;;  %v4960_v42 = vcombine.low %v4941_v21, %v4957_v9  ;;  %v4962_v8 = vcombine.low %v3914_v18, %v3921_v46  ;;  %v16537_v26 = vcombine.high %v3914_v18, %v3921_v46  ;;  %v2989_v24 = vpop.permute.xlu1 %2988 }
 0x292   : > { %17254 = vmatprep.mubr.msk.f32.mxu0 %vm7570_vm1, %v2523_v49  ;;  %v4978_v25 = vcombine.low %v20364_v23, %v20367_v22  ;;  %17735 = vmatprep.subr.msk.bf16.mxu0 %vm19423_vm2, %v17733_v28  ;;  %v4893_v53 = vcombine.high %v4873_v11, %v4889_v45  ;;  %v4961_v18 = vcombine.high %v4941_v21, %v4957_v9 }
 0x293   : > { %17732 = vmatpush3.bf16.xpose.msk.msra.mxu1 %vm19423_vm2, %v17727_v58  ;;  %5316 = vrot.lane.b32.xlu1 %v24274_v29, %s18234_s16  ;;  %v17739_v49 = vpack.c.bf16 %v4960_v42, %v4892_v40  ;;  %v3942_v46 = vcombine.low %v20313_v13, %v2957_v38  ;;  %v3943_v61 = vcombine.high %v20313_v13, %v2957_v38 }
 0x294   : > { %17738 = vmatpush3.bf16.xpose.msk.msra.mxu0 %vm19423_vm2, %v17733_v28  ;;  %v2566_v62 = vrot.slane %v2558_v2, %v18554_v39  ;;  %v2582_v58 = vrot.slane %v2574_v44, %v18554_v39  ;;  %v17745_v63 = vpack.c.bf16 %v4961_v18, %v4893_v53  ;;  %v3958_v57 = vcombine.low %v20354_v43, %v2989_v24  ;;  %v20438_v44 = vpop.permute.xlu0 %2926 }
 0x295   : > { %17741 = vmatprep.subr.msk.bf16.mxu1 %vm19423_vm2, %v17739_v49  ;;  %v3959_v28 = vcombine.high %v20354_v43, %v2989_v24  ;;  %v2491_v11 = vcombine.high %v19485_v27, %v19488_v47  ;;  %v20419_v45 = vrot.slane %v4962_v8, %v18546_v32  ;;  %v16538_v13 = vcombine.high %v20364_v23, %v20367_v22 }
 0x296   : > { %v3950_v21 = vrot.slane %v3942_v46, %v18546_v32  ;;  %v3957_v9 = vrot.slane %v3943_v61, %v18546_v32  ;;  %17747 = vmatprep.subr.msk.bf16.mxu0 %vm19423_vm2, %v17745_v63  ;;  %v3966_v43 = vrot.slane %v3958_v57, %v18546_v32  ;;  %v2590_v47 = vcombine.low %v2566_v62, %v2582_v58 }
 0x297   : > { %5364 = vrot.lane.b32.xlu1 %v24274_v29, %s18236_s18  ;;  %v3973_v27 = vrot.slane %v3959_v28, %v18546_v32  ;;  %v20432_v38 = vrot.slane %v16537_v26, %v18546_v32  ;;  %v20435_v23 = vrot.slane %v4978_v25, %v18546_v32  ;;  %v2591_v22 = vcombine.high %v2566_v62, %v2582_v58  ;;  %v20446_v26 = vpop.permute.xlu1 %2896 }
 0x298   : > { %v2505_v2 = vrot.slane %v2491_v11, %v18554_v39  ;;  %v3974_v40 = vcombine.low %v3950_v21, %v3966_v43  ;;  %v3975_v42 = vcombine.high %v3950_v21, %v3966_v43  ;;  %v2507_v57 = vcombine.high %v24302_v30, %v19638_v10 }
 0x299   : > { %v3990_v8 = vcombine.low %v3957_v9, %v3973_v27  ;;  %v3991_v53 = vcombine.high %v3957_v9, %v3973_v27  ;;  %v2559_v25 = vcombine.high %v24324_v35, %v24323_v7  ;;  %v2575_v18 = vcombine.high %v24326_v50, %v24325_v52 }
 0x29a   : > { %17248 = vmatmul.mubr.msk.f32.vlgmr.msra.gmra.mrb[36].mxu1 %vm7570_vm1, %v2590_v47  ;;  %v3982_v46 = vrot.slane %v3974_v40, %v18554_v39  ;;  %v3989_v61 = vrot.slane %v3975_v42, %v18554_v39  ;;  %v20459_v10 = vrot.slane %v16538_v13, %v18546_v32  ;;  %v2521_v30 = vrot.slane %v2507_v57, %v18554_v39  ;;  %v24327_v13 = vld [vmem:[#allocation6_spill] sm:$0xff] }
 0x29b   : > { %17255 = vmatmul.mubr.msk.f32.vlgmr.msra.gmra.mrb[36].mxu0 %vm7570_vm1, %v2591_v22  ;;  %17744 = vmatpush3.bf16.xpose.msk.msra.mxu1 %vm19423_vm2, %v17739_v49  ;;  %v3998_v49 = vrot.slane %v3990_v8, %v18554_v39  ;;  %v4005_v24 = vrot.slane %v3991_v53, %v18554_v39  ;;  %v2573_v7 = vrot.slane %v2559_v25, %v18554_v39  ;;  %v20488_v40 = vpop.permute.xlu1 %2928 }
 0x29c   : > { %5270 = vrot.lane.b32.xlu1 %v24277_v4, %s18235_s17  ;;  %17750 = vmatpush3.bf16.xpose.msk.msra.mxu0 %vm19423_vm2, %v17745_v63  ;;  %v2589_v35 = vrot.slane %v2575_v18, %v18554_v39  ;;  %v5030_v52 = vcombine.low %v3982_v46, %v3989_v61  ;;  %v16539_v50 = vcombine.high %v3982_v46, %v3989_v61 }
 0x29d   : > { %v5046_v62 = vcombine.low %v3998_v49, %v4005_v24  ;;  %v16540_v58 = vcombine.high %v3998_v49, %v4005_v24  ;;  %v2524_v28 = vcombine.low %v2505_v2, %v2521_v30  ;;  %v2525_v11 = vcombine.high %v2505_v2, %v2521_v30  ;;  %v2959_v2 = vpop.permute.xlu0 %2958 }
 0x29e   : > { %v2592_v21 = vcombine.low %v2573_v7, %v2589_v35  ;;  %v24328_v9 = vcombine.low %v19614_v37, %v24327_v13  ;;  %v20473_v27 = vrot.slane %v5030_v52, %v18546_v32  ;;  %v20476_v63 = vrot.slane %v16539_v50, %v18546_v32 }
 0x29f   : > { %v20479_v47 = vrot.slane %v5046_v62, %v18546_v32  ;;  %v20482_v22 = vrot.slane %v16540_v58, %v18546_v32  ;;  %17261 = vmatprep.mubr.msk.f32.mxu1 %vm7570_vm1, %v2524_v28  ;;  %17268 = vmatprep.mubr.msk.f32.mxu0 %vm7570_vm1, %v2525_v11  ;;  %v24329_v42 = vcombine.high %v19614_v37, %v24327_v13 }
 0x2a0   : > { %v20470_v43 = vrot.slane %v24328_v9, %v18546_v32  ;;  %5318 = vrot.lane.b32.xlu1 %v24277_v4, %s18234_s16  ;;  %v24330_v53 = vcombine.low %v19641_v12, %v19644_v16  ;;  %v24331_v25 = vcombine.high %v19641_v12, %v19644_v16  ;;  %v24332_v46 = vcombine.high %v19650_v19, %v19797_v20 }
 0x2a1   : > { %v20494_v8 = vrot.slane %v24329_v42, %v18546_v32  ;;  %v2593_v37 = vcombine.high %v2573_v7, %v2589_v35  ;;  %v4994_v49 = vcombine.low %v20419_v45, %v20432_v38  ;;  %v5010_v24 = vcombine.low %v20435_v23, %v20459_v10  ;;  %v2991_v35 = vpop.permute.xlu0 %2990 }
 0x2a2   : > { %v20500_v57 = vrot.slane %v24330_v53, %v18546_v32  ;;  %v20506_v18 = vrot.slane %v24331_v25, %v18546_v32  ;;  %v20512_v61 = vrot.slane %v24332_v46, %v18546_v32  ;;  %17262 = vmatmul.mubr.msk.f32.vlgmr.msra.gmra.mrb[38].mxu1 %vm7570_vm1, %v2592_v21  ;;  %v5062_v19 = vcombine.low %v20473_v27, %v20476_v63  ;;  %v2961_v25 = vpop.permute.xlu1 %2960 }
 0x2a3   : > { %v2626_v12 = vcombine.low %v20470_v43, %v20494_v8  ;;  %v5078_v20 = vcombine.low %v20479_v47, %v20482_v22  ;;  %v1742_v30 = vcombine.low %v19755_v6, %v20391_v15  ;;  %v1743_v7 = vcombine.high %v19755_v6, %v20391_v15  ;;  %17269 = vmatmul.mubr.msk.f32.vlgmr.msra.gmra.mrb[38].mxu0 %vm7570_vm1, %v2593_v37 }
 0x2a4   : > { %v2642_v16 = vcombine.low %v20500_v57, %v20506_v18  ;;  %5320 = vrot.lane.b32.xlu1 %v24276_v1, %s18234_s16  ;;  %v5002_v52 = vrot.slane %v4994_v49, %v18554_v39  ;;  %v4010_v50 = vcombine.low %v20404_v34, %v2959_v2  ;;  %v4026_v28 = vcombine.low %v20438_v44, %v2991_v35 }
 0x2a5   : > { %v2634_v62 = vrot.slane %v2626_v12, %v18554_v39  ;;  %v4027_v11 = vcombine.high %v20438_v44, %v2991_v35  ;;  %v5018_v21 = vrot.slane %v5010_v24, %v18554_v39  ;;  %v5070_v13 = vrot.slane %v5062_v19, %v18554_v39 }
 0x2a6   : > { %v2650_v58 = vrot.slane %v2642_v16, %v18554_v39  ;;  %v5086_v9 = vrot.slane %v5078_v20, %v18554_v39  ;;  %v4034_v46 = vrot.slane %v4026_v28, %v18546_v32  ;;  %v4995_v37 = vcombine.high %v20419_v45, %v20432_v38 }
 0x2a7   : > { %v5026_v49 = vcombine.low %v5002_v52, %v5018_v21  ;;  %v5027_v44 = vcombine.high %v5002_v52, %v5018_v21  ;;  %v1758_v24 = vcombine.low %v19758_v54, %v20512_v61  ;;  %v4011_v19 = vcombine.high %v20404_v34, %v2959_v2 }
 0x2a8   : > { %v2658_v42 = vcombine.low %v2634_v62, %v2650_v58  ;;  %v2659_v53 = vcombine.high %v2634_v62, %v2650_v58  ;;  %5368 = vrot.lane.b32.xlu1 %v24276_v1, %s18236_s18  ;;  %v5094_v12 = vcombine.low %v5070_v13, %v5086_v9  ;;  %v5095_v16 = vcombine.high %v5070_v13, %v5086_v9 }
 0x2a9   : > { %v4018_v20 = vrot.slane %v4010_v50, %v18546_v32  ;;  %v1759_v45 = vcombine.high %v19758_v54, %v20512_v61  ;;  %v4078_v38 = vcombine.low %v20446_v26, %v2961_v25  ;;  %v4041_v52 = vrot.slane %v4027_v11, %v18546_v32  ;;  %v24335_v61 = vld [vmem:[#allocation14_spill] sm:$0xff] }
 0x2aa   : > { %17275 = vmatprep.mubr.msk.f32.mxu1 %vm7570_vm1, %v2658_v42  ;;  %17282 = vmatprep.mubr.msk.f32.mxu0 %vm7570_vm1, %v2659_v53  ;;  %v17751_v35 = vpack.c.bf16 %v5094_v12, %v5026_v49  ;;  %v17757_v62 = vpack.c.bf16 %v5095_v16, %v5027_v44  ;;  %v5011_v34 = vcombine.high %v20435_v23, %v20459_v10  ;;  %v24333_v16 = vld [vmem:[#allocation8_spill] sm:$0xff] }
 0x2ab   : > { %v4042_v58 = vcombine.low %v4018_v20, %v4034_v46  ;;  %v4043_v28 = vcombine.high %v4018_v20, %v4034_v46  ;;  %v5009_v2 = vrot.slane %v4995_v37, %v18554_v39  ;;  %v5063_v50 = vcombine.high %v20473_v27, %v20476_v63  ;;  %v2993_v37 = vpop.permute.xlu1 %2992 }
 0x2ac   : > { %5274 = vrot.lane.b32.xlu1 %v24285_v51, %s18235_s17  ;;  %17753 = vmatprep.subr.msk.bf16.mxu1 %vm19423_vm2, %v17751_v35  ;;  %v5079_v21 = vcombine.high %v20479_v47, %v20482_v22  ;;  %v20570_v11 = vrot.slane %v1742_v30, %v18554_v39  ;;  %v4025_v13 = vrot.slane %v4011_v19, %v18546_v32  ;;  %v24334_v19 = vld [vmem:[#allocation7_spill] sm:$0xff] }
 0x2ad   : > { %17759 = vmatprep.subr.msk.bf16.mxu0 %vm19423_vm2, %v17757_v62  ;;  %17756 = vmatpush3.bf16.xpose.msk.msra.mxu1 %vm19423_vm2, %v17751_v35  ;;  %v5025_v23 = vrot.slane %v5011_v34, %v18554_v39  ;;  %v4079_v10 = vcombine.high %v20446_v26, %v2961_v25  ;;  %v4086_v27 = vrot.slane %v4078_v38, %v18546_v32 }
 0x2ae   : > { %17762 = vmatpush3.bf16.xpose.msk.msra.mxu0 %vm19423_vm2, %v17757_v62  ;;  %v5077_v63 = vrot.slane %v5063_v50, %v18554_v39  ;;  %v5093_v47 = vrot.slane %v5079_v21, %v18554_v39  ;;  %v4050_v22 = vrot.slane %v4042_v58, %v18554_v39  ;;  %v4057_v30 = vrot.slane %v4043_v28, %v18554_v39 }
 0x2af   : > { %v4058_v9 = vcombine.low %v4025_v13, %v4041_v52  ;;  %v4059_v42 = vcombine.high %v4025_v13, %v4041_v52  ;;  %v5028_v53 = vcombine.low %v5009_v2, %v5025_v23  ;;  %v5029_v25 = vcombine.high %v5009_v2, %v5025_v23 }
 0x2b0   : > { %5322 = vrot.lane.b32.xlu1 %v24285_v51, %s18234_s16  ;;  %v5096_v26 = vcombine.low %v5077_v63, %v5093_v47  ;;  %v5097_v46 = vcombine.high %v5077_v63, %v5093_v47  ;;  %v4094_v49 = vcombine.low %v20488_v40, %v2993_v37  ;;  %v4095_v12 = vcombine.high %v20488_v40, %v2993_v37  ;;  %v20619_v47 = vpop.permute.xlu1 %5250 }
 0x2b1   : > { %v2694_v44 = vcombine.low %v19719_v31, %v19729_v5  ;;  %v2710_v20 = vcombine.low %v24334_v19, %v24333_v16  ;;  %v2627_v62 = vcombine.high %v20470_v43, %v20494_v8  ;;  %v2643_v52 = vcombine.high %v20500_v57, %v20506_v18 }
 0x2b2   : > { %v17763_v38 = vpack.c.bf16 %v5096_v26, %v5028_v53  ;;  %v17769_v35 = vpack.c.bf16 %v5097_v46, %v5029_v25  ;;  %v4102_v58 = vrot.slane %v4094_v49, %v18546_v32  ;;  %v4109_v28 = vrot.slane %v4095_v12, %v18546_v32  ;;  %v20634_v25 = vpop.permute.xlu0 %5252 }
 0x2b3   : > { %v2702_v40 = vrot.slane %v2694_v44, %v18554_v39  ;;  %v2718_v34 = vrot.slane %v2710_v20, %v18554_v39  ;;  %v4093_v2 = vrot.slane %v4079_v10, %v18546_v32  ;;  %v2641_v43 = vrot.slane %v2627_v62, %v18554_v39 }
 0x2b4   : > { %5324 = vrot.lane.b32.xlu1 %v24284_v0, %s18234_s16  ;;  %17765 = vmatprep.subr.msk.bf16.mxu1 %vm19423_vm2, %v17763_v38  ;;  %v2657_v8 = vrot.slane %v2643_v52, %v18554_v39  ;;  %v4066_v57 = vrot.slane %v4058_v9, %v18554_v39  ;;  %v4073_v18 = vrot.slane %v4059_v42, %v18554_v39  ;;  %v5299_v37 = vpop.permute.xlu1 %5298  ;;  %v24338_v52 = vld [vmem:[#allocation48_spill] sm:$0xff] }
 0x2b5   : > { %17771 = vmatprep.subr.msk.bf16.mxu0 %vm19423_vm2, %v17769_v35  ;;  %v4110_v50 = vcombine.low %v4086_v27, %v4102_v58  ;;  %v4111_v21 = vcombine.high %v4086_v27, %v4102_v58  ;;  %v20617_v13 = vrot.slane %v1743_v7, %v18554_v39  ;;  %v4126_v23 = vcombine.low %v4093_v2, %v4109_v28  ;;  %v24339_v58 = vld [vmem:[#allocation49_spill] sm:$0xff] }
 0x2b6   : > { %v4127_v10 = vcombine.high %v4093_v2, %v4109_v28  ;;  %v2726_v63 = vcombine.low %v2702_v40, %v2718_v34  ;;  %v5098_v53 = vcombine.low %v4050_v22, %v4057_v30  ;;  %v16541_v9 = vcombine.high %v4050_v22, %v4057_v30 }
 0x2b7   : > { %v2727_v26 = vcombine.high %v2702_v40, %v2718_v34  ;;  %v2695_v42 = vcombine.high %v19719_v31, %v19729_v5  ;;  %v4118_v27 = vrot.slane %v4110_v50, %v18554_v39  ;;  %v4125_v6 = vrot.slane %v4111_v21, %v18554_v39  ;;  %v5347_v50 = vpop.permute.xlu0 %5346 }
 0x2b8   : > { %5372 = vrot.lane.b32.xlu1 %v24284_v0, %s18236_s18  ;;  %17276 = vmatmul.mubr.msk.f32.vlgmr.msra.gmra.mrb[40].mxu1 %vm7570_vm1, %v2726_v63  ;;  %v2660_v15 = vcombine.low %v2641_v43, %v2657_v8  ;;  %v20632_v7 = vrot.slane %v1758_v24, %v18554_v39  ;;  %v5114_v22 = vcombine.low %v4066_v57, %v4073_v18 }
 0x2b9   : > { %v16542_v30 = vcombine.high %v4066_v57, %v4073_v18  ;;  %17283 = vmatmul.mubr.msk.f32.vlgmr.msra.gmra.mrb[40].mxu0 %vm7570_vm1, %v2727_v26  ;;  %v2661_v31 = vcombine.high %v2641_v43, %v2657_v8  ;;  %v4134_v5 = vrot.slane %v4126_v23, %v18554_v39  ;;  %v4141_v46 = vrot.slane %v4127_v10, %v18554_v39 }
 0x2ba   : > { %17768 = vmatpush3.bf16.xpose.msk.msra.mxu1 %vm19423_vm2, %v17763_v38  ;;  %17289 = vmatprep.mubr.msk.f32.mxu1 %vm7570_vm1, %v2660_v15  ;;  %v2711_v24 = vcombine.high %v24334_v19, %v24333_v16  ;;  %v20648_v49 = vrot.slane %v1759_v45, %v18554_v39  ;;  %v20651_v12 = vrot.slane %v5098_v53, %v18546_v32 }
 0x2bb   : > { %v20654_v44 = vrot.slane %v16541_v9, %v18546_v32  ;;  %17774 = vmatpush3.bf16.xpose.msk.msra.mxu0 %vm19423_vm2, %v17769_v35  ;;  %v2709_v20 = vrot.slane %v2695_v42, %v18554_v39  ;;  %v5166_v38 = vcombine.low %v4118_v27, %v4125_v6  ;;  %v16543_v62 = vcombine.high %v4118_v27, %v4125_v6  ;;  %v24342_v9 = vld [vmem:[#allocation11_spill] sm:$0xff]  ;;  %v20705_v27 = vpop.permute.xlu1 %5300 }
 0x2bc   : > { %5278 = vrot.lane.b32.xlu1 %v24301_v33, %s18235_s17  ;;  %17296 = vmatprep.mubr.msk.f32.mxu0 %vm7570_vm1, %v2661_v31  ;;  %v2725_v54 = vrot.slane %v2711_v24, %v18554_v39  ;;  %v24336_v45 = vcombine.low %v19831_v14, %v24335_v61  ;;  %v24337_v19 = vcombine.high %v19831_v14, %v24335_v61 }
 0x2bd   : > { %v24340_v28 = vcombine.low %v24338_v52, %v24339_v58  ;;  %v24341_v34 = vcombine.high %v24338_v52, %v24339_v58  ;;  %v20688_v43 = vrot.slane %v5114_v22, %v18546_v32  ;;  %v20691_v8 = vrot.slane %v16542_v30, %v18546_v32 }
 0x2be   : > { %v20667_v16 = vrot.slane %v24336_v45, %v18546_v32  ;;  %v20673_v35 = vrot.slane %v24337_v19, %v18546_v32  ;;  %v5182_v14 = vcombine.low %v4134_v5, %v4141_v46  ;;  %v16544_v57 = vcombine.high %v4134_v5, %v4141_v46 }
 0x2bf   : > { %v20679_v40 = vrot.slane %v24340_v28, %v18546_v32  ;;  %v20685_v2 = vrot.slane %v24341_v34, %v18546_v32  ;;  %v2798_v18 = vcombine.low %v20570_v11, %v20617_v13  ;;  %v2728_v21 = vcombine.low %v2709_v20, %v2725_v54 }
 0x2c0   : > { %v2762_v23 = vcombine.low %v20667_v16, %v20673_v35  ;;  %v16511_v63 = vcombine.high %v20570_v11, %v20617_v13  ;;  %v5410_v53 = vcombine.low %v20619_v47, %v5347_v50  ;;  %5326 = vrot.lane.b32.xlu1 %v24301_v33, %s18234_s16  ;;  %v5394_v26 = vcombine.low %v24342_v9, %v5299_v37 }
 0x2c1   : > { %v2778_v10 = vcombine.low %v20679_v40, %v20685_v2  ;;  %v2729_v42 = vcombine.high %v2709_v20, %v2725_v54  ;;  %v20708_v6 = vrot.slane %v5166_v38, %v18546_v32  ;;  %v20711_v15 = vrot.slane %v16543_v62, %v18546_v32  ;;  %17290 = vmatmul.mubr.msk.f32.vlgmr.msra.gmra.mrb[42].mxu1 %vm7570_vm1, %v2728_v21  ;;  %v5349_v54 = vpop.permute.xlu1 %5348 }
 0x2c2   : > { %v2770_v11 = vrot.slane %v2762_v23, %v18554_v39  ;;  %v20717_v22 = vrot.slane %v5182_v14, %v18546_v32  ;;  %v20720_v30 = vrot.slane %v16544_v57, %v18546_v32  ;;  %v5130_v31 = vcombine.low %v20651_v12, %v20654_v44 }
 0x2c3   : > { %v2786_v13 = vrot.slane %v2778_v10, %v18554_v39  ;;  %17297 = vmatmul.mubr.msk.f32.vlgmr.msra.gmra.mrb[42].mxu0 %vm7570_vm1, %v2729_v42  ;;  %v5146_v5 = vcombine.low %v20688_v43, %v20691_v8  ;;  %v5411_v46 = vcombine.high %v20619_v47, %v5347_v50  ;;  %v5395_v24 = vcombine.high %v24342_v9, %v5299_v37 }
 0x2c4   : > { %v5402_v62 = vrot.slane %v5394_v26, %v18546_v32  ;;  %5328 = vrot.lane.b32.xlu1 %v24292_v17, %s18234_s16  ;;  %v2814_v61 = vcombine.low %v20632_v7, %v20648_v49  ;;  %v16512_v45 = vcombine.high %v20632_v7, %v20648_v49  ;;  %v5418_v19 = vrot.slane %v5410_v53, %v18546_v32 }
 0x2c5   : > { %v2794_v20 = vcombine.low %v2770_v11, %v2786_v13  ;;  %v2795_v38 = vcombine.high %v2770_v11, %v2786_v13  ;;  %v5138_v47 = vrot.slane %v5130_v31, %v18554_v39  ;;  %v5154_v37 = vrot.slane %v5146_v5, %v18554_v39  ;;  %v20755_v50 = vpop.permute.xlu1 %5254 }
 0x2c6   : > { %v5198_v52 = vcombine.low %v20708_v6, %v20711_v15  ;;  %v5214_v58 = vcombine.low %v20717_v22, %v20720_v30  ;;  %v20746_v28 = vrot.slane %v2798_v18, %v18546_v32  ;;  %v20749_v7 = vrot.slane %v16511_v63, %v18546_v32  ;;  %v24343_v18 = vld [vmem:[#allocation12_spill] sm:$0xff] }
 0x2c7   : > { %17303 = vmatprep.mubr.msk.f32.mxu1 %vm7570_vm1, %v2794_v20  ;;  %17310 = vmatprep.mubr.msk.f32.mxu0 %vm7570_vm1, %v2795_v38  ;;  %v5425_v49 = vrot.slane %v5411_v46, %v18546_v32  ;;  %v5409_v34 = vrot.slane %v5395_v24, %v18546_v32  ;;  %v5426_v14 = vcombine.low %v5402_v62, %v5418_v19  ;;  %v20777_v38 = vpop.permute.xlu0 %5256 }
 0x2c8   : > { %v5427_v57 = vcombine.high %v5402_v62, %v5418_v19  ;;  %5376 = vrot.lane.b32.xlu1 %v24292_v17, %s18236_s18  ;;  %v5206_v21 = vrot.slane %v5198_v52, %v18554_v39  ;;  %v5222_v23 = vrot.slane %v5214_v58, %v18554_v39  ;;  %v5462_v10 = vcombine.low %v24343_v18, %v20705_v27 }
 0x2c9   : > { %v5478_v63 = vcombine.low %v20634_v25, %v5349_v54  ;;  %v5479_v53 = vcombine.high %v20634_v25, %v5349_v54  ;;  %v5131_v9 = vcombine.high %v20651_v12, %v20654_v44  ;;  %v5162_v26 = vcombine.low %v5138_v47, %v5154_v37 }
 0x2ca   : > { %v5230_v42 = vcombine.low %v5206_v21, %v5222_v23  ;;  %v5163_v11 = vcombine.high %v5138_v47, %v5154_v37  ;;  %v5231_v13 = vcombine.high %v5206_v21, %v5222_v23  ;;  %v20766_v31 = vrot.slane %v2814_v61, %v18546_v32 }
 0x2cb   : > { %v20769_v5 = vrot.slane %v16512_v45, %v18546_v32  ;;  %v5147_v46 = vcombine.high %v20688_v43, %v20691_v8  ;;  %v5199_v24 = vcombine.high %v20708_v6, %v20711_v15  ;;  %v5442_v25 = vcombine.low %v5409_v34, %v5425_v49  ;;  %v5303_v15 = vpop.permute.xlu1 %5302 }
 0x2cc   : > { %v5463_v12 = vcombine.high %v24343_v18, %v20705_v27  ;;  %v17775_v44 = vpack.c.bf16 %v5230_v42, %v5162_v26  ;;  %v17781_v20 = vpack.c.bf16 %v5231_v13, %v5163_v11  ;;  %v20780_v62 = vrot.slane %v5426_v14, %v18554_v39 }
 0x2cd   : > { %v20783_v54 = vrot.slane %v5427_v57, %v18554_v39  ;;  %v5443_v61 = vcombine.high %v5409_v34, %v5425_v49  ;;  %v5486_v43 = vrot.slane %v5478_v63, %v18546_v32  ;;  %v5470_v8 = vrot.slane %v5462_v10, %v18546_v32  ;;  %v5351_v10 = vpop.permute.xlu0 %5350 }
 0x2ce   : > { %v5493_v6 = vrot.slane %v5479_v53, %v18546_v32  ;;  %17777 = vmatprep.subr.msk.bf16.mxu1 %vm19423_vm2, %v17775_v44  ;;  %17783 = vmatprep.subr.msk.bf16.mxu0 %vm19423_vm2, %v17781_v20  ;;  %v5145_v27 = vrot.slane %v5131_v9, %v18554_v39  ;;  %v5161_v45 = vrot.slane %v5147_v46, %v18554_v39 }
 0x2cf   : > { %17780 = vmatpush3.bf16.xpose.msk.msra.mxu1 %vm19423_vm2, %v17775_v44  ;;  %17786 = vmatpush3.bf16.xpose.msk.msra.mxu0 %vm19423_vm2, %v17781_v20  ;;  %v5213_v19 = vrot.slane %v5199_v24, %v18554_v39  ;;  %v5215_v47 = vcombine.high %v20717_v22, %v20720_v30  ;;  %v20802_v37 = vrot.slane %v5442_v25, %v18554_v39  ;;  %v5305_v46 = vpop.permute.xlu1 %5304 }
 0x2d0   : > { %v5477_v52 = vrot.slane %v5463_v12, %v18546_v32  ;;  %v2830_v58 = vcombine.low %v20746_v28, %v20749_v7  ;;  %v2846_v49 = vcombine.low %v20766_v31, %v20769_v5  ;;  %v20810_v34 = vrot.slane %v5443_v61, %v18554_v39 }
 0x2d1   : > { %v5494_v14 = vcombine.low %v5470_v8, %v5486_v43  ;;  %v5495_v57 = vcombine.high %v5470_v8, %v5486_v43  ;;  %v5229_v21 = vrot.slane %v5215_v47, %v18554_v39  ;;  %v5164_v63 = vcombine.low %v5145_v27, %v5161_v45  ;;  %v21083_v51 = vpop.permute.xlu0 %5260 }
 0x2d2   : > { %v5510_v23 = vcombine.low %v5477_v52, %v5493_v6  ;;  %v5511_v22 = vcombine.high %v5477_v52, %v5493_v6  ;;  %v2838_v30 = vrot.slane %v2830_v58, %v18554_v39  ;;  %v2854_v18 = vrot.slane %v2846_v49, %v18554_v39  ;;  %24362 = vst [vmem:[#allocation43_spill] sm:$0xff] %v21083_v51 }
 0x2d3   : > { %v5232_v53 = vcombine.low %v5213_v19, %v5229_v21  ;;  %v5165_v9 = vcombine.high %v5145_v27, %v5161_v45  ;;  %v5233_v26 = vcombine.high %v5213_v19, %v5229_v21  ;;  %v6482_v42 = vcombine.low %v20780_v62, %v20783_v54  ;;  %v5353_v52 = vpop.permute.xlu1 %5352 }
 0x2d4   : > { %v16545_v11 = vcombine.high %v20780_v62, %v20783_v54  ;;  %v5546_v13 = vcombine.low %v20755_v50, %v5351_v10  ;;  %v2763_v24 = vcombine.high %v20667_v16, %v20673_v35  ;;  %v5547_v25 = vcombine.high %v20755_v50, %v5351_v10 }
 0x2d5   : > { %v17787_v12 = vpack.c.bf16 %v5232_v53, %v5164_v63  ;;  %v17793_v44 = vpack.c.bf16 %v5233_v26, %v5165_v9  ;;  %v5530_v20 = vcombine.low %v24262_v60, %v5303_v15  ;;  %v5502_v61 = vrot.slane %v5494_v14, %v18554_v39  ;;  %v21099_v29 = vpop.permute.xlu0 %5354 }
 0x2d6   : > { %v5509_v43 = vrot.slane %v5495_v57, %v18554_v39  ;;  %v2862_v8 = vcombine.low %v2838_v30, %v2854_v18  ;;  %v2863_v6 = vcombine.high %v2838_v30, %v2854_v18  ;;  %v5518_v62 = vrot.slane %v5510_v23, %v18554_v39  ;;  %24364 = vst [vmem:[#allocation4_spill] sm:$0xff] %v21099_v29 }
 0x2d7   : > { %v5525_v54 = vrot.slane %v5511_v22, %v18554_v39  ;;  %17789 = vmatprep.subr.msk.bf16.mxu1 %vm19423_vm2, %v17787_v12  ;;  %17795 = vmatprep.subr.msk.bf16.mxu0 %vm19423_vm2, %v17793_v44  ;;  %v5531_v16 = vcombine.high %v24262_v60, %v5303_v15  ;;  %v6498_v35 = vcombine.low %v20802_v37, %v20810_v34 }
 0x2d8   : > { %17304 = vmatmul.mubr.msk.f32.vlgmr.msra.gmra.mrb[44].mxu1 %vm7570_vm1, %v2862_v8  ;;  %17311 = vmatmul.mubr.msk.f32.vlgmr.msra.gmra.mrb[44].mxu0 %vm7570_vm1, %v2863_v6  ;;  %v2777_v50 = vrot.slane %v2763_v24, %v18554_v39  ;;  %v2779_v27 = vcombine.high %v20679_v40, %v20685_v2  ;;  %v16546_v45 = vcombine.high %v20802_v37, %v20810_v34 }
 0x2d9   : > { %v5554_v19 = vrot.slane %v5546_v13, %v18546_v32  ;;  %v5538_v47 = vrot.slane %v5530_v20, %v18546_v32  ;;  %17792 = vmatpush3.bf16.xpose.msk.msra.mxu1 %vm19423_vm2, %v17787_v12  ;;  %17798 = vmatpush3.bf16.xpose.msk.msra.mxu0 %vm19423_vm2, %v17793_v44  ;;  %v5561_v60 = vrot.slane %v5547_v25, %v18546_v32 }
 0x2da   : > { %v2793_v15 = vrot.slane %v2779_v27, %v18554_v39  ;;  %v2831_v40 = vcombine.high %v20746_v28, %v20749_v7  ;;  %v2847_v2 = vcombine.high %v20766_v31, %v20769_v5  ;;  %v6550_v37 = vcombine.low %v5502_v61, %v5509_v43 }
 0x2db   : > { %v16547_v58 = vcombine.high %v5502_v61, %v5509_v43  ;;  %v6566_v49 = vcombine.low %v5518_v62, %v5525_v54  ;;  %v5545_v34 = vrot.slane %v5531_v16, %v18546_v32  ;;  %v6489_v21 = vrot.slane %v6482_v42, %v18546_v32 }
 0x2dc   : > { %v2796_v14 = vcombine.low %v2777_v50, %v2793_v15  ;;  %v2797_v57 = vcombine.high %v2777_v50, %v2793_v15  ;;  %v2845_v41 = vrot.slane %v2831_v40, %v18554_v39  ;;  %v5562_v23 = vcombine.low %v5538_v47, %v5554_v19 }
 0x2dd   : > { %v5598_v22 = vcombine.low %v24256_v59, %v5305_v46  ;;  %v5599_v30 = vcombine.high %v24256_v59, %v5305_v46  ;;  %v5614_v28 = vcombine.low %v20777_v38, %v5353_v52  ;;  %v2861_v7 = vrot.slane %v2847_v2, %v18554_v39 }
 0x2de   : > { %17317 = vmatprep.mubr.msk.f32.mxu1 %vm7570_vm1, %v2796_v14  ;;  %17324 = vmatprep.mubr.msk.f32.mxu0 %vm7570_vm1, %v2797_v57  ;;  %v6497_v31 = vrot.slane %v16545_v11, %v18546_v32  ;;  %v6505_v5 = vrot.slane %v6498_v35, %v18546_v32  ;;  %v16548_v18 = vcombine.high %v5518_v62, %v5525_v54 }
 0x2df   : > { %v5563_v10 = vcombine.high %v5538_v47, %v5554_v19  ;;  %v5578_v63 = vcombine.low %v5545_v34, %v5561_v60  ;;  %v5615_v53 = vcombine.high %v20777_v38, %v5353_v52  ;;  %v2864_v9 = vcombine.low %v2845_v41, %v2861_v7 }
 0x2e0   : > { %v2865_v26 = vcombine.high %v2845_v41, %v2861_v7  ;;  %v6513_v59 = vrot.slane %v16546_v45, %v18546_v32  ;;  %v6514_v42 = vcombine.low %v6489_v21, %v6497_v31  ;;  %v20868_v13 = vrot.slane %v5562_v23, %v18554_v39 }
 0x2e1   : > { %v5579_v46 = vcombine.high %v5545_v34, %v5561_v60  ;;  %v5606_v24 = vrot.slane %v5598_v22, %v18546_v32  ;;  %v5613_v11 = vrot.slane %v5599_v30, %v18546_v32  ;;  %v5622_v25 = vrot.slane %v5614_v28, %v18546_v32  ;;  %17318 = vmatmul.mubr.msk.f32.vlgmr.msra.gmra.mrb[46].mxu1 %vm7570_vm1, %v2864_v9 }
 0x2e2   : > { %17325 = vmatmul.mubr.msk.f32.vlgmr.msra.gmra.mrb[46].mxu0 %vm7570_vm1, %v2865_v26  ;;  %v6530_v38 = vcombine.low %v6505_v5, %v6513_v59  ;;  %v6557_v12 = vrot.slane %v6550_v37, %v18546_v32  ;;  %v6565_v44 = vrot.slane %v16547_v58, %v18546_v32  ;;  %v6573_v20 = vrot.slane %v6566_v49, %v18546_v32  ;;  %v20903_v30 = vpop.f32.mrb[8].mxu1 }
 0x2e3   : > { %v6581_v61 = vrot.slane %v16548_v18, %v18546_v32  ;;  %v6515_v43 = vcombine.high %v6489_v21, %v6497_v31  ;;  %v5577_v8 = vrot.slane %v5563_v10, %v18554_v39  ;;  %v5629_v6 = vrot.slane %v5615_v53, %v18546_v32  ;;  %v20907_v18 = vpop.f32.mrb[9].mxu1 }
 0x2e4   : > { %v6522_v62 = vrot.slane %v6514_v42, %v18554_v39  ;;  %v6531_v54 = vcombine.high %v6505_v5, %v6513_v59  ;;  %v6538_v16 = vrot.slane %v6530_v38, %v18554_v39  ;;  %v6582_v35 = vcombine.low %v6557_v12, %v6565_v44 }
 0x2e5   : > { %v6598_v50 = vcombine.low %v6573_v20, %v6581_v61  ;;  %v6583_v27 = vcombine.high %v6557_v12, %v6565_v44  ;;  %v5630_v45 = vcombine.low %v5606_v24, %v5622_v25  ;;  %v20884_v19 = vrot.slane %v6515_v43, %v18554_v39 }
 0x2e6   : > { %v20887_v47 = vrot.slane %v6531_v54, %v18554_v39  ;;  %v6599_v60 = vcombine.high %v6573_v20, %v6581_v61  ;;  %v5631_v15 = vcombine.high %v5606_v24, %v5622_v25  ;;  %v6590_v52 = vrot.slane %v6582_v35, %v18554_v39 }
 0x2e7   : > { %v6606_v40 = vrot.slane %v6598_v50, %v18554_v39  ;;  %v20892_v2 = vrot.slane %v6583_v27, %v18554_v39  ;;  %v5586_v37 = vrot.slane %v5578_v63, %v18554_v39  ;;  %v5593_v58 = vrot.slane %v5579_v46, %v18554_v39 }
 0x2e8   : > { %v5646_v49 = vcombine.low %v5613_v11, %v5629_v6  ;;  %v20897_v34 = vrot.slane %v6599_v60, %v18554_v39  ;;  %v5647_v14 = vcombine.high %v5613_v11, %v5629_v6  ;;  %v6546_v57 = vcombine.low %v6522_v62, %v6538_v16 }
 0x2e9   : > { %v6614_v41 = vcombine.low %v6590_v52, %v6606_v40  ;;  %v6615_v21 = vcombine.high %v6590_v52, %v6606_v40  ;;  %v6548_v23 = vcombine.low %v20884_v19, %v20887_v47  ;;  %v5638_v28 = vrot.slane %v5630_v45, %v18554_v39 }
 0x2ea   : > { %v6616_v22 = vcombine.low %v20892_v2, %v20897_v34  ;;  %v5645_v7 = vrot.slane %v5631_v15, %v18554_v39  ;;  %v6547_v5 = vcombine.high %v6522_v62, %v6538_v16  ;;  %v6618_v10 = vcombine.low %v20868_v13, %v5577_v8 }
 0x2eb   : > { %v17799_v31 = vpack.c.bf16 %v6614_v41, %v6546_v57  ;;  %v16549_v63 = vcombine.high %v20868_v13, %v5577_v8  ;;  %v6634_v53 = vcombine.low %v5586_v37, %v5593_v58  ;;  %v5654_v26 = vrot.slane %v5646_v49, %v18554_v39  ;;  %v20924_v8 = vpop.f32.mrb[10].mxu1 }
 0x2ec   : > { %v17807_v9 = vpack.c.bf16 %v6616_v22, %v6548_v23  ;;  %v5661_v59 = vrot.slane %v5647_v14, %v18554_v39  ;;  %v20913_v42 = vpack.c.bf16 %v6615_v21, %v6547_v5  ;;  %v16550_v46 = vcombine.high %v5586_v37, %v5593_v58  ;;  %v20928_v16 = vpop.f32.mrb[11].mxu1 }
 0x2ed   : > { %17800 = vmatprep.subr.bf16.mxu1 %v17799_v31  ;;  %v10358_v24 = vsel %vm7570_vm1, %v20903_v30, -inf  ;;  %v6686_v11 = vcombine.low %v5638_v28, %v5645_v7  ;;  %v16551_v25 = vcombine.high %v5638_v28, %v5645_v7  ;;  %v10355_v13 = vsel %vm7570_vm1, %v20907_v18, -inf }
 0x2ee   : > { %24344 = vst [vmem:[#allocation13_spill] sm:$0xff] %v20913_v42  ;;  %17808 = vmatprep.subr.bf16.mxu0 %v17807_v9  ;;  %17802 = vmatpush3.bf16.msra.mxu1 %v17799_v31  ;;  %v6625_v38 = vrot.slane %v6618_v10, %v18546_v32  ;;  %v6633_v12 = vrot.slane %v16549_v63, %v18546_v32  ;;  %v10364_v37 = vsel %vm7570_vm1, %v20924_v8, -inf  ;;  %v10361_v22 = vsel %vm7570_vm1, %v20928_v16, -inf }
 0x2ef   : > { %17810 = vmatpush3.bf16.msra.mxu0 %v17807_v9  ;;  %17804 = vmatprep.subr.bf16.mxu1 %v20913_v42  ;;  %v6641_v44 = vrot.slane %v6634_v53, %v18546_v32  ;;  %v6702_v20 = vcombine.low %v5654_v26, %v5661_v59  ;;  %v16552_v61 = vcombine.high %v5654_v26, %v5661_v59 }
 0x2f0   : > { %10359 = vmax.xlane.f32.xlu1 %v10358_v24  ;;  %10356 = vmax.xlane.f32.xlu0 %v10355_v13  ;;  %v6649_v43 = vrot.slane %v16550_v46, %v18546_v32  ;;  %v6650_v6 = vcombine.low %v6625_v38, %v6633_v12  ;;  %v6693_v62 = vrot.slane %v6686_v11, %v18546_v32 }
 0x2f1   : > { %v6701_v54 = vrot.slane %v16551_v25, %v18546_v32  ;;  %v6709_v50 = vrot.slane %v6702_v20, %v18546_v32  ;;  %v6717_v27 = vrot.slane %v16552_v61, %v18546_v32  ;;  %v6549_v14 = vcombine.high %v20884_v19, %v20887_v47 }
 0x2f2   : > { %v6666_v35 = vcombine.low %v6641_v44, %v6649_v43  ;;  %v6658_v60 = vrot.slane %v6650_v6, %v18554_v39  ;;  %v6617_v57 = vcombine.high %v20892_v2, %v20897_v34  ;;  %v6651_v10 = vcombine.high %v6625_v38, %v6633_v12 }
 0x2f3   : > { %v6718_v45 = vcombine.low %v6693_v62, %v6701_v54  ;;  %v6734_v52 = vcombine.low %v6709_v50, %v6717_v27  ;;  %v20938_v49 = vpop.f32.mrb[12].mxu1  ;;  %v6667_v63 = vcombine.high %v6641_v44, %v6649_v43  ;;  %v6719_v53 = vcombine.high %v6693_v62, %v6701_v54 }
 0x2f4   : > { %v6674_v15 = vrot.slane %v6666_v35, %v18554_v39  ;;  %10365 = vmax.xlane.f32.xlu0 %v10364_v37  ;;  %v20944_v23 = vpop.f32.mrb[13].mxu1  ;;  %v10370_v28 = vsel %vm7570_vm1, %v20938_v49, -inf  ;;  %v20957_v2 = vpack.c.bf16 %v6617_v57, %v6549_v14  ;;  %v6665_v26 = vrot.slane %v6651_v10, %v18554_v39  ;;  %v20981_v35 = vpop.permute.xlu1 %5258 }
 0x2f5   : > { %v6726_v40 = vrot.slane %v6718_v45, %v18554_v39  ;;  %v6742_v58 = vrot.slane %v6734_v52, %v18554_v39  ;;  %10371 = vmax.xlane.f32.xlu1 %v10370_v28  ;;  %v10367_v19 = vsel %vm7570_vm1, %v20944_v23, -inf  ;;  %v6681_v59 = vrot.slane %v6667_v63, %v18554_v39  ;;  %24350 = vst [vmem:[#allocation34_spill] sm:$0xff] %v20981_v35 }
 0x2f6   : > { %v6682_v41 = vcombine.low %v6658_v60, %v6674_v15  ;;  %24346 = vst [vmem:[#allocation21_spill] sm:$0xff] %v20957_v2  ;;  %v6683_v34 = vcombine.high %v6658_v60, %v6674_v15  ;;  %v6735_v11 = vcombine.high %v6709_v50, %v6717_v27  ;;  %v6733_v20 = vrot.slane %v6719_v53, %v18554_v39 }
 0x2f7   : > { %v6750_v21 = vcombine.low %v6726_v40, %v6742_v58  ;;  %v6751_v5 = vcombine.high %v6726_v40, %v6742_v58  ;;  %v6684_v24 = vcombine.low %v6665_v26, %v6681_v59  ;;  %v6685_v38 = vcombine.high %v6665_v26, %v6681_v59 }
 0x2f8   : > { %10362 = vmax.xlane.f32.xlu0 %v10361_v22  ;;  %v6749_v12 = vrot.slane %v6735_v11, %v18554_v39  ;;  %v20985_v27 = vpop.permute.xlu1 %5306 }
 0x2f9   : > { %v20950_v7 = vpack.c.bf16 %v6750_v21, %v6682_v41  ;;  %10368 = vmax.xlane.f32.xlu1 %v10367_v19  ;;  %v20961_v9 = vpack.c.bf16 %v6751_v5, %v6683_v34  ;;  %24351 = vst [vmem:[#allocation32_spill] sm:$0xff] %v20985_v27 }
 0x2fa   : > { %v6752_v61 = vcombine.low %v6733_v20, %v6749_v12  ;;  %v6753_v43 = vcombine.high %v6733_v20, %v6749_v12 }
 0x2fb   : > { %24345 = vst [vmem:[#allocation20_spill] sm:$0xff] %v20950_v7  ;;  %17816 = vmatprep.subr.bf16.mxu0 %v20950_v7  ;;  %v20955_v47 = vpop.f32.mrb[14].mxu1  ;;  %24347 = vst [vmem:[#allocation26_spill] sm:$0xff] %v20961_v9 }
 0x2fc   : > { %v20959_v31 = vpop.f32.mrb[15].mxu1  ;;  %v20975_v6 = vpack.c.bf16 %v6752_v61, %v6684_v24  ;;  %v20977_v62 = vpack.c.bf16 %v6753_v43, %v6685_v38  ;;  %v20993_v52 = vpop.permute.xlu1 %5308 }
 0x2fd   : > { %24352 = vst [vmem:[#allocation33_spill] sm:$0xff] %v20993_v52 }
 0x2fe   : > { %24348 = vst [vmem:[#allocation28_spill] sm:$0xff] %v20975_v6  ;;  %24349 = vst [vmem:[#allocation31_spill] sm:$0xff] %v20977_v62 }
 0x300   : > { %v20997_v37 = vpop.permute.xlu1 %5356 }
 0x301   : > { %24353 = vst [vmem:[#allocation35_spill] sm:$0xff] %v20997_v37 }
 0x304   : > { %v21003_v57 = vpop.permute.xlu1 %5262 }
 0x305   : > { %24354 = vst [vmem:[#allocation37_spill] sm:$0xff] %v21003_v57 }
 0x306   : > { %v20965_v46 = vpop.f32.mrb[16].mxu1 }
 0x307   : > { %v20967_v25 = vpop.f32.mrb[17].mxu1  ;;  %v10382_v13 = vsel %vm7570_vm1, %v20965_v46, -inf }
 0x308   : > { %10383 = vmax.xlane.f32.xlu1 %v10382_v13  ;;  %v10379_v44 = vsel %vm7570_vm1, %v20967_v25, -inf  ;;  %v21005_v41 = vpop.permute.xlu1 %5310  ;;  %v10376_v13 = vsel %vm7570_vm1, %v20955_v47, -inf }
 0x309   : > { %24355 = vst [vmem:[#allocation5_spill] sm:$0xff] %v21005_v41 }
 0x30c   : > { %10380 = vmax.xlane.f32.xlu1 %v10379_v44  ;;  %v21007_v21 = vpop.permute.xlu1 %5312 }
 0x30d   : > { %24356 = vst [vmem:[#allocation36_spill] sm:$0xff] %v21007_v21 }
 0x30f   : > { %v20979_v54 = vpop.f32.mrb[18].mxu1 }
 0x310   : > { %v20983_v50 = vpop.f32.mrb[19].mxu1  ;;  %v21021_v63 = vpop.permute.xlu1 %5360 }
 0x311   : > { %24357 = vst [vmem:[#allocation38_spill] sm:$0xff] %v21021_v63 }
 0x314   : > { %v21035_v20 = vpop.permute.xlu1 %5266 }
 0x315   : > { %24358 = vst [vmem:[#allocation41_spill] sm:$0xff] %v21035_v20 }
 0x317   : > { %v20987_v45 = vpop.f32.mrb[20].mxu1 }
 0x318   : > { %v20989_v60 = vpop.f32.mrb[21].mxu1  ;;  %v10394_v15 = vsel %vm7570_vm1, %v20987_v45, -inf  ;;  %v21045_v43 = vpop.permute.xlu1 %5314 }
 0x319   : > { %10395 = vmax.xlane.f32.xlu1 %v10394_v15  ;;  %v10391_v40 = vsel %vm7570_vm1, %v20989_v60, -inf  ;;  %24359 = vst [vmem:[#allocation42_spill] sm:$0xff] %v21045_v43 }
 0x31d   : > { %10392 = vmax.xlane.f32.xlu1 %v10391_v40 }
 0x323   : > { %v20999_v58 = vpop.f32.mrb[22].mxu1 }
 0x324   : > { %v21001_v14 = vpop.f32.mrb[23].mxu1  ;;  %v10400_v21 = vsel %vm7570_vm1, %v20999_v58, -inf }
 0x336   : > { %v21009_v22 = vpop.f32.mrb[24].mxu1 }
 0x337   : > { %v21011_v28 = vpop.f32.mrb[24].mxu0  ;;  %v21013_v19 = vpop.f32.mrb[25].mxu1  ;;  %v10406_v5 = vsel %vm7570_vm1, %v21009_v22, -inf }
 0x338   : > { %v21015_v34 = vpop.f32.mrb[25].mxu0  ;;  %v10412_v10 = vsel %vm7570_vm1, %v21011_v28, -inf  ;;  %10407 = vmax.xlane.f32.xlu1 %v10406_v5  ;;  %v10403_v53 = vsel %vm7570_vm1, %v21013_v19, -inf }
 0x339   : > { %10413 = vmax.xlane.f32.xlu0 %v10412_v10  ;;  %v10409_v26 = vsel %vm7570_vm1, %v21015_v34, -inf  ;;  %v10373_v10 = vsel %vm7570_vm1, %v20959_v31, -inf }
 0x33c   : > { %10404 = vmax.xlane.f32.xlu1 %v10403_v53 }
 0x33d   : > { %10410 = vmax.xlane.f32.xlu0 %v10409_v26 }
 0x33f   : > { %v21027_v59 = vpop.f32.mrb[26].mxu1 }
 0x340   : > { %v21029_v24 = vpop.f32.mrb[26].mxu0  ;;  %v21031_v11 = vpop.f32.mrb[27].mxu1  ;;  %v10418_v12 = vsel %vm7570_vm1, %v21027_v59, -inf }
 0x341   : > { %v21037_v38 = vpop.f32.mrb[27].mxu0  ;;  %10377 = vmax.xlane.f32.xlu0 %v10376_v13  ;;  %10419 = vmax.xlane.f32.xlu1 %v10418_v12  ;;  %v10424_v44 = vsel %vm7570_vm1, %v21029_v24, -inf  ;;  %v10415_v61 = vsel %vm7570_vm1, %v21031_v11, -inf  ;;  %v21061_v12 = vpop.permute.xlu1 %5316 }
 0x342   : > { %v10421_v13 = vsel %vm7570_vm1, %v21037_v38, -inf  ;;  %24360 = vst [vmem:[#allocation39_spill] sm:$0xff] %v21061_v12 }
 0x345   : > { %10425 = vmax.xlane.f32.xlu0 %v10424_v44  ;;  %10416 = vmax.xlane.f32.xlu1 %v10415_v61 }
 0x348   : > { %v21047_v15 = vpop.f32.mrb[28].mxu1 }
 0x349   : > { %v21049_v40 = vpop.f32.mrb[28].mxu0  ;;  %v21051_v5 = vpop.f32.mrb[29].mxu1  ;;  %v10430_v53 = vsel %vm7570_vm1, %v21047_v15, -inf  ;;  %10374 = vmax.xlane.f32.xlu0 %v10373_v10 }
 0x34a   : > { %v21057_v26 = vpop.f32.mrb[29].mxu0  ;;  %10431 = vmax.xlane.f32.xlu1 %v10430_v53  ;;  %v10427_v44 = vsel %vm7570_vm1, %v21051_v5, -inf  ;;  %v10436_v10 = vsel %vm7570_vm1, %v21049_v40, -inf }
 0x34d   : > { %10422 = vmax.xlane.f32.xlu0 %v10421_v13  ;;  %v21077_v13 = vpop.permute.xlu1 %5364 }
 0x34e   : > { %10428 = vmax.xlane.f32.xlu1 %v10427_v44  ;;  %24361 = vst [vmem:[#allocation40_spill] sm:$0xff] %v21077_v13  ;;  %v10433_v44 = vsel %vm7570_vm1, %v21057_v26, -inf }
 0x351   : > { %v21065_v61 = vpop.f32.mrb[30].mxu1  ;;  %10437 = vmax.xlane.f32.xlu0 %v10436_v10  ;;  %v10388_v10 = vsel %vm7570_vm1, %v20979_v54, -inf  ;;  %v21095_v4 = vpop.permute.xlu1 %5270 }
 0x352   : > { %v21067_v17 = vpop.f32.mrb[30].mxu0  ;;  %v21069_v33 = vpop.f32.mrb[31].mxu1  ;;  %v10442_v53 = vsel %vm7570_vm1, %v21065_v61, -inf  ;;  %24363 = vst [vmem:[#allocation44_spill] sm:$0xff] %v21095_v4 }
 0x353   : > { %v21075_v62 = vpop.f32.mrb[31].mxu0  ;;  %10443 = vmax.xlane.f32.xlu1 %v10442_v53  ;;  %v10439_v0 = vsel %vm7570_vm1, %v21069_v33, -inf }
 0x355   : > { %10434 = vmax.xlane.f32.xlu0 %v10433_v44  ;;  %v21105_v13 = vpop.permute.xlu1 %5318 }
 0x356   : > { %24365 = vst [vmem:[#allocation45_spill] sm:$0xff] %v21105_v13 }
 0x357   : > { %10440 = vmax.xlane.f32.xlu1 %v10439_v0  ;;  %v10448_v0 = vsel %vm7570_vm1, %v21067_v17, -inf }
 0x359   : > { %10389 = vmax.xlane.f32.xlu0 %v10388_v10  ;;  %v10385_v10 = vsel %vm7570_vm1, %v20983_v50, -inf  ;;  %v21125_v43 = vpop.permute.xlu1 %5320 }
 0x35a   : > { %v21085_v6 = vpop.f32.mrb[32].mxu1  ;;  %24369 = vst [vmem:[#allocation47_spill] sm:$0xff] %v21125_v43 }
 0x35b   : > { %v21087_v7 = vpop.f32.mrb[32].mxu0  ;;  %v21089_v1 = vpop.f32.mrb[33].mxu1  ;;  %v10454_v53 = vsel %vm7570_vm1, %v21085_v6, -inf }
 0x35c   : > { %v21097_v44 = vpop.f32.mrb[33].mxu0  ;;  %10455 = vmax.xlane.f32.xlu1 %v10454_v53  ;;  %v10451_v12 = vsel %vm7570_vm1, %v21089_v1, -inf  ;;  %v10460_v42 = vsel %vm7570_vm1, %v21087_v7, -inf }
 0x35d   : > { %10449 = vmax.xlane.f32.xlu0 %v10448_v0  ;;  %v21119_v0 = vpop.permute.xlu0 %5264  ;;  %v21141_v43 = vpop.permute.xlu1 %5368 }
 0x35e   : > { %24368 = vst [vmem:[#allocation10_spill] sm:$0xff] %v21119_v0  ;;  %24371 = vst [vmem:[#allocation8_spill] sm:$0xff] %v21141_v43 }
 0x360   : > { %10452 = vmax.xlane.f32.xlu1 %v10451_v12  ;;  %v10445_v12 = vsel %vm7570_vm1, %v21075_v62, -inf }
 0x361   : > { %10386 = vmax.xlane.f32.xlu0 %v10385_v10  ;;  %v21127_v2 = vpop.permute.xlu0 %5358  ;;  %v21153_v41 = vpop.permute.xlu1 %5274 }
 0x362   : > { %24370 = vst [vmem:[#allocation6_spill] sm:$0xff] %v21127_v2  ;;  %24374 = vst [vmem:[#allocation48_spill] sm:$0xff] %v21153_v41  ;;  %v10397_v2 = vsel %vm7570_vm1, %v21001_v14, -inf }
 0x363   : > { %v21107_v20 = vpop.f32.mrb[34].mxu1 }
 0x364   : > { %24366 = vst [vmem:[#allocation46_spill] sm:$0xff] %v21107_v20  ;;  %v21109_v9 = vpop.f32.mrb[34].mxu0  ;;  %v21111_v4 = vpop.f32.mrb[35].mxu1  ;;  %v10466_v53 = vsel %vm7570_vm1, %v21107_v20, -inf }
 0x365   : > { %24367 = vst [vmem:[#allocation9_spill] sm:$0xff] %v21111_v4  ;;  %v21117_v3 = vpop.f32.mrb[35].mxu0  ;;  %10467 = vmax.xlane.f32.xlu1 %v10466_v53  ;;  %10446 = vmax.xlane.f32.xlu0 %v10445_v12  ;;  %v10463_v13 = vsel %vm7570_vm1, %v21111_v4, -inf  ;;  %v21145_v56 = vpop.permute.xlu0 %5268 }
 0x366   : > { %24372 = vst [vmem:[#allocation7_spill] sm:$0xff] %v21145_v56  ;;  %v21169_v41 = vpop.permute.xlu1 %5322 }
 0x367   : > { %24377 = vst [vmem:[#allocation12_spill] sm:$0xff] %v21169_v41 }
 0x369   : > { %10464 = vmax.xlane.f32.xlu1 %v10463_v13  ;;  %10461 = vmax.xlane.f32.xlu0 %v10460_v42  ;;  %v10457_v13 = vsel %vm7570_vm1, %v21097_v44, -inf  ;;  %v21161_v56 = vpop.permute.xlu0 %5362 }
 0x36a   : > { %24376 = vst [vmem:[#allocation11_spill] sm:$0xff] %v21161_v56  ;;  %v21177_v56 = vpop.permute.xlu1 %5324 }
 0x36b   : > { %24379 = vst [vmem:[#allocation51_spill] sm:$0xff] %v21177_v56 }
 0x36d   : > { %v21131_v10 = vpop.f32.mrb[36].mxu1  ;;  %10458 = vmax.xlane.f32.xlu0 %v10457_v13  ;;  %v21173_v39 = vpop.permute.xlu0 %5272 }
 0x36e   : > { %v21133_v0 = vpop.f32.mrb[36].mxu0  ;;  %v21135_v53 = vpop.f32.mrb[37].mxu1  ;;  %v10478_v12 = vsel %vm7570_vm1, %v21131_v10, -inf  ;;  %24378 = vst [vmem:[#allocation50_spill] sm:$0xff] %v21173_v39 }
 0x36f   : > { %v21139_v63 = vpop.f32.mrb[37].mxu0  ;;  %10479 = vmax.xlane.f32.xlu1 %v10478_v12  ;;  %v10475_v42 = vsel %vm7570_vm1, %v21135_v53, -inf }
 0x370   : > { %v10481_v41 = vsel %vm7570_vm1, %v21139_v63, -inf }
 0x371   : > { %10401 = vmax.xlane.f32.xlu0 %v10400_v21  ;;  %v21179_v51 = vpop.permute.xlu0 %5366 }
 0x372   : > { %24380 = vst [vmem:[#allocation52_spill] sm:$0xff] %v21179_v51 }
 0x373   : > { %10476 = vmax.xlane.f32.xlu1 %v10475_v42  ;;  %v10472_v42 = vsel %vm7570_vm1, %v21109_v9, -inf }
 0x375   : > { %v21151_v48 = vpop.f32.mrb[38].mxu1  ;;  %10473 = vmax.xlane.f32.xlu0 %v10472_v42  ;;  %v10484_v42 = vsel %vm7570_vm1, %v21133_v0, -inf }
 0x376   : > { %24373 = vst [vmem:[#allocation14_spill] sm:$0xff] %v21151_v48  ;;  %v21155_v12 = vpop.f32.mrb[39].mxu1  ;;  %v10490_v43 = vsel %vm7570_vm1, %v21151_v48, -inf  ;;  %v21159_v13 = vpop.f32.mrb[38].mxu0 }
 0x377   : > { %24375 = vst [vmem:[#allocation49_spill] sm:$0xff] %v21155_v12  ;;  %10491 = vmax.xlane.f32.xlu1 %v10490_v43  ;;  %v21165_v57 = vpop.f32.mrb[39].mxu0  ;;  %v10487_v21 = vsel %vm7570_vm1, %v21155_v12, -inf  ;;  %v10469_v43 = vsel %vm7570_vm1, %v21117_v3, -inf }
 0x379   : > { %10398 = vmax.xlane.f32.xlu0 %v10397_v2  ;;  %v21187_v2 = vpop.permute.xlu0 %5276 }
 0x37a   : > { %24382 = vst [vmem:[#allocation54_spill] sm:$0xff] %v21187_v2  ;;  %v10493_v2 = vsel %vm7570_vm1, %v21165_v57, -inf }
 0x37b   : > { %10488 = vmax.xlane.f32.xlu1 %v10487_v21  ;;  %v21183_v21 = vpop.permute.xlu1 %5372 }
 0x37c   : > { %24381 = vst [vmem:[#allocation53_spill] sm:$0xff] %v21183_v21 }
 0x37d   : > { %10470 = vmax.xlane.f32.xlu0 %v10469_v43  ;;  %v10496_v43 = vsel %vm7570_vm1, %v21159_v13, -inf }
 0x37f   : > { %v21201_v37 = vpop.permute.xlu1 %5278 }
 0x380   : > { %24385 = vst [vmem:[#allocation57_spill] sm:$0xff] %v21201_v37 }
 0x381   : > { %10485 = vmax.xlane.f32.xlu0 %v10484_v42 }
 0x383   : > { %v21211_v32 = vpop.permute.xlu1 %5326 }
 0x384   : > { %24387 = vst [vmem:[#allocation59_spill] sm:$0xff] %v21211_v32 }
 0x385   : > { %10482 = vmax.xlane.f32.xlu0 %v10481_v41  ;;  %v21203_v41 = vpop.permute.xlu0 %5370 }
 0x386   : > { %24386 = vst [vmem:[#allocation58_spill] sm:$0xff] %v21203_v41 }
 0x387   : > { %v21231_v32 = vpop.permute.xlu1 %5328 }
 0x388   : > { %24391 = vst [vmem:[#allocation63_spill] sm:$0xff] %v21231_v32 }
 0x389   : > { %10497 = vmax.xlane.f32.xlu0 %v10496_v43  ;;  %v21221_v12 = vpop.permute.xlu0 %5280 }
 0x38a   : > { %24390 = vst [vmem:[#allocation62_spill] sm:$0xff] %v21221_v12 }
 0x38b   : > { %v21189_v39 = vpop.f32.mrb[40].mxu1 }
 0x38c   : > { %24383 = vst [vmem:[#allocation55_spill] sm:$0xff] %v21189_v39  ;;  %v21193_v56 = vpop.f32.mrb[40].mxu0  ;;  %v21195_v51 = vpop.f32.mrb[41].mxu1  ;;  %v10502_v42 = vsel %vm7570_vm1, %v21189_v39, -inf }
 0x38d   : > { %24384 = vst [vmem:[#allocation56_spill] sm:$0xff] %v21195_v51  ;;  %v21199_v21 = vpop.f32.mrb[41].mxu0  ;;  %10503 = vmax.xlane.f32.xlu1 %v10502_v42  ;;  %v10499_v55 = vsel %vm7570_vm1, %v21195_v51, -inf  ;;  %10494 = vmax.xlane.f32.xlu0 %v10493_v2  ;;  %v10508_v52 = vsel %vm7570_vm1, %v21193_v56, -inf  ;;  %v21233_v27 = vpop.permute.xlu0 %5374 }
 0x38e   : > { %24392 = vst [vmem:[#allocation64_spill] sm:$0xff] %v21233_v27 }
 0x391   : > { %10500 = vmax.xlane.f32.xlu1 %v10499_v55  ;;  %10509 = vmax.xlane.f32.xlu0 %v10508_v52  ;;  %v10505_v55 = vsel %vm7570_vm1, %v21199_v21, -inf  ;;  %v10357_v12 = vpop.xlane.xlu0 %10356 }
 0x392   : > { %v10547_v35 = vsub.f32 %v20907_v18, %v10357_v12 }
 0x394   : > { %v21213_v43 = vpop.f32.mrb[42].mxu1 }
 0x395   : > { %24388 = vst [vmem:[#allocation60_spill] sm:$0xff] %v21213_v43  ;;  %v21217_v37 = vpop.f32.mrb[43].mxu1  ;;  %v10514_v41 = vsel %vm7570_vm1, %v21213_v43, -inf  ;;  %10506 = vmax.xlane.f32.xlu0 %v10505_v55  ;;  %v21237_v43 = vpop.permute.xlu1 %5376 }
 0x396   : > { %v21215_v42 = vpop.f32.mrb[42].mxu0  ;;  %24389 = vst [vmem:[#allocation61_spill] sm:$0xff] %v21217_v37  ;;  %10515 = vmax.xlane.f32.xlu1 %v10514_v41  ;;  %v10511_v2 = vsel %vm7570_vm1, %v21217_v37, -inf  ;;  %24393 = vst [vmem:[#allocation65_spill] sm:$0xff] %v21237_v43  ;;  %v10366_v55 = vpop.xlane.xlu0 %10365 }
 0x397   : > { %v21223_v36 = vpop.f32.mrb[43].mxu0  ;;  %v10520_v52 = vsel %vm7570_vm1, %v21215_v42, -inf  ;;  %v10550_v27 = vsub.f32 %v20924_v8, %v10366_v55 }
 0x398   : > { %v10517_v41 = vsel %vm7570_vm1, %v21223_v36, -inf }
 0x399   : > { %10521 = vmax.xlane.f32.xlu0 %v10520_v52  ;;  %v10360_v48 = vpop.xlane.xlu1 %10359  ;;  %v10617_v12 = vmul.f32 1.442695, %v10550_v27 }
 0x39a   : > { %10512 = vmax.xlane.f32.xlu1 %v10511_v2  ;;  %v10548_v37 = vsub.f32 %v20903_v30, %v10360_v48  ;;  %v10363_v29 = vpop.xlane.xlu0 %10362  ;;  %v10611_v30 = vmul.f32 1.442695, %v10547_v35 }
 0x39b   : > { %v10549_v18 = vsub.f32 %v20928_v16, %v10363_v29 }
 0x39c   : > { %v10613_v52 = vmul.f32 1.442695, %v10548_v37 }
 0x39d   : > { %10518 = vmax.xlane.f32.xlu0 %v10517_v41  ;;  %v10372_v2 = vpop.xlane.xlu1 %10371  ;;  %v10615_v43 = vmul.f32 1.442695, %v10549_v18 }
 0x39e   : > { %17969 = vpow2.f32 %v10613_v52  ;;  %v10552_v39 = vsub.f32 %v20938_v49, %v10372_v2 }
 0x39f   : > { %17971 = vpow2.f32 %v10611_v30 }
 0x3a0   : > { %17973 = vpow2.f32 %v10617_v12  ;;  %v10621_v29 = vmul.f32 1.442695, %v10552_v39 }
 0x3a1   : > { %v10369_v37 = vpop.xlane.xlu1 %10368  ;;  %17975 = vpow2.f32 %v10615_v43 }
 0x3a2   : > { %17977 = vpow2.f32 %v10621_v29 }
 0x3a5   : > { %v21260_v35 = vpop.xlane.xlu1 %10383 }
 0x3a8   : > { %v21274_v2 = vpop.eup %17969 }
 0x3a9   : > { %24399 = vst [vmem:[#allocation71_spill] sm:$0xff] %v21274_v2  ;;  %v21280_v30 = vpop.eup %17971  ;;  %v21282_v18 = vpop.xlane.xlu1 %10380 }
 0x3aa   : > { %24400 = vst [vmem:[#allocation72_spill] sm:$0xff] %v21280_v30  ;;  %v21284_v12 = vpop.eup %17973 }
 0x3ab   : > { %v21241_v4 = vpop.f32.mrb[44].mxu1  ;;  %v21243_v32 = vpop.f32.mrb[44].mxu0  ;;  %24401 = vst [vmem:[#allocation73_spill] sm:$0xff] %v21284_v12 }
 0x3ac   : > { %v21246_v51 = vpop.f32.mrb[45].mxu1  ;;  %v21248_v20 = vpop.f32.mrb[45].mxu0  ;;  %v10532_v41 = vsel %vm7570_vm1, %v21243_v32, -inf  ;;  %v10526_v48 = vsel %vm7570_vm1, %v21241_v4, -inf }
 0x3ad   : > { %24394 = vst [vmem:[#allocation66_spill] sm:$0xff] %v21246_v51  ;;  %10533 = vmax.xlane.f32.xlu0 %v10532_v41  ;;  %10527 = vmax.xlane.f32.xlu1 %v10526_v48  ;;  %v10529_v8 = vsel %vm7570_vm1, %v21248_v20, -inf  ;;  %v10523_v55 = vsel %vm7570_vm1, %v21246_v51, -inf  ;;  %v21290_v29 = vpop.eup %17975 }
 0x3ae   : > { %24402 = vst [vmem:[#allocation74_spill] sm:$0xff] %v21290_v29 }
 0x3b1   : > { %10530 = vmax.xlane.f32.xlu0 %v10529_v8  ;;  %10524 = vmax.xlane.f32.xlu1 %v10523_v55  ;;  %v10742_v8 = vsel %vm7570_vm1, %v21274_v2, 0.0  ;;  %v10739_v55 = vsel %vm7570_vm1, %v21280_v30, 0.0 }
 0x3b4   : > { %v21262_v16 = vpop.f32.mrb[46].mxu1 }
 0x3b5   : > { %24395 = vst [vmem:[#allocation67_spill] sm:$0xff] %v21262_v16  ;;  %v21264_v27 = vpop.f32.mrb[46].mxu0  ;;  %v21266_v52 = vpop.f32.mrb[47].mxu1  ;;  %v10538_v49 = vsel %vm7570_vm1, %v21262_v16, -inf }
 0x3b6   : > { %24396 = vst [vmem:[#allocation68_spill] sm:$0xff] %v21264_v27  ;;  %24397 = vst [vmem:[#allocation69_spill] sm:$0xff] %v21266_v52  ;;  %v21268_v41 = vpop.f32.mrb[47].mxu0  ;;  %v10544_v48 = vsel %vm7570_vm1, %v21264_v27, -inf  ;;  %10539 = vmax.xlane.f32.xlu1 %v10538_v49  ;;  %v10535_v43 = vsel %vm7570_vm1, %v21266_v52, -inf  ;;  %v10748_v49 = vsel %vm7570_vm1, %v21284_v12, 0.0 }
 0x3b7   : > { %24398 = vst [vmem:[#allocation70_spill] sm:$0xff] %v21268_v41  ;;  %10545 = vmax.xlane.f32.xlu0 %v10544_v48  ;;  %v10541_v39 = vsel %vm7570_vm1, %v21268_v41, -inf  ;;  %v21292_v48 = vpop.xlane.xlu1 %10395 }
 0x3ba   : > { %10536 = vmax.xlane.f32.xlu1 %v10535_v43  ;;  %v21298_v43 = vpop.eup %17977 }
 0x3bb   : > { %10542 = vmax.xlane.f32.xlu0 %v10541_v39  ;;  %v10745_v39 = vsel %vm7570_vm1, %v21290_v29, 0.0  ;;  %24403 = vst [vmem:[#allocation75_spill] sm:$0xff] %v21298_v43  ;;  %v21300_v27 = vpop.xlane.xlu1 %10392  ;;  %v10754_v2 = vsel %vm7570_vm1, %v21298_v43, 0.0 }
 0x3be   : > { %10740 = vadd.xlane.f32.xlu1 %v10739_v55 }
 0x3bf   : > { %10743 = vadd.xlane.f32.xlu0 %v10742_v8  ;;  %v10551_v8 = vsub.f32 %v20944_v23, %v10369_v37 }
 0x3c1   : > { %v10619_v16 = vmul.f32 1.442695, %v10551_v8 }
 0x3c2   : > { %10749 = vadd.xlane.f32.xlu1 %v10748_v49 }
 0x3c3   : > { %10746 = vadd.xlane.f32.xlu0 %v10745_v39 }
 0x3c5   : > { %v21305_v55 = vpop.xlane.xlu1 %10407 }
 0x3c6   : > { %10755 = vadd.xlane.f32.xlu1 %v10754_v2  ;;  %v10414_v30 = vpop.xlane.xlu0 %10413 }
 0x3c7   : > { %v10566_v12 = vsub.f32 %v21011_v28, %v10414_v30 }
 0x3c9   : > { %v10649_v52 = vmul.f32 1.442695, %v10566_v12  ;;  %v21308_v29 = vpop.xlane.xlu1 %10404 }
 0x3ca   : > { %v10411_v41 = vpop.xlane.xlu0 %10410 }
 0x3cb   : > { %v10565_v49 = vsub.f32 %v21015_v34, %v10411_v41  ;;  %17979 = vpow2.f32 %v10649_v52 }
 0x3cc   : > { %17981 = vpow2.f32 %v10619_v16 }
 0x3cd   : > { %v10647_v39 = vmul.f32 1.442695, %v10565_v49 }
 0x3ce   : > { %v10378_v51 = vpop.xlane.xlu0 %10377  ;;  %v21312_v43 = vpop.xlane.xlu1 %10419 }
 0x3cf   : > { %v10554_v2 = vsub.f32 %v20955_v47, %v10378_v51  ;;  %17983 = vpow2.f32 %v10647_v39  ;;  %v10556_v47 = vsub.f32 %v20965_v46, %v21260_v35 }
 0x3d1   : > { %v10625_v23 = vmul.f32 1.442695, %v10554_v2 }
 0x3d2   : > { %v10426_v37 = vpop.xlane.xlu0 %10425  ;;  %v21317_v12 = vpop.xlane.xlu1 %10416 }
 0x3d3   : > { %v10570_v28 = vsub.f32 %v21029_v24, %v10426_v37  ;;  %17985 = vpow2.f32 %v10625_v23  ;;  %v10629_v23 = vmul.f32 1.442695, %v10556_v47  ;;  %v10555_v37 = vsub.f32 %v20967_v25, %v21282_v18 }
 0x3d5   : > { %v21315_v30 = vpop.eup %17979  ;;  %v10657_v8 = vmul.f32 1.442695, %v10570_v28 }
 0x3d6   : > { %v10375_v34 = vpop.xlane.xlu0 %10374  ;;  %v10796_v52 = vsel %vm7570_vm1, %v21315_v30, 0.0  ;;  %v21322_v51 = vpop.eup %17981 }
 0x3d7   : > { %v10553_v16 = vsub.f32 %v20959_v31, %v10375_v34  ;;  %10797 = vadd.xlane.f32.xlu0 %v10796_v52  ;;  %17987 = vpow2.f32 %v10657_v8  ;;  %v10751_v39 = vsel %vm7570_vm1, %v21322_v51, 0.0  ;;  %v21331_v31 = vpop.xlane.xlu1 %10431  ;;  %v10627_v34 = vmul.f32 1.442695, %v10555_v37 }
 0x3d9   : > { %v10623_v24 = vmul.f32 1.442695, %v10553_v16  ;;  %v21329_v2 = vpop.eup %17983 }
 0x3da   : > { %v10423_v41 = vpop.xlane.xlu0 %10422 }
 0x3db   : > { %v10569_v49 = vsub.f32 %v21037_v38, %v10423_v41  ;;  %10752 = vadd.xlane.f32.xlu0 %v10751_v39  ;;  %17989 = vpow2.f32 %v10623_v24  ;;  %v10793_v38 = vsel %vm7570_vm1, %v21329_v2, 0.0  ;;  %v21340_v52 = vpop.xlane.xlu1 %10428 }
 0x3dd   : > { %v10655_v28 = vmul.f32 1.442695, %v10569_v49  ;;  %v21338_v8 = vpop.eup %17985 }
 0x3de   : > { %v10438_v46 = vpop.xlane.xlu0 %10437  ;;  %v10760_v18 = vsel %vm7570_vm1, %v21338_v8, 0.0 }
 0x3df   : > { %17991 = vpow2.f32 %v10655_v28  ;;  %v10574_v35 = vsub.f32 %v21049_v40, %v10438_v46  ;;  %10794 = vadd.xlane.f32.xlu0 %v10793_v38 }
 0x3e0   : > { %17993 = vpow2.f32 %v10629_v23  ;;  %v21352_v37 = vpop.xlane.xlu1 %10443 }
 0x3e1   : > { %v10665_v16 = vmul.f32 1.442695, %v10574_v35  ;;  %v21345_v24 = vpop.eup %17987 }
 0x3e2   : > { %v10435_v47 = vpop.xlane.xlu0 %10434  ;;  %v10808_v39 = vsel %vm7570_vm1, %v21345_v24, 0.0 }
 0x3e3   : > { %17995 = vpow2.f32 %v10665_v16  ;;  %v10573_v25 = vsub.f32 %v21057_v26, %v10435_v47  ;;  %10761 = vadd.xlane.f32.xlu0 %v10760_v18 }
 0x3e4   : > { %17997 = vpow2.f32 %v10627_v34  ;;  %v21367_v18 = vpop.xlane.xlu1 %10440 }
 0x3e5   : > { %v10663_v40 = vmul.f32 1.442695, %v10573_v25  ;;  %v21350_v23 = vpop.eup %17989  ;;  %v10560_v25 = vsub.f32 %v20987_v45, %v21292_v48 }
 0x3e6   : > { %v10390_v41 = vpop.xlane.xlu0 %10389  ;;  %v10757_v34 = vsel %vm7570_vm1, %v21350_v23, 0.0 }
 0x3e7   : > { %17999 = vpow2.f32 %v10663_v40  ;;  %v10558_v49 = vsub.f32 %v20979_v54, %v10390_v41  ;;  %10809 = vadd.xlane.f32.xlu0 %v10808_v39  ;;  %v10637_v45 = vmul.f32 1.442695, %v10560_v25  ;;  %v10559_v25 = vsub.f32 %v20989_v60, %v21300_v27 }
 0x3e9   : > { %v21354_v26 = vpop.eup %17991  ;;  %v10633_v28 = vmul.f32 1.442695, %v10558_v49 }
 0x3ea   : > { %v10450_v46 = vpop.xlane.xlu0 %10449  ;;  %v10805_v35 = vsel %vm7570_vm1, %v21354_v26, 0.0  ;;  %v21358_v38 = vpop.eup %17993 }
 0x3eb   : > { %18001 = vpow2.f32 %v10633_v28  ;;  %v10578_v54 = vsub.f32 %v21067_v17, %v10450_v46  ;;  %10806 = vadd.xlane.f32.xlu1 %v10805_v35  ;;  %10758 = vadd.xlane.f32.xlu0 %v10757_v34  ;;  %v10766_v41 = vsel %vm7570_vm1, %v21358_v38, 0.0 }
 0x3ed   : > { %v21363_v16 = vpop.eup %17995  ;;  %v10673_v47 = vmul.f32 1.442695, %v10578_v54 }
 0x3ee   : > { %v10387_v40 = vpop.xlane.xlu0 %10386  ;;  %v10820_v17 = vsel %vm7570_vm1, %v21363_v16, 0.0  ;;  %v21373_v49 = vpop.eup %17997 }
 0x3ef   : > { %18003 = vpow2.f32 %v10673_v47  ;;  %v10557_v39 = vsub.f32 %v20983_v50, %v10387_v40  ;;  %10767 = vadd.xlane.f32.xlu1 %v10766_v41  ;;  %10821 = vadd.xlane.f32.xlu0 %v10820_v17  ;;  %v10763_v35 = vsel %vm7570_vm1, %v21373_v49, 0.0  ;;  %v21383_v47 = vpop.xlane.xlu1 %10455 }
 0x3f1   : > { %v21376_v28 = vpop.eup %17999  ;;  %v10631_v46 = vmul.f32 1.442695, %v10557_v39 }
 0x3f2   : > { %v10447_v48 = vpop.xlane.xlu0 %10446  ;;  %v10817_v54 = vsel %vm7570_vm1, %v21376_v28, 0.0 }
 0x3f3   : > { %18005 = vpow2.f32 %v10631_v46  ;;  %v10577_v34 = vsub.f32 %v21075_v62, %v10447_v48  ;;  %10764 = vadd.xlane.f32.xlu1 %v10763_v35  ;;  %10818 = vadd.xlane.f32.xlu0 %v10817_v54  ;;  %v10635_v48 = vmul.f32 1.442695, %v10559_v25  ;;  %v21394_v35 = vpop.xlane.xlu1 %10452 }
 0x3f4   : > { %18007 = vpow2.f32 %v10637_v45 }
 0x3f5   : > { %v21385_v50 = vpop.eup %18001  ;;  %v10671_v40 = vmul.f32 1.442695, %v10577_v34 }
 0x3f6   : > { %v10462_v41 = vpop.xlane.xlu0 %10461  ;;  %v10772_v17 = vsel %vm7570_vm1, %v21385_v50, 0.0 }
 0x3f7   : > { %18009 = vpow2.f32 %v10671_v40  ;;  %v10582_v39 = vsub.f32 %v21087_v7, %v10462_v41  ;;  %10773 = vadd.xlane.f32.xlu0 %v10772_v17  ;;  %v21406_v17 = vpop.xlane.xlu1 %10467 }
 0x3f9   : > { %v21392_v62 = vpop.eup %18003  ;;  %v10681_v46 = vmul.f32 1.442695, %v10582_v39 }
 0x3fa   : > { %v10459_v54 = vpop.xlane.xlu0 %10458  ;;  %v10832_v45 = vsel %vm7570_vm1, %v21392_v62, 0.0 }
 0x3fb   : > { %18011 = vpow2.f32 %v10681_v46  ;;  %v10581_v60 = vsub.f32 %v21097_v44, %v10459_v54  ;;  %10833 = vadd.xlane.f32.xlu0 %v10832_v45 }
 0x3fc   : > { %18013 = vpow2.f32 %v10635_v48 }
 0x3fd   : > { %v21399_v27 = vpop.eup %18005  ;;  %v10679_v34 = vmul.f32 1.442695, %v10581_v60  ;;  %v21417_v60 = vpop.xlane.xlu1 %10464 }
 0x3fe   : > { %v10402_v7 = vpop.xlane.xlu0 %10401  ;;  %v10769_v40 = vsel %vm7570_vm1, %v21399_v27, 0.0  ;;  %v21404_v41 = vpop.eup %18007 }
 0x3ff   : > { %v10562_v25 = vsub.f32 %v20999_v58, %v10402_v7  ;;  %10770 = vadd.xlane.f32.xlu0 %v10769_v40  ;;  %18015 = vpow2.f32 %v10679_v34  ;;  %v10778_v45 = vsel %vm7570_vm1, %v21404_v41, 0.0 }
 0x401   : > { %v21408_v39 = vpop.eup %18009  ;;  %v10641_v44 = vmul.f32 1.442695, %v10562_v25 }
 0x402   : > { %24404 = vst [vmem:[#allocation76_spill] sm:$0xff] %v21408_v39  ;;  %v10474_v46 = vpop.xlane.xlu0 %10473  ;;  %v10829_v48 = vsel %vm7570_vm1, %v21408_v39, 0.0 }
 0x403   : > { %v10586_v54 = vsub.f32 %v21109_v9, %v10474_v46  ;;  %10830 = vadd.xlane.f32.xlu1 %v10829_v48  ;;  %10779 = vadd.xlane.f32.xlu0 %v10778_v45  ;;  %18017 = vpow2.f32 %v10641_v44  ;;  %v10564_v9 = vsub.f32 %v21009_v22, %v21305_v55  ;;  %v21426_v48 = vpop.xlane.xlu1 %10479 }
 0x405   : > { %v21415_v58 = vpop.eup %18011  ;;  %v10689_v7 = vmul.f32 1.442695, %v10586_v54 }
 0x406   : > { %24405 = vst [vmem:[#allocation77_spill] sm:$0xff] %v21415_v58  ;;  %v10399_v40 = vpop.xlane.xlu0 %10398  ;;  %v10844_v34 = vsel %vm7570_vm1, %v21415_v58, 0.0  ;;  %v21422_v39 = vpop.eup %18013 }
 0x407   : > { %v10561_v25 = vsub.f32 %v21001_v14, %v10399_v40  ;;  %10845 = vadd.xlane.f32.xlu0 %v10844_v34  ;;  %18019 = vpow2.f32 %v10689_v7  ;;  %v10775_v54 = vsel %vm7570_vm1, %v21422_v39, 0.0  ;;  %v10645_v14 = vmul.f32 1.442695, %v10564_v9 }
 0x408   : > { %v10563_v40 = vsub.f32 %v21013_v19, %v21308_v29  ;;  %v10568_v9 = vsub.f32 %v21027_v59, %v21312_v43 }
 0x409   : > { %v10639_v46 = vmul.f32 1.442695, %v10561_v25  ;;  %v21431_v58 = vpop.eup %18015 }
 0x40a   : > { %v10471_v45 = vpop.xlane.xlu0 %10470  ;;  %24406 = vst [vmem:[#allocation78_spill] sm:$0xff] %v21431_v58  ;;  %v10841_v7 = vsel %vm7570_vm1, %v21431_v58, 0.0  ;;  %v24510_v58 = vld [vmem:[#allocation50_spill] sm:$0xff] }
 0x40b   : > { %18021 = vpow2.f32 %v10639_v46  ;;  %v10585_v44 = vsub.f32 %v21117_v3, %v10471_v45  ;;  %10776 = vadd.xlane.f32.xlu0 %v10775_v54  ;;  %v21440_v3 = vpop.xlane.xlu1 %10476  ;;  %v10643_v46 = vmul.f32 1.442695, %v10563_v40 }
 0x40d   : > { %v10687_v34 = vmul.f32 1.442695, %v10585_v44  ;;  %v21438_v25 = vpop.eup %18017 }
 0x40e   : > { %v10486_v22 = vpop.xlane.xlu0 %10485  ;;  %24407 = vst [vmem:[#allocation79_spill] sm:$0xff] %v21438_v25 }
 0x40f   : > { %18023 = vpow2.f32 %v10687_v34  ;;  %v10590_v55 = vsub.f32 %v21133_v0, %v10486_v22  ;;  %10842 = vadd.xlane.f32.xlu0 %v10841_v7  ;;  %v10784_v0 = vsel %vm7570_vm1, %v21438_v25, 0.0  ;;  %v10653_v34 = vmul.f32 1.442695, %v10568_v9  ;;  %v21451_v40 = vpop.xlane.xlu1 %10491  ;;  %v24509_v25 = vld [vmem:[#allocation8_spill] sm:$0xff] }
 0x410   : > { %18025 = vpow2.f32 %v10645_v14 }
 0x411   : > { %v10697_v45 = vmul.f32 1.442695, %v10590_v55  ;;  %v21447_v44 = vpop.eup %18019  ;;  %v10567_v55 = vsub.f32 %v21031_v11, %v21317_v12 }
 0x412   : > { %v10483_v19 = vpop.xlane.xlu0 %10482  ;;  %24408 = vst [vmem:[#allocation80_spill] sm:$0xff] %v21447_v44  ;;  %v10856_v43 = vsel %vm7570_vm1, %v21447_v44, 0.0  ;;  %v24507_v44 = vld [vmem:[#allocation47_spill] sm:$0xff] }
 0x413   : > { %18027 = vpow2.f32 %v10697_v45  ;;  %v10589_v29 = vsub.f32 %v21139_v63, %v10483_v19  ;;  %10785 = vadd.xlane.f32.xlu0 %v10784_v0  ;;  %v10651_v0 = vmul.f32 1.442695, %v10567_v55 }
 0x414   : > { %18029 = vpow2.f32 %v10643_v46  ;;  %v10572_v46 = vsub.f32 %v21047_v15, %v21331_v31 }
 0x415   : > { %v21449_v54 = vpop.eup %18021  ;;  %v10695_v14 = vmul.f32 1.442695, %v10589_v29 }
 0x416   : > { %24409 = vst [vmem:[#allocation81_spill] sm:$0xff] %v21449_v54  ;;  %v10498_v22 = vpop.xlane.xlu0 %10497  ;;  %v10781_v59 = vsel %vm7570_vm1, %v21449_v54, 0.0  ;;  %v10661_v12 = vmul.f32 1.442695, %v10572_v46  ;;  %v24508_v54 = vld [vmem:[#allocation27_spill] sm:$0xff] }
 0x417   : > { %18031 = vpow2.f32 %v10695_v14  ;;  %v10594_v63 = vsub.f32 %v21159_v13, %v10498_v22  ;;  %10782 = vadd.xlane.f32.xlu1 %v10781_v59  ;;  %10857 = vadd.xlane.f32.xlu0 %v10856_v43  ;;  %v21469_v14 = vpop.xlane.xlu1 %10488 }
 0x418   : > { %18033 = vpow2.f32 %v10653_v34  ;;  %v10571_v34 = vsub.f32 %v21051_v5, %v21340_v52 }
 0x419   : > { %v21460_v7 = vpop.eup %18023  ;;  %v10705_v9 = vmul.f32 1.442695, %v10594_v63 }
 0x41a   : > { %24410 = vst [vmem:[#allocation82_spill] sm:$0xff] %v21460_v7  ;;  %v10495_v45 = vpop.xlane.xlu0 %10494  ;;  %v10853_v19 = vsel %vm7570_vm1, %v21460_v7, 0.0  ;;  %v21466_v13 = vpop.eup %18025  ;;  %v10659_v52 = vmul.f32 1.442695, %v10571_v34 }
 0x41b   : > { %24411 = vst [vmem:[#allocation83_spill] sm:$0xff] %v21466_v13  ;;  %v10593_v29 = vsub.f32 %v21165_v57, %v10495_v45  ;;  %10854 = vadd.xlane.f32.xlu1 %v10853_v19  ;;  %18035 = vpow2.f32 %v10705_v9  ;;  %v10790_v31 = vsel %vm7570_vm1, %v21466_v13, 0.0  ;;  %v21482_v43 = vpop.xlane.xlu1 %10503 }
 0x41d   : > { %v21471_v11 = vpop.eup %18027  ;;  %v10703_v15 = vmul.f32 1.442695, %v10593_v29  ;;  %v10576_v29 = vsub.f32 %v21065_v61, %v21352_v37 }
 0x41e   : > { %24412 = vst [vmem:[#allocation84_spill] sm:$0xff] %v21471_v11  ;;  %v10868_v22 = vsel %vm7570_vm1, %v21471_v11, 0.0  ;;  %v10510_v59 = vpop.xlane.xlu0 %10509  ;;  %v21479_v57 = vpop.eup %18029 }
 0x41f   : > { %24413 = vst [vmem:[#allocation85_spill] sm:$0xff] %v21479_v57  ;;  %18037 = vpow2.f32 %v10703_v15  ;;  %10791 = vadd.xlane.f32.xlu1 %v10790_v31  ;;  %10869 = vadd.xlane.f32.xlu0 %v10868_v22  ;;  %v10598_v63 = vsub.f32 %v21193_v56, %v10510_v59  ;;  %v10787_v46 = vsel %vm7570_vm1, %v21479_v57, 0.0  ;;  %v10580_v22 = vsub.f32 %v21085_v6, %v21383_v47 }
 0x420   : > { %18039 = vpow2.f32 %v10651_v0  ;;  %v10575_v47 = vsub.f32 %v21069_v33, %v21367_v18 }
 0x421   : > { %v21484_v5 = vpop.eup %18031  ;;  %18041 = vpow2.f32 %v10661_v12  ;;  %v10713_v55 = vmul.f32 1.442695, %v10598_v63  ;;  %v21495_v12 = vpop.xlane.xlu1 %10500 }
 0x422   : > { %24414 = vst [vmem:[#allocation86_spill] sm:$0xff] %v21484_v5  ;;  %v10865_v9 = vsel %vm7570_vm1, %v21484_v5, 0.0  ;;  %v10507_v45 = vpop.xlane.xlu0 %10506  ;;  %v21490_v19 = vpop.eup %18033  ;;  %v10667_v33 = vmul.f32 1.442695, %v10575_v47 }
 0x423   : > { %24415 = vst [vmem:[#allocation87_spill] sm:$0xff] %v21490_v19  ;;  %18043 = vpow2.f32 %v10713_v55  ;;  %10788 = vadd.xlane.f32.xlu1 %v10787_v46  ;;  %10866 = vadd.xlane.f32.xlu0 %v10865_v9  ;;  %v10597_v56 = vsub.f32 %v21199_v21, %v10507_v45  ;;  %v10802_v34 = vsel %vm7570_vm1, %v21490_v19, 0.0  ;;  %v10669_v21 = vmul.f32 1.442695, %v10576_v29 }
 0x424   : > { %18045 = vpow2.f32 %v10659_v52  ;;  %v10677_v9 = vmul.f32 1.442695, %v10580_v22 }
 0x425   : > { %v10711_v0 = vmul.f32 1.442695, %v10597_v56  ;;  %v21499_v31 = vpop.eup %18035  ;;  %v10579_v56 = vsub.f32 %v21089_v1, %v21394_v35  ;;  %v10588_v35 = vsub.f32 %v21131_v10, %v21426_v48 }
 0x426   : > { %v10522_v15 = vpop.xlane.xlu0 %10521  ;;  %24416 = vst [vmem:[#allocation88_spill] sm:$0xff] %v21499_v31  ;;  %v10880_v37 = vsel %vm7570_vm1, %v21499_v31, 0.0 }
 0x427   : > { %18047 = vpow2.f32 %v10711_v0  ;;  %10803 = vadd.xlane.f32.xlu0 %v10802_v34  ;;  %v10602_v63 = vsub.f32 %v21215_v42, %v10522_v15  ;;  %v21517_v42 = vpop.xlane.xlu1 %10515  ;;  %v10675_v1 = vmul.f32 1.442695, %v10579_v56 }
 0x428   : > { %18049 = vpow2.f32 %v10669_v21 }
 0x429   : > { %v21503_v59 = vpop.eup %18037  ;;  %v10721_v29 = vmul.f32 1.442695, %v10602_v63 }
 0x42a   : > { %24417 = vst [vmem:[#allocation89_spill] sm:$0xff] %v21503_v59  ;;  %v21506_v61 = vpop.eup %18039  ;;  %v10877_v52 = vsel %vm7570_vm1, %v21503_v59, 0.0  ;;  %v10519_v55 = vpop.xlane.xlu0 %10518  ;;  %v24491_v59 = vld [vmem:[#allocation24_spill] sm:$0xff] }
 0x42b   : > { %24418 = vst [vmem:[#allocation90_spill] sm:$0xff] %v21506_v61  ;;  %v21512_v46 = vpop.eup %18041  ;;  %10881 = vadd.xlane.f32.xlu0 %v10880_v37  ;;  %10878 = vadd.xlane.f32.xlu1 %v10877_v52  ;;  %v10601_v6 = vsub.f32 %v21223_v36, %v10519_v55  ;;  %v10799_v34 = vsel %vm7570_vm1, %v21506_v61, 0.0  ;;  %v21535_v21 = vpop.xlane.xlu1 %10512  ;;  %v10693_v52 = vmul.f32 1.442695, %v10588_v35  ;;  %v10587_v55 = vsub.f32 %v21135_v53, %v21440_v3 }
 0x42c   : > { %24419 = vst [vmem:[#allocation91_spill] sm:$0xff] %v21512_v46  ;;  %v10814_v36 = vsel %vm7570_vm1, %v21512_v46, 0.0  ;;  %v24477_v46 = vld [vmem:[#allocation13_spill] sm:$0xff] }
 0x42d   : > { %v21519_v45 = vpop.eup %18043  ;;  %v10719_v0 = vmul.f32 1.442695, %v10601_v6  ;;  %v10691_v56 = vmul.f32 1.442695, %v10587_v55 }
 0x42e   : > { %24420 = vst [vmem:[#allocation92_spill] sm:$0xff] %v21519_v45  ;;  %v21527_v15 = vpop.eup %18045  ;;  %v10892_v18 = vsel %vm7570_vm1, %v21519_v45, 0.0 }
 0x42f   : > { %24421 = vst [vmem:[#allocation93_spill] sm:$0xff] %v21527_v15  ;;  %18051 = vpow2.f32 %v10719_v0  ;;  %10800 = vadd.xlane.f32.xlu0 %v10799_v34  ;;  %10815 = vadd.xlane.f32.xlu1 %v10814_v36  ;;  %v10811_v63 = vsel %vm7570_vm1, %v21527_v15, 0.0 }
 0x430   : > { %18053 = vpow2.f32 %v10677_v9 }
 0x431   : > { %v21531_v22 = vpop.eup %18047  ;;  %18055 = vpow2.f32 %v10721_v29  ;;  %v24425_v29 = vld [vmem:[#allocation55_spill] sm:$0xff] }
 0x432   : > { %24422 = vst [vmem:[#allocation94_spill] sm:$0xff] %v21531_v22  ;;  %18057 = vpow2.f32 %v10667_v33  ;;  %v10889_v37 = vsel %vm7570_vm1, %v21531_v22, 0.0  ;;  %v21543_v10 = vpop.eup %18049  ;;  %v10596_v0 = vsub.f32 %v24425_v29, %v21482_v43  ;;  %v24427_v33 = vld [vmem:[#allocation46_spill] sm:$0xff] }
 0x433   : > { %10812 = vadd.xlane.f32.xlu1 %v10811_v63  ;;  %10893 = vadd.xlane.f32.xlu0 %v10892_v18  ;;  %18059 = vpow2.f32 %v10675_v1  ;;  %24423 = vst [vmem:[#allocation95_spill] sm:$0xff] %v21543_v10  ;;  %v10584_v53 = vsub.f32 %v24427_v33, %v21406_v17  ;;  %v10826_v3 = vsel %vm7570_vm1, %v21543_v10, 0.0 }
 0x434   : > { %18061 = vpow2.f32 %v10693_v52  ;;  %v10709_v63 = vmul.f32 1.442695, %v10596_v0  ;;  %v24434_v0 = vld [vmem:[#allocation34_spill] sm:$0xff] }
 0x437   : > { %10890 = vadd.xlane.f32.xlu0 %v10889_v37  ;;  %v24429_v37 = vld [vmem:[#allocation56_spill] sm:$0xff] }
 0x438   : > { %v10595_v17 = vsub.f32 %v24429_v37, %v21495_v12  ;;  %v24435_v12 = vld [vmem:[#allocation14_spill] sm:$0xff]  ;;  %v24438_v37 = vld [vmem:[#allocation49_spill] sm:$0xff] }
 0x439   : > { %v21546_v9 = vpop.eup %18051 }
 0x43a   : > { %v10528_v6 = vpop.xlane.xlu1 %10527  ;;  %v10534_v47 = vpop.xlane.xlu0 %10533  ;;  %24424 = vst [vmem:[#allocation96_spill] sm:$0xff] %v21546_v9  ;;  %v10901_v18 = vsel %vm7570_vm1, %v21546_v9, 0.0  ;;  %v10707_v9 = vmul.f32 1.442695, %v10595_v17  ;;  %v24441_v17 = vld [vmem:[#allocation2_spill] sm:$0xff] }
 0x43b   : > { %v10606_v48 = vsub.f32 %v21243_v32, %v10534_v47  ;;  %v21550_v36 = vpop.eup %18053  ;;  %10827 = vadd.xlane.f32.xlu0 %v10826_v3  ;;  %10902 = vadd.xlane.f32.xlu1 %v10901_v18  ;;  %v10685_v47 = vmul.f32 1.442695, %v10584_v53  ;;  %v10592_v18 = vsub.f32 %v24435_v12, %v21451_v40  ;;  %v24436_v53 = vld [vmem:[#allocation32_spill] sm:$0xff]  ;;  %v10604_v40 = vsub.f32 %v21241_v4, %v10528_v6  ;;  %v24439_v12 = vld [vmem:[#allocation66_spill] sm:$0xff] }
 0x43c   : > { %24426 = vst [vmem:[#allocation55_spill] sm:$0xff] %v21550_v36  ;;  %v21558_v35 = vpop.eup %18055  ;;  %v10838_v3 = vsel %vm7570_vm1, %v21550_v36, 0.0 }
 0x43d   : > { %v10729_v34 = vmul.f32 1.442695, %v10606_v48  ;;  %24428 = vst [vmem:[#allocation46_spill] sm:$0xff] %v21558_v35  ;;  %v21563_v55 = vpop.eup %18057  ;;  %v24431_v48 = vld [vmem:[#allocation9_spill] sm:$0xff]  ;;  %v10904_v33 = vsel %vm7570_vm1, %v21558_v35, 0.0 }
 0x43e   : > { %v10525_v32 = vpop.xlane.xlu1 %10524  ;;  %v10531_v1 = vpop.xlane.xlu0 %10530  ;;  %24430 = vst [vmem:[#allocation56_spill] sm:$0xff] %v21563_v55  ;;  %v10583_v29 = vsub.f32 %v24431_v48, %v21417_v60  ;;  %v10591_v48 = vsub.f32 %v24438_v37, %v21469_v14 }
 0x43f   : > { %v10605_v43 = vsub.f32 %v21248_v20, %v10531_v1  ;;  %18063 = vpow2.f32 %v10729_v34  ;;  %v21571_v20 = vpop.eup %18059  ;;  %10905 = vadd.xlane.f32.xlu0 %v10904_v33  ;;  %10839 = vadd.xlane.f32.xlu1 %v10838_v3  ;;  %v24437_v1 = vld [vmem:[#allocation15_spill] sm:$0xff]  ;;  %v10823_v33 = vsel %vm7570_vm1, %v21563_v55, 0.0  ;;  %v10603_v10 = vsub.f32 %v24439_v12, %v10525_v32 }
 0x440   : > { %18065 = vpow2.f32 %v10691_v56  ;;  %24432 = vst [vmem:[#allocation9_spill] sm:$0xff] %v21571_v20  ;;  %v24433_v56 = vld [vmem:[#allocation4_spill] sm:$0xff]  ;;  %v5667_v60 = vcombine.high %v24437_v1, %v24436_v53  ;;  %v10683_v3 = vmul.f32 1.442695, %v10583_v29  ;;  %v21593_v14 = vpop.eup %18061  ;;  %v10699_v6 = vmul.f32 1.442695, %v10591_v48 }
 0x441   : > { %v10727_v52 = vmul.f32 1.442695, %v10605_v43  ;;  %v5682_v34 = vcombine.low %v24434_v0, %v24433_v56  ;;  %v5666_v43 = vcombine.low %v24437_v1, %v24436_v53  ;;  %v10835_v53 = vsel %vm7570_vm1, %v21571_v20, 0.0  ;;  %24440 = vst [vmem:[#allocation4_spill] sm:$0xff] %v21593_v14  ;;  %v24447_v20 = vld [vmem:[#allocation35_spill] sm:$0xff] }
 0x442   : > { %v10725_v32 = vmul.f32 1.442695, %v10604_v40  ;;  %v5681_v12 = vrot.slane %v5667_v60, %v24441_v17  ;;  %v24448_v55 = vld [vmem:[#allocation43_spill] sm:$0xff] }
 0x443   : > { %18067 = vpow2.f32 %v10727_v52  ;;  %v21583_v36 = vpop.xlane.xlu1 %10539  ;;  %v10701_v52 = vmul.f32 1.442695, %v10592_v18  ;;  %10824 = vadd.xlane.f32.xlu0 %v10823_v33  ;;  %10836 = vadd.xlane.f32.xlu1 %v10835_v53  ;;  %v5674_v4 = vrot.slane %v5666_v43, %v24441_v17  ;;  %v5690_v29 = vrot.slane %v5682_v34, %v24441_v17  ;;  %v24444_v43 = vld [vmem:[#allocation70_spill] sm:$0xff]  ;;  %v24446_v53 = vld [vmem:[#allocation16_spill] sm:$0xff] }
 0x444   : > { %v21585_v35 = vpop.xlane.xlu0 %10545  ;;  %18069 = vpow2.f32 %v10709_v63  ;;  %v5683_v63 = vcombine.high %v24434_v0, %v24433_v56  ;;  %v10723_v18 = vmul.f32 1.442695, %v10603_v10  ;;  %v10862_v33 = vsel %vm7570_vm1, %v21593_v14, 0.0 }
 0x445   : > { %18071 = vpow2.f32 %v10685_v47  ;;  %v5699_v10 = vcombine.high %v5674_v4, %v5690_v29 }
 0x446   : > { %18073 = vpow2.f32 %v10707_v9  ;;  %v5697_v34 = vrot.slane %v5683_v63, %v24441_v17  ;;  %v5698_v9 = vcombine.low %v5674_v4, %v5690_v29  ;;  %v24450_v63 = vld [vmem:[#allocation60_spill] sm:$0xff]  ;;  %v5751_v29 = vcombine.high %v24448_v55, %v24447_v20 }
 0x447   : > { %v21598_v1 = vpop.xlane.xlu1 %10536  ;;  %18075 = vpow2.f32 %v10683_v3  ;;  %10863 = vadd.xlane.f32.xlu1 %v10862_v33  ;;  %v24445_v3 = vld [vmem:[#allocation33_spill] sm:$0xff]  ;;  %v10600_v22 = vsub.f32 %v24450_v63, %v21517_v42 }
 0x448   : > { %v10543_v47 = vpop.xlane.xlu0 %10542  ;;  %18077 = vpow2.f32 %v10701_v52  ;;  %v5734_v14 = vcombine.low %v24446_v53, %v24445_v3  ;;  %v5750_v52 = vcombine.low %v24448_v55, %v24447_v20  ;;  %v5715_v4 = vcombine.high %v5681_v12, %v5697_v34 }
 0x449   : > { %v21601_v37 = vpop.eup %18063  ;;  %18079 = vpow2.f32 %v10699_v6  ;;  %v10609_v48 = vsub.f32 %v24444_v43, %v10543_v47  ;;  %v24453_v43 = vld [vmem:[#allocation3_spill] sm:$0xff]  ;;  %v5735_v42 = vcombine.high %v24446_v53, %v24445_v3  ;;  %v5765_v53 = vrot.slane %v5751_v29, %v24441_v17 }
 0x44a   : > { %24442 = vst [vmem:[#allocation34_spill] sm:$0xff] %v21601_v37  ;;  %v21606_v56 = vpop.eup %18065  ;;  %v10916_v0 = vsel %vm7570_vm1, %v21601_v37, 0.0  ;;  %18081 = vpow2.f32 %v10725_v32  ;;  %v5714_v37 = vcombine.low %v5681_v12, %v5697_v34  ;;  %v21631_v45 = vrot.slane %v5698_v9, %v24453_v43  ;;  %v24454_v34 = vld [vmem:[#allocation61_spill] sm:$0xff] }
 0x44b   : > { %24443 = vst [vmem:[#allocation14_spill] sm:$0xff] %v21606_v56  ;;  %v10741_v40 = vpop.xlane.xlu1 %10740  ;;  %10917 = vadd.xlane.f32.xlu0 %v10916_v0  ;;  %18083 = vpow2.f32 %v10723_v18  ;;  %v10859_v6 = vsel %vm7570_vm1, %v21606_v56, 0.0  ;;  %v10735_v18 = vmul.f32 1.442695, %v10609_v48  ;;  %v21636_v55 = vrot.slane %v5699_v10, %v24453_v43  ;;  %v24467_v56 = vld [vmem:[#allocation72_spill] sm:$0xff] }
 0x44c   : > { %v10744_v60 = vpop.xlane.xlu0 %10743  ;;  %18085 = vrcp.f32 %v10741_v40  ;;  %10860 = vadd.xlane.f32.xlu1 %v10859_v6  ;;  %v5758_v20 = vrot.slane %v5750_v52, %v24441_v17  ;;  %v10599_v40 = vsub.f32 %v24454_v34, %v21535_v21  ;;  %v21642_v9 = vrot.slane %v5714_v37, %v24453_v43  ;;  %v24457_v52 = vld [vmem:[#allocation6_spill] sm:$0xff] }
 0x44d   : > { %v21616_v33 = vpop.eup %18067  ;;  %18087 = vrcp.f32 %v10744_v60  ;;  %v10717_v6 = vmul.f32 1.442695, %v10600_v22  ;;  %v21649_v3 = vrot.slane %v5715_v4, %v24453_v43  ;;  %v5742_v10 = vrot.slane %v5734_v14, %v24441_v17 }
 0x44e   : > { %24449 = vst [vmem:[#allocation32_spill] sm:$0xff] %v21616_v33  ;;  %v21622_v47 = vpop.eup %18069  ;;  %v10913_v32 = vsel %vm7570_vm1, %v21616_v33, 0.0  ;;  %v5749_v22 = vrot.slane %v5735_v42, %v24441_v17  ;;  %v24465_v42 = vld [vmem:[#allocation17_spill] sm:$0xff] }
 0x44f   : > { %24451 = vst [vmem:[#allocation15_spill] sm:$0xff] %v21622_v47  ;;  %v21628_v0 = vpop.eup %18071  ;;  %v10750_v63 = vpop.xlane.xlu1 %10749  ;;  %10914 = vadd.xlane.f32.xlu0 %v10913_v32  ;;  %v10886_v48 = vsel %vm7570_vm1, %v21622_v47, 0.0  ;;  %v24458_v32 = vld [vmem:[#allocation37_spill] sm:$0xff]  ;;  %v5766_v29 = vcombine.low %v5742_v10, %v5758_v20  ;;  %v5767_v34 = vcombine.high %v5742_v10, %v5758_v20  ;;  %v24461_v47 = vld [vmem:[#allocation67_spill] sm:$0xff] }
 0x450   : > { %24452 = vst [vmem:[#allocation49_spill] sm:$0xff] %v21628_v0  ;;  %v10747_v12 = vpop.xlane.xlu0 %10746  ;;  %18089 = vrcp.f32 %v10750_v63  ;;  %v21646_v60 = vpop.eup %18073  ;;  %10887 = vadd.xlane.f32.xlu1 %v10886_v48  ;;  %v10850_v21 = vsel %vm7570_vm1, %v21628_v0, 0.0  ;;  %v5818_v63 = vcombine.low %v24458_v32, %v24457_v52  ;;  %v5819_v4 = vcombine.high %v24458_v32, %v24457_v52 }
 0x451   : > { %18091 = vrcp.f32 %v10747_v12  ;;  %24455 = vst [vmem:[#allocation66_spill] sm:$0xff] %v21646_v60  ;;  %v21655_v37 = vpop.eup %18075  ;;  %v10715_v48 = vmul.f32 1.442695, %v10599_v40  ;;  %v10608_v33 = vsub.f32 %v24461_v47, %v21583_v36  ;;  %v5782_v10 = vcombine.low %v5749_v22, %v5765_v53 }
 0x452   : > { %24456 = vst [vmem:[#allocation2_spill] sm:$0xff] %v21655_v37  ;;  %18093 = vpow2.f32 %v10735_v18  ;;  %v21662_v14 = vpop.eup %18077  ;;  %v10883_v18 = vsel %vm7570_vm1, %v21646_v60, 0.0  ;;  %v10847_v52 = vsel %vm7570_vm1, %v21655_v37, 0.0  ;;  %v5783_v47 = vcombine.high %v5749_v22, %v5765_v53 }
 0x453   : > { %v10756_v12 = vpop.xlane.xlu1 %10755  ;;  %10851 = vadd.xlane.f32.xlu0 %v10850_v21  ;;  %24459 = vst [vmem:[#allocation70_spill] sm:$0xff] %v21662_v14  ;;  %v21664_v0 = vpop.eup %18079  ;;  %v21686_v32 = vrot.slane %v5818_v63, %v24441_v17  ;;  %v21699_v40 = vrot.slane %v5767_v34, %v24453_v43  ;;  %v21702_v53 = vrot.slane %v5819_v4, %v24441_v17  ;;  %v10733_v63 = vmul.f32 1.442695, %v10608_v33 }
 0x454   : > { %18095 = vrcp.f32 %v10756_v12  ;;  %24460 = vst [vmem:[#allocation33_spill] sm:$0xff] %v21664_v0  ;;  %v21673_v21 = vpop.eup %18081  ;;  %10884 = vadd.xlane.f32.xlu1 %v10883_v18  ;;  %v24464_v12 = vld [vmem:[#allocation5_spill] sm:$0xff]  ;;  %v21696_v18 = vrot.slane %v5766_v29, %v24453_v43  ;;  %v21710_v34 = vrot.slane %v5782_v10, %v24453_v43  ;;  %v10874_v33 = vsel %vm7570_vm1, %v21662_v14, 0.0 }
 0x455   : > { %18097 = vpow2.f32 %v10717_v6  ;;  %24462 = vst [vmem:[#allocation16_spill] sm:$0xff] %v21673_v21  ;;  %v21681_v6 = vpop.eup %18083  ;;  %v5802_v20 = vcombine.low %v24465_v42, %v24464_v12  ;;  %v10910_v37 = vsel %vm7570_vm1, %v21673_v21, 0.0  ;;  %v5803_v4 = vcombine.high %v24465_v42, %v24464_v12  ;;  %v24471_v42 = vld [vmem:[#allocation19_spill] sm:$0xff]  ;;  %v24472_v12 = vld [vmem:[#allocation38_spill] sm:$0xff] }
 0x456   : > { %24463 = vst [vmem:[#allocation35_spill] sm:$0xff] %v21681_v6  ;;  %v18086_v60 = vpop.eup %18085  ;;  %18099 = vpow2.f32 %v10715_v48  ;;  %v24468_v48 = vld [vmem:[#allocation71_spill] sm:$0xff]  ;;  %v24506_v7 = vcombine.low %v21696_v18, %v21699_v40 }
 0x457   : > { %10848 = vadd.xlane.f32.xlu0 %v10847_v52  ;;  %v18088_v22 = vpop.eup %18087  ;;  %v24466_v52 = vld [vmem:[#allocation69_spill] sm:$0xff]  ;;  %v10995_v15 = vmul.f32 %v18086_v60, %v24467_v56  ;;  %v5810_v56 = vrot.slane %v5802_v20, %v24441_v17  ;;  %v24474_v20 = vld [vmem:[#allocation74_spill] sm:$0xff]  ;;  %18101 = vpow2.f32 %v10733_v63 }
 0x458   : > { %v10607_v36 = vsub.f32 %v24466_v52, %v21598_v1  ;;  %10911 = vadd.xlane.f32.xlu1 %v10910_v37  ;;  %v10996_v61 = vmul.f32 %v18088_v22, %v24468_v48  ;;  %v21718_v52 = vrot.slane %v5783_v47, %v24453_v43  ;;  %v24469_v60 = vld [vmem:[#allocation73_spill] sm:$0xff]  ;;  %v24470_v37 = vld [vmem:[#allocation36_spill] sm:$0xff]  ;;  %v24473_v22 = vld [vmem:[#allocation10_spill] sm:$0xff] }
 0x459   : > { %11059 = vst.msk [vmem:[%s21693_s24] sm:$0xff] %vm7570_vm1, %v10995_v15  ;;  %17331 = vmatprep.mubr.msk.f32.mxu1 %vm7570_vm1, %v10995_v15  ;;  %v5870_v10 = vcombine.low %v24471_v42, %v24470_v37  ;;  %v5886_v48 = vcombine.low %v24473_v22, %v24472_v12  ;;  %v5887_v47 = vcombine.high %v24473_v22, %v24472_v12  ;;  %v24476_v15 = vld [vmem:[#allocation68_spill] sm:$0xff]  ;;  %v10907_v12 = vsel %vm7570_vm1, %v21681_v6, 0.0  ;;  %v24486_v6 = vld [vmem:[#allocation41_spill] sm:$0xff] }
 0x45a   : > { %v18090_v29 = vpop.eup %18089  ;;  %11060 = vst.msk [vmem:[%s21693_s24 + $0x8] sm:$0xff] %vm7570_vm1, %v10996_v61  ;;  %17332 = vmatmul.mubr.msk.f32.vlgmr.msra.gmra.mrb[48].mxu1 %vm7570_vm1, %v10996_v61  ;;  %v10731_v14 = vmul.f32 1.442695, %v10607_v36  ;;  %v5871_v63 = vcombine.high %v24471_v42, %v24470_v37  ;;  %v5834_v36 = vcombine.low %v5810_v56, %v21686_v32  ;;  %v24480_v61 = vld [vmem:[#allocation75_spill] sm:$0xff] }
 0x45b   : > { %v18092_v1 = vpop.eup %18091  ;;  %v10998_v21 = vmul.f32 %v18090_v29, %v24469_v60  ;;  %10875 = vadd.xlane.f32.xlu0 %v10874_v33  ;;  %v10610_v33 = vsub.f32 %v24476_v15, %v21585_v35  ;;  %17806 = vmatpush3.bf16.msra.mxu1 %v24477_v46  ;;  %v10871_v46 = vsel %vm7570_vm1, %v21664_v0, 0.0  ;;  %v5835_v15 = vcombine.high %v5810_v56, %v21686_v32 }
 0x45c   : > { %v10997_v29 = vmul.f32 %v18092_v1, %v24474_v20  ;;  %v21735_v60 = vpop.eup %18093  ;;  %v5817_v1 = vrot.slane %v5803_v4, %v24441_v17  ;;  %v24478_v20 = vld [vmem:[#allocation21_spill] sm:$0xff]  ;;  %10908 = vadd.xlane.f32.xlu1 %v10907_v12  ;;  %v5878_v12 = vrot.slane %v5870_v10, %v24441_v17  ;;  %v5894_v0 = vrot.slane %v5886_v48, %v24441_v17 }
 0x45d   : > { %24475 = vst [vmem:[#allocation43_spill] sm:$0xff] %v21735_v60  ;;  %11062 = vst.msk [vmem:[%s21693_s24 + $0x18] sm:$0xff] %vm7570_vm1, %v10998_v21  ;;  %17812 = vmatprep.subr.bf16.mxu1 %v24478_v20  ;;  %v5901_v32 = vrot.slane %v5887_v47, %v24441_v17  ;;  %v10737_v56 = vmul.f32 1.442695, %v10610_v33  ;;  %18103 = vpow2.f32 %v10731_v14  ;;  %v24484_v47 = vld [vmem:[#allocation26_spill] sm:$0xff]  ;;  %v21786_v33 = vrot.slane %v5834_v36, %v24453_v43 }
 0x45e   : > { %v18096_v22 = vpop.eup %18095  ;;  %11061 = vst.msk [vmem:[%s21693_s24 + $0x10] sm:$0xff] %vm7570_vm1, %v10997_v29  ;;  %17338 = vmatprep.mubr.msk.f32.mxu1 %vm7570_vm1, %v10997_v29  ;;  %v10925_v29 = vsel %vm7570_vm1, %v21735_v60, 0.0  ;;  %v5850_v10 = vcombine.low %v5817_v1, %v21702_v53  ;;  %v5851_v48 = vcombine.high %v5817_v1, %v21702_v53  ;;  %v5885_v42 = vrot.slane %v5871_v63, %v24441_v17  ;;  %v24485_v60 = vld [vmem:[#allocation11_spill] sm:$0xff] }
 0x45f   : > { %v21754_v35 = vpop.eup %18097  ;;  %v21759_v4 = vmul.f32 %v18096_v22, %v24480_v61  ;;  %10872 = vadd.xlane.f32.xlu0 %v10871_v46  ;;  %17339 = vmatmul.mubr.msk.f32.vlgmr.msra.gmra.mrb[50].mxu1 %vm7570_vm1, %v10998_v21  ;;  %v24482_v61 = vld [vmem:[#allocation42_spill] sm:$0xff]  ;;  %v24483_v21 = vld [vmem:[#allocation23_spill] sm:$0xff]  ;;  %v5902_v1 = vcombine.low %v5878_v12, %v5894_v0  ;;  %v5903_v37 = vcombine.high %v5878_v12, %v5894_v0  ;;  %18105 = vpow2.f32 %v10737_v56 }
 0x460   : > { %24479 = vst [vmem:[#allocation60_spill] sm:$0xff] %v21754_v35  ;;  %17814 = vmatpush3.bf16.msra.mxu1 %v24478_v20  ;;  %v21776_v22 = vpop.eup %18099  ;;  %v5938_v46 = vcombine.low %v24483_v21, %v24482_v61  ;;  %10926 = vadd.xlane.f32.xlu1 %v10925_v29  ;;  %v10898_v14 = vsel %vm7570_vm1, %v21754_v35, 0.0  ;;  %v21789_v20 = vrot.slane %v5835_v15, %v24453_v43  ;;  %v24489_v56 = vld [vmem:[#allocation7_spill] sm:$0xff] }
 0x461   : > { %11064 = vst.msk [vmem:[%s21693_s24 + $0x28] sm:$0xff] %vm7570_vm1, %v21759_v4  ;;  %24481 = vst [vmem:[#allocation3_spill] sm:$0xff] %v21776_v22  ;;  %17820 = vmatprep.subr.bf16.mxu1 %v24484_v47  ;;  %v5939_v53 = vcombine.high %v24483_v21, %v24482_v61  ;;  %v5954_v29 = vcombine.low %v24486_v6, %v24485_v60  ;;  %v5955_v35 = vcombine.high %v24486_v6, %v24485_v60  ;;  %v21809_v21 = vpop.eup %18101  ;;  %v24490_v60 = vld [vmem:[#allocation39_spill] sm:$0xff] }
 0x462   : > { %v5918_v31 = vcombine.low %v5885_v42, %v5901_v32  ;;  %v5919_v15 = vcombine.high %v5885_v42, %v5901_v32  ;;  %v21801_v63 = vrot.slane %v5850_v10, %v24453_v43  ;;  %v21804_v61 = vrot.slane %v5851_v48, %v24453_v43  ;;  %24487 = vst [vmem:[#allocation61_spill] sm:$0xff] %v21809_v21  ;;  %v24488_v32 = vld [vmem:[#allocation40_spill] sm:$0xff] }
 0x463   : > { %10899 = vadd.xlane.f32.xlu0 %v10898_v14  ;;  %v5946_v0 = vrot.slane %v5938_v46, %v24441_v17  ;;  %v10895_v12 = vsel %vm7570_vm1, %v21776_v22, 0.0  ;;  %v5953_v42 = vrot.slane %v5939_v53, %v24441_v17  ;;  %v6022_v10 = vcombine.low %v24489_v56, %v24488_v32 }
 0x464   : > { %v21819_v48 = vrot.slane %v5902_v1, %v24453_v43  ;;  %v21822_v46 = vrot.slane %v5903_v37, %v24453_v43  ;;  %v5962_v14 = vrot.slane %v5954_v29, %v24441_v17  ;;  %v5969_v36 = vrot.slane %v5955_v35, %v24441_v17  ;;  %v10798_v6 = vpop.xlane.xlu0 %10797 }
 0x465   : > { %v21827_v22 = vrot.slane %v5918_v31, %v24453_v43  ;;  %v21830_v53 = vrot.slane %v5919_v15, %v24453_v43  ;;  %18107 = vrcp.f32 %v10798_v6  ;;  %v6023_v37 = vcombine.high %v24489_v56, %v24488_v32 }
 0x466   : > { %v5970_v1 = vcombine.low %v5946_v0, %v5962_v14  ;;  %v5971_v19 = vcombine.high %v5946_v0, %v5962_v14  ;;  %v10922_v29 = vsel %vm7570_vm1, %v21809_v21, 0.0  ;;  %v5986_v5 = vcombine.low %v5953_v42, %v5969_v36 }
 0x467   : > { %10896 = vadd.xlane.f32.xlu0 %v10895_v12  ;;  %v6006_v12 = vcombine.low %v24491_v59, %v24490_v60  ;;  %v21838_v35 = vpop.eup %18103  ;;  %v6030_v57 = vrot.slane %v6022_v10, %v24441_v17  ;;  %v5987_v32 = vcombine.high %v5953_v42, %v5969_v36  ;;  %v6007_v56 = vcombine.high %v24491_v59, %v24490_v60 }
 0x468   : > { %24492 = vst [vmem:[#allocation6_spill] sm:$0xff] %v21838_v35  ;;  %v10753_v14 = vpop.xlane.xlu0 %10752  ;;  %v21860_v0 = vrot.slane %v5971_v19, %v24453_v43  ;;  %v6037_v36 = vrot.slane %v6023_v37, %v24441_v17  ;;  %v10919_v59 = vsel %vm7570_vm1, %v21838_v35, 0.0  ;;  %v21868_v42 = vrot.slane %v5986_v5, %v24453_v43 }
 0x469   : > { %v6014_v10 = vrot.slane %v6006_v12, %v24441_v17  ;;  %18109 = vrcp.f32 %v10753_v14  ;;  %v21865_v60 = vpop.eup %18105  ;;  %v24495_v12 = vld [vmem:[#allocation45_spill] sm:$0xff]  ;;  %v6021_v19 = vrot.slane %v6007_v56, %v24441_v17  ;;  %v24498_v5 = vcombine.low %v21631_v45, %v21636_v55 }
 0x46a   : > { %24493 = vst [vmem:[#allocation37_spill] sm:$0xff] %v21865_v60  ;;  %24494 = vst [vmem:[#allocation67_spill] sm:$0xff] %v21868_v42  ;;  %v24496_v14 = vld [vmem:[#allocation25_spill] sm:$0xff] }
 0x46b   : > { %10923 = vadd.xlane.f32.xlu0 %v10922_v29  ;;  %v21857_v29 = vrot.slane %v5970_v1, %v24453_v43  ;;  %v6038_v15 = vcombine.low %v6014_v10, %v6030_v57  ;;  %v6039_v31 = vcombine.high %v6014_v10, %v6030_v57  ;;  %v6074_v6 = vcombine.low %v24496_v14, %v24495_v12  ;;  %v24499_v57 = vld [vmem:[#allocation52_spill] sm:$0xff] }
 0x46c   : > { %v21873_v1 = vrot.slane %v5987_v32, %v24453_v43  ;;  %v6075_v37 = vcombine.high %v24496_v14, %v24495_v12  ;;  %v10795_v35 = vpop.xlane.xlu0 %10794  ;;  %v21882_v21 = vrot.slane %v24498_v5, %v24441_v17  ;;  %v24500_v10 = vld [vmem:[#allocation44_spill] sm:$0xff]  ;;  %v24501_v32 = vcombine.high %v21631_v45, %v21636_v55 }
 0x46d   : > { %v6090_v11 = vcombine.low %v24500_v10, %v24499_v57  ;;  %18111 = vrcp.f32 %v10795_v35  ;;  %v6054_v12 = vcombine.low %v6021_v19, %v6037_v36  ;;  %v10928_v14 = vsel %vm7570_vm1, %v21865_v60, 0.0 }
 0x46e   : > { %24497 = vst [vmem:[#allocation5_spill] sm:$0xff] %v21873_v1  ;;  %v21892_v56 = vrot.slane %v24501_v32, %v24441_v17  ;;  %v24502_v5 = vcombine.low %v21642_v9, %v21649_v3  ;;  %v24503_v35 = vcombine.high %v21642_v9, %v21649_v3  ;;  %v21909_v45 = vrot.slane %v6038_v15, %v24453_v43 }
 0x46f   : > { %10920 = vadd.xlane.f32.xlu0 %v10919_v59  ;;  %v6091_v59 = vcombine.high %v24500_v10, %v24499_v57  ;;  %v18108_v10 = vpop.eup %18107  ;;  %v21912_v55 = vrot.slane %v6039_v31, %v24453_v43  ;;  %v6055_v32 = vcombine.high %v6021_v19, %v6037_v36  ;;  %v6082_v60 = vrot.slane %v6074_v6, %v24441_v17 }
 0x470   : > { %v21900_v13 = vrot.slane %v24502_v5, %v24441_v17  ;;  %v21906_v57 = vrot.slane %v24503_v35, %v24441_v17  ;;  %v6089_v3 = vrot.slane %v6075_v37, %v24441_v17  ;;  %v10762_v35 = vpop.xlane.xlu0 %10761  ;;  %v21921_v15 = vmul.f32 %v18108_v10, %v21315_v30 }
 0x471   : > { %v6098_v6 = vrot.slane %v6090_v11, %v24441_v17  ;;  %18113 = vrcp.f32 %v10762_v35  ;;  %v21929_v19 = vrot.slane %v6054_v12, %v24453_v43  ;;  %v6786_v37 = vcombine.low %v21882_v21, %v21892_v56  ;;  %v24519_v11 = vld [vmem:[#allocation18_spill] sm:$0xff] }
 0x472   : > { %24504 = vst [vmem:[#allocation17_spill] sm:$0xff] %v21921_v15  ;;  %v6802_v30 = vcombine.low %v21900_v13, %v21906_v57  ;;  %11078 = vst.msk [vmem:[%s21693_s24 + $0x98] sm:$0xff] %vm7570_vm1, %v21921_v15  ;;  %v21940_v36 = vrot.slane %v6055_v32, %v24453_v43  ;;  %v21949_v15 = vrot.slane %v24506_v7, %v24441_v17 }
 0x473   : > { %10929 = vadd.xlane.f32.xlu0 %v10928_v14  ;;  %v6105_v14 = vrot.slane %v6091_v59, %v24441_v17  ;;  %v18110_v10 = vpop.eup %18109  ;;  %v6106_v12 = vcombine.low %v6082_v60, %v6098_v6  ;;  %v6107_v35 = vcombine.high %v6082_v60, %v6098_v6  ;;  %v6142_v32 = vcombine.low %v24508_v54, %v24507_v44 }
 0x474   : > { %24505 = vst [vmem:[#allocation69_spill] sm:$0xff] %v21940_v36  ;;  %v10810_v9 = vpop.xlane.xlu0 %10809  ;;  %v10999_v5 = vmul.f32 %v18110_v10, %v21322_v51  ;;  %v6158_v1 = vcombine.low %v24510_v58, %v24509_v25  ;;  %v24511_v60 = vcombine.high %v21696_v18, %v21699_v40  ;;  %v6143_v51 = vcombine.high %v24508_v54, %v24507_v44 }
 0x475   : > { %v6122_v59 = vcombine.low %v6089_v3, %v6105_v14  ;;  %v6123_v31 = vcombine.high %v6089_v3, %v6105_v14  ;;  %18115 = vrcp.f32 %v10810_v9  ;;  %v6159_v7 = vcombine.high %v24510_v58, %v24509_v25 }
 0x476   : > { %v21959_v3 = vrot.slane %v24511_v60, %v24441_v17  ;;  %11063 = vst.msk [vmem:[%s21693_s24 + $0x20] sm:$0xff] %vm7570_vm1, %v10999_v5  ;;  %17345 = vmatprep.mubr.msk.f32.mxu0 %vm7570_vm1, %v10999_v5  ;;  %v21969_v6 = vrot.slane %v6786_v37, %v24453_v43  ;;  %v21972_v9 = vrot.slane %v6802_v30, %v24453_v43 }
 0x477   : > { %v18112_v14 = vpop.eup %18111  ;;  %v21975_v40 = vrot.slane %v6106_v12, %v24453_v43  ;;  %v21978_v18 = vrot.slane %v6107_v35, %v24453_v43  ;;  %17346 = vmatmul.mubr.msk.f32.vlgmr.msra.gmra.mrb[48].mxu0 %vm7570_vm1, %v21759_v4  ;;  %v24513_v25 = vcombine.low %v21710_v34, %v21718_v52  ;;  %v24514_v54 = vcombine.high %v21710_v34, %v21718_v52  ;;  %v24515_v4 = vld [vmem:[#allocation20_spill] sm:$0xff] }
 0x478   : > { %v10807_v58 = vpop.xlane.xlu1 %10806  ;;  %v21995_v37 = vrot.slane %v6122_v59, %v24453_v43  ;;  %v21998_v30 = vrot.slane %v6123_v31, %v24453_v43  ;;  %17818 = vmatpush3.bf16.msra.mxu0 %v24515_v4  ;;  %v10759_v10 = vpop.xlane.xlu0 %10758  ;;  %v22002_v12 = vmul.f32 %v18112_v14, %v21329_v2  ;;  %v6166_v52 = vrot.slane %v6158_v1, %v24441_v17  ;;  %v24517_v59 = vld [vmem:[#allocation28_spill] sm:$0xff] }
 0x479   : > { %24512 = vst [vmem:[#allocation72_spill] sm:$0xff] %v21978_v18  ;;  %v21986_v44 = vrot.slane %v24513_v25, %v24441_v17  ;;  %v21992_v5 = vrot.slane %v24514_v54, %v24441_v17  ;;  %18117 = vrcp.f32 %v10807_v58  ;;  %17824 = vmatprep.subr.bf16.mxu0 %v24517_v59  ;;  %v6150_v60 = vrot.slane %v6142_v32, %v24441_v17  ;;  %v24518_v35 = vld [vmem:[#allocation12_spill] sm:$0xff] }
 0x47a   : > { %24516 = vst [vmem:[#allocation71_spill] sm:$0xff] %v22002_v12  ;;  %18119 = vrcp.f32 %v10759_v10  ;;  %v6157_v58 = vrot.slane %v6143_v51, %v24441_v17  ;;  %v6173_v2 = vrot.slane %v6159_v7, %v24441_v17  ;;  %11077 = vst.msk [vmem:[%s21693_s24 + $0x90] sm:$0xff] %vm7570_vm1, %v22002_v12  ;;  %v6854_v4 = vcombine.low %v21949_v15, %v21959_v3  ;;  %v24520_v51 = vld [vmem:[#allocation58_spill] sm:$0xff]  ;;  %v24521_v18 = vld [vmem:[#allocation48_spill] sm:$0xff] }
 0x47b   : > { %v18114_v14 = vpop.eup %18113  ;;  %v6870_v32 = vcombine.low %v21986_v44, %v21992_v5  ;;  %v6174_v31 = vcombine.low %v6150_v60, %v6166_v52  ;;  %v6175_v34 = vcombine.high %v6150_v60, %v6166_v52  ;;  %v6210_v54 = vcombine.low %v24519_v11, %v24518_v35 }
 0x47c   : > { %v10768_v1 = vpop.xlane.xlu1 %10767  ;;  %v10822_v10 = vpop.xlane.xlu0 %10821  ;;  %v11002_v25 = vmul.f32 %v18114_v14, %v21338_v8  ;;  %v6190_v42 = vcombine.low %v6157_v58, %v6173_v2  ;;  %v6191_v36 = vcombine.high %v6157_v58, %v6173_v2  ;;  %v6787_v7 = vcombine.high %v21882_v21, %v21892_v56 }
 0x47d   : > { %18121 = vrcp.f32 %v10768_v1  ;;  %v6226_v8 = vcombine.low %v24521_v18, %v24520_v51  ;;  %v6211_v52 = vcombine.high %v24519_v11, %v24518_v35  ;;  %v6862_v14 = vrot.slane %v6854_v4, %v24453_v43 }
 0x47e   : > { %18123 = vrcp.f32 %v10822_v10  ;;  %11066 = vst.msk [vmem:[%s21693_s24 + $0x38] sm:$0xff] %vm7570_vm1, %v11002_v25  ;;  %v6878_v10 = vrot.slane %v6870_v32, %v24453_v43  ;;  %v6227_v58 = vcombine.high %v24521_v18, %v24520_v51  ;;  %v6803_v21 = vcombine.high %v21900_v13, %v21906_v57 }
 0x47f   : > { %v18116_v1 = vpop.eup %18115  ;;  %v22053_v12 = vrot.slane %v6174_v31, %v24453_v43  ;;  %v22056_v11 = vrot.slane %v6175_v34, %v24453_v43  ;;  %v6218_v35 = vrot.slane %v6210_v54, %v24441_v17  ;;  %v22060_v18 = vrot.slane %v6190_v42, %v24453_v43 }
 0x480   : > { %v10765_v60 = vpop.xlane.xlu1 %10764  ;;  %v10819_v2 = vpop.xlane.xlu0 %10818  ;;  %v22050_v56 = vmul.f32 %v18116_v1, %v21345_v24  ;;  %v22063_v32 = vrot.slane %v6191_v36, %v24453_v43  ;;  %v6819_v24 = vcombine.high %v21969_v6, %v21972_v9  ;;  %v22068_v13 = vrot.slane %v6787_v7, %v24453_v43 }
 0x481   : > { %18125 = vrcp.f32 %v10765_v60  ;;  %v6234_v34 = vrot.slane %v6226_v8, %v24441_v17  ;;  %v6225_v31 = vrot.slane %v6211_v52, %v24441_v17  ;;  %v6886_v42 = vcombine.low %v6862_v14, %v6878_v10 }
 0x482   : > { %24522 = vst [vmem:[#allocation73_spill] sm:$0xff] %v22050_v56  ;;  %18127 = vrcp.f32 %v10819_v2  ;;  %11082 = vst.msk [vmem:[%s21693_s24 + $0xb8] sm:$0xff] %vm7570_vm1, %v22050_v56  ;;  %v6241_v54 = vrot.slane %v6227_v58, %v24441_v17  ;;  %v6887_v1 = vcombine.high %v6862_v14, %v6878_v10  ;;  %v22081_v60 = vrot.slane %v6803_v21, %v24453_v43  ;;  %v24525_v14 = vld [vmem:[#allocation22_spill] sm:$0xff] }
 0x483   : > { %v18118_v4 = vpop.eup %18117  ;;  %v6242_v8 = vcombine.low %v6218_v35, %v6234_v34  ;;  %v6243_v56 = vcombine.high %v6218_v35, %v6234_v34  ;;  %v6855_v10 = vcombine.high %v21949_v15, %v21959_v3 }
 0x484   : > { %v18120_v57 = vpop.eup %18119  ;;  %v22076_v36 = vmul.f32 %v18118_v4, %v21354_v26  ;;  %v10774_v51 = vpop.xlane.xlu0 %10773  ;;  %v6258_v21 = vcombine.low %v6225_v31, %v6241_v54  ;;  %v6259_v35 = vcombine.high %v6225_v31, %v6241_v54  ;;  %v22125_v31 = vpack.c.bf16 %v6887_v1, %v6819_v24  ;;  %v24528_v54 = vld [vmem:[#allocation54_spill] sm:$0xff] }
 0x485   : > { %v11001_v7 = vmul.f32 %v18120_v57, %v21350_v23  ;;  %18129 = vrcp.f32 %v10774_v51  ;;  %v24523_v57 = vcombine.low %v21969_v6, %v21972_v9  ;;  %v24524_v51 = vld [vmem:[#allocation51_spill] sm:$0xff]  ;;  %v22117_v6 = vrot.slane %v6242_v8, %v24453_v43 }
 0x486   : > { %11081 = vst.msk [vmem:[%s21693_s24 + $0xb0] sm:$0xff] %vm7570_vm1, %v22076_v36  ;;  %v6278_v23 = vcombine.low %v24525_v14, %v24524_v51  ;;  %v22120_v9 = vrot.slane %v6243_v56, %v24453_v43  ;;  %v6821_v56 = vcombine.high %v22068_v13, %v22081_v60  ;;  %v22140_v24 = vrot.slane %v6258_v21, %v24453_v43 }
 0x487   : > { %v18122_v26 = vpop.eup %18121  ;;  %11065 = vst.msk [vmem:[%s21693_s24 + $0x30] sm:$0xff] %vm7570_vm1, %v11001_v7  ;;  %17352 = vmatprep.mubr.msk.f32.mxu1 %vm7570_vm1, %v11001_v7  ;;  %v22104_v34 = vpack.c.bf16 %v6886_v42, %v24523_v57  ;;  %v6279_v7 = vcombine.high %v24525_v14, %v24524_v51  ;;  %v24527_v42 = vld [vmem:[#allocation53_spill] sm:$0xff]  ;;  %v22143_v1 = vrot.slane %v6259_v35, %v24453_v43 }
 0x488   : > { %v18124_v58 = vpop.eup %18123  ;;  %v11004_v4 = vmul.f32 %v18122_v26, %v21358_v38  ;;  %17353 = vmatmul.mubr.msk.f32.vlgmr.msra.gmra.mrb[52].mxu1 %vm7570_vm1, %v11002_v25  ;;  %v10834_v15 = vpop.xlane.xlu0 %10833  ;;  %v6871_v38 = vcombine.high %v21986_v44, %v21992_v5  ;;  %v24526_v25 = vld [vmem:[#allocation31_spill] sm:$0xff]  ;;  %v6294_v44 = vcombine.low %v24528_v54, %v24527_v42  ;;  %v22132_v5 = vrot.slane %v6855_v10, %v24453_v43 }
 0x489   : > { %17822 = vmatpush3.bf16.msra.mxu1 %v24484_v47  ;;  %v22114_v3 = vmul.f32 %v18124_v58, %v21363_v16  ;;  %18131 = vrcp.f32 %v10834_v15  ;;  %v6820_v16 = vcombine.low %v22068_v13, %v22081_v60  ;;  %v6295_v26 = vcombine.high %v24528_v54, %v24527_v42  ;;  %v24546_v60 = vld [vmem:[#allocation76_spill] sm:$0xff] }
 0x48a   : > { %11068 = vst.msk [vmem:[%s21693_s24 + $0x48] sm:$0xff] %vm7570_vm1, %v11004_v4  ;;  %17828 = vmatprep.subr.bf16.mxu1 %v24526_v25  ;;  %v6286_v10 = vrot.slane %v6278_v23, %v24441_v17  ;;  %v22150_v58 = vrot.slane %v6279_v7, %v24441_v17  ;;  %v6885_v51 = vrot.slane %v6871_v38, %v24453_v43 }
 0x48b   : > { %v18126_v47 = vpop.eup %18125  ;;  %11086 = vst.msk [vmem:[%s21693_s24 + $0xd8] sm:$0xff] %vm7570_vm1, %v22114_v3  ;;  %v24530_v7 = vcombine.high %v21786_v33, %v21789_v20  ;;  %v24532_v54 = vcombine.high %v21801_v63, %v21804_v61 }
 0x48c   : > { %v18128_v8 = vpop.eup %18127  ;;  %v11003_v14 = vmul.f32 %v18126_v47, %v21373_v49  ;;  %v10771_v57 = vpop.xlane.xlu0 %10770  ;;  %v24529_v49 = vcombine.low %v21786_v33, %v21789_v20  ;;  %v24531_v47 = vcombine.low %v21801_v63, %v21804_v61  ;;  %v6309_v20 = vrot.slane %v6295_v26, %v24441_v17 }
 0x48d   : > { %v22154_v21 = vmul.f32 %v18128_v8, %v21376_v28  ;;  %18133 = vrcp.f32 %v10771_v57  ;;  %v6302_v28 = vrot.slane %v6294_v44, %v24441_v17  ;;  %v22175_v38 = vrot.slane %v24530_v7, %v24441_v17  ;;  %v24533_v44 = vld [vmem:[#allocation64_spill] sm:$0xff]  ;;  %v24536_v7 = vld [vmem:[#allocation29_spill] sm:$0xff] }
 0x48e   : > { %11067 = vst.msk [vmem:[%s21693_s24 + $0x40] sm:$0xff] %vm7570_vm1, %v11003_v14  ;;  %17359 = vmatprep.mubr.msk.f32.mxu0 %vm7570_vm1, %v11003_v14  ;;  %v22167_v23 = vrot.slane %v24529_v49, %v24441_v17  ;;  %v22181_v42 = vrot.slane %v24531_v47, %v24441_v17  ;;  %v22187_v8 = vrot.slane %v24532_v54, %v24441_v17  ;;  %v24534_v14 = vld [vmem:[#allocation57_spill] sm:$0xff]  ;;  %v24535_v49 = vld [vmem:[#allocation59_spill] sm:$0xff] }
 0x48f   : > { %17360 = vmatmul.mubr.msk.f32.vlgmr.msra.gmra.mrb[50].mxu0 %vm7570_vm1, %v11004_v4  ;;  %11085 = vst.msk [vmem:[%s21693_s24 + $0xd0] sm:$0xff] %vm7570_vm1, %v22154_v21  ;;  %v18130_v4 = vpop.eup %18129  ;;  %v6362_v57 = vcombine.low %v24534_v14, %v24533_v44  ;;  %v6346_v47 = vcombine.low %v24536_v7, %v24535_v49  ;;  %v6363_v61 = vcombine.high %v24534_v14, %v24533_v44 }
 0x490   : > { %17826 = vmatpush3.bf16.msra.mxu0 %v24517_v59  ;;  %v10831_v63 = vpop.xlane.xlu1 %10830  ;;  %v6347_v54 = vcombine.high %v24536_v7, %v24535_v49  ;;  %v10780_v26 = vpop.xlane.xlu0 %10779  ;;  %v11006_v33 = vmul.f32 %v18130_v4, %v21385_v50  ;;  %v6888_v35 = vcombine.low %v22132_v5, %v6885_v51  ;;  %v6889_v59 = vcombine.high %v22132_v5, %v6885_v51 }
 0x491   : > { %18135 = vrcp.f32 %v10831_v63  ;;  %17832 = vmatprep.subr.bf16.mxu0 %v22104_v34  ;;  %v6310_v52 = vcombine.low %v6286_v10, %v6302_v28  ;;  %v6311_v2 = vcombine.high %v6286_v10, %v6302_v28  ;;  %v6922_v44 = vcombine.low %v22167_v23, %v22175_v38 }
 0x492   : > { %18137 = vrcp.f32 %v10780_v26  ;;  %11070 = vst.msk [vmem:[%s21693_s24 + $0x58] sm:$0xff] %vm7570_vm1, %v11006_v33  ;;  %v6938_v14 = vcombine.low %v22181_v42, %v22187_v8  ;;  %v6326_v50 = vcombine.low %v22150_v58, %v6309_v20  ;;  %v6327_v4 = vcombine.high %v22150_v58, %v6309_v20 }
 0x493   : > { %v18132_v49 = vpop.eup %18131  ;;  %v6370_v7 = vrot.slane %v6362_v57, %v24441_v17  ;;  %v6354_v5 = vrot.slane %v6346_v47, %v24441_v17  ;;  %v6377_v10 = vrot.slane %v6363_v61, %v24441_v17  ;;  %v6361_v51 = vrot.slane %v6347_v54, %v24441_v17 }
 0x494   : > { %v10846_v28 = vpop.xlane.xlu0 %10845  ;;  %v24537_v63 = vcombine.low %v21819_v48, %v21822_v46  ;;  %v22229_v15 = vmul.f32 %v18132_v49, %v21392_v62  ;;  %v24539_v58 = vcombine.high %v21819_v48, %v21822_v46  ;;  %v24540_v57 = vcombine.low %v21827_v22, %v21830_v53 }
 0x495   : > { %18139 = vrcp.f32 %v10846_v28  ;;  %v24541_v61 = vcombine.high %v21827_v22, %v21830_v53  ;;  %v22250_v62 = vrot.slane %v6310_v52, %v24453_v43  ;;  %v22253_v49 = vrot.slane %v6311_v2, %v24453_v43 }
 0x496   : > { %v22226_v26 = vrot.slane %v24537_v63, %v24441_v17  ;;  %24538 = vst [vmem:[#allocation36_spill] sm:$0xff] %v22229_v15  ;;  %v22235_v20 = vrot.slane %v24539_v58, %v24441_v17  ;;  %v22241_v47 = vrot.slane %v24540_v57, %v24441_v17  ;;  %v22256_v48 = vrot.slane %v6922_v44, %v24453_v43 }
 0x497   : > { %v22247_v54 = vrot.slane %v24541_v61, %v24441_v17  ;;  %v22259_v46 = vrot.slane %v6938_v14, %v24453_v43  ;;  %11090 = vst.msk [vmem:[%s21693_s24 + $0xf8] sm:$0xff] %vm7570_vm1, %v22229_v15  ;;  %v18134_v28 = vpop.eup %18133  ;;  %v22265_v22 = vrot.slane %v6326_v50, %v24453_v43  ;;  %v6378_v53 = vcombine.low %v6354_v5, %v6370_v7 }
 0x498   : > { %v22270_v2 = vpack.c.bf16 %v6888_v35, %v6820_v16  ;;  %v22275_v52 = vpack.c.bf16 %v6889_v59, %v6821_v56  ;;  %v6379_v44 = vcombine.high %v6354_v5, %v6370_v7  ;;  %v6394_v14 = vcombine.low %v6361_v51, %v6377_v10  ;;  %v10777_v58 = vpop.xlane.xlu0 %10776  ;;  %v24542_v56 = vld [vmem:[#allocation63_spill] sm:$0xff]  ;;  %v24543_v59 = vld [vmem:[#allocation30_spill] sm:$0xff] }
 0x499   : > { %v6395_v63 = vcombine.high %v6361_v51, %v6377_v10  ;;  %v11005_v57 = vmul.f32 %v18134_v28, %v21399_v27  ;;  %v22279_v50 = vrot.slane %v6327_v4, %v24453_v43  ;;  %18141 = vrcp.f32 %v10777_v58  ;;  %v24544_v51 = vld [vmem:[#allocation65_spill] sm:$0xff]  ;;  %v24545_v28 = vld [vmem:[#allocation62_spill] sm:$0xff] }
 0x49a   : > { %v6990_v61 = vcombine.low %v22226_v26, %v22235_v20  ;;  %v7006_v16 = vcombine.low %v22241_v47, %v22247_v54  ;;  %v6414_v27 = vcombine.low %v24543_v59, %v24542_v56  ;;  %v6955_v4 = vcombine.high %v22256_v48, %v22259_v46 }
 0x49b   : > { %v18136_v35 = vpop.eup %18135  ;;  %11069 = vst.msk [vmem:[%s21693_s24 + $0x50] sm:$0xff] %vm7570_vm1, %v11005_v57  ;;  %17366 = vmatprep.mubr.msk.f32.mxu1 %vm7570_vm1, %v11005_v57  ;;  %v22297_v5 = vrot.slane %v6378_v53, %v24453_v43  ;;  %v6415_v10 = vcombine.high %v24543_v59, %v24542_v56  ;;  %v6430_v58 = vcombine.low %v24545_v28, %v24544_v51 }
 0x49c   : > { %v18138_v7 = vpop.eup %18137  ;;  %17367 = vmatmul.mubr.msk.f32.vlgmr.msra.gmra.mrb[54].mxu1 %vm7570_vm1, %v11006_v33  ;;  %v22305_v13 = vmul.f32 %v18136_v35, %v24546_v60  ;;  %v22308_v57 = vrot.slane %v6379_v44, %v24453_v43  ;;  %v22311_v15 = vrot.slane %v6394_v14, %v24453_v43  ;;  %v22314_v53 = vrot.slane %v6395_v63, %v24453_v43  ;;  %v10843_v56 = vpop.xlane.xlu0 %10842 }
 0x49d   : > { %17830 = vmatpush3.bf16.msra.mxu1 %v24526_v25  ;;  %v11008_v59 = vmul.f32 %v18138_v7, %v21404_v41  ;;  %v6431_v33 = vcombine.high %v24545_v28, %v24544_v51  ;;  %18143 = vrcp.f32 %v10843_v56  ;;  %v22322_v44 = vrot.slane %v6990_v61, %v24453_v43  ;;  %v24553_v28 = vld [vmem:[#allocation69_spill] sm:$0xff] }
 0x49e   : > { %24547 = vst [vmem:[#allocation19_spill] sm:$0xff] %v22311_v15  ;;  %24548 = vst [vmem:[#allocation38_spill] sm:$0xff] %v22314_v53  ;;  %17836 = vmatprep.subr.bf16.mxu1 %v22125_v31  ;;  %v22325_v14 = vrot.slane %v7006_v16, %v24453_v43  ;;  %v6923_v63 = vcombine.high %v22167_v23, %v22175_v38  ;;  %v6939_v61 = vcombine.high %v22181_v42, %v22187_v8  ;;  %v24549_v42 = vld [vmem:[#allocation77_spill] sm:$0xff] }
 0x49f   : > { %11089 = vst.msk [vmem:[%s21693_s24 + $0xf0] sm:$0xff] %vm7570_vm1, %v22305_v13  ;;  %11072 = vst.msk [vmem:[%s21693_s24 + $0x68] sm:$0xff] %vm7570_vm1, %v11008_v59  ;;  %v18140_v16 = vpop.eup %18139  ;;  %v6422_v35 = vrot.slane %v6414_v27, %v24441_v17  ;;  %v6429_v60 = vrot.slane %v6415_v10, %v24441_v17  ;;  %v6438_v7 = vrot.slane %v6430_v58, %v24441_v17 }
 0x4a0   : > { %v6954_v51 = vcombine.low %v22256_v48, %v22259_v46  ;;  %v22352_v8 = vmul.f32 %v18140_v16, %v24549_v42  ;;  %v10786_v27 = vpop.xlane.xlu0 %10785  ;;  %v6445_v58 = vrot.slane %v6431_v33, %v24441_v17  ;;  %v7023_v48 = vcombine.high %v22322_v44, %v22325_v14 }
 0x4a1   : > { %18145 = vrcp.f32 %v10786_v27  ;;  %v22363_v46 = vrot.slane %v6923_v63, %v24453_v43  ;;  %v22366_v56 = vrot.slane %v6939_v61, %v24453_v43  ;;  %v6991_v16 = vcombine.high %v22226_v26, %v22235_v20 }
 0x4a2   : > { %11094 = vst.msk [vmem:[%s21693_s24 + $0x118] sm:$0xff] %vm7570_vm1, %v22352_v8  ;;  %v7007_v42 = vcombine.high %v22241_v47, %v22247_v54  ;;  %v6446_v27 = vcombine.low %v6422_v35, %v6438_v7  ;;  %v24550_v38 = vcombine.low %v21857_v29, %v21860_v0  ;;  %v24551_v63 = vcombine.low %v21909_v45, %v21912_v55 }
 0x4a3   : > { %v18142_v33 = vpop.eup %18141  ;;  %v24552_v26 = vcombine.high %v21909_v45, %v21912_v55  ;;  %v24554_v41 = vcombine.low %v21929_v19, %v24553_v28  ;;  %v24555_v25 = vcombine.high %v21929_v19, %v24553_v28  ;;  %v6462_v15 = vcombine.low %v6429_v60, %v6445_v58 }
 0x4a4   : > { %v10783_v10 = vpop.xlane.xlu1 %10782  ;;  %v22376_v23 = vrot.slane %v24550_v38, %v24441_v17  ;;  %v7101_v61 = vrot.slane %v24551_v63, %v24441_v17  ;;  %v10858_v47 = vpop.xlane.xlu0 %10857  ;;  %v11007_v54 = vmul.f32 %v18142_v33, %v21422_v39  ;;  %v6447_v63 = vcombine.high %v6422_v35, %v6438_v7 }
 0x4a5   : > { %v7109_v20 = vrot.slane %v24552_v26, %v24441_v17  ;;  %18147 = vrcp.f32 %v10783_v10  ;;  %v7117_v38 = vrot.slane %v24554_v41, %v24441_v17  ;;  %v7125_v53 = vrot.slane %v24555_v25, %v24441_v17 }
 0x4a6   : > { %18149 = vrcp.f32 %v10858_v47  ;;  %v24556_v45 = vcombine.high %v21857_v29, %v21860_v0  ;;  %v6463_v10 = vcombine.high %v6429_v60, %v6445_v58  ;;  %11071 = vst.msk [vmem:[%s21693_s24 + $0x60] sm:$0xff] %vm7570_vm1, %v11007_v54  ;;  %17373 = vmatprep.mubr.msk.f32.mxu0 %vm7570_vm1, %v11007_v54  ;;  %v22402_v39 = vpack.c.bf16 %v7023_v48, %v6955_v4  ;;  %v24557_v4 = vld [vmem:[#allocation67_spill] sm:$0xff]  ;;  %v24558_v60 = vld [vmem:[#allocation5_spill] sm:$0xff] }
 0x4a7   : > { %v22405_v41 = vrot.slane %v6991_v16, %v24453_v43  ;;  %v22408_v19 = vrot.slane %v7007_v42, %v24453_v43  ;;  %v18144_v25 = vpop.eup %18143  ;;  %17374 = vmatmul.mubr.msk.f32.vlgmr.msra.gmra.mrb[52].mxu0 %vm7570_vm1, %v11008_v59  ;;  %v7022_v29 = vcombine.low %v22322_v44, %v22325_v14  ;;  %v24559_v7 = vcombine.low %v24557_v4, %v24558_v60  ;;  %v24561_v42 = vld [vmem:[#allocation78_spill] sm:$0xff] }
 0x4a8   : > { %v7041_v55 = vrot.slane %v24556_v45, %v24441_v17  ;;  %v10855_v35 = vpop.xlane.xlu1 %10854  ;;  %v24560_v58 = vcombine.high %v24557_v4, %v24558_v60  ;;  %17834 = vmatpush3.bf16.msra.mxu0 %v22104_v34  ;;  %v7126_v59 = vcombine.low %v7101_v61, %v7109_v20  ;;  %v7142_v16 = vcombine.low %v7117_v38, %v7125_v53 }
 0x4a9   : > { %v7049_v28 = vrot.slane %v24559_v7, %v24441_v17  ;;  %18151 = vrcp.f32 %v10855_v35  ;;  %v22425_v33 = vmul.f32 %v18144_v25, %v24561_v42  ;;  %v22428_v44 = vrot.slane %v6446_v27, %v24453_v43  ;;  %17840 = vmatprep.subr.bf16.mxu0 %v22270_v2 }
 0x4aa   : > { %v7057_v48 = vrot.slane %v24560_v58, %v24441_v17  ;;  %v22431_v14 = vrot.slane %v6447_v63, %v24453_v43  ;;  %v22434_v26 = vrot.slane %v6462_v15, %v24453_v43  ;;  %v7058_v47 = vcombine.low %v22376_v23, %v7041_v55 }
 0x4ab   : > { %v22439_v34 = vrot.slane %v6463_v10, %v24453_v43  ;;  %v7025_v54 = vcombine.high %v22405_v41, %v22408_v19  ;;  %11093 = vst.msk [vmem:[%s21693_s24 + $0x110] sm:$0xff] %vm7570_vm1, %v22425_v33  ;;  %v7127_v27 = vcombine.high %v7101_v61, %v7109_v20  ;;  %v7143_v45 = vcombine.high %v7117_v38, %v7125_v53  ;;  %v18146_v63 = vpop.eup %18145  ;;  %v24562_v10 = vld [vmem:[#allocation79_spill] sm:$0xff] }
 0x4ac   : > { %v10792_v25 = vpop.xlane.xlu1 %10791  ;;  %v10870_v15 = vpop.xlane.xlu0 %10869  ;;  %v22446_v35 = vpack.c.bf16 %v7022_v29, %v6954_v51  ;;  %v7074_v4 = vcombine.low %v7049_v28, %v7057_v48  ;;  %v7059_v60 = vcombine.high %v22376_v23, %v7041_v55  ;;  %v7075_v7 = vcombine.high %v7049_v28, %v7057_v48  ;;  %v24563_v51 = vld [vmem:[#allocation72_spill] sm:$0xff] }
 0x4ad   : > { %v11010_v58 = vmul.f32 %v18146_v63, %v24562_v10  ;;  %18153 = vrcp.f32 %v10792_v25  ;;  %v22451_v42 = vrot.slane %v7126_v59, %v24453_v43  ;;  %v22454_v0 = vrot.slane %v7142_v16, %v24453_v43  ;;  %v24568_v25 = vld [vmem:[#allocation81_spill] sm:$0xff] }
 0x4ae   : > { %18155 = vrcp.f32 %v10870_v15  ;;  %v22457_v53 = vrot.slane %v7058_v47, %v24453_v43  ;;  %v24564_v61 = vcombine.low %v21975_v40, %v24563_v51  ;;  %v24565_v23 = vcombine.high %v21975_v40, %v24563_v51 }
 0x4af   : > { %v18148_v55 = vpop.eup %18147  ;;  %11074 = vst.msk [vmem:[%s21693_s24 + $0x78] sm:$0xff] %vm7570_vm1, %v11010_v58  ;;  %v22474_v29 = vrot.slane %v7127_v27, %v24453_v43  ;;  %v22477_v28 = vrot.slane %v7143_v45, %v24453_v43  ;;  %v24566_v48 = vcombine.low %v21995_v37, %v21998_v30  ;;  %v24567_v40 = vcombine.high %v21995_v37, %v21998_v30 }
 0x4b0   : > { %v22463_v20 = vrot.slane %v24564_v61, %v24441_v17  ;;  %v22469_v38 = vrot.slane %v24565_v23, %v24441_v17  ;;  %v18150_v47 = vpop.eup %18149  ;;  %v10789_v63 = vpop.xlane.xlu1 %10788  ;;  %v11009_v15 = vmul.f32 %v18148_v55, %v24568_v25  ;;  %v22493_v45 = vrot.slane %v7074_v4, %v24453_v43  ;;  %v24571_v61 = vld [vmem:[#allocation80_spill] sm:$0xff]  ;;  %v24576_v25 = vld [vmem:[#allocation71_spill] sm:$0xff] }
 0x4b1   : > { %v22483_v59 = vrot.slane %v24566_v48, %v24441_v17  ;;  %v22489_v16 = vrot.slane %v24567_v40, %v24441_v17  ;;  %v10867_v27 = vpop.xlane.xlu0 %10866  ;;  %v22496_v10 = vrot.slane %v7059_v60, %v24453_v43  ;;  %v22499_v51 = vrot.slane %v7075_v7, %v24453_v43 }
 0x4b2   : > { %v22502_v23 = vmul.f32 %v18150_v47, %v24571_v61  ;;  %18157 = vrcp.f32 %v10789_v63  ;;  %v7159_v37 = vcombine.high %v22451_v42, %v22454_v0  ;;  %v24572_v30 = vcombine.low %v22053_v12, %v22056_v11  ;;  %11073 = vst.msk [vmem:[%s21693_s24 + $0x70] sm:$0xff] %vm7570_vm1, %v11009_v15  ;;  %17380 = vmatprep.mubr.msk.f32.mxu1 %vm7570_vm1, %v11009_v15  ;;  %v24577_v61 = vld [vmem:[#allocation82_spill] sm:$0xff] }
 0x4b3   : > { %24569 = vst [vmem:[#allocation10_spill] sm:$0xff] %v22496_v10  ;;  %24570 = vst [vmem:[#allocation74_spill] sm:$0xff] %v22499_v51  ;;  %18159 = vrcp.f32 %v10867_v27  ;;  %v24573_v4 = vcombine.high %v22053_v12, %v22056_v11  ;;  %v24574_v7 = vcombine.low %v22060_v18, %v22063_v32  ;;  %v24575_v40 = vcombine.high %v22060_v18, %v22063_v32  ;;  %v18152_v63 = vpop.eup %18151  ;;  %v24580_v27 = vld [vmem:[#allocation83_spill] sm:$0xff] }
 0x4b4   : > { %v22510_v55 = vrot.slane %v24572_v30, %v24441_v17  ;;  %11098 = vst.msk [vmem:[%s21693_s24 + $0x138] sm:$0xff] %vm7570_vm1, %v22502_v23  ;;  %17381 = vmatmul.mubr.msk.f32.vlgmr.msra.gmra.mrb[56].mxu1 %vm7570_vm1, %v11010_v58  ;;  %v7161_v12 = vcombine.high %v22474_v29, %v22477_v28  ;;  %v7194_v11 = vcombine.low %v22463_v20, %v22469_v38 }
 0x4b5   : > { %v22519_v60 = vrot.slane %v24573_v4, %v24441_v17  ;;  %v22525_v48 = vrot.slane %v24574_v7, %v24441_v17  ;;  %v22531_v47 = vrot.slane %v24575_v40, %v24441_v17  ;;  %v7210_v18 = vcombine.low %v22483_v59, %v22489_v16  ;;  %17838 = vmatpush3.bf16.msra.mxu1 %v22125_v31  ;;  %v10804_v15 = vpop.xlane.xlu0 %10803  ;;  %v24579_v7 = vld [vmem:[#allocation17_spill] sm:$0xff] }
 0x4b6   : > { %17394 = vmatprep.mubr.msk.f32.mxu1 %vm7570_vm1, %v24576_v25  ;;  %v7091_v58 = vcombine.high %v22457_v53, %v22493_v45  ;;  %v22553_v30 = vmul.f32 %v18152_v63, %v24577_v61  ;;  %17844 = vmatprep.subr.bf16.mxu1 %v22275_v52  ;;  %18161 = vrcp.f32 %v10804_v15  ;;  %v7093_v31 = vcombine.high %v22496_v10, %v22499_v51 }
 0x4b7   : > { %v24578_v40 = vcombine.high %v22363_v46, %v22366_v56  ;;  %v7262_v63 = vcombine.low %v22510_v55, %v22519_v60  ;;  %v7278_v61 = vcombine.low %v22525_v48, %v22531_v47  ;;  %v18154_v15 = vpop.eup %18153 }
 0x4b8   : > { %v22567_v32 = vpack.c.bf16 %v7159_v37, %v7091_v58  ;;  %11097 = vst.msk [vmem:[%s21693_s24 + $0x130] sm:$0xff] %vm7570_vm1, %v22553_v30  ;;  %17395 = vmatmul.mubr.msk.f32.vlgmr.msra.gmra.mrb[58].mxu1 %vm7570_vm1, %v24579_v7  ;;  %v22578_v4 = vpack.c.bf16 %v7161_v12, %v7093_v31  ;;  %v22584_v37 = vrot.slane %v7210_v18, %v24453_v43  ;;  %v10879_v51 = vpop.xlane.xlu1 %10878  ;;  %v24581_v7 = vld [vmem:[#allocation84_spill] sm:$0xff] }
 0x4b9   : > { %v22565_v25 = vpack.c.bf16 %v7025_v54, %v24578_v40  ;;  %v22581_v54 = vrot.slane %v7194_v11, %v24453_v43  ;;  %v7024_v58 = vcombine.low %v22405_v41, %v22408_v19  ;;  %v18156_v40 = vpop.eup %18155  ;;  %v11012_v10 = vmul.f32 %v18154_v15, %v24580_v27  ;;  %17846 = vmatpush3.bf16.msra.mxu1 %v22275_v52  ;;  %v10882_v12 = vpop.xlane.xlu0 %10881 }
 0x4ba   : > { %17408 = vmatprep.mubr.msk.f32.mxu1 %vm7570_vm1, %v22076_v36  ;;  %v7195_v11 = vcombine.high %v22463_v20, %v22469_v38  ;;  %v7211_v18 = vcombine.high %v22483_v59, %v22489_v16  ;;  %v22597_v31 = vmul.f32 %v18156_v40, %v24581_v7  ;;  %18163 = vrcp.f32 %v10879_v51  ;;  %17852 = vmatprep.subr.bf16.mxu1 %v22402_v39 }
 0x4bb   : > { %v6956_v52 = vcombine.low %v22363_v46, %v22366_v56  ;;  %v7263_v41 = vcombine.high %v22510_v55, %v22519_v60  ;;  %11076 = vst.msk [vmem:[%s21693_s24 + $0x88] sm:$0xff] %vm7570_vm1, %v11012_v10  ;;  %18165 = vrcp.f32 %v10882_v12  ;;  %v22607_v36 = vrot.slane %v7262_v63, %v24453_v43  ;;  %v24582_v46 = vld [vmem:[#allocation73_spill] sm:$0xff] }
 0x4bc   : > { %v22610_v19 = vrot.slane %v7278_v61, %v24453_v43  ;;  %v7279_v20 = vcombine.high %v22525_v48, %v22531_v47  ;;  %v18158_v38 = vpop.eup %18157  ;;  %11102 = vst.msk [vmem:[%s21693_s24 + $0x158] sm:$0xff] %vm7570_vm1, %v22597_v31  ;;  %17409 = vmatmul.mubr.msk.f32.vlgmr.msra.gmra.mrb[60].mxu1 %vm7570_vm1, %v24582_v46  ;;  %v7227_v56 = vcombine.high %v22581_v54, %v22584_v37  ;;  %v10816_v47 = vpop.xlane.xlu1 %10815  ;;  %v24585_v63 = vld [vmem:[#allocation85_spill] sm:$0xff] }
 0x4bd   : > { %v22621_v59 = vpack.c.bf16 %v7024_v58, %v6956_v52  ;;  %v24583_v16 = vcombine.low %v22117_v6, %v22120_v9  ;;  %v24584_v55 = vcombine.high %v22117_v6, %v22120_v9  ;;  %v18160_v48 = vpop.eup %18159  ;;  %17854 = vmatpush3.bf16.msra.mxu1 %v22402_v39  ;;  %17422 = vmatprep.mubr.msk.f32.mxu1 %vm7570_vm1, %v22154_v21  ;;  %v10801_v27 = vpop.xlane.xlu0 %10800  ;;  %18167 = vrcp.f32 %v10816_v47  ;;  %v24586_v6 = vld [vmem:[#allocation86_spill] sm:$0xff] }
 0x4be   : > { %v11011_v61 = vmul.f32 %v18158_v38, %v24585_v63  ;;  %v22640_v15 = vrot.slane %v7195_v11, %v24453_v43  ;;  %v22643_v58 = vrot.slane %v7211_v18, %v24453_v43  ;;  %17860 = vmatprep.subr.bf16.mxu1 %v22565_v25  ;;  %v22647_v9 = vmul.f32 %v18160_v48, %v24586_v6  ;;  %v24594_v63 = vld [vmem:[#allocation36_spill] sm:$0xff] }
 0x4bf   : > { %v22627_v51 = vrot.slane %v24583_v16, %v24441_v17  ;;  %v22633_v60 = vrot.slane %v24584_v55, %v24441_v17  ;;  %v24587_v21 = vcombine.low %v22140_v24, %v22143_v1  ;;  %v24588_v40 = vcombine.high %v22140_v24, %v22143_v1 }
 0x4c0   : > { %18169 = vrcp.f32 %v10801_v27  ;;  %11075 = vst.msk [vmem:[%s21693_s24 + $0x80] sm:$0xff] %vm7570_vm1, %v11011_v61  ;;  %17387 = vmatprep.mubr.msk.f32.mxu0 %vm7570_vm1, %v11011_v61  ;;  %v7295_v11 = vcombine.high %v22607_v36, %v22610_v19  ;;  %v22663_v18 = vrot.slane %v7263_v41, %v24453_v43  ;;  %v22666_v7 = vrot.slane %v7279_v20, %v24453_v43  ;;  %v18162_v52 = vpop.eup %18161  ;;  %v10813_v46 = vpop.xlane.xlu1 %10812 }
 0x4c1   : > { %v7321_v39 = vrot.slane %v24587_v21, %v24441_v17  ;;  %v7329_v12 = vrot.slane %v24588_v40, %v24441_v17  ;;  %17388 = vmatmul.mubr.msk.f32.vlgmr.msra.gmra.mrb[54].mxu0 %vm7570_vm1, %v11012_v10  ;;  %17423 = vmatmul.mubr.msk.f32.vlgmr.msra.gmra.mrb[62].mxu1 %vm7570_vm1, %v22114_v3  ;;  %11101 = vst.msk [vmem:[%s21693_s24 + $0x150] sm:$0xff] %vm7570_vm1, %v22647_v9  ;;  %v24591_v3 = vld [vmem:[#allocation87_spill] sm:$0xff]  ;;  %v10894_v16 = vpop.xlane.xlu0 %10893  ;;  %18171 = vrcp.f32 %v10813_v46  ;;  %v24596_v40 = vld [vmem:[#allocation88_spill] sm:$0xff] }
 0x4c2   : > { %v7330_v24 = vcombine.low %v22627_v51, %v22633_v60  ;;  %v24589_v1 = vcombine.low %v22250_v62, %v22253_v49  ;;  %v24590_v10 = vcombine.high %v22250_v62, %v22253_v49  ;;  %v22689_v38 = vmul.f32 %v18162_v52, %v24591_v3  ;;  %17842 = vmatpush3.bf16.msra.mxu0 %v22270_v2 }
 0x4c3   : > { %17862 = vmatpush3.bf16.msra.mxu1 %v22565_v25  ;;  %v24592_v55 = vcombine.low %v22265_v22, %v22279_v50  ;;  %v24593_v62 = vcombine.high %v22265_v22, %v22279_v50  ;;  %17848 = vmatprep.subr.bf16.mxu0 %v22446_v35  ;;  %v7229_v2 = vcombine.high %v22640_v15, %v22643_v58  ;;  %18173 = vrcp.f32 %v10894_v16 }
 0x4c4   : > { %v22680_v41 = vrot.slane %v24589_v1, %v24441_v17  ;;  %v22686_v20 = vrot.slane %v24590_v10, %v24441_v17  ;;  %17436 = vmatprep.mubr.msk.f32.mxu1 %vm7570_vm1, %v22305_v13  ;;  %v7090_v25 = vcombine.low %v22457_v53, %v22493_v45  ;;  %v7346_v47 = vcombine.low %v7321_v39, %v7329_v12  ;;  %v18164_v27 = vpop.eup %18163 }
 0x4c5   : > { %v7389_v48 = vrot.slane %v24592_v55, %v24441_v17  ;;  %v7397_v49 = vrot.slane %v24593_v62, %v24441_v17  ;;  %11080 = vst.msk [vmem:[%s21693_s24 + $0xa8] sm:$0xff] %vm7570_vm1, %v22689_v38  ;;  %17868 = vmatprep.subr.bf16.mxu1 %v22567_v32  ;;  %v7297_v22 = vcombine.high %v22663_v18, %v22666_v7  ;;  %v18166_v21 = vpop.eup %18165 }
 0x4c6   : > { %v7158_v50 = vcombine.low %v22451_v42, %v22454_v0  ;;  %v7331_v13 = vcombine.high %v22627_v51, %v22633_v60  ;;  %17437 = vmatmul.mubr.msk.f32.vlgmr.msra.gmra.mrb[64].mxu1 %vm7570_vm1, %v24594_v63  ;;  %v17883_v53 = vpack.c.bf16 %v7295_v11, %v7227_v56  ;;  %v22721_v45 = vrot.slane %v7330_v24, %v24453_v43  ;;  %v10891_v0 = vpop.xlane.xlu0 %10890  ;;  %v24595_v42 = vld [vmem:[#allocation89_spill] sm:$0xff] }
 0x4c7   : > { %v7398_v61 = vcombine.low %v22680_v41, %v22686_v20  ;;  %v7347_v6 = vcombine.high %v7321_v39, %v7329_v12  ;;  %17870 = vmatpush3.bf16.msra.mxu1 %v22567_v32  ;;  %17450 = vmatprep.mubr.msk.f32.mxu1 %vm7570_vm1, %v22425_v33  ;;  %v22729_v51 = vmul.f32 %v18164_v27, %v24595_v42  ;;  %18175 = vrcp.f32 %v10891_v0  ;;  %v24604_v27 = vld [vmem:[#allocation90_spill] sm:$0xff] }
 0x4c8   : > { %v7414_v56 = vcombine.low %v7389_v48, %v7397_v49  ;;  %v7399_v60 = vcombine.high %v22680_v41, %v22686_v20  ;;  %v22734_v11 = vmul.f32 %v18166_v21, %v24596_v40  ;;  %17876 = vmatprep.subr.bf16.mxu1 %v22578_v4  ;;  %v22738_v32 = vrot.slane %v7346_v47, %v24453_v43  ;;  %v18168_v20 = vpop.eup %18167  ;;  %v10903_v47 = vpop.xlane.xlu1 %10902 }
 0x4c9   : > { %v24597_v33 = vcombine.low %v22297_v5, %v22308_v57  ;;  %11105 = vst.msk [vmem:[%s21693_s24 + $0x170] sm:$0xff] %vm7570_vm1, %v22729_v51  ;;  %v22750_v12 = vrot.slane %v7331_v13, %v24453_v43  ;;  %v7415_v52 = vcombine.high %v7389_v48, %v7397_v49  ;;  %v24598_v24 = vcombine.low %v22428_v44, %v22431_v14  ;;  %v24602_v48 = vld [vmem:[#allocation91_spill] sm:$0xff] }
 0x4ca   : > { %v24599_v41 = vcombine.high %v22428_v44, %v22431_v14  ;;  %11106 = vst.msk [vmem:[%s21693_s24 + $0x178] sm:$0xff] %vm7570_vm1, %v22734_v11  ;;  %17451 = vmatmul.mubr.msk.f32.vlgmr.msra.gmra.mrb[66].mxu1 %vm7570_vm1, %v22352_v8  ;;  %v22770_v3 = vrot.slane %v7398_v61, %v24453_v43  ;;  %v22773_v46 = vrot.slane %v7347_v6, %v24453_v43  ;;  %v18170_v8 = vpop.eup %18169  ;;  %v10828_v49 = vpop.xlane.xlu0 %10827  ;;  %v24606_v61 = vld [vmem:[#allocation38_spill] sm:$0xff] }
 0x4cb   : > { %v22744_v39 = vrot.slane %v24597_v33, %v24441_v17  ;;  %v22756_v1 = vrot.slane %v24598_v24, %v24441_v17  ;;  %v24600_v16 = vcombine.low %v22434_v26, %v22439_v34  ;;  %v24601_v14 = vcombine.high %v22434_v26, %v22439_v34  ;;  %17878 = vmatpush3.bf16.msra.mxu1 %v22578_v4  ;;  %v24605_v4 = vld [vmem:[#allocation19_spill] sm:$0xff] }
 0x4cc   : > { %v22762_v10 = vrot.slane %v24599_v41, %v24441_v17  ;;  %v11020_v62 = vmul.f32 %v18168_v20, %v24602_v48  ;;  %17464 = vmatprep.mubr.msk.f32.mxu1 %vm7570_vm1, %v22553_v30  ;;  %v22792_v13 = vrot.slane %v7414_v56, %v24453_v43  ;;  %v24603_v26 = vcombine.high %v22297_v5, %v22308_v57  ;;  %v18172_v56 = vpop.eup %18171  ;;  %v24609_v41 = vld [vmem:[#allocation93_spill] sm:$0xff] }
 0x4cd   : > { %v22779_v44 = vrot.slane %v24600_v16, %v24441_v17  ;;  %v22785_v55 = vrot.slane %v24601_v14, %v24441_v17  ;;  %17884 = vmatprep.subr.bf16.mxu1 %v17883_v53  ;;  %18177 = vrcp.f32 %v10828_v49  ;;  %v11015_v63 = vmul.f32 %v18170_v8, %v24604_v27  ;;  %v18174_v24 = vpop.eup %18173  ;;  %v10840_v16 = vpop.xlane.xlu1 %10839 }
 0x4ce   : > { %v22798_v34 = vrot.slane %v24603_v26, %v24441_v17  ;;  %v24607_v30 = vcombine.low %v24605_v4, %v24606_v61  ;;  %v24608_v21 = vcombine.high %v24605_v4, %v24606_v61  ;;  %11084 = vst.msk [vmem:[%s21693_s24 + $0xc8] sm:$0xff] %vm7570_vm1, %v11020_v62  ;;  %18179 = vrcp.f32 %v10903_v47  ;;  %17465 = vmatmul.mubr.msk.f32.vlgmr.msra.gmra.mrb[68].mxu1 %vm7570_vm1, %v22502_v23  ;;  %v24612_v61 = vld [vmem:[#allocation95_spill] sm:$0xff] }
 0x4cf   : > { %v22816_v5 = vrot.slane %v7399_v60, %v24453_v43  ;;  %v22819_v57 = vrot.slane %v7415_v52, %v24453_v43  ;;  %v7534_v42 = vcombine.low %v22756_v1, %v22762_v10  ;;  %11079 = vst.msk [vmem:[%s21693_s24 + $0xa0] sm:$0xff] %vm7570_vm1, %v11015_v63  ;;  %17401 = vmatprep.mubr.msk.f32.mxu0 %vm7570_vm1, %v11015_v63  ;;  %v10906_v52 = vpop.xlane.xlu0 %10905  ;;  %v24611_v63 = vld [vmem:[#allocation94_spill] sm:$0xff] }
 0x4d0   : > { %v22805_v6 = vrot.slane %v24607_v30, %v24441_v17  ;;  %v22811_v0 = vrot.slane %v24608_v21, %v24441_v17  ;;  %v17891_v40 = vpack.c.bf16 %v7297_v22, %v7229_v2  ;;  %v22828_v33 = vpack.c.bf16 %v7158_v50, %v7090_v25  ;;  %17402 = vmatmul.mubr.msk.f32.vlgmr.msra.gmra.mrb[56].mxu0 %vm7570_vm1, %v22689_v38  ;;  %v24610_v2 = vld [vmem:[#allocation92_spill] sm:$0xff] }
 0x4d1   : > { %v7550_v60 = vcombine.low %v22779_v44, %v22785_v55  ;;  %17886 = vmatpush3.bf16.msra.mxu1 %v17883_v53  ;;  %v11019_v20 = vmul.f32 %v18172_v56, %v24609_v41  ;;  %v7363_v14 = vcombine.high %v22721_v45, %v22738_v32  ;;  %v7431_v23 = vcombine.high %v22770_v3, %v22792_v13  ;;  %v18176_v53 = vpop.eup %18175  ;;  %v10837_v27 = vpop.xlane.xlu1 %10836 }
 0x4d2   : > { %v11046_v25 = vmul.f32 %v18174_v24, %v24610_v2  ;;  %17850 = vmatpush3.bf16.msra.mxu0 %v22446_v35  ;;  %17478 = vmatprep.mubr.msk.f32.mxu1 %vm7570_vm1, %v22647_v9  ;;  %18181 = vrcp.f32 %v10906_v52  ;;  %v7466_v38 = vcombine.low %v22744_v39, %v22798_v34  ;;  %v7482_v22 = vcombine.low %v22805_v6, %v22811_v0 }
 0x4d3   : > { %17856 = vmatprep.subr.bf16.mxu0 %v22621_v59  ;;  %17892 = vmatprep.subr.bf16.mxu1 %v17891_v40  ;;  %11083 = vst.msk [vmem:[%s21693_s24 + $0xc0] sm:$0xff] %vm7570_vm1, %v11019_v20  ;;  %18183 = vrcp.f32 %v10840_v16  ;;  %v7365_v50 = vcombine.high %v22750_v12, %v22773_v46  ;;  %v7433_v35 = vcombine.high %v22816_v5, %v22819_v57  ;;  %v10825_v26 = vpop.xlane.xlu0 %10824 }
 0x4d4   : > { %v22855_v9 = vrot.slane %v7534_v42, %v24453_v43  ;;  %11110 = vst.msk [vmem:[%s21693_s24 + $0x198] sm:$0xff] %vm7570_vm1, %v11046_v25  ;;  %17415 = vmatprep.mubr.msk.f32.mxu0 %vm7570_vm1, %v11019_v20  ;;  %17479 = vmatmul.mubr.msk.f32.vlgmr.msra.gmra.mrb[70].mxu1 %vm7570_vm1, %v22597_v31  ;;  %v22863_v8 = vrot.slane %v7550_v60, %v24453_v43  ;;  %18185 = vrcp.f32 %v10825_v26  ;;  %v24614_v20 = vld [vmem:[#allocation46_spill] sm:$0xff] }
 0x4d5   : > { %v7535_v48 = vcombine.high %v22756_v1, %v22762_v10  ;;  %v7551_v49 = vcombine.high %v22779_v44, %v22785_v55  ;;  %17416 = vmatmul.mubr.msk.f32.vlgmr.msra.gmra.mrb[58].mxu0 %vm7570_vm1, %v11020_v62  ;;  %17894 = vmatpush3.bf16.msra.mxu1 %v17891_v40  ;;  %v17899_v47 = vpack.c.bf16 %v7431_v23, %v7363_v14  ;;  %18187 = vrcp.f32 %v10837_v27  ;;  %v24615_v23 = vld [vmem:[#allocation55_spill] sm:$0xff]  ;;  %v24617_v26 = vld [vmem:[#allocation74_spill] sm:$0xff] }
 0x4d6   : > { %v11045_v4 = vmul.f32 %v18176_v53, %v24611_v63  ;;  %v7467_v31 = vcombine.high %v22744_v39, %v22798_v34  ;;  %17858 = vmatpush3.bf16.msra.mxu0 %v22621_v59  ;;  %17492 = vmatprep.mubr.msk.f32.mxu1 %vm7570_vm1, %v22729_v51  ;;  %v22877_v1 = vrot.slane %v7466_v38, %v24453_v43  ;;  %v24618_v27 = vld [vmem:[#allocation10_spill] sm:$0xff] }
 0x4d7   : > { %v22880_v10 = vrot.slane %v7482_v22, %v24453_v43  ;;  %v7483_v44 = vcombine.high %v22805_v6, %v22811_v0  ;;  %17864 = vmatprep.subr.bf16.mxu0 %v22828_v33  ;;  %17900 = vmatprep.subr.bf16.mxu1 %v17899_v47  ;;  %v18178_v59 = vpop.eup %18177  ;;  %v17907_v51 = vpack.c.bf16 %v7433_v35, %v7365_v50  ;;  %v10864_v6 = vpop.xlane.xlu1 %10863  ;;  %v24613_v0 = vld [vmem:[#allocation96_spill] sm:$0xff] }
 0x4d8   : > { %11109 = vst.msk [vmem:[%s21693_s24 + $0x190] sm:$0xff] %vm7570_vm1, %v11045_v4  ;;  %17493 = vmatmul.mubr.msk.f32.vlgmr.msra.gmra.mrb[72].mxu1 %vm7570_vm1, %v22734_v11  ;;  %v7567_v39 = vcombine.high %v22855_v9, %v22863_v8  ;;  %v22892_v55 = vrot.slane %v7535_v48, %v24453_v43  ;;  %v22895_v62 = vrot.slane %v7551_v49, %v24453_v43  ;;  %v18180_v34 = vpop.eup %18179  ;;  %18189 = vrcp.f32 %v10864_v6  ;;  %v10918_v56 = vpop.xlane.xlu0 %10917  ;;  %v24616_v48 = vld [vmem:[#allocation56_spill] sm:$0xff]  ;;  %v24621_v6 = vld [vmem:[#allocation34_spill] sm:$0xff] }
 0x4d9   : > { %v11024_v30 = vmul.f32 %v18178_v59, %v24612_v61  ;;  %17902 = vmatpush3.bf16.msra.mxu1 %v17899_v47  ;;  %17506 = vmatprep.mubr.msk.f32.mxu1 %vm7570_vm1, %v11045_v4  ;;  %v22900_v11 = vrot.slane %v7467_v31, %v24453_v43  ;;  %v7499_v21 = vcombine.high %v22877_v1, %v22880_v10  ;;  %18191 = vrcp.f32 %v10918_v56  ;;  %v24619_v4 = vld [vmem:[#allocation9_spill] sm:$0xff]  ;;  %v24622_v56 = vld [vmem:[#allocation14_spill] sm:$0xff] }
 0x4da   : > { %17908 = vmatprep.subr.bf16.mxu1 %v17907_v51  ;;  %v11049_v42 = vmul.f32 %v18180_v34, %v24613_v0  ;;  %v22906_v40 = vrot.slane %v7483_v44, %v24453_v43  ;;  %v7569_v52 = vcombine.high %v22892_v55, %v22895_v62  ;;  %v7160_v35 = vcombine.low %v22474_v29, %v22477_v28 }
 0x4db   : > { %11088 = vst.msk [vmem:[%s21693_s24 + $0xe8] sm:$0xff] %vm7570_vm1, %v11024_v30  ;;  %v17915_v24 = vpack.c.bf16 %v7567_v39, %v7499_v21  ;;  %v10861_v14 = vpop.xlane.xlu1 %10860  ;;  %v7092_v63 = vcombine.low %v24618_v27, %v24617_v26  ;;  %v7294_v59 = vcombine.low %v22607_v36, %v22610_v19  ;;  %v24620_v39 = vld [vmem:[#allocation4_spill] sm:$0xff]  ;;  %v24627_v26 = vld [vmem:[#allocation2_spill] sm:$0xff]  ;;  %v7228_v27 = vcombine.low %v22640_v15, %v22643_v58 }
 0x4dc   : > { %v18182_v60 = vpop.eup %18181  ;;  %17507 = vmatmul.mubr.msk.f32.vlgmr.msra.gmra.mrb[74].mxu1 %vm7570_vm1, %v11046_v25  ;;  %11113 = vst.msk [vmem:[%s21693_s24 + $0x1b0] sm:$0xff] %vm7570_vm1, %v11049_v42  ;;  %18193 = vrcp.f32 %v10861_v14  ;;  %v7501_v25 = vcombine.high %v22900_v11, %v22906_v40  ;;  %v10915_v38 = vpop.xlane.xlu0 %10914 }
 0x4dd   : > { %v18184_v41 = vpop.eup %18183  ;;  %v11050_v16 = vmul.f32 %v18182_v60, %v24614_v20  ;;  %17910 = vmatpush3.bf16.msra.mxu1 %v17907_v51  ;;  %17520 = vmatprep.mubr.msk.f32.mxu1 %vm7570_vm1, %v11049_v42  ;;  %18195 = vrcp.f32 %v10915_v38  ;;  %v17871_v28 = vpack.c.bf16 %v7160_v35, %v7092_v63  ;;  %v24624_v20 = vld [vmem:[#allocation15_spill] sm:$0xff] }
 0x4de   : > { %v11028_v2 = vmul.f32 %v18184_v41, %v24615_v23  ;;  %17916 = vmatprep.subr.bf16.mxu1 %v17915_v24  ;;  %v18186_v22 = vpop.eup %18185  ;;  %v17923_v50 = vpack.c.bf16 %v7569_v52, %v7501_v25  ;;  %v24625_v23 = vld [vmem:[#allocation49_spill] sm:$0xff] }
 0x4df   : > { %11114 = vst.msk [vmem:[%s21693_s24 + $0x1b8] sm:$0xff] %vm7570_vm1, %v11050_v16  ;;  %v18188_v53 = vpop.eup %18187  ;;  %v11023_v49 = vmul.f32 %v18186_v22, %v24616_v48  ;;  %v10888_v47 = vpop.xlane.xlu1 %10887  ;;  %v24626_v48 = vld [vmem:[#allocation66_spill] sm:$0xff] }
 0x4e0   : > { %11092 = vst.msk [vmem:[%s21693_s24 + $0x108] sm:$0xff] %vm7570_vm1, %v11028_v2  ;;  %17521 = vmatmul.mubr.msk.f32.vlgmr.msra.gmra.mrb[76].mxu1 %vm7570_vm1, %v11050_v16  ;;  %18197 = vrcp.f32 %v10888_v47  ;;  %v11027_v31 = vmul.f32 %v18188_v53, %v24619_v4  ;;  %v10852_v44 = vpop.xlane.xlu0 %10851  ;;  %v7296_v53 = vcombine.low %v22663_v18, %v22666_v7  ;;  %v24628_v7 = vld [vmem:[#allocation16_spill] sm:$0xff] }
 0x4e1   : > { %17918 = vmatpush3.bf16.msra.mxu1 %v17915_v24  ;;  %11087 = vst.msk [vmem:[%s21693_s24 + $0xe0] sm:$0xff] %vm7570_vm1, %v11023_v49  ;;  %17429 = vmatprep.mubr.msk.f32.mxu0 %vm7570_vm1, %v11023_v49  ;;  %18199 = vrcp.f32 %v10852_v44  ;;  %v7430_v44 = vcombine.low %v22770_v3, %v22792_v13 }
 0x4e2   : > { %17924 = vmatprep.subr.bf16.mxu1 %v17923_v50  ;;  %v18190_v29 = vpop.eup %18189  ;;  %17430 = vmatmul.mubr.msk.f32.vlgmr.msra.gmra.mrb[60].mxu0 %vm7570_vm1, %v11024_v30  ;;  %11091 = vst.msk [vmem:[%s21693_s24 + $0x100] sm:$0xff] %vm7570_vm1, %v11027_v31  ;;  %v7226_v30 = vcombine.low %v22581_v54, %v22584_v37  ;;  %v24623_v37 = vld [vmem:[#allocation32_spill] sm:$0xff] }
 0x4e3   : > { %v18192_v51 = vpop.eup %18191  ;;  %v22940_v34 = vmul.f32 %v18190_v29, %v24620_v39  ;;  %17866 = vmatpush3.bf16.msra.mxu0 %v22828_v33  ;;  %17443 = vmatprep.mubr.msk.f32.mxu0 %vm7570_vm1, %v11027_v31  ;;  %v10885_v61 = vpop.xlane.xlu1 %10884  ;;  %v17887_v31 = vpack.c.bf16 %v7296_v53, %v7228_v27  ;;  %v24629_v29 = vld [vmem:[#allocation70_spill] sm:$0xff]  ;;  %v24630_v39 = vld [vmem:[#allocation35_spill] sm:$0xff] }
 0x4e4   : > { %v11054_v21 = vmul.f32 %v18192_v51, %v24621_v6  ;;  %17872 = vmatprep.subr.bf16.mxu0 %v17871_v28  ;;  %18201 = vrcp.f32 %v10885_v61  ;;  %v10849_v0 = vpop.xlane.xlu0 %10848  ;;  %v17879_v19 = vpack.c.bf16 %v7294_v59, %v7226_v30  ;;  %v7432_v51 = vcombine.low %v22816_v5, %v22819_v57  ;;  %v24632_v57 = vld [vmem:[#allocation43_spill] sm:$0xff] }
 0x4e5   : > { %11100 = vst.msk [vmem:[%s21693_s24 + $0x148] sm:$0xff] %vm7570_vm1, %v22940_v34  ;;  %18203 = vrcp.f32 %v10849_v0 }
 0x4e6   : > { %v18194_v36 = vpop.eup %18193  ;;  %11118 = vst.msk [vmem:[%s21693_s24 + $0x1d8] sm:$0xff] %vm7570_vm1, %v11054_v21  ;;  %17444 = vmatmul.mubr.msk.f32.vlgmr.msra.gmra.mrb[62].mxu0 %vm7570_vm1, %v11028_v2 }
 0x4e7   : > { %v18196_v33 = vpop.eup %18195  ;;  %17874 = vmatpush3.bf16.msra.mxu0 %v17871_v28  ;;  %v10912_v42 = vpop.xlane.xlu1 %10911  ;;  %v11035_v60 = vmul.f32 %v18194_v36, %v24622_v56  ;;  %v7362_v28 = vcombine.low %v22721_v45, %v22738_v32  ;;  %v7364_v45 = vcombine.low %v22750_v12, %v22773_v46  ;;  %v7566_v36 = vcombine.low %v22855_v9, %v22863_v8 }
 0x4e8   : > { %17880 = vmatprep.subr.bf16.mxu0 %v17879_v19  ;;  %18205 = vrcp.f32 %v10912_v42  ;;  %v10876_v54 = vpop.xlane.xlu0 %10875  ;;  %v11053_v24 = vmul.f32 %v18196_v33, %v24623_v37  ;;  %v7498_v46 = vcombine.low %v22877_v1, %v22880_v10  ;;  %v7568_v8 = vcombine.low %v22892_v55, %v22895_v62  ;;  %v24635_v62 = vld [vmem:[#allocation61_spill] sm:$0xff] }
 0x4e9   : > { %18207 = vrcp.f32 %v10876_v54  ;;  %11099 = vst.msk [vmem:[%s21693_s24 + $0x140] sm:$0xff] %vm7570_vm1, %v11035_v60  ;;  %v17895_v13 = vpack.c.bf16 %v7430_v44, %v7362_v28  ;;  %v17903_v0 = vpack.c.bf16 %v7432_v51, %v7364_v45  ;;  %v7500_v1 = vcombine.low %v22900_v11, %v22906_v40  ;;  %v24636_v11 = vld [vmem:[#allocation6_spill] sm:$0xff] }
 0x4ea   : > { %v18198_v52 = vpop.eup %18197  ;;  %11117 = vst.msk [vmem:[%s21693_s24 + $0x1d0] sm:$0xff] %vm7570_vm1, %v11053_v24  ;;  %17534 = vmatprep.mubr.msk.f32.mxu1 %vm7570_vm1, %v11053_v24  ;;  %v17911_v9 = vpack.c.bf16 %v7566_v36, %v7498_v46 }
 0x4eb   : > { %v18200_v41 = vpop.eup %18199  ;;  %v22961_v16 = vmul.f32 %v18198_v52, %v24624_v20  ;;  %v10909_v14 = vpop.xlane.xlu1 %10908  ;;  %17535 = vmatmul.mubr.msk.f32.vlgmr.msra.gmra.mrb[78].mxu1 %vm7570_vm1, %v11054_v21  ;;  %v24631_v21 = vld [vmem:[#allocation33_spill] sm:$0xff]  ;;  %v17919_v55 = vpack.c.bf16 %v7568_v8, %v7500_v1 }
 0x4ec   : > { %v11032_v2 = vmul.f32 %v18200_v41, %v24625_v23  ;;  %18209 = vrcp.f32 %v10909_v14  ;;  %17926 = vmatpush3.bf16.msra.mxu1 %v17923_v50  ;;  %v10873_v25 = vpop.xlane.xlu0 %10872  ;;  %v24637_v41 = vld [vmem:[#allocation37_spill] sm:$0xff] }
 0x4ed   : > { %11108 = vst.msk [vmem:[%s21693_s24 + $0x188] sm:$0xff] %vm7570_vm1, %v22961_v16  ;;  %18211 = vrcp.f32 %v10873_v25 }
 0x4ee   : > { %v18202_v38 = vpop.eup %18201  ;;  %11096 = vst.msk [vmem:[%s21693_s24 + $0x128] sm:$0xff] %vm7570_vm1, %v11032_v2 }
 0x4ef   : > { %v18204_v22 = vpop.eup %18203  ;;  %v10927_v35 = vpop.xlane.xlu1 %10926  ;;  %v11043_v49 = vmul.f32 %v18202_v38, %v24626_v48 }
 0x4f0   : > { %18213 = vrcp.f32 %v10927_v35  ;;  %v10900_v47 = vpop.xlane.xlu0 %10899  ;;  %v11031_v50 = vmul.f32 %v18204_v22, %v24627_v26 }
 0x4f1   : > { %18215 = vrcp.f32 %v10900_v47  ;;  %11107 = vst.msk [vmem:[%s21693_s24 + $0x180] sm:$0xff] %vm7570_vm1, %v11043_v49 }
 0x4f2   : > { %v18206_v63 = vpop.eup %18205  ;;  %11095 = vst.msk [vmem:[%s21693_s24 + $0x120] sm:$0xff] %vm7570_vm1, %v11031_v50  ;;  %17457 = vmatprep.mubr.msk.f32.mxu0 %vm7570_vm1, %v11031_v50 }
 0x4f3   : > { %v18208_v18 = vpop.eup %18207  ;;  %v22982_v4 = vmul.f32 %v18206_v63, %v24628_v7  ;;  %17458 = vmatmul.mubr.msk.f32.vlgmr.msra.gmra.mrb[64].mxu0 %vm7570_vm1, %v11032_v2 }
 0x4f4   : > { %v11040_v15 = vmul.f32 %v18208_v18, %v24629_v29  ;;  %17882 = vmatpush3.bf16.msra.mxu0 %v17879_v19  ;;  %17471 = vmatprep.mubr.msk.f32.mxu0 %vm7570_vm1, %v11035_v60  ;;  %v10897_v58 = vpop.xlane.xlu0 %10896  ;;  %v24633_v19 = vld [vmem:[#allocation60_spill] sm:$0xff]  ;;  %v24634_v60 = vld [vmem:[#allocation3_spill] sm:$0xff] }
 0x4f5   : > { %11116 = vst.msk [vmem:[%s21693_s24 + $0x1c8] sm:$0xff] %vm7570_vm1, %v22982_v4  ;;  %17888 = vmatprep.subr.bf16.mxu0 %v17887_v31  ;;  %18217 = vrcp.f32 %v10897_v58 }
 0x4f6   : > { %v18210_v59 = vpop.eup %18209  ;;  %11104 = vst.msk [vmem:[%s21693_s24 + $0x168] sm:$0xff] %vm7570_vm1, %v11040_v15 }
 0x4f7   : > { %v18212_v3 = vpop.eup %18211  ;;  %17472 = vmatmul.mubr.msk.f32.vlgmr.msra.gmra.mrb[66].mxu0 %vm7570_vm1, %v22940_v34  ;;  %v11051_v61 = vmul.f32 %v18210_v59, %v24630_v39 }
 0x4f8   : > { %17890 = vmatpush3.bf16.msra.mxu0 %v17887_v31  ;;  %v10924_v6 = vpop.xlane.xlu0 %10923  ;;  %v11039_v30 = vmul.f32 %v18212_v3, %v24631_v21 }
 0x4f9   : > { %17896 = vmatprep.subr.bf16.mxu0 %v17895_v13  ;;  %18219 = vrcp.f32 %v10924_v6  ;;  %11115 = vst.msk [vmem:[%s21693_s24 + $0x1c0] sm:$0xff] %vm7570_vm1, %v11051_v61 }
 0x4fa   : > { %v18214_v32 = vpop.eup %18213  ;;  %11103 = vst.msk [vmem:[%s21693_s24 + $0x160] sm:$0xff] %vm7570_vm1, %v11039_v30  ;;  %17485 = vmatprep.mubr.msk.f32.mxu0 %vm7570_vm1, %v11039_v30 }
 0x4fb   : > { %v18216_v5 = vpop.eup %18215  ;;  %v11057_v34 = vmul.f32 %v18214_v32, %v24632_v57  ;;  %17486 = vmatmul.mubr.msk.f32.vlgmr.msra.gmra.mrb[68].mxu0 %vm7570_vm1, %v11040_v15 }
 0x4fc   : > { %v11048_v33 = vmul.f32 %v18216_v5, %v24633_v19  ;;  %17898 = vmatpush3.bf16.msra.mxu0 %v17895_v13  ;;  %17499 = vmatprep.mubr.msk.f32.mxu0 %vm7570_vm1, %v11043_v49  ;;  %v10921_v12 = vpop.xlane.xlu0 %10920 }
 0x4fd   : > { %11121 = vst.msk [vmem:[%s21693_s24 + $0x1f0] sm:$0xff] %vm7570_vm1, %v11057_v34  ;;  %17548 = vmatprep.mubr.msk.f32.mxu1 %vm7570_vm1, %v11057_v34  ;;  %17904 = vmatprep.subr.bf16.mxu0 %v17903_v0  ;;  %18221 = vrcp.f32 %v10921_v12 }
 0x4fe   : > { %11112 = vst.msk [vmem:[%s21693_s24 + $0x1a8] sm:$0xff] %vm7570_vm1, %v11048_v33 }
 0x4ff   : > { %v18218_v42 = vpop.eup %18217  ;;  %17500 = vmatmul.mubr.msk.f32.vlgmr.msra.gmra.mrb[70].mxu0 %vm7570_vm1, %v22961_v16 }
 0x500   : > { %17906 = vmatpush3.bf16.msra.mxu0 %v17903_v0  ;;  %v10930_v56 = vpop.xlane.xlu0 %10929  ;;  %v11047_v54 = vmul.f32 %v18218_v42, %v24634_v60 }
 0x501   : > { %17912 = vmatprep.subr.bf16.mxu0 %v17911_v9  ;;  %18223 = vrcp.f32 %v10930_v56 }
 0x502   : > { %11111 = vst.msk [vmem:[%s21693_s24 + $0x1a0] sm:$0xff] %vm7570_vm1, %v11047_v54  ;;  %17513 = vmatprep.mubr.msk.f32.mxu0 %vm7570_vm1, %v11047_v54 }
 0x503   : > { %v18220_v10 = vpop.eup %18219  ;;  %17514 = vmatmul.mubr.msk.f32.vlgmr.msra.gmra.mrb[72].mxu0 %vm7570_vm1, %v11048_v33 }
 0x504   : > { %v11056_v37 = vmul.f32 %v18220_v10, %v24635_v62  ;;  %17914 = vmatpush3.bf16.msra.mxu0 %v17911_v9  ;;  %17527 = vmatprep.mubr.msk.f32.mxu0 %vm7570_vm1, %v11051_v61 }
 0x505   : > { %17920 = vmatprep.subr.bf16.mxu0 %v17919_v55 }
 0x506   : > { %11120 = vst.msk [vmem:[%s21693_s24 + $0x1e8] sm:$0xff] %vm7570_vm1, %v11056_v37 }
 0x507   : > { %v18222_v24 = vpop.eup %18221  ;;  %17528 = vmatmul.mubr.msk.f32.vlgmr.msra.gmra.mrb[74].mxu0 %vm7570_vm1, %v22982_v4 }
 0x508   : > { %17922 = vmatpush3.bf16.msra.mxu0 %v17919_v55  ;;  %v11055_v40 = vmul.f32 %v18222_v24, %v24636_v11 }
 0x50a   : > { %11119 = vst.msk [vmem:[%s21693_s24 + $0x1e0] sm:$0xff] %vm7570_vm1, %v11055_v40  ;;  %17541 = vmatprep.mubr.msk.f32.mxu0 %vm7570_vm1, %v11055_v40 }
 0x50b   : > { %v18224_v52 = vpop.eup %18223  ;;  %17542 = vmatmul.mubr.msk.f32.vlgmr.msra.gmra.mrb[76].mxu0 %vm7570_vm1, %v11056_v37 }
 0x50c   : > { %v11058_v20 = vmul.f32 %v18224_v52, %v24637_v41 }
 0x50e   : > { %11122 = vst.msk [vmem:[%s21693_s24 + $0x1f8] sm:$0xff] %vm7570_vm1, %v11058_v20  ;;  %17549 = vmatmul.mubr.msk.f32.vlgmr.msra.gmra.mrb[80].mxu1 %vm7570_vm1, %v11058_v20 }
 0x52d   : > { %v17333_v16 = vpop.f32.mrb[48].mxu1 }
 0x52e   : > { %v11195_v14 = vpop.f32.mrb[49].mxu1 }
 0x532   : > { %v17340_v23 = vpop.f32.mrb[50].mxu1 }
 0x533   : > { %v11276_v2 = vpop.f32.mrb[51].mxu1 }
 0x54a   : > { %v17347_v25 = vpop.f32.mrb[48].mxu0 }
 0x54b   : > { %v13783_v38 = vcombine.low %v17333_v16, %v17347_v25  ;;  %v13784_v22 = vcombine.high %v17333_v16, %v17347_v25  ;;  %v11357_v35 = vpop.f32.mrb[49].mxu0  ;;  %v16133_v25 = vld [vmem:[%s23956_s3] sm:$0xff] }
 0x54c   : > { %v13715_v53 = vcombine.low %v11195_v14, %v11357_v35  ;;  %v13716_v48 = vcombine.high %v11195_v14, %v11357_v35 }
 0x54d   : > { %v13791_v18 = vrot.slane %v13783_v38, %v24441_v17  ;;  %v13798_v7 = vrot.slane %v13784_v22, %v24441_v17  ;;  %v16134_v38 = vld [vmem:[%s23956_s3 + $0x8] sm:$0xff] }
 0x54e   : > { %v13723_v44 = vrot.slane %v13715_v53, %v24441_v17  ;;  %v13730_v29 = vrot.slane %v13716_v48, %v24441_v17 }
 0x55b   : > { %v17354_v49 = vpop.f32.mrb[52].mxu1 }
 0x55c   : > { %v13799_v47 = vcombine.low %v17340_v23, %v17354_v49  ;;  %v13800_v26 = vcombine.high %v17340_v23, %v17354_v49  ;;  %v11438_v50 = vpop.f32.mrb[53].mxu1 }
 0x55d   : > { %v13731_v27 = vcombine.low %v11276_v2, %v11438_v50  ;;  %v13732_v63 = vcombine.high %v11276_v2, %v11438_v50 }
 0x55e   : > { %v13807_v4 = vrot.slane %v13799_v47, %v24441_v17  ;;  %v13814_v31 = vrot.slane %v13800_v26, %v24441_v17 }
 0x55f   : > { %v13739_v15 = vrot.slane %v13731_v27, %v24441_v17  ;;  %v13746_v58 = vrot.slane %v13732_v63, %v24441_v17 }
 0x560   : > { %v13815_v28 = vcombine.low %v13791_v18, %v13807_v4  ;;  %v13816_v59 = vcombine.high %v13791_v18, %v13807_v4  ;;  %v13831_v3 = vcombine.low %v13798_v7, %v13814_v31  ;;  %v13832_v13 = vcombine.high %v13798_v7, %v13814_v31 }
 0x561   : > { %v13747_v51 = vcombine.low %v13723_v44, %v13739_v15  ;;  %v13748_v39 = vcombine.high %v13723_v44, %v13739_v15  ;;  %v13763_v61 = vcombine.low %v13730_v29, %v13746_v58  ;;  %v13764_v6 = vcombine.high %v13730_v29, %v13746_v58  ;;  %v16135_v15 = vld [vmem:[%s23956_s3 + $0x10] sm:$0xff]  ;;  %v16136_v58 = vld [vmem:[%s23956_s3 + $0x18] sm:$0xff] }
 0x562   : > { %v13823_v21 = vrot.slane %v13815_v28, %v24453_v43  ;;  %v13830_v30 = vrot.slane %v13816_v59, %v24453_v43  ;;  %v13839_v45 = vrot.slane %v13831_v3, %v24453_v43  ;;  %v13846_v32 = vrot.slane %v13832_v13, %v24453_v43  ;;  %v23060_v5 = vpop.f32.mrb[50].mxu0 }
 0x563   : > { %v13755_v57 = vrot.slane %v13747_v51, %v24453_v43  ;;  %v13762_v34 = vrot.slane %v13748_v39, %v24453_v43  ;;  %v13771_v0 = vrot.slane %v13763_v61, %v24453_v43  ;;  %v13778_v36 = vrot.slane %v13764_v6, %v24453_v43  ;;  %v23066_v19 = vpop.f32.mrb[51].mxu0  ;;  %v16137_v51 = vld [vmem:[%s23956_s3 + $0x20] sm:$0xff]  ;;  %v16138_v39 = vld [vmem:[%s23956_s3 + $0x28] sm:$0xff] }
 0x564   : > { %v14871_v33 = vcombine.low %v13823_v21, %v13830_v30  ;;  %v16771_v12 = vcombine.high %v13823_v21, %v13830_v30  ;;  %v14887_v46 = vcombine.low %v13839_v45, %v13846_v32  ;;  %v16772_v42 = vcombine.high %v13839_v45, %v13846_v32 }
 0x565   : > { %v14803_v9 = vcombine.low %v13755_v57, %v13762_v34  ;;  %v16769_v8 = vcombine.high %v13755_v57, %v13762_v34  ;;  %v14819_v56 = vcombine.low %v13771_v0, %v13778_v36  ;;  %v16770_v60 = vcombine.high %v13771_v0, %v13778_v36  ;;  %v16139_v34 = vld [vmem:[%s23956_s3 + $0x30] sm:$0xff]  ;;  %v16140_v0 = vld [vmem:[%s23956_s3 + $0x38] sm:$0xff] }
 0x566   : > { %v14878_v54 = vrot.slane %v14871_v33, %v24441_v17  ;;  %v14886_v1 = vrot.slane %v16771_v12, %v24441_v17  ;;  %v14894_v10 = vrot.slane %v14887_v46, %v24441_v17  ;;  %v14902_v55 = vrot.slane %v16772_v42, %v24441_v17 }
 0x567   : > { %v14810_v62 = vrot.slane %v14803_v9, %v24441_v17  ;;  %v14818_v37 = vrot.slane %v16769_v8, %v24441_v17  ;;  %v14826_v24 = vrot.slane %v14819_v56, %v24441_v17  ;;  %v14834_v11 = vrot.slane %v16770_v60, %v24441_v17 }
 0x568   : > { %v14904_v40 = vcombine.high %v14878_v54, %v14886_v1  ;;  %v14920_v52 = vcombine.high %v14894_v10, %v14902_v55  ;;  %v14903_v41 = vcombine.low %v14878_v54, %v14886_v1  ;;  %v14919_v20 = vcombine.low %v14894_v10, %v14902_v55 }
 0x569   : > { %v14836_v16 = vcombine.high %v14810_v62, %v14818_v37  ;;  %v14852_v14 = vcombine.high %v14826_v24, %v14834_v11  ;;  %v14835_v23 = vcombine.low %v14810_v62, %v14818_v37  ;;  %v14851_v2 = vcombine.low %v14826_v24, %v14834_v11 }
 0x56a   : > { %v14918_v22 = vrot.slane %v14904_v40, %v24453_v43  ;;  %v14934_v35 = vrot.slane %v14920_v52, %v24453_v43  ;;  %v23085_v53 = vrot.slane %v14903_v41, %v24453_v43  ;;  %v23088_v48 = vrot.slane %v14919_v20, %v24453_v43 }
 0x56b   : > { %v14850_v49 = vrot.slane %v14836_v16, %v24453_v43  ;;  %v14866_v47 = vrot.slane %v14852_v14, %v24453_v43  ;;  %v23093_v26 = vrot.slane %v14835_v23, %v24453_v43  ;;  %v23096_v50 = vrot.slane %v14851_v2, %v24453_v43 }
 0x56c   : > { %v14937_v27 = vcombine.low %v14918_v22, %v14934_v35  ;;  %v14936_v63 = vcombine.high %v23085_v53, %v23088_v48  ;;  %v14938_v18 = vcombine.high %v14918_v22, %v14934_v35  ;;  %v17927_v7 = vpack.c.bf16 %v16134_v38, %v16133_v25 }
 0x56d   : > { %v14870_v4 = vcombine.high %v14850_v49, %v14866_v47  ;;  %v14868_v31 = vcombine.high %v23093_v26, %v23096_v50  ;;  %v14869_v44 = vcombine.low %v14850_v49, %v14866_v47  ;;  %v17931_v59 = vpack.c.bf16 %v16136_v58, %v16135_v15 }
 0x56e   : > { %15973 = vrot.lane.b32.xlu1 %v14937_v27, %s18240_s30  ;;  %15909 = vrot.lane.b32.xlu0 %v14936_v63, %s18241_s7  ;;  %v17935_v61 = vpack.c.bf16 %v16138_v39, %v16137_v51  ;;  %v17939_v36 = vpack.c.bf16 %v16140_v0, %v16139_v34 }
 0x56f   : > { %v17368_v28 = vpop.f32.mrb[54].mxu1  ;;  %17928 = vmatprep.subr.bf16.mxu0 %v17927_v7 }
 0x570   : > { %v11600_v3 = vpop.f32.mrb[55].mxu1  ;;  %17930 = vmatpush3.bf16.msra.mxu0 %v17927_v7 }
 0x571   : > { %17932 = vmatprep.subr.bf16.mxu0 %v17931_v59 }
 0x572   : > { %16037 = vrot.lane.b32.xlu1 %v14938_v18, %s18242_s13  ;;  %16035 = vrot.lane.b32.xlu0 %v14870_v4, %s18242_s13 }
 0x574   : > { %17934 = vmatpush3.bf16.msra.mxu0 %v17931_v59 }
 0x575   : > { %17936 = vmatprep.subr.bf16.mxu0 %v17935_v61 }
 0x576   : > { %15907 = vrot.lane.b32.xlu1 %v14868_v31, %s18241_s7 }
 0x578   : > { %17938 = vmatpush3.bf16.msra.mxu0 %v17935_v61 }
 0x579   : > { %17940 = vmatprep.subr.bf16.mxu0 %v17939_v36 }
 0x57a   : > { %15971 = vrot.lane.b32.xlu1 %v14869_v44, %s18240_s30  ;;  %v17375_v6 = vpop.f32.mrb[52].mxu0 }
 0x57b   : > { %v13919_v21 = vcombine.low %v23060_v5, %v17375_v6  ;;  %v13920_v30 = vcombine.high %v23060_v5, %v17375_v6  ;;  %v11681_v45 = vpop.f32.mrb[53].mxu0 }
 0x57c   : > { %v13851_v32 = vcombine.low %v23066_v19, %v11681_v45  ;;  %v13852_v57 = vcombine.high %v23066_v19, %v11681_v45  ;;  %17942 = vmatpush3.bf16.msra.mxu0 %v17939_v36 }
 0x57d   : > { %v13927_v8 = vrot.slane %v13919_v21, %v24441_v17  ;;  %v13934_v19 = vrot.slane %v13920_v30, %v24441_v17 }
 0x57e   : > { %v13859_v54 = vrot.slane %v13851_v32, %v24441_v17  ;;  %v13866_v1 = vrot.slane %v13852_v57, %v24441_v17 }
 0x587   : > { %v17382_v33 = vpop.f32.mrb[56].mxu1 }
 0x588   : > { %v13935_v12 = vcombine.low %v17368_v28, %v17382_v33  ;;  %v13936_v46 = vcombine.high %v17368_v28, %v17382_v33  ;;  %v11762_v5 = vpop.f32.mrb[57].mxu1 }
 0x589   : > { %v13867_v42 = vcombine.low %v11600_v3, %v11762_v5  ;;  %v13868_v9 = vcombine.high %v11600_v3, %v11762_v5 }
 0x58a   : > { %v13943_v56 = vrot.slane %v13935_v12, %v24441_v17  ;;  %v13950_v60 = vrot.slane %v13936_v46, %v24441_v17 }
 0x58b   : > { %v13875_v10 = vrot.slane %v13867_v42, %v24441_v17  ;;  %v13882_v55 = vrot.slane %v13868_v9, %v24441_v17  ;;  %v23142_v62 = vpop.f32.mrb[58].mxu1 }
 0x58c   : > { %v13951_v37 = vcombine.low %v13927_v8, %v13943_v56  ;;  %v13952_v24 = vcombine.high %v13927_v8, %v13943_v56  ;;  %v13967_v11 = vcombine.low %v13934_v19, %v13950_v60  ;;  %v13968_v40 = vcombine.high %v13934_v19, %v13950_v60  ;;  %v23144_v52 = vpop.f32.mrb[59].mxu1 }
 0x58d   : > { %v13883_v41 = vcombine.low %v13859_v54, %v13875_v10  ;;  %v13884_v20 = vcombine.high %v13859_v54, %v13875_v10  ;;  %v13899_v16 = vcombine.low %v13866_v1, %v13882_v55  ;;  %v13900_v14 = vcombine.high %v13866_v1, %v13882_v55 }
 0x58e   : > { %v13959_v23 = vrot.slane %v13951_v37, %v24453_v43  ;;  %v13966_v2 = vrot.slane %v13952_v24, %v24453_v43  ;;  %v13975_v25 = vrot.slane %v13967_v11, %v24453_v43  ;;  %v13982_v38 = vrot.slane %v13968_v40, %v24453_v43 }
 0x58f   : > { %v13891_v22 = vrot.slane %v13883_v41, %v24453_v43  ;;  %v13898_v35 = vrot.slane %v13884_v20, %v24453_v43  ;;  %v13907_v49 = vrot.slane %v13899_v16, %v24453_v43  ;;  %v13914_v47 = vrot.slane %v13900_v14, %v24453_v43  ;;  %v17410_v27 = vpop.f32.mrb[60].mxu1 }
 0x590   : > { %v15007_v63 = vcombine.low %v13959_v23, %v13966_v2  ;;  %v16775_v18 = vcombine.high %v13959_v23, %v13966_v2  ;;  %v15023_v7 = vcombine.low %v13975_v25, %v13982_v38  ;;  %v16776_v4 = vcombine.high %v13975_v25, %v13982_v38  ;;  %v12086_v31 = vpop.f32.mrb[61].mxu1 }
 0x591   : > { %v14939_v44 = vcombine.low %v13891_v22, %v13898_v35  ;;  %v16773_v15 = vcombine.high %v13891_v22, %v13898_v35  ;;  %v14955_v58 = vcombine.low %v13907_v49, %v13914_v47  ;;  %v16774_v28 = vcombine.high %v13907_v49, %v13914_v47 }
 0x592   : > { %v15014_v59 = vrot.slane %v15007_v63, %v24441_v17  ;;  %v15022_v3 = vrot.slane %v16775_v18, %v24441_v17  ;;  %v15030_v51 = vrot.slane %v15023_v7, %v24441_v17  ;;  %v15038_v39 = vrot.slane %v16776_v4, %v24441_v17 }
 0x593   : > { %v14946_v61 = vrot.slane %v14939_v44, %v24441_v17  ;;  %v14954_v6 = vrot.slane %v16773_v15, %v24441_v17  ;;  %v14962_v21 = vrot.slane %v14955_v58, %v24441_v17  ;;  %v14970_v30 = vrot.slane %v16774_v28, %v24441_v17 }
 0x594   : > { %v23162_v45 = vpop.f32.mrb[54].mxu0  ;;  %v17424_v32 = vpop.f32.mrb[62].mxu1  ;;  %v14071_v57 = vcombine.low %v23142_v62, %v17410_v27  ;;  %v14072_v34 = vcombine.high %v23142_v62, %v17410_v27  ;;  %v14003_v0 = vcombine.low %v23144_v52, %v12086_v31  ;;  %v14004_v36 = vcombine.high %v23144_v52, %v12086_v31 }
 0x595   : > { %v23168_v33 = vpop.f32.mrb[55].mxu0  ;;  %v12248_v12 = vpop.f32.mrb[63].mxu1  ;;  %v15039_v46 = vcombine.low %v15014_v59, %v15022_v3  ;;  %v15055_v5 = vcombine.low %v15030_v51, %v15038_v39  ;;  %v14971_v42 = vcombine.low %v14946_v61, %v14954_v6  ;;  %v14987_v9 = vcombine.low %v14962_v21, %v14970_v30 }
 0x596   : > { %v15040_v62 = vcombine.high %v15014_v59, %v15022_v3  ;;  %v15056_v37 = vcombine.high %v15030_v51, %v15038_v39  ;;  %v14972_v14 = vcombine.high %v14946_v61, %v14954_v6  ;;  %v14988_v25 = vcombine.high %v14962_v21, %v14970_v30 }
 0x597   : > { %v23171_v19 = vrot.slane %v15039_v46, %v24453_v43  ;;  %v23174_v56 = vrot.slane %v15055_v5, %v24453_v43  ;;  %v23177_v60 = vrot.slane %v14971_v42, %v24453_v43  ;;  %v23180_v54 = vrot.slane %v14987_v9, %v24453_v43 }
 0x598   : > { %v15054_v41 = vrot.slane %v15040_v62, %v24453_v43  ;;  %v15070_v20 = vrot.slane %v15056_v37, %v24453_v43  ;;  %v14079_v22 = vrot.slane %v14071_v57, %v24441_v17  ;;  %v14986_v35 = vrot.slane %v14972_v14, %v24453_v43 }
 0x599   : > { %v17438_v8 = vpop.f32.mrb[64].mxu1  ;;  %v15072_v40 = vcombine.high %v23171_v19, %v23174_v56  ;;  %v15004_v52 = vcombine.high %v23177_v60, %v23180_v54  ;;  %v14086_v49 = vrot.slane %v14072_v34, %v24441_v17  ;;  %v14011_v47 = vrot.slane %v14003_v0, %v24441_v17 }
 0x59a   : > { %v14207_v1 = vcombine.low %v17424_v32, %v17438_v8  ;;  %v14208_v10 = vcombine.high %v17424_v32, %v17438_v8  ;;  %v12410_v55 = vpop.f32.mrb[65].mxu1  ;;  %v15073_v2 = vcombine.low %v15054_v41, %v15070_v20  ;;  %v15074_v38 = vcombine.high %v15054_v41, %v15070_v20 }
 0x59b   : > { %v14139_v24 = vcombine.low %v12248_v12, %v12410_v55  ;;  %v14140_v11 = vcombine.high %v12248_v12, %v12410_v55  ;;  %15913 = vrot.lane.b32.xlu1 %v15072_v40, %s18241_s7  ;;  %15911 = vrot.lane.b32.xlu0 %v15004_v52, %s18241_s7  ;;  %v14018_v27 = vrot.slane %v14004_v36, %v24441_v17 }
 0x59c   : > { %v15002_v63 = vrot.slane %v14988_v25, %v24453_v43  ;;  %v23197_v18 = vrot.slane %v14207_v1, %v24441_v17  ;;  %v23200_v7 = vrot.slane %v14208_v10, %v24441_v17 }
 0x59d   : > { %v17452_v16 = vpop.f32.mrb[66].mxu1  ;;  %v23210_v32 = vrot.slane %v14139_v24, %v24441_v17  ;;  %v23213_v57 = vrot.slane %v14140_v11, %v24441_v17 }
 0x59e   : > { %v12572_v23 = vpop.f32.mrb[67].mxu1  ;;  %v15005_v15 = vcombine.low %v14986_v35, %v15002_v63  ;;  %v15006_v51 = vcombine.high %v14986_v35, %v15002_v63 }
 0x59f   : > { %15977 = vrot.lane.b32.xlu1 %v15073_v2, %s18240_s30 }
 0x5a0   : > { %15975 = vrot.lane.b32.xlu0 %v15005_v15, %s18240_s30 }
 0x5a1   : > { %v17466_v4 = vpop.f32.mrb[68].mxu1 }
 0x5a2   : > { %v14343_v28 = vcombine.low %v17452_v16, %v17466_v4  ;;  %v14344_v59 = vcombine.high %v17452_v16, %v17466_v4  ;;  %v12734_v3 = vpop.f32.mrb[69].mxu1 }
 0x5a3   : > { %v17403_v58 = vpop.f32.mrb[56].mxu0  ;;  %v14275_v21 = vcombine.low %v12572_v23, %v12734_v3  ;;  %v14276_v30 = vcombine.high %v12572_v23, %v12734_v3  ;;  %16041 = vrot.lane.b32.xlu1 %v15074_v38, %s18242_s13 }
 0x5a4   : > { %v14055_v39 = vcombine.low %v23162_v45, %v17403_v58  ;;  %v14056_v61 = vcombine.high %v23162_v45, %v17403_v58  ;;  %v12005_v6 = vpop.f32.mrb[57].mxu0  ;;  %v23221_v45 = vrot.slane %v14343_v28, %v24441_v17  ;;  %v23224_v46 = vrot.slane %v14344_v59, %v24441_v17  ;;  %16039 = vrot.lane.b32.xlu0 %v15006_v51, %s18242_s13 }
 0x5a5   : > { %v13987_v34 = vcombine.low %v23168_v33, %v12005_v6  ;;  %v13988_v0 = vcombine.high %v23168_v33, %v12005_v6  ;;  %v23230_v8 = vrot.slane %v14275_v21, %v24441_v17  ;;  %v23233_v33 = vrot.slane %v14276_v30, %v24441_v17 }
 0x5a6   : > { %v14063_v36 = vrot.slane %v14055_v39, %v24441_v17  ;;  %v14070_v12 = vrot.slane %v14056_v61, %v24441_v17 }
 0x5a7   : > { %v17480_v5 = vpop.f32.mrb[70].mxu1  ;;  %v13995_v42 = vrot.slane %v13987_v34, %v24441_v17  ;;  %v14002_v9 = vrot.slane %v13988_v0, %v24441_v17 }
 0x5a8   : > { %v23235_v1 = vpop.f32.mrb[58].mxu0  ;;  %v12896_v10 = vpop.f32.mrb[71].mxu1  ;;  %v14087_v55 = vcombine.low %v14063_v36, %v14079_v22  ;;  %v14088_v62 = vcombine.high %v14063_v36, %v14079_v22  ;;  %v14103_v37 = vcombine.low %v14070_v12, %v14086_v49  ;;  %v14104_v24 = vcombine.high %v14070_v12, %v14086_v49 }
 0x5a9   : > { %v23237_v11 = vpop.f32.mrb[59].mxu0  ;;  %v14019_v40 = vcombine.low %v13995_v42, %v14011_v47  ;;  %v14020_v52 = vcombine.high %v13995_v42, %v14011_v47  ;;  %v14035_v41 = vcombine.low %v14002_v9, %v14018_v27  ;;  %v14036_v20 = vcombine.high %v14002_v9, %v14018_v27 }
 0x5aa   : > { %v14095_v16 = vrot.slane %v14087_v55, %v24453_v43  ;;  %v14102_v14 = vrot.slane %v14088_v62, %v24453_v43  ;;  %v14111_v23 = vrot.slane %v14103_v37, %v24453_v43  ;;  %v14118_v2 = vrot.slane %v14104_v24, %v24453_v43 }
 0x5ab   : > { %v17494_v25 = vpop.f32.mrb[72].mxu1  ;;  %v14027_v38 = vrot.slane %v14019_v40, %v24453_v43  ;;  %v14034_v22 = vrot.slane %v14020_v52, %v24453_v43  ;;  %v14043_v35 = vrot.slane %v14035_v41, %v24453_v43  ;;  %v14050_v49 = vrot.slane %v14036_v20, %v24453_v43 }
 0x5ac   : > { %v13058_v47 = vpop.f32.mrb[73].mxu1  ;;  %v15143_v27 = vcombine.low %v14095_v16, %v14102_v14  ;;  %v16779_v63 = vcombine.high %v14095_v16, %v14102_v14  ;;  %v15159_v4 = vcombine.low %v14111_v23, %v14118_v2  ;;  %v16780_v15 = vcombine.high %v14111_v23, %v14118_v2 }
 0x5ad   : > { %v15075_v58 = vcombine.low %v14027_v38, %v14034_v22  ;;  %v16777_v28 = vcombine.high %v14027_v38, %v14034_v22  ;;  %v15091_v59 = vcombine.low %v14043_v35, %v14050_v49  ;;  %v16778_v3 = vcombine.high %v14043_v35, %v14050_v49 }
 0x5ae   : > { %v15150_v51 = vrot.slane %v15143_v27, %v24441_v17  ;;  %v15158_v39 = vrot.slane %v16779_v63, %v24441_v17  ;;  %v15166_v61 = vrot.slane %v15159_v4, %v24441_v17  ;;  %v15174_v6 = vrot.slane %v16780_v15, %v24441_v17 }
 0x5af   : > { %v17508_v21 = vpop.f32.mrb[74].mxu1  ;;  %v15082_v30 = vrot.slane %v15075_v58, %v24441_v17  ;;  %v15090_v34 = vrot.slane %v16777_v28, %v24441_v17  ;;  %v15098_v0 = vrot.slane %v15091_v59, %v24441_v17  ;;  %v15106_v36 = vrot.slane %v16778_v3, %v24441_v17 }
 0x5b0   : > { %v13220_v12 = vpop.f32.mrb[75].mxu1  ;;  %v14479_v42 = vcombine.low %v17480_v5, %v17494_v25  ;;  %v14480_v9 = vcombine.high %v17480_v5, %v17494_v25  ;;  %v14411_v55 = vcombine.low %v12896_v10, %v13058_v47  ;;  %v14412_v62 = vcombine.high %v12896_v10, %v13058_v47 }
 0x5b1   : > { %v15175_v37 = vcombine.low %v15150_v51, %v15158_v39  ;;  %v15191_v24 = vcombine.low %v15166_v61, %v15174_v6  ;;  %v15107_v40 = vcombine.low %v15082_v30, %v15090_v34  ;;  %v15123_v52 = vcombine.low %v15098_v0, %v15106_v36 }
 0x5b2   : > { %v23257_v41 = vrot.slane %v14479_v42, %v24441_v17  ;;  %v23260_v20 = vrot.slane %v14480_v9, %v24441_v17  ;;  %v23263_v16 = vrot.slane %v14411_v55, %v24441_v17  ;;  %v23266_v14 = vrot.slane %v14412_v62, %v24441_v17 }
 0x5b3   : > { %v17522_v23 = vpop.f32.mrb[76].mxu1  ;;  %v23269_v25 = vrot.slane %v15175_v37, %v24453_v43  ;;  %v23272_v38 = vrot.slane %v15191_v24, %v24453_v43  ;;  %v23275_v49 = vrot.slane %v15107_v40, %v24453_v43  ;;  %v23278_v47 = vrot.slane %v15123_v52, %v24453_v43 }
 0x5b4   : > { %v14615_v5 = vcombine.low %v17508_v21, %v17522_v23  ;;  %v14616_v2 = vcombine.high %v17508_v21, %v17522_v23  ;;  %v13382_v10 = vpop.f32.mrb[77].mxu1  ;;  %v15176_v15 = vcombine.high %v15150_v51, %v15158_v39  ;;  %v15192_v21 = vcombine.high %v15166_v61, %v15174_v6 }
 0x5b5   : > { %v14547_v22 = vcombine.low %v13220_v12, %v13382_v10  ;;  %v14548_v35 = vcombine.high %v13220_v12, %v13382_v10  ;;  %v15208_v4 = vcombine.high %v23269_v25, %v23272_v38  ;;  %v15140_v59 = vcombine.high %v23275_v49, %v23278_v47  ;;  %v17431_v3 = vpop.f32.mrb[60].mxu0 }
 0x5b6   : > { %v23281_v27 = vrot.slane %v14615_v5, %v24441_v17  ;;  %v23284_v63 = vrot.slane %v14616_v2, %v24441_v17  ;;  %v14191_v12 = vcombine.low %v23235_v1, %v17431_v3  ;;  %v14192_v42 = vcombine.high %v23235_v1, %v17431_v3  ;;  %v12329_v9 = vpop.f32.mrb[61].mxu0 }
 0x5b7   : > { %v23289_v58 = vrot.slane %v14547_v22, %v24441_v17  ;;  %v23292_v28 = vrot.slane %v14548_v35, %v24441_v17  ;;  %15917 = vrot.lane.b32.xlu1 %v15208_v4, %s18241_s7  ;;  %v15190_v51 = vrot.slane %v15176_v15, %v24453_v43  ;;  %v15108_v39 = vcombine.high %v15082_v30, %v15090_v34 }
 0x5b8   : > { %15915 = vrot.lane.b32.xlu0 %v15140_v59, %s18241_s7  ;;  %v14123_v55 = vcombine.low %v23237_v11, %v12329_v9  ;;  %v14124_v62 = vcombine.high %v23237_v11, %v12329_v9  ;;  %v15206_v37 = vrot.slane %v15192_v21, %v24453_v43  ;;  %v15124_v24 = vcombine.high %v15098_v0, %v15106_v36 }
 0x5b9   : > { %v14199_v61 = vrot.slane %v14191_v12, %v24441_v17  ;;  %v14206_v6 = vrot.slane %v14192_v42, %v24441_v17  ;;  %v23307_v40 = vrot.slane %v15108_v39, %v24453_v43  ;;  %v23316_v23 = vpop.f32.mrb[62].mxu0 }
 0x5ba   : > { %v14131_v30 = vrot.slane %v14123_v55, %v24441_v17  ;;  %v14138_v34 = vrot.slane %v14124_v62, %v24441_v17  ;;  %v15209_v52 = vcombine.low %v15190_v51, %v15206_v37  ;;  %v23314_v11 = vrot.slane %v15124_v24, %v24453_v43  ;;  %v23322_v10 = vpop.f32.mrb[63].mxu0 }
 0x5bb   : > { %v14223_v0 = vcombine.low %v14199_v61, %v23197_v18  ;;  %v14224_v36 = vcombine.high %v14199_v61, %v23197_v18  ;;  %v14239_v5 = vcombine.low %v14206_v6, %v23200_v7  ;;  %v14240_v2 = vcombine.high %v14206_v6, %v23200_v7 }
 0x5bc   : > { %v14155_v22 = vcombine.low %v14131_v30, %v23210_v32  ;;  %v14156_v35 = vcombine.high %v14131_v30, %v23210_v32  ;;  %v14171_v4 = vcombine.low %v14138_v34, %v23213_v57  ;;  %v14172_v15 = vcombine.high %v14138_v34, %v23213_v57  ;;  %15981 = vrot.lane.b32.xlu1 %v15209_v52, %s18240_s30 }
 0x5bd   : > { %v14231_v59 = vrot.slane %v14223_v0, %v24453_v43  ;;  %v14238_v18 = vrot.slane %v14224_v36, %v24453_v43  ;;  %v14247_v3 = vrot.slane %v14239_v5, %v24453_v43  ;;  %v14254_v7 = vrot.slane %v14240_v2, %v24453_v43 }
 0x5be   : > { %v14163_v21 = vrot.slane %v14155_v22, %v24453_v43  ;;  %v14170_v12 = vrot.slane %v14156_v35, %v24453_v43  ;;  %v14179_v32 = vrot.slane %v14171_v4, %v24453_v43  ;;  %v14186_v42 = vrot.slane %v14172_v15, %v24453_v43  ;;  %v23337_v62 = vpop.f32.mrb[78].mxu1 }
 0x5bf   : > { %v15279_v9 = vcombine.low %v14231_v59, %v14238_v18  ;;  %v16783_v57 = vcombine.high %v14231_v59, %v14238_v18  ;;  %v15295_v39 = vcombine.low %v14247_v3, %v14254_v7  ;;  %v16784_v55 = vcombine.high %v14247_v3, %v14254_v7  ;;  %v23339_v34 = vpop.f32.mrb[79].mxu1 }
 0x5c0   : > { %v15211_v24 = vcombine.low %v14163_v21, %v14170_v12  ;;  %v16781_v61 = vcombine.high %v14163_v21, %v14170_v12  ;;  %v15227_v6 = vcombine.low %v14179_v32, %v14186_v42  ;;  %v16782_v30 = vcombine.high %v14179_v32, %v14186_v42 }
 0x5c1   : > { %v15286_v52 = vrot.slane %v15279_v9, %v24441_v17  ;;  %v15294_v0 = vrot.slane %v16783_v57, %v24441_v17  ;;  %v15302_v36 = vrot.slane %v15295_v39, %v24441_v17  ;;  %v15310_v5 = vrot.slane %v16784_v55, %v24441_v17 }
 0x5c2   : > { %v15218_v2 = vrot.slane %v15211_v24, %v24441_v17  ;;  %v15226_v22 = vrot.slane %v16781_v61, %v24441_v17  ;;  %v15234_v35 = vrot.slane %v15227_v6, %v24441_v17  ;;  %v15242_v4 = vrot.slane %v16782_v30, %v24441_v17 }
 0x5c3   : > { %v15141_v15 = vcombine.low %v23307_v40, %v23314_v11  ;;  %v15210_v59 = vcombine.high %v15190_v51, %v15206_v37  ;;  %v15142_v18 = vcombine.high %v23307_v40, %v23314_v11  ;;  %v15311_v3 = vcombine.low %v15286_v52, %v15294_v0 }
 0x5c4   : > { %v15327_v7 = vcombine.low %v15302_v36, %v15310_v5  ;;  %v15243_v21 = vcombine.low %v15218_v2, %v15226_v22  ;;  %v15259_v12 = vcombine.low %v15234_v35, %v15242_v4  ;;  %v15312_v32 = vcombine.high %v15286_v52, %v15294_v0 }
 0x5c5   : > { %15979 = vrot.lane.b32.xlu0 %v15141_v15, %s18240_s30  ;;  %16045 = vrot.lane.b32.xlu1 %v15210_v59, %s18242_s13  ;;  %v23356_v42 = vrot.slane %v15311_v3, %v24453_v43  ;;  %v15328_v9 = vcombine.high %v15302_v36, %v15310_v5  ;;  %v15244_v57 = vcombine.high %v15218_v2, %v15226_v22 }
 0x5c6   : > { %v23359_v39 = vrot.slane %v15327_v7, %v24453_v43  ;;  %v23362_v51 = vrot.slane %v15243_v21, %v24453_v43  ;;  %v23365_v37 = vrot.slane %v15259_v12, %v24453_v43  ;;  %v15326_v40 = vrot.slane %v15312_v32, %v24453_v43  ;;  %v17459_v55 = vpop.f32.mrb[64].mxu0 }
 0x5c7   : > { %24638 = vst [vmem:[#allocation68_spill] sm:$0xff] %v23356_v42  ;;  %v15342_v11 = vrot.slane %v15328_v9, %v24453_v43  ;;  %v23370_v24 = vrot.slane %v15244_v57, %v24453_v43  ;;  %v15260_v61 = vcombine.high %v15234_v35, %v15242_v4  ;;  %v14327_v0 = vcombine.low %v23316_v23, %v17459_v55  ;;  %v12653_v5 = vpop.f32.mrb[65].mxu0 }
 0x5c8   : > { %24639 = vst [vmem:[#allocation13_spill] sm:$0xff] %v23359_v39  ;;  %24640 = vst [vmem:[#allocation21_spill] sm:$0xff] %v23362_v51  ;;  %v15344_v30 = vcombine.high %v23356_v42, %v23359_v39  ;;  %v15276_v52 = vcombine.high %v23362_v51, %v23365_v37  ;;  %v14328_v36 = vcombine.high %v23316_v23, %v17459_v55 }
 0x5c9   : > { %16043 = vrot.lane.b32.xlu0 %v15142_v18, %s18242_s13  ;;  %v15345_v2 = vcombine.low %v15326_v40, %v15342_v11  ;;  %v15274_v22 = vrot.slane %v15260_v61, %v24453_v43  ;;  %v14259_v35 = vcombine.low %v23322_v10, %v12653_v5  ;;  %v14260_v4 = vcombine.high %v23322_v10, %v12653_v5 }
 0x5ca   : > { %15921 = vrot.lane.b32.xlu1 %v15344_v30, %s18241_s7  ;;  %v14335_v15 = vrot.slane %v14327_v0, %v24441_v17  ;;  %v14342_v59 = vrot.slane %v14328_v36, %v24441_v17  ;;  %v15346_v3 = vcombine.high %v15326_v40, %v15342_v11  ;;  %v17473_v12 = vpop.f32.mrb[66].mxu0 }
 0x5cb   : > { %v15277_v7 = vcombine.low %v23370_v24, %v15274_v22  ;;  %v14267_v18 = vrot.slane %v14259_v35, %v24441_v17  ;;  %v14274_v21 = vrot.slane %v14260_v4, %v24441_v17  ;;  %v15278_v32 = vcombine.high %v23370_v24, %v15274_v22  ;;  %v12815_v11 = vpop.f32.mrb[67].mxu0 }
 0x5cc   : > { %v14359_v10 = vcombine.low %v14335_v15, %v23221_v45  ;;  %v14360_v9 = vcombine.high %v14335_v15, %v23221_v45  ;;  %v14375_v57 = vcombine.low %v14342_v59, %v23224_v46  ;;  %v14376_v40 = vcombine.high %v14342_v59, %v23224_v46 }
 0x5cd   : > { %15919 = vrot.lane.b32.xlu0 %v15276_v52, %s18241_s7  ;;  %v14291_v55 = vcombine.low %v14267_v18, %v23230_v8  ;;  %v14292_v61 = vcombine.high %v14267_v18, %v23230_v8  ;;  %v14307_v30 = vcombine.low %v14274_v21, %v23233_v33  ;;  %v14308_v0 = vcombine.high %v14274_v21, %v23233_v33 }
 0x5ce   : > { %15985 = vrot.lane.b32.xlu1 %v15345_v2, %s18240_s30  ;;  %v14367_v24 = vrot.slane %v14359_v10, %v24453_v43  ;;  %v14374_v45 = vrot.slane %v14360_v9, %v24453_v43  ;;  %v14383_v36 = vrot.slane %v14375_v57, %v24453_v43  ;;  %v14390_v46 = vrot.slane %v14376_v40, %v24453_v43  ;;  %v17487_v35 = vpop.f32.mrb[68].mxu0 }
 0x5cf   : > { %v14299_v52 = vrot.slane %v14291_v55, %v24453_v43  ;;  %v14306_v5 = vrot.slane %v14292_v61, %v24453_v43  ;;  %v14315_v8 = vrot.slane %v14307_v30, %v24453_v43  ;;  %v14322_v22 = vrot.slane %v14308_v0, %v24453_v43  ;;  %v12977_v59 = vpop.f32.mrb[69].mxu0 }
 0x5d0   : > { %v15415_v33 = vcombine.low %v14367_v24, %v14374_v45  ;;  %v16787_v4 = vcombine.high %v14367_v24, %v14374_v45  ;;  %v15431_v2 = vcombine.low %v14383_v36, %v14390_v46  ;;  %v16788_v15 = vcombine.high %v14383_v36, %v14390_v46 }
 0x5d1   : > { %15983 = vrot.lane.b32.xlu0 %v15277_v7, %s18240_s30  ;;  %v15347_v18 = vcombine.low %v14299_v52, %v14306_v5  ;;  %v16785_v21 = vcombine.high %v14299_v52, %v14306_v5  ;;  %v15363_v10 = vcombine.low %v14315_v8, %v14322_v22  ;;  %v16786_v9 = vcombine.high %v14315_v8, %v14322_v22 }
 0x5d2   : > { %v23413_v57 = vrot.slane %v15415_v33, %v24441_v17  ;;  %v23416_v40 = vrot.slane %v16787_v4, %v24441_v17  ;;  %v23419_v55 = vrot.slane %v15431_v2, %v24441_v17  ;;  %v23422_v61 = vrot.slane %v16788_v15, %v24441_v17  ;;  %16049 = vrot.lane.b32.xlu1 %v15346_v3, %s18242_s13  ;;  %v23437_v45 = vpop.f32.mrb[70].mxu0 }
 0x5d3   : > { %v23426_v7 = vrot.slane %v15347_v18, %v24441_v17  ;;  %v23429_v30 = vrot.slane %v16785_v21, %v24441_v17  ;;  %v23432_v0 = vrot.slane %v15363_v10, %v24441_v17  ;;  %v23435_v24 = vrot.slane %v16786_v9, %v24441_v17  ;;  %v23439_v8 = vpop.f32.mrb[71].mxu0 }
 0x5d4   : > { %v14463_v36 = vcombine.low %v17473_v12, %v17487_v35  ;;  %v14464_v46 = vcombine.high %v17473_v12, %v17487_v35  ;;  %v14395_v52 = vcombine.low %v12815_v11, %v12977_v59  ;;  %v14396_v5 = vcombine.high %v12815_v11, %v12977_v59 }
 0x5d5   : > { %16047 = vrot.lane.b32.xlu0 %v15278_v32, %s18242_s13  ;;  %v15447_v3 = vcombine.low %v23413_v57, %v23416_v40  ;;  %v15463_v22 = vcombine.low %v23419_v55, %v23422_v61  ;;  %v15379_v33 = vcombine.low %v23426_v7, %v23429_v30  ;;  %v15395_v4 = vcombine.low %v23432_v0, %v23435_v24 }
 0x5d6   : > { %v14471_v12 = vrot.slane %v14463_v36, %v24441_v17  ;;  %v14478_v11 = vrot.slane %v14464_v46, %v24441_v17  ;;  %v14403_v35 = vrot.slane %v14395_v52, %v24441_v17  ;;  %v14410_v32 = vrot.slane %v14396_v5, %v24441_v17  ;;  %v17515_v2 = vpop.f32.mrb[72].mxu0 }
 0x5d7   : > { %v23455_v15 = vrot.slane %v15447_v3, %v24453_v43  ;;  %v23458_v59 = vrot.slane %v15463_v22, %v24453_v43  ;;  %v23461_v18 = vrot.slane %v15379_v33, %v24453_v43  ;;  %v23464_v21 = vrot.slane %v15395_v4, %v24453_v43  ;;  %v13301_v52 = vpop.f32.mrb[73].mxu0 }
 0x5d8   : > { %v14495_v10 = vcombine.low %v14471_v12, %v23257_v41  ;;  %v14496_v9 = vcombine.high %v14471_v12, %v23257_v41  ;;  %v14511_v36 = vcombine.low %v14478_v11, %v23260_v20  ;;  %v14512_v46 = vcombine.high %v14478_v11, %v23260_v20 }
 0x5d9   : > { %v14427_v5 = vcombine.low %v14403_v35, %v23263_v16  ;;  %v14428_v3 = vcombine.high %v14403_v35, %v23263_v16  ;;  %v14443_v22 = vcombine.low %v14410_v32, %v23266_v14  ;;  %v14444_v33 = vcombine.high %v14410_v32, %v23266_v14 }
 0x5da   : > { %v14503_v4 = vrot.slane %v14495_v10, %v24453_v43  ;;  %v14510_v23 = vrot.slane %v14496_v9, %v24453_v43  ;;  %v14519_v1 = vrot.slane %v14511_v36, %v24453_v43  ;;  %v14526_v41 = vrot.slane %v14512_v46, %v24453_v43  ;;  %v23482_v35 = vpop.f32.mrb[74].mxu0 }
 0x5db   : > { %v14435_v12 = vrot.slane %v14427_v5, %v24453_v43  ;;  %v14442_v20 = vrot.slane %v14428_v3, %v24453_v43  ;;  %v14451_v11 = vrot.slane %v14443_v22, %v24453_v43  ;;  %v14458_v16 = vrot.slane %v14444_v33, %v24453_v43  ;;  %v23484_v31 = vpop.f32.mrb[75].mxu0 }
 0x5dc   : > { %v15551_v6 = vcombine.low %v14503_v4, %v14510_v23  ;;  %v16791_v14 = vcombine.high %v14503_v4, %v14510_v23  ;;  %v15567_v32 = vcombine.low %v14519_v1, %v14526_v41  ;;  %v16792_v10 = vcombine.high %v14519_v1, %v14526_v41 }
 0x5dd   : > { %v15483_v9 = vcombine.low %v14435_v12, %v14442_v20  ;;  %v16789_v36 = vcombine.high %v14435_v12, %v14442_v20  ;;  %v15499_v44 = vcombine.low %v14451_v11, %v14458_v16  ;;  %v16790_v46 = vcombine.high %v14451_v11, %v14458_v16 }
 0x5de   : > { %v23487_v5 = vrot.slane %v15551_v6, %v24441_v17  ;;  %v23490_v3 = vrot.slane %v16791_v14, %v24441_v17  ;;  %v23493_v22 = vrot.slane %v15567_v32, %v24441_v17  ;;  %v23496_v33 = vrot.slane %v16792_v10, %v24441_v17  ;;  %v23510_v41 = vpop.f32.mrb[76].mxu0 }
 0x5df   : > { %v23499_v1 = vrot.slane %v15483_v9, %v24441_v17  ;;  %v23502_v23 = vrot.slane %v16789_v36, %v24441_v17  ;;  %v23505_v4 = vrot.slane %v15499_v44, %v24441_v17  ;;  %v23508_v6 = vrot.slane %v16790_v46, %v24441_v17  ;;  %v23516_v14 = vpop.f32.mrb[77].mxu0 }
 0x5e0   : > { %v14599_v12 = vcombine.low %v23437_v45, %v17515_v2  ;;  %v14600_v20 = vcombine.high %v23437_v45, %v17515_v2  ;;  %v14531_v11 = vcombine.low %v23439_v8, %v13301_v52  ;;  %v14532_v16 = vcombine.high %v23439_v8, %v13301_v52 }
 0x5e1   : > { %v15480_v32 = vcombine.high %v23455_v15, %v23458_v59  ;;  %v15412_v44 = vcombine.high %v23461_v18, %v23464_v21  ;;  %v15448_v10 = vcombine.high %v23413_v57, %v23416_v40  ;;  %v15464_v9 = vcombine.high %v23419_v55, %v23422_v61  ;;  %v23530_v36 = vpop.f32.mrb[80].mxu1 }
 0x5e2   : > { %v14607_v45 = vrot.slane %v14599_v12, %v24441_v17  ;;  %v14614_v2 = vrot.slane %v14600_v20, %v24441_v17  ;;  %v14539_v8 = vrot.slane %v14531_v11, %v24441_v17  ;;  %v14546_v52 = vrot.slane %v14532_v16, %v24441_v17  ;;  %v23542_v55 = vpop.f32.mrb[81].mxu1  ;;  %v15974_v16 = vpop.permute.xlu1 %15973 }
 0x5e3   : > { %15925 = vrot.lane.b32.xlu1 %v15480_v32, %s18241_s7  ;;  %15923 = vrot.lane.b32.xlu0 %v15412_v44, %s18241_s7  ;;  %v23535_v46 = vrot.slane %v15448_v10, %v24453_v43  ;;  %v23538_v57 = vrot.slane %v15464_v9, %v24453_v43  ;;  %v15380_v40 = vcombine.high %v23426_v7, %v23429_v30 }
 0x5e4   : > { %v14631_v61 = vcombine.low %v14607_v45, %v23281_v27  ;;  %v14632_v12 = vcombine.high %v14607_v45, %v23281_v27  ;;  %v14647_v20 = vcombine.low %v14614_v2, %v23284_v63  ;;  %v14648_v11 = vcombine.high %v14614_v2, %v23284_v63 }
 0x5e5   : > { %v14563_v32 = vcombine.low %v14539_v8, %v23289_v58  ;;  %v14564_v44 = vcombine.high %v14539_v8, %v23289_v58  ;;  %v14579_v10 = vcombine.low %v14546_v52, %v23292_v28  ;;  %v14580_v7 = vcombine.high %v14546_v52, %v23292_v28 }
 0x5e6   : > { %v14639_v30 = vrot.slane %v14631_v61, %v24453_v43  ;;  %v14646_v9 = vrot.slane %v14632_v12, %v24453_v43  ;;  %v14655_v27 = vrot.slane %v14647_v20, %v24453_v43  ;;  %v14662_v45 = vrot.slane %v14648_v11, %v24453_v43  ;;  %v16038_v39 = vpop.permute.xlu1 %16037  ;;  %v15910_v20 = vpop.permute.xlu0 %15909 }
 0x5e7   : > { %v14571_v63 = vrot.slane %v14563_v32, %v24453_v43  ;;  %v14578_v2 = vrot.slane %v14564_v44, %v24453_v43  ;;  %v14587_v13 = vrot.slane %v14579_v10, %v24453_v43  ;;  %v14594_v58 = vrot.slane %v14580_v7, %v24453_v43 }
 0x5e8   : > { %v15687_v8 = vcombine.low %v14639_v30, %v14646_v9  ;;  %v16795_v29 = vcombine.high %v14639_v30, %v14646_v9  ;;  %v15703_v28 = vcombine.low %v14655_v27, %v14662_v45  ;;  %v16796_v52 = vcombine.high %v14655_v27, %v14662_v45 }
 0x5e9   : > { %v15619_v61 = vcombine.low %v14571_v63, %v14578_v2  ;;  %v16793_v42 = vcombine.high %v14571_v63, %v14578_v2  ;;  %v15635_v12 = vcombine.low %v14587_v13, %v14594_v58  ;;  %v16794_v51 = vcombine.high %v14587_v13, %v14594_v58 }
 0x5ea   : > { %v23561_v11 = vrot.slane %v15687_v8, %v24441_v17  ;;  %v23564_v32 = vrot.slane %v16795_v29, %v24441_v17  ;;  %v23567_v44 = vrot.slane %v15703_v28, %v24441_v17  ;;  %v23570_v10 = vrot.slane %v16796_v52, %v24441_v17  ;;  %v15908_v8 = vpop.permute.xlu1 %15907 }
 0x5eb   : > { %v23573_v7 = vrot.slane %v15619_v61, %v24441_v17  ;;  %v23576_v30 = vrot.slane %v16793_v42, %v24441_v17  ;;  %v23579_v13 = vrot.slane %v15635_v12, %v24441_v17  ;;  %v23582_v9 = vrot.slane %v16794_v51, %v24441_v17 }
 0x5ec   : > { %v24641_v29 = vcombine.low %v23085_v53, %v23088_v48  ;;  %v15481_v45 = vcombine.low %v23535_v46, %v23538_v57  ;;  %v15394_v63 = vrot.slane %v15380_v40, %v24453_v43  ;;  %v15396_v42 = vcombine.high %v23432_v0, %v23435_v24 }
 0x5ed   : > { %v14735_v2 = vcombine.low %v23482_v35, %v23510_v41  ;;  %v14736_v51 = vcombine.high %v23482_v35, %v23510_v41  ;;  %v14667_v58 = vcombine.low %v23484_v31, %v23516_v14  ;;  %v14668_v53 = vcombine.high %v23484_v31, %v23516_v14 }
 0x5ee   : > { %v16084_v27 = vsel %vm7570_vm1, %v24641_v29, %v15910_v20  ;;  %15989 = vrot.lane.b32.xlu1 %v15481_v45, %s18240_s30  ;;  %v15410_v48 = vrot.slane %v15396_v42, %v24453_v43  ;;  %v15482_v0 = vcombine.high %v23535_v46, %v23538_v57  ;;  %v14751_v24 = vcombine.low %v23337_v62, %v23530_v36 }
 0x5ef   : > { %v16101_v40 = vsel %vm16099_vm3, %v16084_v27, %v15974_v16  ;;  %v14743_v35 = vrot.slane %v14735_v2, %v24441_v17  ;;  %v14750_v41 = vrot.slane %v14736_v51, %v24441_v17  ;;  %v14675_v28 = vrot.slane %v14667_v58, %v24441_v17 }
 0x5f0   : > { %v14682_v31 = vrot.slane %v14668_v53, %v24441_v17  ;;  %v15413_v14 = vcombine.low %v15394_v63, %v15410_v48  ;;  %v23613_v52 = vsel %vm16116_vm4, %v16101_v40, %v16038_v39  ;;  %v14752_v16 = vcombine.high %v23337_v62, %v23530_v36 }
 0x5f1   : > { %v14759_v46 = vrot.slane %v14751_v24, %v24441_v17  ;;  %v15414_v57 = vcombine.high %v15394_v63, %v15410_v48  ;;  %v14683_v61 = vcombine.low %v23339_v34, %v23542_v55  ;;  %v14684_v12 = vcombine.high %v23339_v34, %v23542_v55 }
 0x5f2   : > { %v24642_v20 = vcombine.low %v23093_v26, %v23096_v50  ;;  %15987 = vrot.lane.b32.xlu0 %v15413_v14, %s18240_s30  ;;  %16053 = vrot.lane.b32.xlu1 %v15482_v0, %s18242_s13  ;;  %v14766_v62 = vrot.slane %v14752_v16, %v24441_v17  ;;  %v15583_v34 = vcombine.low %v23487_v5, %v23490_v3 }
 0x5f3   : > { %v14767_v39 = vcombine.low %v14743_v35, %v14759_v46  ;;  %v14768_v36 = vcombine.high %v14743_v35, %v14759_v46  ;;  %v14691_v27 = vrot.slane %v14683_v61, %v24441_v17  ;;  %v14698_v45 = vrot.slane %v14684_v12, %v24441_v17 }
 0x5f4   : > { %v16083_v29 = vsel %vm7570_vm1, %v24642_v20, %v15908_v8  ;;  %v15599_v26 = vcombine.low %v23493_v22, %v23496_v33  ;;  %v14783_v63 = vcombine.low %v14750_v41, %v14766_v62  ;;  %v14784_v42 = vcombine.high %v14750_v41, %v14766_v62  ;;  %v15972_v62 = vpop.permute.xlu1 %15971 }
 0x5f5   : > { %v14775_v50 = vrot.slane %v14767_v39, %v24453_v43  ;;  %v14782_v55 = vrot.slane %v14768_v36, %v24453_v43  ;;  %v14699_v2 = vcombine.low %v14675_v28, %v14691_v27  ;;  %v14700_v51 = vcombine.high %v14675_v28, %v14691_v27 }
 0x5f6   : > { %v14715_v58 = vcombine.low %v14682_v31, %v14698_v45  ;;  %v14716_v53 = vcombine.high %v14682_v31, %v14698_v45  ;;  %v14791_v48 = vrot.slane %v14783_v63, %v24453_v43  ;;  %v14798_v40 = vrot.slane %v14784_v42, %v24453_v43  ;;  %16051 = vrot.lane.b32.xlu0 %v15414_v57, %s18242_s13 }
 0x5f7   : > { %v15823_v0 = vcombine.low %v14775_v50, %v14782_v55  ;;  %v16799_v24 = vcombine.high %v14775_v50, %v14782_v55  ;;  %v14707_v8 = vrot.slane %v14699_v2, %v24453_v43  ;;  %v14714_v35 = vrot.slane %v14700_v51, %v24453_v43 }
 0x5f8   : > { %v14723_v14 = vrot.slane %v14715_v58, %v24453_v43  ;;  %v14730_v41 = vrot.slane %v14716_v53, %v24453_v43  ;;  %v15839_v16 = vcombine.low %v14791_v48, %v14798_v40  ;;  %v16800_v46 = vcombine.high %v14791_v48, %v14798_v40  ;;  %v16036_v58 = vpop.permute.xlu0 %16035 }
 0x5f9   : > { %v23645_v28 = vrot.slane %v15823_v0, %v24441_v17  ;;  %v23648_v31 = vrot.slane %v16799_v24, %v24441_v17  ;;  %v15755_v61 = vcombine.low %v14707_v8, %v14714_v35  ;;  %v16797_v12 = vcombine.high %v14707_v8, %v14714_v35 }
 0x5fa   : > { %v15771_v20 = vcombine.low %v14723_v14, %v14730_v41  ;;  %v16798_v57 = vcombine.high %v14723_v14, %v14730_v41  ;;  %v23651_v39 = vrot.slane %v15839_v16, %v24441_v17  ;;  %v23654_v36 = vrot.slane %v16800_v46, %v24441_v17 }
 0x5fb   : > { %v23657_v27 = vrot.slane %v15583_v34, %v24453_v43  ;;  %v23660_v45 = vrot.slane %v15599_v26, %v24453_v43  ;;  %v23663_v50 = vrot.slane %v15755_v61, %v24441_v17  ;;  %v23666_v55 = vrot.slane %v16797_v12, %v24441_v17 }
 0x5fc   : > { %v23669_v63 = vrot.slane %v15771_v20, %v24441_v17  ;;  %v23672_v42 = vrot.slane %v16798_v57, %v24441_v17  ;;  %v15515_v34 = vcombine.low %v23499_v1, %v23502_v23  ;;  %v15531_v26 = vcombine.low %v23505_v4, %v23508_v6 }
 0x5fd   : > { %v15616_v2 = vcombine.high %v23657_v27, %v23660_v45  ;;  %v16100_v51 = vsel %vm16099_vm3, %v16083_v29, %v15972_v62  ;;  %v15584_v53 = vcombine.high %v23487_v5, %v23490_v3  ;;  %v15600_v48 = vcombine.high %v23493_v22, %v23496_v33 }
 0x5fe   : > { %v15516_v17 = vcombine.high %v23499_v1, %v23502_v23  ;;  %v15532_v40 = vcombine.high %v23505_v4, %v23508_v6  ;;  %v23691_v0 = vrot.slane %v15515_v34, %v24453_v43  ;;  %v23694_v29 = vrot.slane %v15531_v26, %v24453_v43 }
 0x5ff   : > { %15929 = vrot.lane.b32.xlu1 %v15616_v2, %s18241_s7  ;;  %v16117_v24 = vsel %vm16116_vm4, %v16100_v51, %v16036_v58  ;;  %v15719_v5 = vcombine.low %v23561_v11, %v23564_v32  ;;  %v15598_v3 = vrot.slane %v15584_v53, %v24453_v43  ;;  %v15614_v22 = vrot.slane %v15600_v48, %v24453_v43 }
 0x600   : > { %v15530_v33 = vrot.slane %v15516_v17, %v24453_v43  ;;  %v15546_v1 = vrot.slane %v15532_v40, %v24453_v43  ;;  %17567 = vmatprep.mubr.msk.f32.mxu0 %vm320_vm0, %v16117_v24  ;;  %v15548_v23 = vcombine.high %v23691_v0, %v23694_v29  ;;  %v15735_v6 = vcombine.low %v23567_v44, %v23570_v10 }
 0x601   : > { %17568 = vmatmul.mubr.msk.f32.vlgmr.msra.gmra.mrb[78].mxu0 %vm320_vm0, %v23613_v52  ;;  %v23709_v4 = vrot.slane %v15719_v5, %v24453_v43  ;;  %v15651_v8 = vcombine.low %v23573_v7, %v23576_v30  ;;  %v15617_v35 = vcombine.low %v15598_v3, %v15614_v22  ;;  %v15618_v41 = vcombine.high %v15598_v3, %v15614_v22 }
 0x602   : > { %v15549_v14 = vcombine.low %v15530_v33, %v15546_v1  ;;  %v15550_v16 = vcombine.high %v15530_v33, %v15546_v1  ;;  %15927 = vrot.lane.b32.xlu0 %v15548_v23, %s18241_s7  ;;  %v23717_v46 = vrot.slane %v15735_v6, %v24453_v43  ;;  %v15667_v61 = vcombine.low %v23579_v13, %v23582_v9 }
 0x603   : > { %v23720_v52 = vrot.slane %v15651_v8, %v24453_v43  ;;  %v15720_v12 = vcombine.high %v23561_v11, %v23564_v32  ;;  %15993 = vrot.lane.b32.xlu1 %v15617_v35, %s18240_s30  ;;  %v15736_v20 = vcombine.high %v23567_v44, %v23570_v10  ;;  %v15652_v57 = vcombine.high %v23573_v7, %v23576_v30 }
 0x604   : > { %v15668_v62 = vcombine.high %v23579_v13, %v23582_v9  ;;  %v15855_v2 = vcombine.low %v23645_v28, %v23648_v31  ;;  %v15752_v34 = vcombine.high %v23709_v4, %v23717_v46  ;;  %v23738_v26 = vrot.slane %v15667_v61, %v24453_v43 }
 0x605   : > { %v15734_v11 = vrot.slane %v15720_v12, %v24453_v43  ;;  %v15871_v32 = vcombine.low %v23651_v39, %v23654_v36  ;;  %v15750_v44 = vrot.slane %v15736_v20, %v24453_v43  ;;  %v15666_v10 = vrot.slane %v15652_v57, %v24453_v43 }
 0x606   : > { %v15682_v7 = vrot.slane %v15668_v62, %v24453_v43  ;;  %v23747_v30 = vrot.slane %v15855_v2, %v24453_v43  ;;  %15991 = vrot.lane.b32.xlu0 %v15549_v14, %s18240_s30  ;;  %v15684_v13 = vcombine.high %v23720_v52, %v23738_v26  ;;  %v15787_v51 = vcombine.low %v23663_v50, %v23666_v55 }
 0x607   : > { %v23753_v9 = vrot.slane %v15871_v32, %v24453_v43  ;;  %v15803_v58 = vcombine.low %v23669_v63, %v23672_v42  ;;  %16057 = vrot.lane.b32.xlu1 %v15618_v41, %s18242_s13  ;;  %v15753_v53 = vcombine.low %v15734_v11, %v15750_v44  ;;  %v15754_v17 = vcombine.high %v15734_v11, %v15750_v44 }
 0x608   : > { %v15685_v48 = vcombine.low %v15666_v10, %v15682_v7  ;;  %v15686_v40 = vcombine.high %v15666_v10, %v15682_v7  ;;  %v23763_v5 = vrot.slane %v15787_v51, %v24453_v43  ;;  %v15856_v22 = vcombine.high %v23645_v28, %v23648_v31 }
 0x609   : > { %v15888_v24 = vcombine.high %v23747_v30, %v23753_v9  ;;  %v23766_v3 = vrot.slane %v15803_v58, %v24453_v43  ;;  %v15872_v33 = vcombine.high %v23651_v39, %v23654_v36  ;;  %v15788_v1 = vcombine.high %v23663_v50, %v23666_v55 }
 0x60a   : > { %v15804_v23 = vcombine.high %v23669_v63, %v23672_v42  ;;  %16055 = vrot.lane.b32.xlu0 %v15550_v16, %s18242_s13  ;;  %v15870_v8 = vrot.slane %v15856_v22, %v24453_v43  ;;  %v15479_v35 = vcombine.low %v23455_v15, %v23458_v59  ;;  %v15411_v28 = vcombine.low %v23461_v18, %v23464_v21 }
 0x60b   : > { %v15820_v6 = vcombine.high %v23763_v5, %v23766_v3  ;;  %15933 = vrot.lane.b32.xlu1 %v15752_v34, %s18241_s7  ;;  %v15886_v31 = vrot.slane %v15872_v33, %v24453_v43  ;;  %v15802_v39 = vrot.slane %v15788_v1, %v24453_v43  ;;  %v15615_v50 = vcombine.low %v23657_v27, %v23660_v45 }
 0x60c   : > { %v15818_v36 = vrot.slane %v15804_v23, %v24453_v43  ;;  %v15547_v55 = vcombine.low %v23691_v0, %v23694_v29  ;;  %v15751_v63 = vcombine.low %v23709_v4, %v23717_v46  ;;  %v15683_v42 = vcombine.low %v23720_v52, %v23738_v26 }
 0x60d   : > { %v15887_v14 = vcombine.low %v23747_v30, %v23753_v9  ;;  %v15889_v41 = vcombine.low %v15870_v8, %v15886_v31  ;;  %v15890_v61 = vcombine.high %v15870_v8, %v15886_v31  ;;  %v15819_v43 = vcombine.low %v23763_v5, %v23766_v3  ;;  %v15914_v20 = vpop.permute.xlu1 %15913  ;;  %v15912_v57 = vpop.permute.xlu0 %15911  ;;  %v16801_v5 = vld [vmem:[%s23957_s4] ss:$0 sm:$0xff] }
 0x60e   : > { %v15821_v16 = vcombine.low %v15802_v39, %v15818_v36  ;;  %v15822_v12 = vcombine.high %v15802_v39, %v15818_v36  ;;  %15931 = vrot.lane.b32.xlu0 %v15684_v13, %s18241_s7  ;;  %v24643_v34 = vcombine.low %v23177_v60, %v23180_v54  ;;  %v24644_v44 = vcombine.low %v23171_v19, %v23174_v56 }
 0x60f   : > { %15997 = vrot.lane.b32.xlu1 %v15753_v53, %s18240_s30 }
 0x610   : > { %v16085_v11 = vsel %vm7570_vm1, %v24643_v34, %v15912_v57  ;;  %v16086_v10 = vsel %vm7570_vm1, %v24644_v44, %v15914_v20 }
 0x611   : > { %v15978_v62 = vpop.permute.xlu1 %15977 }
 0x612   : > { %15995 = vrot.lane.b32.xlu0 %v15685_v48, %s18240_s30  ;;  %v15976_v2 = vpop.permute.xlu0 %15975  ;;  %v16103_v51 = vsel %vm16099_vm3, %v16086_v10, %v15978_v62 }
 0x613   : > { %16061 = vrot.lane.b32.xlu1 %v15754_v17, %s18242_s13  ;;  %v16102_v7 = vsel %vm16099_vm3, %v16085_v11, %v15976_v2  ;;  %v24645_v17 = vcombine.low %v23275_v49, %v23278_v47 }
 0x615   : > { %v16042_v32 = vpop.permute.xlu1 %16041 }
 0x616   : > { %16059 = vrot.lane.b32.xlu0 %v15686_v40, %s18242_s13  ;;  %v16040_v13 = vpop.permute.xlu0 %16039  ;;  %v16120_v53 = vsel %vm16116_vm4, %v16103_v51, %v16042_v32 }
 0x617   : > { %15937 = vrot.lane.b32.xlu1 %v15888_v24, %s18241_s7  ;;  %v16119_v58 = vsel %vm16116_vm4, %v16102_v7, %v16040_v13  ;;  %v24646_v24 = vcombine.low %v23269_v25, %v23272_v38  ;;  %v24647_v25 = vld [vmem:[#allocation21_spill] sm:$0xff] }
 0x618   : > { %17570 = vmatprep.mubr.msk.f32.mxu0 %vm320_vm0, %v16119_v58  ;;  %v15275_v38 = vcombine.low %v24647_v25, %v23365_v37 }
 0x619   : > { %17571 = vmatmul.mubr.msk.f32.gmra.mrb[80].mxu0 %vm320_vm0, %v16120_v53 }
 0x61a   : > { %15935 = vrot.lane.b32.xlu0 %v15820_v6, %s18241_s7 }
 0x61b   : > { %16001 = vrot.lane.b32.xlu1 %v15889_v41, %s18240_s30 }
 0x61e   : > { %15999 = vrot.lane.b32.xlu0 %v15821_v16, %s18240_s30  ;;  %v24648_v16 = vld [vmem:[#allocation68_spill] sm:$0xff] }
 0x61f   : > { %16065 = vrot.lane.b32.xlu1 %v15890_v61, %s18242_s13  ;;  %v24649_v61 = vld [vmem:[#allocation13_spill] sm:$0xff] }
 0x622   : > { %16063 = vrot.lane.b32.xlu0 %v15822_v12, %s18242_s13  ;;  %v24650_v12 = vcombine.low %v24648_v16, %v24649_v61 }
 0x629   : > { %v15918_v19 = vpop.permute.xlu1 %15917 }
 0x62a   : > { %v15916_v56 = vpop.permute.xlu0 %15915  ;;  %v16088_v22 = vsel %vm7570_vm1, %v24646_v24, %v15918_v19 }
 0x62b   : > { %v16087_v40 = vsel %vm7570_vm1, %v24645_v17, %v15916_v56 }
 0x62e   : > { %v15982_v60 = vpop.permute.xlu1 %15981 }
 0x62f   : > { %v16105_v23 = vsel %vm16099_vm3, %v16088_v22, %v15982_v60 }
 0x637   : > { %v15980_v54 = vpop.permute.xlu0 %15979  ;;  %v16046_v48 = vpop.permute.xlu1 %16045 }
 0x638   : > { %v16104_v33 = vsel %vm16099_vm3, %v16087_v40, %v15980_v54  ;;  %v16122_v31 = vsel %vm16116_vm4, %v16105_v23, %v16046_v48 }
 0x63b   : > { %v16044_v1 = vpop.permute.xlu0 %16043 }
 0x63c   : > { %v16121_v6 = vsel %vm16116_vm4, %v16104_v33, %v16044_v1  ;;  %v15922_v8 = vpop.permute.xlu1 %15921 }
 0x63d   : > { %17573 = vmatprep.mubr.msk.f32.mxu0 %vm320_vm0, %v16121_v6  ;;  %v16090_v20 = vsel %vm7570_vm1, %v24650_v12, %v15922_v8 }
 0x63e   : > { %17574 = vmatmul.mubr.msk.f32.gmra.mrb[82].mxu0 %vm320_vm0, %v16122_v31 }
 0x63f   : > { %v15920_v49 = vpop.permute.xlu0 %15919 }
 0x640   : > { %v15986_v47 = vpop.permute.xlu1 %15985  ;;  %v16089_v36 = vsel %vm7570_vm1, %v15275_v38, %v15920_v49 }
 0x641   : > { %v16107_v2 = vsel %vm16099_vm3, %v16090_v20, %v15986_v47 }
 0x643   : > { %v15984_v39 = vpop.permute.xlu0 %15983 }
 0x644   : > { %v16050_v41 = vpop.permute.xlu1 %16049  ;;  %v16106_v57 = vsel %vm16099_vm3, %v16089_v36, %v15984_v39 }
 0x645   : > { %v16124_v11 = vsel %vm16116_vm4, %v16107_v2, %v16050_v41 }
 0x647   : > { %v16048_v62 = vpop.permute.xlu0 %16047 }
 0x648   : > { %v16123_v34 = vsel %vm16116_vm4, %v16106_v57, %v16048_v62 }
 0x649   : > { %17576 = vmatprep.mubr.msk.f32.mxu0 %vm320_vm0, %v16123_v34 }
 0x64a   : > { %17577 = vmatmul.mubr.msk.f32.gmra.mrb[84].mxu0 %vm320_vm0, %v16124_v11 }
 0x655   : > { %v15926_v37 = vpop.permute.xlu1 %15925  ;;  %v15924_v32 = vpop.permute.xlu0 %15923 }
 0x656   : > { %v16091_v7 = vsel %vm7570_vm1, %v15411_v28, %v15924_v32  ;;  %v16092_v51 = vsel %vm7570_vm1, %v15479_v35, %v15926_v37 }
 0x660   : > { %v15990_v44 = vpop.permute.xlu1 %15989 }
 0x661   : > { %v16109_v19 = vsel %vm16099_vm3, %v16092_v51, %v15990_v44 }
 0x664   : > { %v15988_v10 = vpop.permute.xlu0 %15987  ;;  %v16054_v13 = vpop.permute.xlu1 %16053 }
 0x665   : > { %v16108_v58 = vsel %vm16099_vm3, %v16091_v7, %v15988_v10  ;;  %v16126_v60 = vsel %vm16116_vm4, %v16109_v19, %v16054_v13 }
 0x668   : > { %v16052_v53 = vpop.permute.xlu0 %16051 }
 0x669   : > { %v16125_v56 = vsel %vm16116_vm4, %v16108_v58, %v16052_v53 }
 0x66a   : > { %17579 = vmatprep.mubr.msk.f32.mxu0 %vm320_vm0, %v16125_v56 }
 0x66b   : > { %17580 = vmatmul.mubr.msk.f32.gmra.mrb[86].mxu0 %vm320_vm0, %v16126_v60 }
 0x671   : > { %v15930_v18 = vpop.permute.xlu1 %15929 }
 0x672   : > { %v16094_v35 = vsel %vm7570_vm1, %v15615_v50, %v15930_v18 }
 0x674   : > { %v15928_v21 = vpop.permute.xlu0 %15927 }
 0x675   : > { %v15994_v28 = vpop.permute.xlu1 %15993  ;;  %v16093_v59 = vsel %vm7570_vm1, %v15547_v55, %v15928_v21 }
 0x676   : > { %v16111_v40 = vsel %vm16099_vm3, %v16094_v35, %v15994_v28 }
 0x678   : > { %v15992_v54 = vpop.permute.xlu0 %15991 }
 0x679   : > { %v16058_v15 = vpop.permute.xlu1 %16057  ;;  %v16110_v48 = vsel %vm16099_vm3, %v16093_v59, %v15992_v54 }
 0x67a   : > { %v16128_v33 = vsel %vm16116_vm4, %v16111_v40, %v16058_v15 }
 0x67c   : > { %v16056_v17 = vpop.permute.xlu0 %16055 }
 0x67d   : > { %v16127_v24 = vsel %vm16116_vm4, %v16110_v48, %v16056_v17  ;;  %v15934_v22 = vpop.permute.xlu1 %15933 }
 0x67e   : > { %17582 = vmatprep.mubr.msk.f32.mxu0 %vm320_vm0, %v16127_v24  ;;  %v16096_v50 = vsel %vm7570_vm1, %v15751_v63, %v15934_v22 }
 0x67f   : > { %17583 = vmatmul.mubr.msk.f32.gmra.mrb[88].mxu0 %vm320_vm0, %v16128_v33 }
 0x680   : > { %v15932_v0 = vpop.permute.xlu0 %15931 }
 0x681   : > { %v15998_v29 = vpop.permute.xlu1 %15997  ;;  %v16095_v45 = vsel %vm7570_vm1, %v15683_v42, %v15932_v0 }
 0x682   : > { %v16113_v6 = vsel %vm16099_vm3, %v16096_v50, %v15998_v29 }
 0x684   : > { %v15996_v55 = vpop.permute.xlu0 %15995 }
 0x685   : > { %v16062_v27 = vpop.permute.xlu1 %16061  ;;  %v16112_v1 = vsel %vm16099_vm3, %v16095_v45, %v15996_v55 }
 0x686   : > { %v16130_v49 = vsel %vm16116_vm4, %v16113_v6, %v16062_v27 }
 0x688   : > { %v16060_v23 = vpop.permute.xlu0 %16059 }
 0x689   : > { %v16129_v8 = vsel %vm16116_vm4, %v16112_v1, %v16060_v23  ;;  %v15938_v31 = vpop.permute.xlu1 %15937 }
 0x68a   : > { %17585 = vmatprep.mubr.msk.f32.mxu0 %vm320_vm0, %v16129_v8  ;;  %v16098_v42 = vsel %vm7570_vm1, %v15887_v14, %v15938_v31 }
 0x68b   : > { %17586 = vmatmul.mubr.msk.f32.gmra.mrb[90].mxu0 %vm320_vm0, %v16130_v49 }
 0x68c   : > { %v15936_v52 = vpop.permute.xlu0 %15935 }
 0x68d   : > { %v16002_v26 = vpop.permute.xlu1 %16001  ;;  %v16097_v46 = vsel %vm7570_vm1, %v15819_v43, %v15936_v52 }
 0x68e   : > { %v16115_v25 = vsel %vm16099_vm3, %v16098_v42, %v16002_v26 }
 0x690   : > { %v16000_v4 = vpop.permute.xlu0 %15999 }
 0x691   : > { %v16066_v63 = vpop.permute.xlu1 %16065  ;;  %v16114_v47 = vsel %vm16099_vm3, %v16097_v46, %v16000_v4 }
 0x692   : > { %v16132_v36 = vsel %vm16116_vm4, %v16115_v25, %v16066_v63 }
 0x694   : > { %v16064_v39 = vpop.permute.xlu0 %16063 }
 0x695   : > { %v16131_v38 = vsel %vm16116_vm4, %v16114_v47, %v16064_v39 }
 0x696   : > { %17588 = vmatprep.mubr.msk.f32.mxu0 %vm320_vm0, %v16131_v38 }
 0x697   : > { %17589 = vmatmul.mubr.msk.f32.gmra.mrb[92].mxu0 %vm320_vm0, %v16132_v36 }
 0x6d4   : > { %v17569_v30 = vpop.f32.mrb[78].mxu0 }
 0x6d5   : > { %v16268_v9 = vadd.f32 %v17569_v30, %v16801_v5  ;;  %v16262_v3 = vpop.f32.mrb[79].mxu0 }
 0x6d6   : > { %v16263_v14 = vadd.f32 %v16801_v5, %v16262_v3 }
 0x6d7   : > { %16342 = vst.msk [vmem:[%s23916_s27 + $0x8] sm:$0xff] %vm320_vm0, %v16268_v9 }
 0x6d8   : > { %16341 = vst.msk [vmem:[%s23916_s27] sm:$0xff] %vm320_vm0, %v16263_v14 }
 0x6ec   : > { %v17572_v43 = vpop.f32.mrb[80].mxu0 }
 0x6ed   : > { %v16278_v41 = vadd.f32 %v17572_v43, %v16801_v5  ;;  %v16272_v16 = vpop.f32.mrb[81].mxu0 }
 0x6ee   : > { %v16273_v61 = vadd.f32 %v16801_v5, %v16272_v16 }
 0x6ef   : > { %16344 = vst.msk [vmem:[%s23916_s27 + $0x18] sm:$0xff] %vm320_vm0, %v16278_v41 }
 0x6f0   : > { %16343 = vst.msk [vmem:[%s23916_s27 + $0x10] sm:$0xff] %vm320_vm0, %v16273_v61 }
 0x711   : > { %v17575_v12 = vpop.f32.mrb[82].mxu0 }
 0x712   : > { %v16288_v20 = vadd.f32 %v17575_v12, %v16801_v5  ;;  %v16282_v57 = vpop.f32.mrb[83].mxu0 }
 0x713   : > { %v16283_v62 = vadd.f32 %v16801_v5, %v16282_v57 }
 0x714   : > { %16346 = vst.msk [vmem:[%s23916_s27 + $0x28] sm:$0xff] %vm320_vm0, %v16288_v20 }
 0x715   : > { %16345 = vst.msk [vmem:[%s23916_s27 + $0x20] sm:$0xff] %vm320_vm0, %v16283_v62 }
 0x71d   : > { %v17578_v2 = vpop.f32.mrb[84].mxu0 }
 0x71e   : > { %v16298_v34 = vadd.f32 %v17578_v2, %v16801_v5  ;;  %v16292_v11 = vpop.f32.mrb[85].mxu0 }
 0x71f   : > { %v16293_v37 = vadd.f32 %v16801_v5, %v16292_v11 }
 0x720   : > { %16348 = vst.msk [vmem:[%s23916_s27 + $0x38] sm:$0xff] %vm320_vm0, %v16298_v34 }
 0x721   : > { %16347 = vst.msk [vmem:[%s23916_s27 + $0x30] sm:$0xff] %vm320_vm0, %v16293_v37 }
 0x73e   : > { %v17581_v32 = vpop.f32.mrb[86].mxu0 }
 0x73f   : > { %v16308_v44 = vadd.f32 %v17581_v32, %v16801_v5  ;;  %v16302_v10 = vpop.f32.mrb[87].mxu0 }
 0x740   : > { %v16303_v7 = vadd.f32 %v16801_v5, %v16302_v10 }
 0x741   : > { %16350 = vst.msk [vmem:[%s23916_s27 + $0x48] sm:$0xff] %vm320_vm0, %v16308_v44 }
 0x742   : > { %16349 = vst.msk [vmem:[%s23916_s27 + $0x40] sm:$0xff] %vm320_vm0, %v16303_v7 }
 0x752   : > { %v17584_v13 = vpop.f32.mrb[88].mxu0 }
 0x753   : > { %v16318_v51 = vadd.f32 %v17584_v13, %v16801_v5  ;;  %v16312_v58 = vpop.f32.mrb[89].mxu0 }
 0x754   : > { %v16313_v53 = vadd.f32 %v16801_v5, %v16312_v58 }
 0x755   : > { %16352 = vst.msk [vmem:[%s23916_s27 + $0x58] sm:$0xff] %vm320_vm0, %v16318_v51 }
 0x756   : > { %16351 = vst.msk [vmem:[%s23916_s27 + $0x50] sm:$0xff] %vm320_vm0, %v16313_v53 }
 0x75e   : > { %v17587_v19 = vpop.f32.mrb[90].mxu0 }
 0x75f   : > { %v16328_v56 = vadd.f32 %v17587_v19, %v16801_v5  ;;  %v16322_v60 = vpop.f32.mrb[91].mxu0 }
 0x760   : > { %v16323_v18 = vadd.f32 %v16801_v5, %v16322_v60 }
 0x761   : > { %16354 = vst.msk [vmem:[%s23916_s27 + $0x68] sm:$0xff] %vm320_vm0, %v16328_v56 }
 0x762   : > { %16353 = vst.msk [vmem:[%s23916_s27 + $0x60] sm:$0xff] %vm320_vm0, %v16323_v18 }
 0x76a   : > { %v17590_v21 = vpop.f32.mrb[92].mxu0 }
 0x76b   : > { %v16338_v28 = vadd.f32 %v17590_v21, %v16801_v5  ;;  %v16332_v54 = vpop.f32.mrb[93].mxu0 }
 0x76c   : > { %v16333_v15 = vadd.f32 %v16801_v5, %v16332_v54 }
 0x76d   : > { %16356 = vst.msk [vmem:[%s23916_s27 + $0x78] sm:$0xff] %vm320_vm0, %v16338_v28 }
 0x76e   : > { %16355 = vst.msk [vmem:[%s23916_s27 + $0x70] sm:$0xff] %vm320_vm0, %v16333_v15 }
 0x76f PF: > { %s17_s21 = sadd.s32 1, %s18231_s21  }
 0x770   : > { %p14_p4 = scmp.ge.s32.totalorder %s17_s21, 6  }
 0x772   :  { %16 = sbr.rel (!%p14_p4) target bundleno = 1 (0x1), region = 82 }

</bundles_post_ra>
